<compile_context>
chip_gen: v5e
topology: v5e:2x2
jax: 0.10.0
libtpu: 0.0.40
codegen_flags: <defaults>
</compile_context>

<pallas_src>
import jax
import jax.numpy as jnp
import numpy as np
from jax.experimental import pallas as pl
from jax.experimental.pallas import tpu as pltpu

EOS_token = 1
SOS_token = 0

# Small, deterministic synthetic sizes (original: embed=256, hidden=512, vocab=len(pkl)).
EMBED = 32
HIDDEN = 64
IN_VOCAB = 40    # stands in for len(en_index2token)
OUT_VOCAB = 48   # stands in for len(fr_index2token)

# Lane-padded sizes (multiples of 128 for lane-dense vregs / stores).
E_PAD = 128
H_PAD = 128
V_PAD = 128


# ----------------------------- fused Pallas kernel --------------------------

def _seq2seq_kernel(src_ref, tgt_ref, tf_ref,                       # SMEM int32
                    enc_emb_ref, enc_w_ref, enc_b_ref,
                    dec_emb_ref, dec_w_ref, dec_b_ref,
                    out_w_ref, out_b_ref,                           # VMEM f32
                    out_ref):                                       # (T, V_PAD) f32
    input_length = src_ref.shape[0]
    target_length = out_ref.shape[0]

    def gru_step(x, h, w, b):
        # Single gate-fused matmul; columns of g are [r | z | n_input | n_hidden].
        xh = jnp.concatenate([x, h], axis=-1)                       # (1, E_PAD + H_PAD)
        g = jnp.dot(xh, w, preferred_element_type=jnp.float32) + b  # (1, 4*H_PAD)
        r = jax.nn.sigmoid(g[:, 0:H_PAD])
        z = jax.nn.sigmoid(g[:, H_PAD:2 * H_PAD])
        n = jnp.tanh(g[:, 2 * H_PAD:3 * H_PAD] + r * g[:, 3 * H_PAD:4 * H_PAD])
        return (1.0 - z) * n + z * h

    # ---- Encoder ----
    # PyTorch reference re-starts from a zero hidden state on every source token,
    # so only the last token's single GRU step survives; compute exactly that one.
    last_tok = src_ref[input_length - 1]
    x_enc = enc_emb_ref[pl.ds(last_tok, 1), :]                      # (1, E_PAD)
    h = gru_step(x_enc, jnp.zeros((1, H_PAD), jnp.float32),
                 enc_w_ref[...], enc_b_ref[...])

    # ---- Hoisted loop invariants ----
    lane_ids = jax.lax.broadcasted_iota(jnp.int32, (1, V_PAD), 1)
    lane_f = lane_ids.astype(jnp.float32)
    neg_lane_f = -lane_f
    lane_valid = lane_ids < OUT_VOCAB
    row_ids = jax.lax.broadcasted_iota(jnp.int32, (target_length, 1), 0)
    dec_emb = dec_emb_ref[...]         # relu already folded in at pack time
    dec_w = dec_w_ref[...]
    dec_b = dec_b_ref[...]
    out_w = out_w_ref[...]
    out_bias = out_b_ref[...]          # -inf on padded vocab lanes baked in at pack time

    tok_vec = jnp.full((1, 1), float(SOS_token), jnp.float32)       # next-token as vector
    active = jnp.ones((1, 1), jnp.float32)   # replaces the data-dependent `break`
    acc_out = jnp.zeros((target_length, V_PAD), jnp.float32)

    # ---- Decoder (statically unrolled time loop, T is small & fixed) ----
    for t in range(target_length):
        # Embedding gather via one-hot matmul (no vector->scalar readback).
        onehot = jnp.where(lane_f == tok_vec, 1.0, 0.0)             # (1, V_PAD)
        x_dec = jnp.dot(onehot, dec_emb, preferred_element_type=jnp.float32)  # (1, E_PAD)
        h = gru_step(x_dec, h, dec_w, dec_b)

        logits = (jnp.dot(h, out_w, preferred_element_type=jnp.float32)
                  + out_bias)                                       # (1, V_PAD), pads=-inf
        m = jnp.max(logits, axis=-1, keepdims=True)
        s = logits - m
        lse = jnp.log(jnp.sum(jnp.exp(s), axis=-1, keepdims=True))
        pred = s - lse                                              # log_softmax

        # outputs[t] = pred (zeroed once the simulated `break` has triggered;
        # padded lanes zeroed so the stored tile stays finite).  Accumulated in
        # registers; single full-tile store after the loop.
        write_row = jnp.where(lane_valid, pred, 0.0) * active       # (1, V_PAD)
        row_sel = jnp.where(row_ids == t, 1.0, 0.0)                 # (T, 1)
        acc_out = acc_out + row_sel * write_row

        # topk(1): reuse the softmax max (pred == max(pred) <=> logits == m);
        # ties pick the smallest index (torch/np first-occurrence behaviour).
        neg_idx = jnp.where(logits == m, neg_lane_f, -jnp.inf)
        topi_vec = -jnp.max(neg_idx, axis=-1, keepdims=True)        # (1, 1) f32

        # Teacher forcing select + simulated break, all in f32 arithmetic
        # (no boolean scalar->vector broadcasts).
        tf_f = tf_ref[t].astype(jnp.float32)                        # 1.0 if teacher force
        tgt_f = tgt_ref[t].astype(jnp.float32)
        next_tok = tf_f * tgt_f + (1.0 - tf_f) * topi_vec           # (1, 1)
        eos_hit = jnp.where(topi_vec == float(EOS_token), 1.0, 0.0) # (1, 1)
        active = active * (1.0 - (1.0 - tf_f) * eos_hit)
        tok_vec = next_tok

    out_ref[...] = acc_out   # one unmasked (T, V_PAD) store


# ----------------------------- parameters ----------------------------------

def init_raw_params(key):
    """Unpadded, logically-shaped parameters (gate order r, z, n)."""
    ks = jax.random.split(key, 12)
    scale = 0.1

    def nrm(k, shape):
        return jax.random.normal(k, shape, jnp.float32) * scale

    return dict(
        enc_emb=nrm(ks[0], (IN_VOCAB, EMBED)),
        enc_wi=nrm(ks[1], (3, EMBED, HIDDEN)),    # W_ih^T, gate-stacked
        enc_wh=nrm(ks[2], (3, HIDDEN, HIDDEN)),   # W_hh^T
        enc_bi=nrm(ks[3], (3, HIDDEN)),
        enc_bh=nrm(ks[4], (3, HIDDEN)),
        dec_emb=nrm(ks[5], (OUT_VOCAB, EMBED)),
        dec_wi=nrm(ks[6], (3, EMBED, HIDDEN)),
        dec_wh=nrm(ks[7], (3, HIDDEN, HIDDEN)),
        dec_bi=nrm(ks[8], (3, HIDDEN)),
        dec_bh=nrm(ks[9], (3, HIDDEN)),
        out_w=nrm(ks[10], (HIDDEN, OUT_VOCAB)),   # nn.Linear(hidden, vocab).weight^T
        out_b=nrm(ks[11], (OUT_VOCAB,)),
    )


def _pad2(x, rows, cols):
    return jnp.pad(x, ((0, rows - x.shape[0]), (0, cols - x.shape[1])))


def pack_params(raw):
    """Zero-pad to 128 lanes, fuse the GRU into a single (E_PAD+H_PAD, 4*H_PAD)
    matmul per step, fold relu into dec_emb and the -inf pad mask into out_b."""

    def fuse_gru(wi3, wh3, bi3, bh3):
        zblk = jnp.zeros((E_PAD, H_PAD), jnp.float32)   # E_PAD == H_PAD
        top = jnp.concatenate([_pad2(wi3[0], E_PAD, H_PAD),
                               _pad2(wi3[1], E_PAD, H_PAD),
                               _pad2(wi3[2], E_PAD, H_PAD),
                               zblk], axis=1)
        bot = jnp.concatenate([_pad2(wh3[0], H_PAD, H_PAD),
                               _pad2(wh3[1], H_PAD, H_PAD),
                               zblk,
                               _pad2(wh3[2], H_PAD, H_PAD)], axis=1)
        w = jnp.concatenate([top, bot], axis=0)          # (E_PAD+H_PAD, 4*H_PAD)

        def pb(b):
            return _pad2(b[None, :], 1, H_PAD)

        b = jnp.concatenate([pb(bi3[0] + bh3[0]),        # r: bi_r + bh_r
                             pb(bi3[1] + bh3[1]),        # z: bi_z + bh_z
                             pb(bi3[2]),                 # n (input part)
                             pb(bh3[2])], axis=1)        # n (hidden part)
        return w, b

    enc_w, enc_b = fuse_gru(raw["enc_wi"], raw["enc_wh"], raw["enc_bi"], raw["enc_bh"])
    dec_w, dec_b = fuse_gru(raw["dec_wi"], raw["dec_wh"], raw["dec_bi"], raw["dec_bh"])

    out_b = _pad2(raw["out_b"][None, :], 1, V_PAD)
    out_b = jnp.where(jnp.arange(V_PAD)[None, :] < OUT_VOCAB, out_b, -jnp.inf)

    return dict(
        enc_emb=_pad2(raw["enc_emb"], IN_VOCAB, E_PAD),
        enc_w=enc_w, enc_b=enc_b,
        # relu(emb)[tok] == relu(emb[tok]); padded to V_PAD rows for the one-hot gather.
        dec_emb=jnp.maximum(_pad2(raw["dec_emb"], V_PAD, E_PAD), 0.0),
        dec_w=dec_w, dec_b=dec_b,
        out_w=_pad2(raw["out_w"], H_PAD, V_PAD),
        out_b=out_b,
    )


# ----------------------------- Seq2Seq forward ------------------------------

@jax.jit
def seq2seq_forward(source, target, packed, tf_flags):
    """Faithful Seq2Seq.forward (batch_size must be 1); one fused Pallas kernel."""
    target_length, batch_size = target.shape
    assert batch_size == 1

    smem = pl.BlockSpec(memory_space=pltpu.MemorySpace.SMEM)
    vmem = pl.BlockSpec(memory_space=pltpu.MemorySpace.VMEM)

    out_padded = pl.pallas_call(
        _seq2seq_kernel,
        out_shape=jax.ShapeDtypeStruct((target_length, V_PAD), jnp.float32),
        in_specs=[smem, smem, smem] + [vmem] * 8,
        out_specs=vmem,
    )(
        source[:, 0].astype(jnp.int32),
        target[:, 0].astype(jnp.int32),
        tf_flags.astype(jnp.int32),
        packed["enc_emb"], packed["enc_w"], packed["enc_b"],
        packed["dec_emb"], packed["dec_w"], packed["dec_b"],
        packed["out_w"], packed["out_b"],
    )
    return out_padded[:, :OUT_VOCAB].reshape(target_length, batch_size, OUT_VOCAB)


# ----------------------------- pure-JAX/numpy reference ---------------------

def reference_forward(source, target, raw, tf_flags):
    raw = {k: np.asarray(v) for k, v in raw.items()}
    src = np.asarray(source)[:, 0]
    tgt = np.asarray(target)[:, 0]
    tf = np.asarray(tf_flags)

    def sigmoid(x):
        return 1.0 / (1.0 + np.exp(-x))

    def gru(x, h, wi, wh, bi, bh):
        i_r = x @ wi[0] + bi[0]; i_z = x @ wi[1] + bi[1]; i_n = x @ wi[2] + bi[2]
        h_r = h @ wh[0] + bh[0]; h_z = h @ wh[1] + bh[1]; h_n = h @ wh[2] + bh[2]
        r = sigmoid(i_r + h_r)
        z = sigmoid(i_z + h_z)
        n = np.tanh(i_n + r * h_n)
        return (1.0 - z) * n + z * h

    T = tgt.shape[0]
    outputs = np.zeros((T, 1, OUT_VOCAB), np.float32)

    # Encoder: only the last token's zero-hidden step matters (matches the PyTorch loop).
    x = raw["enc_emb"][src[-1]][None, :]
    h = gru(x, np.zeros((1, HIDDEN), np.float32),
            raw["enc_wi"], raw["enc_wh"], raw["enc_bi"], raw["enc_bh"])

    tok = SOS_token
    active = True
    for t in range(T):
        x = np.maximum(raw["dec_emb"][tok], 0.0)[None, :]
        h = gru(x, h, raw["dec_wi"], raw["dec_wh"], raw["dec_bi"], raw["dec_bh"])
        logits = h @ raw["out_w"] + raw["out_b"][None, :]
        m = logits.max(axis=-1, keepdims=True)
        s = logits - m
        pred = s - np.log(np.exp(s).sum(axis=-1, keepdims=True))
        if active:
            outputs[t, 0] = pred[0]
        topi = int(np.argmax(pred[0]))
        teacher_force = bool(tf[t])
        tok = int(tgt[t]) if teacher_force else topi
        if (not teacher_force) and topi == EOS_token:
            active = False
    return outputs


# ----------------------------------- main -----------------------------------

if __name__ == "__main__":
    key = jax.random.PRNGKey(0)
    pkey, skey, tkey, fkey = jax.random.split(key, 4)

    raw_params = init_raw_params(pkey)
    packed_params = pack_params(raw_params)

    input_length, target_length, batch = 7, 8, 1
    source = jax.random.randint(skey, (input_length, batch), 2, IN_VOCAB, dtype=jnp.int32)
    target = jax.random.randint(tkey, (target_length, batch), 2, OUT_VOCAB, dtype=jnp.int32)

    # TODO(synk): PyTorch uses Python random.random() per decode step; replaced by
    # deterministic jax.random teacher-forcing coin flips precomputed outside the kernel.
    tf_flags = (jax.random.uniform(fkey, (target_length,)) < 0.5).astype(jnp.int32)

    outputs = seq2seq_forward(source, target, packed_params, tf_flags)
    outputs = jax.block_until_ready(outputs)

    assert outputs.shape == (target_length, batch, OUT_VOCAB)
    assert outputs.dtype == jnp.float32

    ref = reference_forward(source, target, raw_params, tf_flags)
    np.testing.assert_allclose(np.asarray(outputs), ref, rtol=2e-3, atol=2e-3)

    print("KERNEL_OK")
</pallas_src>

<mosaic_0001>
module attributes {stable_mosaic.version = 11 : i64} {
  func.func @_seq2seq_kernel(%arg0: memref<7xi32, #tpu.memory_space<smem>>, %arg1: memref<8xi32, #tpu.memory_space<smem>>, %arg2: memref<8xi32, #tpu.memory_space<smem>>, %arg3: memref<40x128xf32, #tpu.memory_space<vmem>>, %arg4: memref<256x512xf32, #tpu.memory_space<vmem>>, %arg5: memref<1x512xf32, #tpu.memory_space<vmem>>, %arg6: memref<128x128xf32, #tpu.memory_space<vmem>>, %arg7: memref<256x512xf32, #tpu.memory_space<vmem>>, %arg8: memref<1x512xf32, #tpu.memory_space<vmem>>, %arg9: memref<128x128xf32, #tpu.memory_space<vmem>>, %arg10: memref<1x128xf32, #tpu.memory_space<vmem>>, %arg11: memref<8x128xf32, #tpu.memory_space<vmem>>) attributes {dimension_semantics = [], scalar_prefetch = 0 : i64, scratch_operands = 0 : i64, tpu.core_type = #tpu.core_type<tc>} {
    %c6 = arith.constant 6 : index
    %0 = memref.load %arg0[%c6] : memref<7xi32, #tpu.memory_space<smem>>
    %1 = arith.index_cast %0 : i32 to index
    %c0 = arith.constant 0 : index
    %2 = vector.load %arg3[%1, %c0] : memref<40x128xf32, #tpu.memory_space<vmem>>, vector<1x128xf32>
    %cst = arith.constant 0.000000e+00 : f32
    %3 = vector.broadcast %cst : f32 to vector<1x128xf32>
    %c0_0 = arith.constant 0 : index
    %c0_1 = arith.constant 0 : index
    %4 = vector.load %arg4[%c0_0, %c0_1] : memref<256x512xf32, #tpu.memory_space<vmem>>, vector<256x512xf32>
    %c0_2 = arith.constant 0 : index
    %c0_3 = arith.constant 0 : index
    %5 = vector.load %arg5[%c0_2, %c0_3] : memref<1x512xf32, #tpu.memory_space<vmem>>, vector<1x512xf32>
    %6 = tpu.concatenate %2, %3 in 1 : vector<1x128xf32>, vector<1x128xf32> -> vector<1x256xf32>
    %cst_4 = arith.constant dense<0.000000e+00> : vector<1x512xf32>
    %7 = tpu.matmul %6, %4, %cst_4 {dimension_numbers = #tpu.dot_dimension_numbers<[1], [0], [0], [1], [0, 0, 1, 1], [], []>} : vector<1x256xf32>, vector<256x512xf32>, vector<1x512xf32> -> vector<1x512xf32>
    %8 = arith.addf %7, %5 : vector<1x512xf32>
    %9 = vector.extract_strided_slice %8 {offsets = [0, 0], sizes = [1, 128], strides = [1, 1]} : vector<1x512xf32> to vector<1x128xf32>
    %10 = arith.negf %9 : vector<1x128xf32>
    %11 = math.exp %10 : vector<1x128xf32>
    %cst_5 = arith.constant 1.000000e+00 : f32
    %12 = vector.broadcast %cst_5 : f32 to vector<1x128xf32>
    %13 = arith.addf %12, %11 : vector<1x128xf32>
    %14 = arith.divf %12, %13 : vector<1x128xf32>
    %15 = vector.extract_strided_slice %8 {offsets = [0, 128], sizes = [1, 128], strides = [1, 1]} : vector<1x512xf32> to vector<1x128xf32>
    %16 = arith.negf %15 : vector<1x128xf32>
    %17 = math.exp %16 : vector<1x128xf32>
    %cst_6 = arith.constant 1.000000e+00 : f32
    %18 = vector.broadcast %cst_6 : f32 to vector<1x128xf32>
    %19 = arith.addf %18, %17 : vector<1x128xf32>
    %20 = arith.divf %18, %19 : vector<1x128xf32>
    %21 = vector.extract_strided_slice %8 {offsets = [0, 256], sizes = [1, 128], strides = [1, 1]} : vector<1x512xf32> to vector<1x128xf32>
    %22 = vector.extract_strided_slice %8 {offsets = [0, 384], sizes = [1, 128], strides = [1, 1]} : vector<1x512xf32> to vector<1x128xf32>
    %23 = arith.mulf %14, %22 : vector<1x128xf32>
    %24 = arith.addf %21, %23 : vector<1x128xf32>
    %25 = math.tanh %24 : vector<1x128xf32>
    %cst_7 = arith.constant 1.000000e+00 : f32
    %26 = vector.broadcast %cst_7 : f32 to vector<1x128xf32>
    %27 = arith.subf %26, %20 : vector<1x128xf32>
    %28 = arith.mulf %27, %25 : vector<1x128xf32>
    %29 = arith.mulf %20, %3 : vector<1x128xf32>
    %30 = arith.addf %28, %29 : vector<1x128xf32>
    %31 = tpu.iota {dimensions = array<i32: 1>} : vector<1x128xi32>
    %32 = arith.sitofp %31 : vector<1x128xi32> to vector<1x128xf32>
    %cst_8 = arith.constant 0.000000e+00 : f32
    %33 = vector.broadcast %cst_8 : f32 to vector<1x128xf32>
    %34 = arith.subf %33, %32 : vector<1x128xf32>
    %c48_i32 = arith.constant 48 : i32
    %35 = vector.broadcast %c48_i32 : i32 to vector<1x128xi32>
    %36 = arith.cmpi slt, %31, %35 : vector<1x128xi32>
    %37 = tpu.iota {dimensions = array<i32: 0>} : vector<8x1xi32>
    %c0_9 = arith.constant 0 : index
    %c0_10 = arith.constant 0 : index
    %38 = vector.load %arg6[%c0_9, %c0_10] : memref<128x128xf32, #tpu.memory_space<vmem>>, vector<128x128xf32>
    %c0_11 = arith.constant 0 : index
    %c0_12 = arith.constant 0 : index
    %39 = vector.load %arg7[%c0_11, %c0_12] : memref<256x512xf32, #tpu.memory_space<vmem>>, vector<256x512xf32>
    %c0_13 = arith.constant 0 : index
    %c0_14 = arith.constant 0 : index
    %40 = vector.load %arg8[%c0_13, %c0_14] : memref<1x512xf32, #tpu.memory_space<vmem>>, vector<1x512xf32>
    %c0_15 = arith.constant 0 : index
    %c0_16 = arith.constant 0 : index
    %41 = vector.load %arg9[%c0_15, %c0_16] : memref<128x128xf32, #tpu.memory_space<vmem>>, vector<128x128xf32>
    %c0_17 = arith.constant 0 : index
    %c0_18 = arith.constant 0 : index
    %42 = vector.load %arg10[%c0_17, %c0_18] : memref<1x128xf32, #tpu.memory_space<vmem>>, vector<1x128xf32>
    %cst_19 = arith.constant 0.000000e+00 : f32
    %43 = vector.broadcast %cst_19 : f32 to vector<1x1xf32>
    %cst_20 = arith.constant 1.000000e+00 : f32
    %44 = vector.broadcast %cst_20 : f32 to vector<1x1xf32>
    %cst_21 = arith.constant 0.000000e+00 : f32
    %45 = vector.broadcast %cst_21 : f32 to vector<8x128xf32>
    %46 = vector.broadcast %43 : vector<1x1xf32> to vector<1x128xf32>
    %47 = arith.cmpf oeq, %32, %46 : vector<1x128xf32>
    %cst_22 = arith.constant 1.000000e+00 : f32
    %cst_23 = arith.constant 0.000000e+00 : f32
    %48 = vector.broadcast %cst_22 : f32 to vector<1x128xf32>
    %49 = vector.broadcast %cst_23 : f32 to vector<1x128xf32>
    %50 = arith.select %47, %48, %49 : vector<1x128xi1>, vector<1x128xf32>
    %cst_24 = arith.constant dense<0.000000e+00> : vector<1x128xf32>
    %51 = tpu.matmul %50, %38, %cst_24 {dimension_numbers = #tpu.dot_dimension_numbers<[1], [0], [0], [1], [0, 0, 1, 1], [], []>} : vector<1x128xf32>, vector<128x128xf32>, vector<1x128xf32> -> vector<1x128xf32>
    %52 = tpu.concatenate %51, %30 in 1 : vector<1x128xf32>, vector<1x128xf32> -> vector<1x256xf32>
    %cst_25 = arith.constant dense<0.000000e+00> : vector<1x512xf32>
    %53 = tpu.matmul %52, %39, %cst_25 {dimension_numbers = #tpu.dot_dimension_numbers<[1], [0], [0], [1], [0, 0, 1, 1], [], []>} : vector<1x256xf32>, vector<256x512xf32>, vector<1x512xf32> -> vector<1x512xf32>
    %54 = arith.addf %53, %40 : vector<1x512xf32>
    %55 = vector.extract_strided_slice %54 {offsets = [0, 0], sizes = [1, 128], strides = [1, 1]} : vector<1x512xf32> to vector<1x128xf32>
    %56 = arith.negf %55 : vector<1x128xf32>
    %57 = math.exp %56 : vector<1x128xf32>
    %cst_26 = arith.constant 1.000000e+00 : f32
    %58 = vector.broadcast %cst_26 : f32 to vector<1x128xf32>
    %59 = arith.addf %58, %57 : vector<1x128xf32>
    %60 = arith.divf %58, %59 : vector<1x128xf32>
    %61 = vector.extract_strided_slice %54 {offsets = [0, 128], sizes = [1, 128], strides = [1, 1]} : vector<1x512xf32> to vector<1x128xf32>
    %62 = arith.negf %61 : vector<1x128xf32>
    %63 = math.exp %62 : vector<1x128xf32>
    %cst_27 = arith.constant 1.000000e+00 : f32
    %64 = vector.broadcast %cst_27 : f32 to vector<1x128xf32>
    %65 = arith.addf %64, %63 : vector<1x128xf32>
    %66 = arith.divf %64, %65 : vector<1x128xf32>
    %67 = vector.extract_strided_slice %54 {offsets = [0, 256], sizes = [1, 128], strides = [1, 1]} : vector<1x512xf32> to vector<1x128xf32>
    %68 = vector.extract_strided_slice %54 {offsets = [0, 384], sizes = [1, 128], strides = [1, 1]} : vector<1x512xf32> to vector<1x128xf32>
    %69 = arith.mulf %60, %68 : vector<1x128xf32>
    %70 = arith.addf %67, %69 : vector<1x128xf32>
    %71 = math.tanh %70 : vector<1x128xf32>
    %cst_28 = arith.constant 1.000000e+00 : f32
    %72 = vector.broadcast %cst_28 : f32 to vector<1x128xf32>
    %73 = arith.subf %72, %66 : vector<1x128xf32>
    %74 = arith.mulf %73, %71 : vector<1x128xf32>
    %75 = arith.mulf %66, %30 : vector<1x128xf32>
    %76 = arith.addf %74, %75 : vector<1x128xf32>
    %cst_29 = arith.constant dense<0.000000e+00> : vector<1x128xf32>
    %77 = tpu.matmul %76, %41, %cst_29 {dimension_numbers = #tpu.dot_dimension_numbers<[1], [0], [0], [1], [0, 0, 1, 1], [], []>} : vector<1x128xf32>, vector<128x128xf32>, vector<1x128xf32> -> vector<1x128xf32>
    %78 = arith.addf %77, %42 : vector<1x128xf32>
    %cst_30 = arith.constant dense<0xFF800000> : vector<1xf32>
    %79 = vector.multi_reduction <maximumf>, %78, %cst_30 [1] : vector<1x128xf32> to vector<1xf32>
    %80 = vector.shape_cast %79 : vector<1xf32> to vector<1x1xf32>
    %81 = vector.broadcast %80 : vector<1x1xf32> to vector<1x128xf32>
    %82 = arith.subf %78, %81 : vector<1x128xf32>
    %83 = math.exp %82 : vector<1x128xf32>
    %cst_31 = arith.constant dense<0.000000e+00> : vector<1xf32>
    %84 = vector.multi_reduction <add>, %83, %cst_31 [1] : vector<1x128xf32> to vector<1xf32>
    %85 = vector.shape_cast %84 : vector<1xf32> to vector<1x1xf32>
    %86 = math.log %85 : vector<1x1xf32>
    %87 = vector.broadcast %86 : vector<1x1xf32> to vector<1x128xf32>
    %88 = arith.subf %82, %87 : vector<1x128xf32>
    %cst_32 = arith.constant 0.000000e+00 : f32
    %89 = vector.broadcast %cst_32 : f32 to vector<1x128xf32>
    %90 = arith.select %36, %88, %89 : vector<1x128xi1>, vector<1x128xf32>
    %91 = vector.broadcast %44 : vector<1x1xf32> to vector<1x128xf32>
    %92 = arith.mulf %90, %91 : vector<1x128xf32>
    %c0_i32 = arith.constant 0 : i32
    %93 = vector.broadcast %c0_i32 : i32 to vector<8x1xi32>
    %94 = arith.cmpi eq, %37, %93 : vector<8x1xi32>
    %cst_33 = arith.constant 1.000000e+00 : f32
    %cst_34 = arith.constant 0.000000e+00 : f32
    %95 = vector.broadcast %cst_33 : f32 to vector<8x1xf32>
    %96 = vector.broadcast %cst_34 : f32 to vector<8x1xf32>
    %97 = arith.select %94, %95, %96 : vector<8x1xi1>, vector<8x1xf32>
    %98 = vector.broadcast %97 : vector<8x1xf32> to vector<8x128xf32>
    %99 = vector.broadcast %92 : vector<1x128xf32> to vector<8x128xf32>
    %100 = arith.mulf %98, %99 : vector<8x128xf32>
    %101 = arith.addf %45, %100 : vector<8x128xf32>
    %102 = vector.broadcast %80 : vector<1x1xf32> to vector<1x128xf32>
    %103 = arith.cmpf oeq, %78, %102 : vector<1x128xf32>
    %cst_35 = arith.constant 0xFF800000 : f32
    %104 = vector.broadcast %cst_35 : f32 to vector<1x128xf32>
    %105 = arith.select %103, %34, %104 : vector<1x128xi1>, vector<1x128xf32>
    %cst_36 = arith.constant dense<0xFF800000> : vector<1xf32>
    %106 = vector.multi_reduction <maximumf>, %105, %cst_36 [1] : vector<1x128xf32> to vector<1xf32>
    %107 = vector.shape_cast %106 : vector<1xf32> to vector<1x1xf32>
    %cst_37 = arith.constant 0.000000e+00 : f32
    %108 = vector.broadcast %cst_37 : f32 to vector<1x1xf32>
    %109 = arith.subf %108, %107 : vector<1x1xf32>
    %c0_38 = arith.constant 0 : index
    %110 = memref.load %arg2[%c0_38] : memref<8xi32, #tpu.memory_space<smem>>
    %111 = arith.sitofp %110 : i32 to f32
    %c0_39 = arith.constant 0 : index
    %112 = memref.load %arg1[%c0_39] : memref<8xi32, #tpu.memory_space<smem>>
    %113 = arith.sitofp %112 : i32 to f32
    %114 = arith.mulf %111, %113 : f32
    %cst_40 = arith.constant 1.000000e+00 : f32
    %115 = arith.subf %cst_40, %111 : f32
    %116 = vector.broadcast %115 : f32 to vector<1x1xf32>
    %117 = arith.mulf %116, %109 : vector<1x1xf32>
    %118 = vector.broadcast %114 : f32 to vector<1x1xf32>
    %119 = arith.addf %118, %117 : vector<1x1xf32>
    %cst_41 = arith.constant 1.000000e+00 : f32
    %120 = vector.broadcast %cst_41 : f32 to vector<1x1xf32>
    %121 = arith.cmpf oeq, %109, %120 : vector<1x1xf32>
    %cst_42 = arith.constant 1.000000e+00 : f32
    %cst_43 = arith.constant 0.000000e+00 : f32
    %122 = vector.broadcast %cst_42 : f32 to vector<1x1xf32>
    %123 = vector.broadcast %cst_43 : f32 to vector<1x1xf32>
    %124 = arith.select %121, %122, %123 : vector<1x1xi1>, vector<1x1xf32>
    %cst_44 = arith.constant 1.000000e+00 : f32
    %125 = arith.subf %cst_44, %111 : f32
    %126 = vector.broadcast %125 : f32 to vector<1x1xf32>
    %127 = arith.mulf %126, %124 : vector<1x1xf32>
    %cst_45 = arith.constant 1.000000e+00 : f32
    %128 = vector.broadcast %cst_45 : f32 to vector<1x1xf32>
    %129 = arith.subf %128, %127 : vector<1x1xf32>
    %130 = arith.mulf %44, %129 : vector<1x1xf32>
    %131 = vector.broadcast %119 : vector<1x1xf32> to vector<1x128xf32>
    %132 = arith.cmpf oeq, %32, %131 : vector<1x128xf32>
    %cst_46 = arith.constant 1.000000e+00 : f32
    %cst_47 = arith.constant 0.000000e+00 : f32
    %133 = vector.broadcast %cst_46 : f32 to vector<1x128xf32>
    %134 = vector.broadcast %cst_47 : f32 to vector<1x128xf32>
    %135 = arith.select %132, %133, %134 : vector<1x128xi1>, vector<1x128xf32>
    %cst_48 = arith.constant dense<0.000000e+00> : vector<1x128xf32>
    %136 = tpu.matmul %135, %38, %cst_48 {dimension_numbers = #tpu.dot_dimension_numbers<[1], [0], [0], [1], [0, 0, 1, 1], [], []>} : vector<1x128xf32>, vector<128x128xf32>, vector<1x128xf32> -> vector<1x128xf32>
    %137 = tpu.concatenate %136, %76 in 1 : vector<1x128xf32>, vector<1x128xf32> -> vector<1x256xf32>
    %cst_49 = arith.constant dense<0.000000e+00> : vector<1x512xf32>
    %138 = tpu.matmul %137, %39, %cst_49 {dimension_numbers = #tpu.dot_dimension_numbers<[1], [0], [0], [1], [0, 0, 1, 1], [], []>} : vector<1x256xf32>, vector<256x512xf32>, vector<1x512xf32> -> vector<1x512xf32>
    %139 = arith.addf %138, %40 : vector<1x512xf32>
    %140 = vector.extract_strided_slice %139 {offsets = [0, 0], sizes = [1, 128], strides = [1, 1]} : vector<1x512xf32> to vector<1x128xf32>
    %141 = arith.negf %140 : vector<1x128xf32>
    %142 = math.exp %141 : vector<1x128xf32>
    %cst_50 = arith.constant 1.000000e+00 : f32
    %143 = vector.broadcast %cst_50 : f32 to vector<1x128xf32>
    %144 = arith.addf %143, %142 : vector<1x128xf32>
    %145 = arith.divf %143, %144 : vector<1x128xf32>
    %146 = vector.extract_strided_slice %139 {offsets = [0, 128], sizes = [1, 128], strides = [1, 1]} : vector<1x512xf32> to vector<1x128xf32>
    %147 = arith.negf %146 : vector<1x128xf32>
    %148 = math.exp %147 : vector<1x128xf32>
    %cst_51 = arith.constant 1.000000e+00 : f32
    %149 = vector.broadcast %cst_51 : f32 to vector<1x128xf32>
    %150 = arith.addf %149, %148 : vector<1x128xf32>
    %151 = arith.divf %149, %150 : vector<1x128xf32>
    %152 = vector.extract_strided_slice %139 {offsets = [0, 256], sizes = [1, 128], strides = [1, 1]} : vector<1x512xf32> to vector<1x128xf32>
    %153 = vector.extract_strided_slice %139 {offsets = [0, 384], sizes = [1, 128], strides = [1, 1]} : vector<1x512xf32> to vector<1x128xf32>
    %154 = arith.mulf %145, %153 : vector<1x128xf32>
    %155 = arith.addf %152, %154 : vector<1x128xf32>
    %156 = math.tanh %155 : vector<1x128xf32>
    %cst_52 = arith.constant 1.000000e+00 : f32
    %157 = vector.broadcast %cst_52 : f32 to vector<1x128xf32>
    %158 = arith.subf %157, %151 : vector<1x128xf32>
    %159 = arith.mulf %158, %156 : vector<1x128xf32>
    %160 = arith.mulf %151, %76 : vector<1x128xf32>
    %161 = arith.addf %159, %160 : vector<1x128xf32>
    %cst_53 = arith.constant dense<0.000000e+00> : vector<1x128xf32>
    %162 = tpu.matmul %161, %41, %cst_53 {dimension_numbers = #tpu.dot_dimension_numbers<[1], [0], [0], [1], [0, 0, 1, 1], [], []>} : vector<1x128xf32>, vector<128x128xf32>, vector<1x128xf32> -> vector<1x128xf32>
    %163 = arith.addf %162, %42 : vector<1x128xf32>
    %cst_54 = arith.constant dense<0xFF800000> : vector<1xf32>
    %164 = vector.multi_reduction <maximumf>, %163, %cst_54 [1] : vector<1x128xf32> to vector<1xf32>
    %165 = vector.shape_cast %164 : vector<1xf32> to vector<1x1xf32>
    %166 = vector.broadcast %165 : vector<1x1xf32> to vector<1x128xf32>
    %167 = arith.subf %163, %166 : vector<1x128xf32>
    %168 = math.exp %167 : vector<1x128xf32>
    %cst_55 = arith.constant dense<0.000000e+00> : vector<1xf32>
    %169 = vector.multi_reduction <add>, %168, %cst_55 [1] : vector<1x128xf32> to vector<1xf32>
    %170 = vector.shape_cast %169 : vector<1xf32> to vector<1x1xf32>
    %171 = math.log %170 : vector<1x1xf32>
    %172 = vector.broadcast %171 : vector<1x1xf32> to vector<1x128xf32>
    %173 = arith.subf %167, %172 : vector<1x128xf32>
    %cst_56 = arith.constant 0.000000e+00 : f32
    %174 = vector.broadcast %cst_56 : f32 to vector<1x128xf32>
    %175 = arith.select %36, %173, %174 : vector<1x128xi1>, vector<1x128xf32>
    %176 = vector.broadcast %130 : vector<1x1xf32> to vector<1x128xf32>
    %177 = arith.mulf %175, %176 : vector<1x128xf32>
    %c1_i32 = arith.constant 1 : i32
    %178 = vector.broadcast %c1_i32 : i32 to vector<8x1xi32>
    %179 = arith.cmpi eq, %37, %178 : vector<8x1xi32>
    %cst_57 = arith.constant 1.000000e+00 : f32
    %cst_58 = arith.constant 0.000000e+00 : f32
    %180 = vector.broadcast %cst_57 : f32 to vector<8x1xf32>
    %181 = vector.broadcast %cst_58 : f32 to vector<8x1xf32>
    %182 = arith.select %179, %180, %181 : vector<8x1xi1>, vector<8x1xf32>
    %183 = vector.broadcast %182 : vector<8x1xf32> to vector<8x128xf32>
    %184 = vector.broadcast %177 : vector<1x128xf32> to vector<8x128xf32>
    %185 = arith.mulf %183, %184 : vector<8x128xf32>
    %186 = arith.addf %101, %185 : vector<8x128xf32>
    %187 = vector.broadcast %165 : vector<1x1xf32> to vector<1x128xf32>
    %188 = arith.cmpf oeq, %163, %187 : vector<1x128xf32>
    %cst_59 = arith.constant 0xFF800000 : f32
    %189 = vector.broadcast %cst_59 : f32 to vector<1x128xf32>
    %190 = arith.select %188, %34, %189 : vector<1x128xi1>, vector<1x128xf32>
    %cst_60 = arith.constant dense<0xFF800000> : vector<1xf32>
    %191 = vector.multi_reduction <maximumf>, %190, %cst_60 [1] : vector<1x128xf32> to vector<1xf32>
    %192 = vector.shape_cast %191 : vector<1xf32> to vector<1x1xf32>
    %cst_61 = arith.constant 0.000000e+00 : f32
    %193 = vector.broadcast %cst_61 : f32 to vector<1x1xf32>
    %194 = arith.subf %193, %192 : vector<1x1xf32>
    %c1 = arith.constant 1 : index
    %195 = memref.load %arg2[%c1] : memref<8xi32, #tpu.memory_space<smem>>
    %196 = arith.sitofp %195 : i32 to f32
    %c1_62 = arith.constant 1 : index
    %197 = memref.load %arg1[%c1_62] : memref<8xi32, #tpu.memory_space<smem>>
    %198 = arith.sitofp %197 : i32 to f32
    %199 = arith.mulf %196, %198 : f32
    %cst_63 = arith.constant 1.000000e+00 : f32
    %200 = arith.subf %cst_63, %196 : f32
    %201 = vector.broadcast %200 : f32 to vector<1x1xf32>
    %202 = arith.mulf %201, %194 : vector<1x1xf32>
    %203 = vector.broadcast %199 : f32 to vector<1x1xf32>
    %204 = arith.addf %203, %202 : vector<1x1xf32>
    %cst_64 = arith.constant 1.000000e+00 : f32
    %205 = vector.broadcast %cst_64 : f32 to vector<1x1xf32>
    %206 = arith.cmpf oeq, %194, %205 : vector<1x1xf32>
    %cst_65 = arith.constant 1.000000e+00 : f32
    %cst_66 = arith.constant 0.000000e+00 : f32
    %207 = vector.broadcast %cst_65 : f32 to vector<1x1xf32>
    %208 = vector.broadcast %cst_66 : f32 to vector<1x1xf32>
    %209 = arith.select %206, %207, %208 : vector<1x1xi1>, vector<1x1xf32>
    %cst_67 = arith.constant 1.000000e+00 : f32
    %210 = arith.subf %cst_67, %196 : f32
    %211 = vector.broadcast %210 : f32 to vector<1x1xf32>
    %212 = arith.mulf %211, %209 : vector<1x1xf32>
    %cst_68 = arith.constant 1.000000e+00 : f32
    %213 = vector.broadcast %cst_68 : f32 to vector<1x1xf32>
    %214 = arith.subf %213, %212 : vector<1x1xf32>
    %215 = arith.mulf %130, %214 : vector<1x1xf32>
    %216 = vector.broadcast %204 : vector<1x1xf32> to vector<1x128xf32>
    %217 = arith.cmpf oeq, %32, %216 : vector<1x128xf32>
    %cst_69 = arith.constant 1.000000e+00 : f32
    %cst_70 = arith.constant 0.000000e+00 : f32
    %218 = vector.broadcast %cst_69 : f32 to vector<1x128xf32>
    %219 = vector.broadcast %cst_70 : f32 to vector<1x128xf32>
    %220 = arith.select %217, %218, %219 : vector<1x128xi1>, vector<1x128xf32>
    %cst_71 = arith.constant dense<0.000000e+00> : vector<1x128xf32>
    %221 = tpu.matmul %220, %38, %cst_71 {dimension_numbers = #tpu.dot_dimension_numbers<[1], [0], [0], [1], [0, 0, 1, 1], [], []>} : vector<1x128xf32>, vector<128x128xf32>, vector<1x128xf32> -> vector<1x128xf32>
    %222 = tpu.concatenate %221, %161 in 1 : vector<1x128xf32>, vector<1x128xf32> -> vector<1x256xf32>
    %cst_72 = arith.constant dense<0.000000e+00> : vector<1x512xf32>
    %223 = tpu.matmul %222, %39, %cst_72 {dimension_numbers = #tpu.dot_dimension_numbers<[1], [0], [0], [1], [0, 0, 1, 1], [], []>} : vector<1x256xf32>, vector<256x512xf32>, vector<1x512xf32> -> vector<1x512xf32>
    %224 = arith.addf %223, %40 : vector<1x512xf32>
    %225 = vector.extract_strided_slice %224 {offsets = [0, 0], sizes = [1, 128], strides = [1, 1]} : vector<1x512xf32> to vector<1x128xf32>
    %226 = arith.negf %225 : vector<1x128xf32>
    %227 = math.exp %226 : vector<1x128xf32>
    %cst_73 = arith.constant 1.000000e+00 : f32
    %228 = vector.broadcast %cst_73 : f32 to vector<1x128xf32>
    %229 = arith.addf %228, %227 : vector<1x128xf32>
    %230 = arith.divf %228, %229 : vector<1x128xf32>
    %231 = vector.extract_strided_slice %224 {offsets = [0, 128], sizes = [1, 128], strides = [1, 1]} : vector<1x512xf32> to vector<1x128xf32>
    %232 = arith.negf %231 : vector<1x128xf32>
    %233 = math.exp %232 : vector<1x128xf32>
    %cst_74 = arith.constant 1.000000e+00 : f32
    %234 = vector.broadcast %cst_74 : f32 to vector<1x128xf32>
    %235 = arith.addf %234, %233 : vector<1x128xf32>
    %236 = arith.divf %234, %235 : vector<1x128xf32>
    %237 = vector.extract_strided_slice %224 {offsets = [0, 256], sizes = [1, 128], strides = [1, 1]} : vector<1x512xf32> to vector<1x128xf32>
    %238 = vector.extract_strided_slice %224 {offsets = [0, 384], sizes = [1, 128], strides = [1, 1]} : vector<1x512xf32> to vector<1x128xf32>
    %239 = arith.mulf %230, %238 : vector<1x128xf32>
    %240 = arith.addf %237, %239 : vector<1x128xf32>
    %241 = math.tanh %240 : vector<1x128xf32>
    %cst_75 = arith.constant 1.000000e+00 : f32
    %242 = vector.broadcast %cst_75 : f32 to vector<1x128xf32>
    %243 = arith.subf %242, %236 : vector<1x128xf32>
    %244 = arith.mulf %243, %241 : vector<1x128xf32>
    %245 = arith.mulf %236, %161 : vector<1x128xf32>
    %246 = arith.addf %244, %245 : vector<1x128xf32>
    %cst_76 = arith.constant dense<0.000000e+00> : vector<1x128xf32>
    %247 = tpu.matmul %246, %41, %cst_76 {dimension_numbers = #tpu.dot_dimension_numbers<[1], [0], [0], [1], [0, 0, 1, 1], [], []>} : vector<1x128xf32>, vector<128x128xf32>, vector<1x128xf32> -> vector<1x128xf32>
    %248 = arith.addf %247, %42 : vector<1x128xf32>
    %cst_77 = arith.constant dense<0xFF800000> : vector<1xf32>
    %249 = vector.multi_reduction <maximumf>, %248, %cst_77 [1] : vector<1x128xf32> to vector<1xf32>
    %250 = vector.shape_cast %249 : vector<1xf32> to vector<1x1xf32>
    %251 = vector.broadcast %250 : vector<1x1xf32> to vector<1x128xf32>
    %252 = arith.subf %248, %251 : vector<1x128xf32>
    %253 = math.exp %252 : vector<1x128xf32>
    %cst_78 = arith.constant dense<0.000000e+00> : vector<1xf32>
    %254 = vector.multi_reduction <add>, %253, %cst_78 [1] : vector<1x128xf32> to vector<1xf32>
    %255 = vector.shape_cast %254 : vector<1xf32> to vector<1x1xf32>
    %256 = math.log %255 : vector<1x1xf32>
    %257 = vector.broadcast %256 : vector<1x1xf32> to vector<1x128xf32>
    %258 = arith.subf %252, %257 : vector<1x128xf32>
    %cst_79 = arith.constant 0.000000e+00 : f32
    %259 = vector.broadcast %cst_79 : f32 to vector<1x128xf32>
    %260 = arith.select %36, %258, %259 : vector<1x128xi1>, vector<1x128xf32>
    %261 = vector.broadcast %215 : vector<1x1xf32> to vector<1x128xf32>
    %262 = arith.mulf %260, %261 : vector<1x128xf32>
    %c2_i32 = arith.constant 2 : i32
    %263 = vector.broadcast %c2_i32 : i32 to vector<8x1xi32>
    %264 = arith.cmpi eq, %37, %263 : vector<8x1xi32>
    %cst_80 = arith.constant 1.000000e+00 : f32
    %cst_81 = arith.constant 0.000000e+00 : f32
    %265 = vector.broadcast %cst_80 : f32 to vector<8x1xf32>
    %266 = vector.broadcast %cst_81 : f32 to vector<8x1xf32>
    %267 = arith.select %264, %265, %266 : vector<8x1xi1>, vector<8x1xf32>
    %268 = vector.broadcast %267 : vector<8x1xf32> to vector<8x128xf32>
    %269 = vector.broadcast %262 : vector<1x128xf32> to vector<8x128xf32>
    %270 = arith.mulf %268, %269 : vector<8x128xf32>
    %271 = arith.addf %186, %270 : vector<8x128xf32>
    %272 = vector.broadcast %250 : vector<1x1xf32> to vector<1x128xf32>
    %273 = arith.cmpf oeq, %248, %272 : vector<1x128xf32>
    %cst_82 = arith.constant 0xFF800000 : f32
    %274 = vector.broadcast %cst_82 : f32 to vector<1x128xf32>
    %275 = arith.select %273, %34, %274 : vector<1x128xi1>, vector<1x128xf32>
    %cst_83 = arith.constant dense<0xFF800000> : vector<1xf32>
    %276 = vector.multi_reduction <maximumf>, %275, %cst_83 [1] : vector<1x128xf32> to vector<1xf32>
    %277 = vector.shape_cast %276 : vector<1xf32> to vector<1x1xf32>
    %cst_84 = arith.constant 0.000000e+00 : f32
    %278 = vector.broadcast %cst_84 : f32 to vector<1x1xf32>
    %279 = arith.subf %278, %277 : vector<1x1xf32>
    %c2 = arith.constant 2 : index
    %280 = memref.load %arg2[%c2] : memref<8xi32, #tpu.memory_space<smem>>
    %281 = arith.sitofp %280 : i32 to f32
    %c2_85 = arith.constant 2 : index
    %282 = memref.load %arg1[%c2_85] : memref<8xi32, #tpu.memory_space<smem>>
    %283 = arith.sitofp %282 : i32 to f32
    %284 = arith.mulf %281, %283 : f32
    %cst_86 = arith.constant 1.000000e+00 : f32
    %285 = arith.subf %cst_86, %281 : f32
    %286 = vector.broadcast %285 : f32 to vector<1x1xf32>
    %287 = arith.mulf %286, %279 : vector<1x1xf32>
    %288 = vector.broadcast %284 : f32 to vector<1x1xf32>
    %289 = arith.addf %288, %287 : vector<1x1xf32>
    %cst_87 = arith.constant 1.000000e+00 : f32
    %290 = vector.broadcast %cst_87 : f32 to vector<1x1xf32>
    %291 = arith.cmpf oeq, %279, %290 : vector<1x1xf32>
    %cst_88 = arith.constant 1.000000e+00 : f32
    %cst_89 = arith.constant 0.000000e+00 : f32
    %292 = vector.broadcast %cst_88 : f32 to vector<1x1xf32>
    %293 = vector.broadcast %cst_89 : f32 to vector<1x1xf32>
    %294 = arith.select %291, %292, %293 : vector<1x1xi1>, vector<1x1xf32>
    %cst_90 = arith.constant 1.000000e+00 : f32
    %295 = arith.subf %cst_90, %281 : f32
    %296 = vector.broadcast %295 : f32 to vector<1x1xf32>
    %297 = arith.mulf %296, %294 : vector<1x1xf32>
    %cst_91 = arith.constant 1.000000e+00 : f32
    %298 = vector.broadcast %cst_91 : f32 to vector<1x1xf32>
    %299 = arith.subf %298, %297 : vector<1x1xf32>
    %300 = arith.mulf %215, %299 : vector<1x1xf32>
    %301 = vector.broadcast %289 : vector<1x1xf32> to vector<1x128xf32>
    %302 = arith.cmpf oeq, %32, %301 : vector<1x128xf32>
    %cst_92 = arith.constant 1.000000e+00 : f32
    %cst_93 = arith.constant 0.000000e+00 : f32
    %303 = vector.broadcast %cst_92 : f32 to vector<1x128xf32>
    %304 = vector.broadcast %cst_93 : f32 to vector<1x128xf32>
    %305 = arith.select %302, %303, %304 : vector<1x128xi1>, vector<1x128xf32>
    %cst_94 = arith.constant dense<0.000000e+00> : vector<1x128xf32>
    %306 = tpu.matmul %305, %38, %cst_94 {dimension_numbers = #tpu.dot_dimension_numbers<[1], [0], [0], [1], [0, 0, 1, 1], [], []>} : vector<1x128xf32>, vector<128x128xf32>, vector<1x128xf32> -> vector<1x128xf32>
    %307 = tpu.concatenate %306, %246 in 1 : vector<1x128xf32>, vector<1x128xf32> -> vector<1x256xf32>
    %cst_95 = arith.constant dense<0.000000e+00> : vector<1x512xf32>
    %308 = tpu.matmul %307, %39, %cst_95 {dimension_numbers = #tpu.dot_dimension_numbers<[1], [0], [0], [1], [0, 0, 1, 1], [], []>} : vector<1x256xf32>, vector<256x512xf32>, vector<1x512xf32> -> vector<1x512xf32>
    %309 = arith.addf %308, %40 : vector<1x512xf32>
    %310 = vector.extract_strided_slice %309 {offsets = [0, 0], sizes = [1, 128], strides = [1, 1]} : vector<1x512xf32> to vector<1x128xf32>
    %311 = arith.negf %310 : vector<1x128xf32>
    %312 = math.exp %311 : vector<1x128xf32>
    %cst_96 = arith.constant 1.000000e+00 : f32
    %313 = vector.broadcast %cst_96 : f32 to vector<1x128xf32>
    %314 = arith.addf %313, %312 : vector<1x128xf32>
    %315 = arith.divf %313, %314 : vector<1x128xf32>
    %316 = vector.extract_strided_slice %309 {offsets = [0, 128], sizes = [1, 128], strides = [1, 1]} : vector<1x512xf32> to vector<1x128xf32>
    %317 = arith.negf %316 : vector<1x128xf32>
    %318 = math.exp %317 : vector<1x128xf32>
    %cst_97 = arith.constant 1.000000e+00 : f32
    %319 = vector.broadcast %cst_97 : f32 to vector<1x128xf32>
    %320 = arith.addf %319, %318 : vector<1x128xf32>
    %321 = arith.divf %319, %320 : vector<1x128xf32>
    %322 = vector.extract_strided_slice %309 {offsets = [0, 256], sizes = [1, 128], strides = [1, 1]} : vector<1x512xf32> to vector<1x128xf32>
    %323 = vector.extract_strided_slice %309 {offsets = [0, 384], sizes = [1, 128], strides = [1, 1]} : vector<1x512xf32> to vector<1x128xf32>
    %324 = arith.mulf %315, %323 : vector<1x128xf32>
    %325 = arith.addf %322, %324 : vector<1x128xf32>
    %326 = math.tanh %325 : vector<1x128xf32>
    %cst_98 = arith.constant 1.000000e+00 : f32
    %327 = vector.broadcast %cst_98 : f32 to vector<1x128xf32>
    %328 = arith.subf %327, %321 : vector<1x128xf32>
    %329 = arith.mulf %328, %326 : vector<1x128xf32>
    %330 = arith.mulf %321, %246 : vector<1x128xf32>
    %331 = arith.addf %329, %330 : vector<1x128xf32>
    %cst_99 = arith.constant dense<0.000000e+00> : vector<1x128xf32>
    %332 = tpu.matmul %331, %41, %cst_99 {dimension_numbers = #tpu.dot_dimension_numbers<[1], [0], [0], [1], [0, 0, 1, 1], [], []>} : vector<1x128xf32>, vector<128x128xf32>, vector<1x128xf32> -> vector<1x128xf32>
    %333 = arith.addf %332, %42 : vector<1x128xf32>
    %cst_100 = arith.constant dense<0xFF800000> : vector<1xf32>
    %334 = vector.multi_reduction <maximumf>, %333, %cst_100 [1] : vector<1x128xf32> to vector<1xf32>
    %335 = vector.shape_cast %334 : vector<1xf32> to vector<1x1xf32>
    %336 = vector.broadcast %335 : vector<1x1xf32> to vector<1x128xf32>
    %337 = arith.subf %333, %336 : vector<1x128xf32>
    %338 = math.exp %337 : vector<1x128xf32>
    %cst_101 = arith.constant dense<0.000000e+00> : vector<1xf32>
    %339 = vector.multi_reduction <add>, %338, %cst_101 [1] : vector<1x128xf32> to vector<1xf32>
    %340 = vector.shape_cast %339 : vector<1xf32> to vector<1x1xf32>
    %341 = math.log %340 : vector<1x1xf32>
    %342 = vector.broadcast %341 : vector<1x1xf32> to vector<1x128xf32>
    %343 = arith.subf %337, %342 : vector<1x128xf32>
    %cst_102 = arith.constant 0.000000e+00 : f32
    %344 = vector.broadcast %cst_102 : f32 to vector<1x128xf32>
    %345 = arith.select %36, %343, %344 : vector<1x128xi1>, vector<1x128xf32>
    %346 = vector.broadcast %300 : vector<1x1xf32> to vector<1x128xf32>
    %347 = arith.mulf %345, %346 : vector<1x128xf32>
    %c3_i32 = arith.constant 3 : i32
    %348 = vector.broadcast %c3_i32 : i32 to vector<8x1xi32>
    %349 = arith.cmpi eq, %37, %348 : vector<8x1xi32>
    %cst_103 = arith.constant 1.000000e+00 : f32
    %cst_104 = arith.constant 0.000000e+00 : f32
    %350 = vector.broadcast %cst_103 : f32 to vector<8x1xf32>
    %351 = vector.broadcast %cst_104 : f32 to vector<8x1xf32>
    %352 = arith.select %349, %350, %351 : vector<8x1xi1>, vector<8x1xf32>
    %353 = vector.broadcast %352 : vector<8x1xf32> to vector<8x128xf32>
    %354 = vector.broadcast %347 : vector<1x128xf32> to vector<8x128xf32>
    %355 = arith.mulf %353, %354 : vector<8x128xf32>
    %356 = arith.addf %271, %355 : vector<8x128xf32>
    %357 = vector.broadcast %335 : vector<1x1xf32> to vector<1x128xf32>
    %358 = arith.cmpf oeq, %333, %357 : vector<1x128xf32>
    %cst_105 = arith.constant 0xFF800000 : f32
    %359 = vector.broadcast %cst_105 : f32 to vector<1x128xf32>
    %360 = arith.select %358, %34, %359 : vector<1x128xi1>, vector<1x128xf32>
    %cst_106 = arith.constant dense<0xFF800000> : vector<1xf32>
    %361 = vector.multi_reduction <maximumf>, %360, %cst_106 [1] : vector<1x128xf32> to vector<1xf32>
    %362 = vector.shape_cast %361 : vector<1xf32> to vector<1x1xf32>
    %cst_107 = arith.constant 0.000000e+00 : f32
    %363 = vector.broadcast %cst_107 : f32 to vector<1x1xf32>
    %364 = arith.subf %363, %362 : vector<1x1xf32>
    %c3 = arith.constant 3 : index
    %365 = memref.load %arg2[%c3] : memref<8xi32, #tpu.memory_space<smem>>
    %366 = arith.sitofp %365 : i32 to f32
    %c3_108 = arith.constant 3 : index
    %367 = memref.load %arg1[%c3_108] : memref<8xi32, #tpu.memory_space<smem>>
    %368 = arith.sitofp %367 : i32 to f32
    %369 = arith.mulf %366, %368 : f32
    %cst_109 = arith.constant 1.000000e+00 : f32
    %370 = arith.subf %cst_109, %366 : f32
    %371 = vector.broadcast %370 : f32 to vector<1x1xf32>
    %372 = arith.mulf %371, %364 : vector<1x1xf32>
    %373 = vector.broadcast %369 : f32 to vector<1x1xf32>
    %374 = arith.addf %373, %372 : vector<1x1xf32>
    %cst_110 = arith.constant 1.000000e+00 : f32
    %375 = vector.broadcast %cst_110 : f32 to vector<1x1xf32>
    %376 = arith.cmpf oeq, %364, %375 : vector<1x1xf32>
    %cst_111 = arith.constant 1.000000e+00 : f32
    %cst_112 = arith.constant 0.000000e+00 : f32
    %377 = vector.broadcast %cst_111 : f32 to vector<1x1xf32>
    %378 = vector.broadcast %cst_112 : f32 to vector<1x1xf32>
    %379 = arith.select %376, %377, %378 : vector<1x1xi1>, vector<1x1xf32>
    %cst_113 = arith.constant 1.000000e+00 : f32
    %380 = arith.subf %cst_113, %366 : f32
    %381 = vector.broadcast %380 : f32 to vector<1x1xf32>
    %382 = arith.mulf %381, %379 : vector<1x1xf32>
    %cst_114 = arith.constant 1.000000e+00 : f32
    %383 = vector.broadcast %cst_114 : f32 to vector<1x1xf32>
    %384 = arith.subf %383, %382 : vector<1x1xf32>
    %385 = arith.mulf %300, %384 : vector<1x1xf32>
    %386 = vector.broadcast %374 : vector<1x1xf32> to vector<1x128xf32>
    %387 = arith.cmpf oeq, %32, %386 : vector<1x128xf32>
    %cst_115 = arith.constant 1.000000e+00 : f32
    %cst_116 = arith.constant 0.000000e+00 : f32
    %388 = vector.broadcast %cst_115 : f32 to vector<1x128xf32>
    %389 = vector.broadcast %cst_116 : f32 to vector<1x128xf32>
    %390 = arith.select %387, %388, %389 : vector<1x128xi1>, vector<1x128xf32>
    %cst_117 = arith.constant dense<0.000000e+00> : vector<1x128xf32>
    %391 = tpu.matmul %390, %38, %cst_117 {dimension_numbers = #tpu.dot_dimension_numbers<[1], [0], [0], [1], [0, 0, 1, 1], [], []>} : vector<1x128xf32>, vector<128x128xf32>, vector<1x128xf32> -> vector<1x128xf32>
    %392 = tpu.concatenate %391, %331 in 1 : vector<1x128xf32>, vector<1x128xf32> -> vector<1x256xf32>
    %cst_118 = arith.constant dense<0.000000e+00> : vector<1x512xf32>
    %393 = tpu.matmul %392, %39, %cst_118 {dimension_numbers = #tpu.dot_dimension_numbers<[1], [0], [0], [1], [0, 0, 1, 1], [], []>} : vector<1x256xf32>, vector<256x512xf32>, vector<1x512xf32> -> vector<1x512xf32>
    %394 = arith.addf %393, %40 : vector<1x512xf32>
    %395 = vector.extract_strided_slice %394 {offsets = [0, 0], sizes = [1, 128], strides = [1, 1]} : vector<1x512xf32> to vector<1x128xf32>
    %396 = arith.negf %395 : vector<1x128xf32>
    %397 = math.exp %396 : vector<1x128xf32>
    %cst_119 = arith.constant 1.000000e+00 : f32
    %398 = vector.broadcast %cst_119 : f32 to vector<1x128xf32>
    %399 = arith.addf %398, %397 : vector<1x128xf32>
    %400 = arith.divf %398, %399 : vector<1x128xf32>
    %401 = vector.extract_strided_slice %394 {offsets = [0, 128], sizes = [1, 128], strides = [1, 1]} : vector<1x512xf32> to vector<1x128xf32>
    %402 = arith.negf %401 : vector<1x128xf32>
    %403 = math.exp %402 : vector<1x128xf32>
    %cst_120 = arith.constant 1.000000e+00 : f32
    %404 = vector.broadcast %cst_120 : f32 to vector<1x128xf32>
    %405 = arith.addf %404, %403 : vector<1x128xf32>
    %406 = arith.divf %404, %405 : vector<1x128xf32>
    %407 = vector.extract_strided_slice %394 {offsets = [0, 256], sizes = [1, 128], strides = [1, 1]} : vector<1x512xf32> to vector<1x128xf32>
    %408 = vector.extract_strided_slice %394 {offsets = [0, 384], sizes = [1, 128], strides = [1, 1]} : vector<1x512xf32> to vector<1x128xf32>
    %409 = arith.mulf %400, %408 : vector<1x128xf32>
    %410 = arith.addf %407, %409 : vector<1x128xf32>
    %411 = math.tanh %410 : vector<1x128xf32>
    %cst_121 = arith.constant 1.000000e+00 : f32
    %412 = vector.broadcast %cst_121 : f32 to vector<1x128xf32>
    %413 = arith.subf %412, %406 : vector<1x128xf32>
    %414 = arith.mulf %413, %411 : vector<1x128xf32>
    %415 = arith.mulf %406, %331 : vector<1x128xf32>
    %416 = arith.addf %414, %415 : vector<1x128xf32>
    %cst_122 = arith.constant dense<0.000000e+00> : vector<1x128xf32>
    %417 = tpu.matmul %416, %41, %cst_122 {dimension_numbers = #tpu.dot_dimension_numbers<[1], [0], [0], [1], [0, 0, 1, 1], [], []>} : vector<1x128xf32>, vector<128x128xf32>, vector<1x128xf32> -> vector<1x128xf32>
    %418 = arith.addf %417, %42 : vector<1x128xf32>
    %cst_123 = arith.constant dense<0xFF800000> : vector<1xf32>
    %419 = vector.multi_reduction <maximumf>, %418, %cst_123 [1] : vector<1x128xf32> to vector<1xf32>
    %420 = vector.shape_cast %419 : vector<1xf32> to vector<1x1xf32>
    %421 = vector.broadcast %420 : vector<1x1xf32> to vector<1x128xf32>
    %422 = arith.subf %418, %421 : vector<1x128xf32>
    %423 = math.exp %422 : vector<1x128xf32>
    %cst_124 = arith.constant dense<0.000000e+00> : vector<1xf32>
    %424 = vector.multi_reduction <add>, %423, %cst_124 [1] : vector<1x128xf32> to vector<1xf32>
    %425 = vector.shape_cast %424 : vector<1xf32> to vector<1x1xf32>
    %426 = math.log %425 : vector<1x1xf32>
    %427 = vector.broadcast %426 : vector<1x1xf32> to vector<1x128xf32>
    %428 = arith.subf %422, %427 : vector<1x128xf32>
    %cst_125 = arith.constant 0.000000e+00 : f32
    %429 = vector.broadcast %cst_125 : f32 to vector<1x128xf32>
    %430 = arith.select %36, %428, %429 : vector<1x128xi1>, vector<1x128xf32>
    %431 = vector.broadcast %385 : vector<1x1xf32> to vector<1x128xf32>
    %432 = arith.mulf %430, %431 : vector<1x128xf32>
    %c4_i32 = arith.constant 4 : i32
    %433 = vector.broadcast %c4_i32 : i32 to vector<8x1xi32>
    %434 = arith.cmpi eq, %37, %433 : vector<8x1xi32>
    %cst_126 = arith.constant 1.000000e+00 : f32
    %cst_127 = arith.constant 0.000000e+00 : f32
    %435 = vector.broadcast %cst_126 : f32 to vector<8x1xf32>
    %436 = vector.broadcast %cst_127 : f32 to vector<8x1xf32>
    %437 = arith.select %434, %435, %436 : vector<8x1xi1>, vector<8x1xf32>
    %438 = vector.broadcast %437 : vector<8x1xf32> to vector<8x128xf32>
    %439 = vector.broadcast %432 : vector<1x128xf32> to vector<8x128xf32>
    %440 = arith.mulf %438, %439 : vector<8x128xf32>
    %441 = arith.addf %356, %440 : vector<8x128xf32>
    %442 = vector.broadcast %420 : vector<1x1xf32> to vector<1x128xf32>
    %443 = arith.cmpf oeq, %418, %442 : vector<1x128xf32>
    %cst_128 = arith.constant 0xFF800000 : f32
    %444 = vector.broadcast %cst_128 : f32 to vector<1x128xf32>
    %445 = arith.select %443, %34, %444 : vector<1x128xi1>, vector<1x128xf32>
    %cst_129 = arith.constant dense<0xFF800000> : vector<1xf32>
    %446 = vector.multi_reduction <maximumf>, %445, %cst_129 [1] : vector<1x128xf32> to vector<1xf32>
    %447 = vector.shape_cast %446 : vector<1xf32> to vector<1x1xf32>
    %cst_130 = arith.constant 0.000000e+00 : f32
    %448 = vector.broadcast %cst_130 : f32 to vector<1x1xf32>
    %449 = arith.subf %448, %447 : vector<1x1xf32>
    %c4 = arith.constant 4 : index
    %450 = memref.load %arg2[%c4] : memref<8xi32, #tpu.memory_space<smem>>
    %451 = arith.sitofp %450 : i32 to f32
    %c4_131 = arith.constant 4 : index
    %452 = memref.load %arg1[%c4_131] : memref<8xi32, #tpu.memory_space<smem>>
    %453 = arith.sitofp %452 : i32 to f32
    %454 = arith.mulf %451, %453 : f32
    %cst_132 = arith.constant 1.000000e+00 : f32
    %455 = arith.subf %cst_132, %451 : f32
    %456 = vector.broadcast %455 : f32 to vector<1x1xf32>
    %457 = arith.mulf %456, %449 : vector<1x1xf32>
    %458 = vector.broadcast %454 : f32 to vector<1x1xf32>
    %459 = arith.addf %458, %457 : vector<1x1xf32>
    %cst_133 = arith.constant 1.000000e+00 : f32
    %460 = vector.broadcast %cst_133 : f32 to vector<1x1xf32>
    %461 = arith.cmpf oeq, %449, %460 : vector<1x1xf32>
    %cst_134 = arith.constant 1.000000e+00 : f32
    %cst_135 = arith.constant 0.000000e+00 : f32
    %462 = vector.broadcast %cst_134 : f32 to vector<1x1xf32>
    %463 = vector.broadcast %cst_135 : f32 to vector<1x1xf32>
    %464 = arith.select %461, %462, %463 : vector<1x1xi1>, vector<1x1xf32>
    %cst_136 = arith.constant 1.000000e+00 : f32
    %465 = arith.subf %cst_136, %451 : f32
    %466 = vector.broadcast %465 : f32 to vector<1x1xf32>
    %467 = arith.mulf %466, %464 : vector<1x1xf32>
    %cst_137 = arith.constant 1.000000e+00 : f32
    %468 = vector.broadcast %cst_137 : f32 to vector<1x1xf32>
    %469 = arith.subf %468, %467 : vector<1x1xf32>
    %470 = arith.mulf %385, %469 : vector<1x1xf32>
    %471 = vector.broadcast %459 : vector<1x1xf32> to vector<1x128xf32>
    %472 = arith.cmpf oeq, %32, %471 : vector<1x128xf32>
    %cst_138 = arith.constant 1.000000e+00 : f32
    %cst_139 = arith.constant 0.000000e+00 : f32
    %473 = vector.broadcast %cst_138 : f32 to vector<1x128xf32>
    %474 = vector.broadcast %cst_139 : f32 to vector<1x128xf32>
    %475 = arith.select %472, %473, %474 : vector<1x128xi1>, vector<1x128xf32>
    %cst_140 = arith.constant dense<0.000000e+00> : vector<1x128xf32>
    %476 = tpu.matmul %475, %38, %cst_140 {dimension_numbers = #tpu.dot_dimension_numbers<[1], [0], [0], [1], [0, 0, 1, 1], [], []>} : vector<1x128xf32>, vector<128x128xf32>, vector<1x128xf32> -> vector<1x128xf32>
    %477 = tpu.concatenate %476, %416 in 1 : vector<1x128xf32>, vector<1x128xf32> -> vector<1x256xf32>
    %cst_141 = arith.constant dense<0.000000e+00> : vector<1x512xf32>
    %478 = tpu.matmul %477, %39, %cst_141 {dimension_numbers = #tpu.dot_dimension_numbers<[1], [0], [0], [1], [0, 0, 1, 1], [], []>} : vector<1x256xf32>, vector<256x512xf32>, vector<1x512xf32> -> vector<1x512xf32>
    %479 = arith.addf %478, %40 : vector<1x512xf32>
    %480 = vector.extract_strided_slice %479 {offsets = [0, 0], sizes = [1, 128], strides = [1, 1]} : vector<1x512xf32> to vector<1x128xf32>
    %481 = arith.negf %480 : vector<1x128xf32>
    %482 = math.exp %481 : vector<1x128xf32>
    %cst_142 = arith.constant 1.000000e+00 : f32
    %483 = vector.broadcast %cst_142 : f32 to vector<1x128xf32>
    %484 = arith.addf %483, %482 : vector<1x128xf32>
    %485 = arith.divf %483, %484 : vector<1x128xf32>
    %486 = vector.extract_strided_slice %479 {offsets = [0, 128], sizes = [1, 128], strides = [1, 1]} : vector<1x512xf32> to vector<1x128xf32>
    %487 = arith.negf %486 : vector<1x128xf32>
    %488 = math.exp %487 : vector<1x128xf32>
    %cst_143 = arith.constant 1.000000e+00 : f32
    %489 = vector.broadcast %cst_143 : f32 to vector<1x128xf32>
    %490 = arith.addf %489, %488 : vector<1x128xf32>
    %491 = arith.divf %489, %490 : vector<1x128xf32>
    %492 = vector.extract_strided_slice %479 {offsets = [0, 256], sizes = [1, 128], strides = [1, 1]} : vector<1x512xf32> to vector<1x128xf32>
    %493 = vector.extract_strided_slice %479 {offsets = [0, 384], sizes = [1, 128], strides = [1, 1]} : vector<1x512xf32> to vector<1x128xf32>
    %494 = arith.mulf %485, %493 : vector<1x128xf32>
    %495 = arith.addf %492, %494 : vector<1x128xf32>
    %496 = math.tanh %495 : vector<1x128xf32>
    %cst_144 = arith.constant 1.000000e+00 : f32
    %497 = vector.broadcast %cst_144 : f32 to vector<1x128xf32>
    %498 = arith.subf %497, %491 : vector<1x128xf32>
    %499 = arith.mulf %498, %496 : vector<1x128xf32>
    %500 = arith.mulf %491, %416 : vector<1x128xf32>
    %501 = arith.addf %499, %500 : vector<1x128xf32>
    %cst_145 = arith.constant dense<0.000000e+00> : vector<1x128xf32>
    %502 = tpu.matmul %501, %41, %cst_145 {dimension_numbers = #tpu.dot_dimension_numbers<[1], [0], [0], [1], [0, 0, 1, 1], [], []>} : vector<1x128xf32>, vector<128x128xf32>, vector<1x128xf32> -> vector<1x128xf32>
    %503 = arith.addf %502, %42 : vector<1x128xf32>
    %cst_146 = arith.constant dense<0xFF800000> : vector<1xf32>
    %504 = vector.multi_reduction <maximumf>, %503, %cst_146 [1] : vector<1x128xf32> to vector<1xf32>
    %505 = vector.shape_cast %504 : vector<1xf32> to vector<1x1xf32>
    %506 = vector.broadcast %505 : vector<1x1xf32> to vector<1x128xf32>
    %507 = arith.subf %503, %506 : vector<1x128xf32>
    %508 = math.exp %507 : vector<1x128xf32>
    %cst_147 = arith.constant dense<0.000000e+00> : vector<1xf32>
    %509 = vector.multi_reduction <add>, %508, %cst_147 [1] : vector<1x128xf32> to vector<1xf32>
    %510 = vector.shape_cast %509 : vector<1xf32> to vector<1x1xf32>
    %511 = math.log %510 : vector<1x1xf32>
    %512 = vector.broadcast %511 : vector<1x1xf32> to vector<1x128xf32>
    %513 = arith.subf %507, %512 : vector<1x128xf32>
    %cst_148 = arith.constant 0.000000e+00 : f32
    %514 = vector.broadcast %cst_148 : f32 to vector<1x128xf32>
    %515 = arith.select %36, %513, %514 : vector<1x128xi1>, vector<1x128xf32>
    %516 = vector.broadcast %470 : vector<1x1xf32> to vector<1x128xf32>
    %517 = arith.mulf %515, %516 : vector<1x128xf32>
    %c5_i32 = arith.constant 5 : i32
    %518 = vector.broadcast %c5_i32 : i32 to vector<8x1xi32>
    %519 = arith.cmpi eq, %37, %518 : vector<8x1xi32>
    %cst_149 = arith.constant 1.000000e+00 : f32
    %cst_150 = arith.constant 0.000000e+00 : f32
    %520 = vector.broadcast %cst_149 : f32 to vector<8x1xf32>
    %521 = vector.broadcast %cst_150 : f32 to vector<8x1xf32>
    %522 = arith.select %519, %520, %521 : vector<8x1xi1>, vector<8x1xf32>
    %523 = vector.broadcast %522 : vector<8x1xf32> to vector<8x128xf32>
    %524 = vector.broadcast %517 : vector<1x128xf32> to vector<8x128xf32>
    %525 = arith.mulf %523, %524 : vector<8x128xf32>
    %526 = arith.addf %441, %525 : vector<8x128xf32>
    %527 = vector.broadcast %505 : vector<1x1xf32> to vector<1x128xf32>
    %528 = arith.cmpf oeq, %503, %527 : vector<1x128xf32>
    %cst_151 = arith.constant 0xFF800000 : f32
    %529 = vector.broadcast %cst_151 : f32 to vector<1x128xf32>
    %530 = arith.select %528, %34, %529 : vector<1x128xi1>, vector<1x128xf32>
    %cst_152 = arith.constant dense<0xFF800000> : vector<1xf32>
    %531 = vector.multi_reduction <maximumf>, %530, %cst_152 [1] : vector<1x128xf32> to vector<1xf32>
    %532 = vector.shape_cast %531 : vector<1xf32> to vector<1x1xf32>
    %cst_153 = arith.constant 0.000000e+00 : f32
    %533 = vector.broadcast %cst_153 : f32 to vector<1x1xf32>
    %534 = arith.subf %533, %532 : vector<1x1xf32>
    %c5 = arith.constant 5 : index
    %535 = memref.load %arg2[%c5] : memref<8xi32, #tpu.memory_space<smem>>
    %536 = arith.sitofp %535 : i32 to f32
    %c5_154 = arith.constant 5 : index
    %537 = memref.load %arg1[%c5_154] : memref<8xi32, #tpu.memory_space<smem>>
    %538 = arith.sitofp %537 : i32 to f32
    %539 = arith.mulf %536, %538 : f32
    %cst_155 = arith.constant 1.000000e+00 : f32
    %540 = arith.subf %cst_155, %536 : f32
    %541 = vector.broadcast %540 : f32 to vector<1x1xf32>
    %542 = arith.mulf %541, %534 : vector<1x1xf32>
    %543 = vector.broadcast %539 : f32 to vector<1x1xf32>
    %544 = arith.addf %543, %542 : vector<1x1xf32>
    %cst_156 = arith.constant 1.000000e+00 : f32
    %545 = vector.broadcast %cst_156 : f32 to vector<1x1xf32>
    %546 = arith.cmpf oeq, %534, %545 : vector<1x1xf32>
    %cst_157 = arith.constant 1.000000e+00 : f32
    %cst_158 = arith.constant 0.000000e+00 : f32
    %547 = vector.broadcast %cst_157 : f32 to vector<1x1xf32>
    %548 = vector.broadcast %cst_158 : f32 to vector<1x1xf32>
    %549 = arith.select %546, %547, %548 : vector<1x1xi1>, vector<1x1xf32>
    %cst_159 = arith.constant 1.000000e+00 : f32
    %550 = arith.subf %cst_159, %536 : f32
    %551 = vector.broadcast %550 : f32 to vector<1x1xf32>
    %552 = arith.mulf %551, %549 : vector<1x1xf32>
    %cst_160 = arith.constant 1.000000e+00 : f32
    %553 = vector.broadcast %cst_160 : f32 to vector<1x1xf32>
    %554 = arith.subf %553, %552 : vector<1x1xf32>
    %555 = arith.mulf %470, %554 : vector<1x1xf32>
    %556 = vector.broadcast %544 : vector<1x1xf32> to vector<1x128xf32>
    %557 = arith.cmpf oeq, %32, %556 : vector<1x128xf32>
    %cst_161 = arith.constant 1.000000e+00 : f32
    %cst_162 = arith.constant 0.000000e+00 : f32
    %558 = vector.broadcast %cst_161 : f32 to vector<1x128xf32>
    %559 = vector.broadcast %cst_162 : f32 to vector<1x128xf32>
    %560 = arith.select %557, %558, %559 : vector<1x128xi1>, vector<1x128xf32>
    %cst_163 = arith.constant dense<0.000000e+00> : vector<1x128xf32>
    %561 = tpu.matmul %560, %38, %cst_163 {dimension_numbers = #tpu.dot_dimension_numbers<[1], [0], [0], [1], [0, 0, 1, 1], [], []>} : vector<1x128xf32>, vector<128x128xf32>, vector<1x128xf32> -> vector<1x128xf32>
    %562 = tpu.concatenate %561, %501 in 1 : vector<1x128xf32>, vector<1x128xf32> -> vector<1x256xf32>
    %cst_164 = arith.constant dense<0.000000e+00> : vector<1x512xf32>
    %563 = tpu.matmul %562, %39, %cst_164 {dimension_numbers = #tpu.dot_dimension_numbers<[1], [0], [0], [1], [0, 0, 1, 1], [], []>} : vector<1x256xf32>, vector<256x512xf32>, vector<1x512xf32> -> vector<1x512xf32>
    %564 = arith.addf %563, %40 : vector<1x512xf32>
    %565 = vector.extract_strided_slice %564 {offsets = [0, 0], sizes = [1, 128], strides = [1, 1]} : vector<1x512xf32> to vector<1x128xf32>
    %566 = arith.negf %565 : vector<1x128xf32>
    %567 = math.exp %566 : vector<1x128xf32>
    %cst_165 = arith.constant 1.000000e+00 : f32
    %568 = vector.broadcast %cst_165 : f32 to vector<1x128xf32>
    %569 = arith.addf %568, %567 : vector<1x128xf32>
    %570 = arith.divf %568, %569 : vector<1x128xf32>
    %571 = vector.extract_strided_slice %564 {offsets = [0, 128], sizes = [1, 128], strides = [1, 1]} : vector<1x512xf32> to vector<1x128xf32>
    %572 = arith.negf %571 : vector<1x128xf32>
    %573 = math.exp %572 : vector<1x128xf32>
    %cst_166 = arith.constant 1.000000e+00 : f32
    %574 = vector.broadcast %cst_166 : f32 to vector<1x128xf32>
    %575 = arith.addf %574, %573 : vector<1x128xf32>
    %576 = arith.divf %574, %575 : vector<1x128xf32>
    %577 = vector.extract_strided_slice %564 {offsets = [0, 256], sizes = [1, 128], strides = [1, 1]} : vector<1x512xf32> to vector<1x128xf32>
    %578 = vector.extract_strided_slice %564 {offsets = [0, 384], sizes = [1, 128], strides = [1, 1]} : vector<1x512xf32> to vector<1x128xf32>
    %579 = arith.mulf %570, %578 : vector<1x128xf32>
    %580 = arith.addf %577, %579 : vector<1x128xf32>
    %581 = math.tanh %580 : vector<1x128xf32>
    %cst_167 = arith.constant 1.000000e+00 : f32
    %582 = vector.broadcast %cst_167 : f32 to vector<1x128xf32>
    %583 = arith.subf %582, %576 : vector<1x128xf32>
    %584 = arith.mulf %583, %581 : vector<1x128xf32>
    %585 = arith.mulf %576, %501 : vector<1x128xf32>
    %586 = arith.addf %584, %585 : vector<1x128xf32>
    %cst_168 = arith.constant dense<0.000000e+00> : vector<1x128xf32>
    %587 = tpu.matmul %586, %41, %cst_168 {dimension_numbers = #tpu.dot_dimension_numbers<[1], [0], [0], [1], [0, 0, 1, 1], [], []>} : vector<1x128xf32>, vector<128x128xf32>, vector<1x128xf32> -> vector<1x128xf32>
    %588 = arith.addf %587, %42 : vector<1x128xf32>
    %cst_169 = arith.constant dense<0xFF800000> : vector<1xf32>
    %589 = vector.multi_reduction <maximumf>, %588, %cst_169 [1] : vector<1x128xf32> to vector<1xf32>
    %590 = vector.shape_cast %589 : vector<1xf32> to vector<1x1xf32>
    %591 = vector.broadcast %590 : vector<1x1xf32> to vector<1x128xf32>
    %592 = arith.subf %588, %591 : vector<1x128xf32>
    %593 = math.exp %592 : vector<1x128xf32>
    %cst_170 = arith.constant dense<0.000000e+00> : vector<1xf32>
    %594 = vector.multi_reduction <add>, %593, %cst_170 [1] : vector<1x128xf32> to vector<1xf32>
    %595 = vector.shape_cast %594 : vector<1xf32> to vector<1x1xf32>
    %596 = math.log %595 : vector<1x1xf32>
    %597 = vector.broadcast %596 : vector<1x1xf32> to vector<1x128xf32>
    %598 = arith.subf %592, %597 : vector<1x128xf32>
    %cst_171 = arith.constant 0.000000e+00 : f32
    %599 = vector.broadcast %cst_171 : f32 to vector<1x128xf32>
    %600 = arith.select %36, %598, %599 : vector<1x128xi1>, vector<1x128xf32>
    %601 = vector.broadcast %555 : vector<1x1xf32> to vector<1x128xf32>
    %602 = arith.mulf %600, %601 : vector<1x128xf32>
    %c6_i32 = arith.constant 6 : i32
    %603 = vector.broadcast %c6_i32 : i32 to vector<8x1xi32>
    %604 = arith.cmpi eq, %37, %603 : vector<8x1xi32>
    %cst_172 = arith.constant 1.000000e+00 : f32
    %cst_173 = arith.constant 0.000000e+00 : f32
    %605 = vector.broadcast %cst_172 : f32 to vector<8x1xf32>
    %606 = vector.broadcast %cst_173 : f32 to vector<8x1xf32>
    %607 = arith.select %604, %605, %606 : vector<8x1xi1>, vector<8x1xf32>
    %608 = vector.broadcast %607 : vector<8x1xf32> to vector<8x128xf32>
    %609 = vector.broadcast %602 : vector<1x128xf32> to vector<8x128xf32>
    %610 = arith.mulf %608, %609 : vector<8x128xf32>
    %611 = arith.addf %526, %610 : vector<8x128xf32>
    %612 = vector.broadcast %590 : vector<1x1xf32> to vector<1x128xf32>
    %613 = arith.cmpf oeq, %588, %612 : vector<1x128xf32>
    %cst_174 = arith.constant 0xFF800000 : f32
    %614 = vector.broadcast %cst_174 : f32 to vector<1x128xf32>
    %615 = arith.select %613, %34, %614 : vector<1x128xi1>, vector<1x128xf32>
    %cst_175 = arith.constant dense<0xFF800000> : vector<1xf32>
    %616 = vector.multi_reduction <maximumf>, %615, %cst_175 [1] : vector<1x128xf32> to vector<1xf32>
    %617 = vector.shape_cast %616 : vector<1xf32> to vector<1x1xf32>
    %cst_176 = arith.constant 0.000000e+00 : f32
    %618 = vector.broadcast %cst_176 : f32 to vector<1x1xf32>
    %619 = arith.subf %618, %617 : vector<1x1xf32>
    %c6_177 = arith.constant 6 : index
    %620 = memref.load %arg2[%c6_177] : memref<8xi32, #tpu.memory_space<smem>>
    %621 = arith.sitofp %620 : i32 to f32
    %c6_178 = arith.constant 6 : index
    %622 = memref.load %arg1[%c6_178] : memref<8xi32, #tpu.memory_space<smem>>
    %623 = arith.sitofp %622 : i32 to f32
    %624 = arith.mulf %621, %623 : f32
    %cst_179 = arith.constant 1.000000e+00 : f32
    %625 = arith.subf %cst_179, %621 : f32
    %626 = vector.broadcast %625 : f32 to vector<1x1xf32>
    %627 = arith.mulf %626, %619 : vector<1x1xf32>
    %628 = vector.broadcast %624 : f32 to vector<1x1xf32>
    %629 = arith.addf %628, %627 : vector<1x1xf32>
    %cst_180 = arith.constant 1.000000e+00 : f32
    %630 = vector.broadcast %cst_180 : f32 to vector<1x1xf32>
    %631 = arith.cmpf oeq, %619, %630 : vector<1x1xf32>
    %cst_181 = arith.constant 1.000000e+00 : f32
    %cst_182 = arith.constant 0.000000e+00 : f32
    %632 = vector.broadcast %cst_181 : f32 to vector<1x1xf32>
    %633 = vector.broadcast %cst_182 : f32 to vector<1x1xf32>
    %634 = arith.select %631, %632, %633 : vector<1x1xi1>, vector<1x1xf32>
    %cst_183 = arith.constant 1.000000e+00 : f32
    %635 = arith.subf %cst_183, %621 : f32
    %636 = vector.broadcast %635 : f32 to vector<1x1xf32>
    %637 = arith.mulf %636, %634 : vector<1x1xf32>
    %cst_184 = arith.constant 1.000000e+00 : f32
    %638 = vector.broadcast %cst_184 : f32 to vector<1x1xf32>
    %639 = arith.subf %638, %637 : vector<1x1xf32>
    %640 = arith.mulf %555, %639 : vector<1x1xf32>
    %641 = vector.broadcast %629 : vector<1x1xf32> to vector<1x128xf32>
    %642 = arith.cmpf oeq, %32, %641 : vector<1x128xf32>
    %cst_185 = arith.constant 1.000000e+00 : f32
    %cst_186 = arith.constant 0.000000e+00 : f32
    %643 = vector.broadcast %cst_185 : f32 to vector<1x128xf32>
    %644 = vector.broadcast %cst_186 : f32 to vector<1x128xf32>
    %645 = arith.select %642, %643, %644 : vector<1x128xi1>, vector<1x128xf32>
    %cst_187 = arith.constant dense<0.000000e+00> : vector<1x128xf32>
    %646 = tpu.matmul %645, %38, %cst_187 {dimension_numbers = #tpu.dot_dimension_numbers<[1], [0], [0], [1], [0, 0, 1, 1], [], []>} : vector<1x128xf32>, vector<128x128xf32>, vector<1x128xf32> -> vector<1x128xf32>
    %647 = tpu.concatenate %646, %586 in 1 : vector<1x128xf32>, vector<1x128xf32> -> vector<1x256xf32>
    %cst_188 = arith.constant dense<0.000000e+00> : vector<1x512xf32>
    %648 = tpu.matmul %647, %39, %cst_188 {dimension_numbers = #tpu.dot_dimension_numbers<[1], [0], [0], [1], [0, 0, 1, 1], [], []>} : vector<1x256xf32>, vector<256x512xf32>, vector<1x512xf32> -> vector<1x512xf32>
    %649 = arith.addf %648, %40 : vector<1x512xf32>
    %650 = vector.extract_strided_slice %649 {offsets = [0, 0], sizes = [1, 128], strides = [1, 1]} : vector<1x512xf32> to vector<1x128xf32>
    %651 = arith.negf %650 : vector<1x128xf32>
    %652 = math.exp %651 : vector<1x128xf32>
    %cst_189 = arith.constant 1.000000e+00 : f32
    %653 = vector.broadcast %cst_189 : f32 to vector<1x128xf32>
    %654 = arith.addf %653, %652 : vector<1x128xf32>
    %655 = arith.divf %653, %654 : vector<1x128xf32>
    %656 = vector.extract_strided_slice %649 {offsets = [0, 128], sizes = [1, 128], strides = [1, 1]} : vector<1x512xf32> to vector<1x128xf32>
    %657 = arith.negf %656 : vector<1x128xf32>
    %658 = math.exp %657 : vector<1x128xf32>
    %cst_190 = arith.constant 1.000000e+00 : f32
    %659 = vector.broadcast %cst_190 : f32 to vector<1x128xf32>
    %660 = arith.addf %659, %658 : vector<1x128xf32>
    %661 = arith.divf %659, %660 : vector<1x128xf32>
    %662 = vector.extract_strided_slice %649 {offsets = [0, 256], sizes = [1, 128], strides = [1, 1]} : vector<1x512xf32> to vector<1x128xf32>
    %663 = vector.extract_strided_slice %649 {offsets = [0, 384], sizes = [1, 128], strides = [1, 1]} : vector<1x512xf32> to vector<1x128xf32>
    %664 = arith.mulf %655, %663 : vector<1x128xf32>
    %665 = arith.addf %662, %664 : vector<1x128xf32>
    %666 = math.tanh %665 : vector<1x128xf32>
    %cst_191 = arith.constant 1.000000e+00 : f32
    %667 = vector.broadcast %cst_191 : f32 to vector<1x128xf32>
    %668 = arith.subf %667, %661 : vector<1x128xf32>
    %669 = arith.mulf %668, %666 : vector<1x128xf32>
    %670 = arith.mulf %661, %586 : vector<1x128xf32>
    %671 = arith.addf %669, %670 : vector<1x128xf32>
    %cst_192 = arith.constant dense<0.000000e+00> : vector<1x128xf32>
    %672 = tpu.matmul %671, %41, %cst_192 {dimension_numbers = #tpu.dot_dimension_numbers<[1], [0], [0], [1], [0, 0, 1, 1], [], []>} : vector<1x128xf32>, vector<128x128xf32>, vector<1x128xf32> -> vector<1x128xf32>
    %673 = arith.addf %672, %42 : vector<1x128xf32>
    %cst_193 = arith.constant dense<0xFF800000> : vector<1xf32>
    %674 = vector.multi_reduction <maximumf>, %673, %cst_193 [1] : vector<1x128xf32> to vector<1xf32>
    %675 = vector.shape_cast %674 : vector<1xf32> to vector<1x1xf32>
    %676 = vector.broadcast %675 : vector<1x1xf32> to vector<1x128xf32>
    %677 = arith.subf %673, %676 : vector<1x128xf32>
    %678 = math.exp %677 : vector<1x128xf32>
    %cst_194 = arith.constant dense<0.000000e+00> : vector<1xf32>
    %679 = vector.multi_reduction <add>, %678, %cst_194 [1] : vector<1x128xf32> to vector<1xf32>
    %680 = vector.shape_cast %679 : vector<1xf32> to vector<1x1xf32>
    %681 = math.log %680 : vector<1x1xf32>
    %682 = vector.broadcast %681 : vector<1x1xf32> to vector<1x128xf32>
    %683 = arith.subf %677, %682 : vector<1x128xf32>
    %cst_195 = arith.constant 0.000000e+00 : f32
    %684 = vector.broadcast %cst_195 : f32 to vector<1x128xf32>
    %685 = arith.select %36, %683, %684 : vector<1x128xi1>, vector<1x128xf32>
    %686 = vector.broadcast %640 : vector<1x1xf32> to vector<1x128xf32>
    %687 = arith.mulf %685, %686 : vector<1x128xf32>
    %c7_i32 = arith.constant 7 : i32
    %688 = vector.broadcast %c7_i32 : i32 to vector<8x1xi32>
    %689 = arith.cmpi eq, %37, %688 : vector<8x1xi32>
    %cst_196 = arith.constant 1.000000e+00 : f32
    %cst_197 = arith.constant 0.000000e+00 : f32
    %690 = vector.broadcast %cst_196 : f32 to vector<8x1xf32>
    %691 = vector.broadcast %cst_197 : f32 to vector<8x1xf32>
    %692 = arith.select %689, %690, %691 : vector<8x1xi1>, vector<8x1xf32>
    %693 = vector.broadcast %692 : vector<8x1xf32> to vector<8x128xf32>
    %694 = vector.broadcast %687 : vector<1x128xf32> to vector<8x128xf32>
    %695 = arith.mulf %693, %694 : vector<8x128xf32>
    %696 = arith.addf %611, %695 : vector<8x128xf32>
    %c0_198 = arith.constant 0 : index
    %c0_199 = arith.constant 0 : index
    %697 = vector.load %arg11[%c0_198, %c0_199] : memref<8x128xf32, #tpu.memory_space<vmem>>, vector<8x128xf32>
    tpu.vector_store %arg11[%c0_198, %c0_199], %696 {strides = array<i32>} : memref<8x128xf32, #tpu.memory_space<vmem>>, vector<8x128xf32>,
    return
  }
}

</mosaic_0001>

<bundles_post_ra>
// kernel: seq2seq_forward.1
= control target key start
LH: loop header
LB: loop body
LE: loop exit
PB: predicated region body
PF: predicated region fallthrough
CT: control target
= control target key end

     0   :  { %16 = vsyncpa [#allocation5], 0  ;;  %s6802_s0 = inlined_call_operand.vmem [shape: s32[7], index: 0, kind: input, shape index: {}]   ;;  %s6803_s1 = inlined_call_operand.vmem [shape: s32[8], index: 1, kind: input, shape index: {}]   ;;  %s6804_s2 = inlined_call_operand.vmem [shape: s32[8], index: 2, kind: input, shape index: {}]   ;;  %s6805_s3 = inlined_call_operand.hbm [shape: f32[40,128], index: 3, kind: input, shape index: {}]   ;;  %s6806_s4 = inlined_call_operand.hbm [shape: f32[256,512], index: 4, kind: input, shape index: {}]   ;;  %s6807_s5 = inlined_call_operand.vmem [shape: f32[1,512], index: 5, kind: input, shape index: {}]   ;;  %s6808_s6 = inlined_call_operand.hbm [shape: f32[128,128], index: 6, kind: input, shape index: {}]   ;;  %s6809_s7 = inlined_call_operand.hbm [shape: f32[256,512], index: 7, kind: input, shape index: {}]   ;;  %s6810_s8 = inlined_call_operand.hbm [shape: f32[1,512], index: 8, kind: input, shape index: {}]   ;;  %s6811_s9 = inlined_call_operand.hbm [shape: f32[128,128], index: 9, kind: input, shape index: {}]   ;;  %s6812_s10 = inlined_call_operand.vmem [shape: f32[1,128], index: 10, kind: input, shape index: {}]   ;;  %s6813_s11 = inlined_call_operand.hbm [shape: f32[8,128], index: 11, kind: output, shape index: {}]  }
   0x1   :  { %17 = vsyncpa [#allocation7], 0 }
   0x2   :  { %18 = vsyncpa [#allocation3], 0 }
   0x3   :  { %19 = vsyncpa [#allocation11], 0 }
   0x4   :  { %20 = vsyncpa [#allocation14], 0 }
   0x5   :  { %21 = vsyncpa [#allocation17], 0  ;;  %s37_s19 = sshll.u32 %s6803_s1, 4  ;;  %s38_s19 = int_to_ptr.vmem [resolvable:$true] %s37_s19 }
   0x6   :  { %22 = vsyncpa [#allocation4], 0  ;;  %s67_s22 = sshll.u32 %s6806_s4, 4  ;;  %s3851_s23 = smov [#allocation6]   ;;  %s68_s22 = int_to_ptr.hbm [resolvable:$true] %s67_s22 }
   0x7   :  { %40 = dma.vmem_to_smem %s38_s19, 16, %s3851_s23, [#allocation7]  }
   0x8   :  { %s3852_s24 = smov [#allocation10]   ;;  %s3853_s26 = smov 512  }
   0x9   :  { %s69_s25 = sshll.u32 %s3852_s24, 4  ;;  %s3854_s27 = smov 32   ;;  %s70_s25 = int_to_ptr.vmem [resolvable:$true] %s69_s25 }
   0xa   :  { %75 = dma.hbm_to_vmem [thread:$0]  %s68_s22, 16384, %s70_s25, [#allocation11], %s3853_s26, %s3853_s26, %s3854_s27  }
   0xb   :  { %s95_s30 = sshll.u32 %s6809_s7, 4  ;;  %s3855_s1 = smov [#allocation13]   ;;  %s96_s30 = int_to_ptr.hbm [resolvable:$true] %s95_s30 }
   0xc   :  { %s97_s12 = sshll.u32 %s3855_s1, 4  ;;  %s28_s4 = sshll.u32 %s6802_s0, 4  ;;  %s98_s12 = int_to_ptr.vmem [resolvable:$true] %s97_s12  ;;  %s29_s4 = int_to_ptr.vmem [resolvable:$true] %s28_s4 }
   0xd   :  { %103 = dma.hbm_to_vmem [thread:$0]  %s96_s30, 16384, %s98_s12, [#allocation14], %s3853_s26, %s3853_s26, %s3854_s27  }
   0xe   :  { %s3856_s15 = smov [#allocation2]   ;;  %s46_s18 = sshll.u32 %s6804_s2, 4  ;;  %s47_s18 = int_to_ptr.vmem [resolvable:$true] %s46_s18 }
   0xf   :  { %31 = dma.vmem_to_smem %s29_s4, 16, %s3856_s15, [#allocation5]  }
  0x10   :  { %s54_s7 = sshll.u32 %s6805_s3, 4  ;;  %s3857_s21 = smov [#allocation8]   ;;  %s55_s7 = int_to_ptr.hbm [resolvable:$true] %s54_s7 }
  0x11   :  { %49 = dma.vmem_to_smem %s47_s18, 16, %s3857_s21, [#allocation7]  }
  0x12   :  { %s3858_s22 = smov [#allocation9]   ;;  %s3859_s0 = smov 128  }
  0x13   :  { %s56_s23 = sshll.u32 %s3858_s22, 4  ;;  %s3860_s24 = smov 8   ;;  %s57_s23 = int_to_ptr.vmem [resolvable:$true] %s56_s23 }
  0x14   :  { %62 = dma.hbm_to_vmem [thread:$0]  %s55_s7, 640, %s57_s23, [#allocation3], %s3859_s0, %s3859_s0, %s3860_s24  }
  0x15   :  { %s82_s27 = sshll.u32 %s6808_s6, 4  ;;  %s3861_s2 = smov [#allocation12]   ;;  %s83_s27 = int_to_ptr.hbm [resolvable:$true] %s82_s27 }
  0x16   :  { %s84_s28 = sshll.u32 %s3861_s2, 4  ;;  %s109_s3 = sshll.u32 %s6810_s8, 4  ;;  %s85_s28 = int_to_ptr.vmem [resolvable:$true] %s84_s28  ;;  %s110_s3 = int_to_ptr.hbm [resolvable:$true] %s109_s3 }
  0x17   :  { %90 = dma.hbm_to_vmem [thread:$0]  %s83_s27, 2048, %s85_s28, [#allocation11], %s3859_s0, %s3859_s0, %s3860_s24  }
  0x18   :  { %s3862_s1 = smov [#allocation15]   ;;  %s119_s4 = sshll.u32 %s6811_s9, 4  ;;  %s120_s4 = int_to_ptr.hbm [resolvable:$true] %s119_s4 }
  0x19   :  { %s111_s12 = sshll.u32 %s3862_s1, 4  ;;  %s3863_s6 = smov [#allocation16]   ;;  %s112_s12 = int_to_ptr.vmem [resolvable:$true] %s111_s12 }
  0x1a   :  { %114 = dma.hbm_to_vmem [thread:$0]  %s110_s3, 64, %s112_s12, [#allocation14]  }
  0x1b   :  { %s121_s15 = sshll.u32 %s3863_s6, 4  ;;  %s122_s15 = int_to_ptr.vmem [resolvable:$true] %s121_s15 }
  0x1c   :  { %127 = dma.hbm_to_vmem [thread:$0]  %s120_s4, 2048, %s122_s15, [#allocation17], %s3859_s0, %s3859_s0, %s3860_s24  }
  0x1d   :  { %3837 = dma.done.wait [#allocation5], 16  }
  0x1e   :  { %3838 = vsyncadd [#allocation5], 4294967280 }
  0x1f   :  { %3839 = dma.done.wait [#allocation7], 32  }
  0x20   :  { %3840 = vsyncadd [#allocation7], 4294967264 }
  0x21   :  { %3841 = dma.done.wait [#allocation3], 640  }
  0x22   :  { %3842 = vsyncadd [#allocation3], 4294966656 }
  0x23   :  { %3843 = dma.done.wait [#allocation11], 18432  }
  0x24   :  { %3844 = vsyncadd [#allocation11], 4294948864 }
  0x25   :  { %3845 = dma.done.wait [#allocation14], 16448  }
  0x26   :  { %3846 = vsyncadd [#allocation14], 4294950848 }
  0x27   :  { %3847 = dma.done.wait [#allocation17], 2048  }
  0x28   :  { %3848 = vsyncadd [#allocation17], 4294965248 }
  0x29   :  { %166 = sfence }
  0x2a   :  { %v230_v0 = vld [vmem:[#allocation10 + $0x1e0] sm:$0xff]  ;;  %v231_v1 = vld [vmem:[#allocation10 + $0x1e8] sm:$0xff]  ;;  %s3954_s8 = sld [smem:[#allocation2 + $0x6]]  ;;  %v233_v63 = vld [vmem:[#allocation10 + $0x1f8] sm:$0xff] }
  0x2b   :  { %v226_v2 = vld [vmem:[#allocation10 + $0x1c0] sm:$0xff]  ;;  %308 = vmatpush.msra.mxu0 %v230_v0  ;;  %348 = vmatpush.msra.mxu2 %v231_v1  ;;  %v227_v4 = vld [vmem:[#allocation10 + $0x1c8] sm:$0xff]  ;;  %v232_v0 = vld [vmem:[#allocation10 + $0x1f0] sm:$0xff]  ;;  %s963_s19 = sld [smem:[#allocation8]] }
  0x2c   :  { %v294_v3 = vld [vmem:[#allocation10 + $0x3e0] sm:$0xff]  ;;  %v295_v5 = vld [vmem:[#allocation10 + $0x3e8] sm:$0xff]  ;;  %s965_s20 = sld [smem:[#allocation6]] }
  0x2d   :  { %328 = vmatpush.msra.mxu1 %v294_v3  ;;  %368 = vmatpush.msra.mxu3 %v295_v5  ;;  %v222_v6 = vld [vmem:[#allocation10 + $0x1a0] sm:$0xff]  ;;  %v223_v8 = vld [vmem:[#allocation10 + $0x1a8] sm:$0xff]  ;;  %v228_v3 = vld [vmem:[#allocation10 + $0x1d0] sm:$0xff]  ;;  %s2998_s0 = sld [smem:[#allocation8 + $0x1]] }
  0x2e   :  { %v290_v7 = vld [vmem:[#allocation10 + $0x3c0] sm:$0xff]  ;;  %309 = vmatpush.msra.mxu0 %v226_v2  ;;  %349 = vmatpush.msra.mxu2 %v227_v4  ;;  %v291_v9 = vld [vmem:[#allocation10 + $0x3c8] sm:$0xff]  ;;  %v229_v4 = vld [vmem:[#allocation10 + $0x1d8] sm:$0xff]  ;;  %s2999_s24 = sld [smem:[#allocation6 + $0x1]] }
  0x2f   :  { %v286_v10 = vld [vmem:[#allocation10 + $0x3a0] sm:$0xff]  ;;  %329 = vmatpush.msra.mxu1 %v290_v7  ;;  %369 = vmatpush.msra.mxu3 %v291_v9  ;;  %v219_v12 = vld [vmem:[#allocation10 + $0x188] sm:$0xff]  ;;  %v297_v5 = vld [vmem:[#allocation10 + $0x3f8] sm:$0xff]  ;;  %v6817_v7 = vmov 0.0   ;;  %s3003_s30 = sld [smem:[#allocation8 + $0x2]] }
  0x30   :  { %v218_v11 = vld [vmem:[#allocation10 + $0x180] sm:$0xff]  ;;  %v287_v13 = vld [vmem:[#allocation10 + $0x3a8] sm:$0xff]  ;;  %310 = vmatpush.msra.mxu0 %v222_v6  ;;  %350 = vmatpush.msra.mxu2 %v223_v8  ;;  %s168_s9 = scalar_lea.vmem [#allocation9], %s3954_s8  ;;  %v224_v6 = vld [vmem:[#allocation10 + $0x1b0] sm:$0xff]  ;;  %s3004_s3 = sld [smem:[#allocation6 + $0x2]] }
  0x31   :  { %v282_v14 = vld [vmem:[#allocation10 + $0x380] sm:$0xff]  ;;  %v283_v15 = vld [vmem:[#allocation10 + $0x388] sm:$0xff]  ;;  %330 = vmatpush.msra.mxu1 %v286_v10  ;;  %370 = vmatpush.msra.mxu3 %v287_v13  ;;  %v3957_v62 = vld [vmem:[%s168_s9] sm:$0x1]  ;;  %s964_s7 = scvt.s32.f32 %s963_s19  ;;  %s3008_s4 = sld [smem:[#allocation8 + $0x3]] }
  0x32   :  { %v214_v16 = vld [vmem:[#allocation10 + $0x160] sm:$0xff]  ;;  %v215_v17 = vld [vmem:[#allocation10 + $0x168] sm:$0xff]  ;;  %311 = vmatpush.msra.mxu0 %v218_v11  ;;  %351 = vmatpush.msra.mxu2 %v219_v12  ;;  %v225_v8 = vld [vmem:[#allocation10 + $0x1b8] sm:$0xff]  ;;  %s966_s21 = scvt.s32.f32 %s965_s20  ;;  %s3009_s6 = sld [smem:[#allocation6 + $0x3]] }
  0x33   :  { %v278_v18 = vld [vmem:[#allocation10 + $0x360] sm:$0xff]  ;;  %v279_v19 = vld [vmem:[#allocation10 + $0x368] sm:$0xff]  ;;  %331 = vmatpush.msra.mxu1 %v282_v14  ;;  %371 = vmatpush.msra.mxu3 %v283_v15  ;;  %v293_v9 = vld [vmem:[#allocation10 + $0x3d8] sm:$0xff]  ;;  %s968_s22 = ssub.f32 1.0, %s964_s7  ;;  %s1250_s25 = scvt.s32.f32 %s2998_s0 }
  0x34   :  { %v210_v20 = vld [vmem:[#allocation10 + $0x140] sm:$0xff]  ;;  %v211_v21 = vld [vmem:[#allocation10 + $0x148] sm:$0xff]  ;;  %312 = vmatpush.msra.mxu0 %v214_v16  ;;  %352 = vmatpush.msra.mxu2 %v215_v17  ;;  %v220_v10 = vld [vmem:[#allocation10 + $0x190] sm:$0xff]  ;;  %s967_s23 = smul.f32 %s966_s21, %s964_s7  ;;  %s1252_s26 = scvt.s32.f32 %s2999_s24 }
  0x35   :  { %v274_v22 = vld [vmem:[#allocation10 + $0x340] sm:$0xff]  ;;  %v275_v23 = vld [vmem:[#allocation10 + $0x348] sm:$0xff]  ;;  %332 = vmatpush.msra.mxu1 %v278_v18  ;;  %372 = vmatpush.msra.mxu3 %v279_v19  ;;  %v296_v11 = vld [vmem:[#allocation10 + $0x3f0] sm:$0xff]  ;;  %s1254_s27 = ssub.f32 1.0, %s1250_s25  ;;  %s1537_s1 = scvt.s32.f32 %s3003_s30 }
  0x36   :  { %v206_v24 = vld [vmem:[#allocation10 + $0x120] sm:$0xff]  ;;  %v207_v25 = vld [vmem:[#allocation10 + $0x128] sm:$0xff]  ;;  %313 = vmatpush.msra.mxu0 %v210_v20  ;;  %353 = vmatpush.msra.mxu2 %v211_v21  ;;  %v221_v12 = vld [vmem:[#allocation10 + $0x198] sm:$0xff]  ;;  %s1253_s2 = smul.f32 %s1252_s26, %s1250_s25  ;;  %s1539_s12 = scvt.s32.f32 %s3004_s3 }
  0x37   :  { %v270_v26 = vld [vmem:[#allocation10 + $0x320] sm:$0xff]  ;;  %v271_v27 = vld [vmem:[#allocation10 + $0x328] sm:$0xff]  ;;  %333 = vmatpush.msra.mxu1 %v274_v22  ;;  %373 = vmatpush.msra.mxu3 %v275_v23  ;;  %v289_v13 = vld [vmem:[#allocation10 + $0x3b8] sm:$0xff]  ;;  %s1541_s13 = ssub.f32 1.0, %s1537_s1  ;;  %s1824_s15 = scvt.s32.f32 %s3008_s4 }
  0x38   :  { %v202_v28 = vld [vmem:[#allocation10 + $0x100] sm:$0xff]  ;;  %v203_v29 = vld [vmem:[#allocation10 + $0x108] sm:$0xff]  ;;  %314 = vmatpush.msra.mxu0 %v206_v24  ;;  %354 = vmatpush.msra.mxu2 %v207_v25  ;;  %v216_v14 = vld [vmem:[#allocation10 + $0x170] sm:$0xff]  ;;  %s1540_s14 = smul.f32 %s1539_s12, %s1537_s1  ;;  %s1826_s8 = scvt.s32.f32 %s3009_s6 }
  0x39   :  { %v266_v30 = vld [vmem:[#allocation10 + $0x300] sm:$0xff]  ;;  %v267_v31 = vld [vmem:[#allocation10 + $0x308] sm:$0xff]  ;;  %334 = vmatpush.msra.mxu1 %v270_v26  ;;  %374 = vmatpush.msra.mxu3 %v271_v27  ;;  %v292_v15 = vld [vmem:[#allocation10 + $0x3d0] sm:$0xff]  ;;  %s1828_s9 = ssub.f32 1.0, %s1824_s15 }
  0x3a   :  { %v198_v32 = vld [vmem:[#allocation10 + $0xe0] sm:$0xff]  ;;  %v199_v33 = vld [vmem:[#allocation10 + $0xe8] sm:$0xff]  ;;  %315 = vmatpush.msra.mxu0 %v202_v28  ;;  %355 = vmatpush.msra.mxu2 %v203_v29  ;;  %v217_v16 = vld [vmem:[#allocation10 + $0x178] sm:$0xff]  ;;  %s1827_s16 = smul.f32 %s1826_s8, %s1824_s15  ;;  %s3013_s18 = sld [smem:[#allocation8 + $0x4]] }
  0x3b   :  { %v262_v34 = vld [vmem:[#allocation10 + $0x2e0] sm:$0xff]  ;;  %v263_v35 = vld [vmem:[#allocation10 + $0x2e8] sm:$0xff]  ;;  %335 = vmatpush.msra.mxu1 %v266_v30  ;;  %375 = vmatpush.msra.mxu3 %v267_v31  ;;  %v285_v17 = vld [vmem:[#allocation10 + $0x398] sm:$0xff]  ;;  %s3014_s19 = sld [smem:[#allocation6 + $0x4]]  ;;  %s2973_s15 = sshll.u32 %s6813_s11, 4  ;;  %s2974_s15 = int_to_ptr.hbm [resolvable:$true] %s2973_s15 }
  0x3c   :  { %v194_v36 = vld [vmem:[#allocation10 + $0xc0] sm:$0xff]  ;;  %v195_v37 = vld [vmem:[#allocation10 + $0xc8] sm:$0xff]  ;;  %316 = vmatpush.msra.mxu0 %v198_v32  ;;  %356 = vmatpush.msra.mxu2 %v199_v33  ;;  %v212_v18 = vld [vmem:[#allocation10 + $0x150] sm:$0xff]  ;;  %s3019_s0 = sld [smem:[#allocation6 + $0x5]] }
  0x3d   :  { %v258_v38 = vld [vmem:[#allocation10 + $0x2c0] sm:$0xff]  ;;  %v259_v39 = vld [vmem:[#allocation10 + $0x2c8] sm:$0xff]  ;;  %336 = vmatpush.msra.mxu1 %v262_v34  ;;  %376 = vmatpush.msra.mxu3 %v263_v35  ;;  %v288_v19 = vld [vmem:[#allocation10 + $0x3b0] sm:$0xff]  ;;  %s3024_s28 = sld [smem:[#allocation6 + $0x6]] }
  0x3e   :  { %v190_v40 = vld [vmem:[#allocation10 + $0xa0] sm:$0xff]  ;;  %v191_v41 = vld [vmem:[#allocation10 + $0xa8] sm:$0xff]  ;;  %317 = vmatpush.msra.mxu0 %v194_v36  ;;  %357 = vmatpush.msra.mxu2 %v195_v37  ;;  %v213_v20 = vld [vmem:[#allocation10 + $0x158] sm:$0xff] }
  0x3f   :  { %v254_v42 = vld [vmem:[#allocation10 + $0x2a0] sm:$0xff]  ;;  %v255_v43 = vld [vmem:[#allocation10 + $0x2a8] sm:$0xff]  ;;  %337 = vmatpush.msra.mxu1 %v258_v38  ;;  %377 = vmatpush.msra.mxu3 %v259_v39  ;;  %v281_v21 = vld [vmem:[#allocation10 + $0x378] sm:$0xff] }
  0x40   :  { %v186_v44 = vld [vmem:[#allocation10 + $0x80] sm:$0xff]  ;;  %v187_v45 = vld [vmem:[#allocation10 + $0x88] sm:$0xff]  ;;  %318 = vmatpush.msra.mxu0 %v190_v40  ;;  %358 = vmatpush.msra.mxu2 %v191_v41  ;;  %v208_v22 = vld [vmem:[#allocation10 + $0x130] sm:$0xff]  ;;  %s2111_s20 = scvt.s32.f32 %s3013_s18 }
  0x41   :  { %v250_v46 = vld [vmem:[#allocation10 + $0x280] sm:$0xff]  ;;  %v251_v47 = vld [vmem:[#allocation10 + $0x288] sm:$0xff]  ;;  %338 = vmatpush.msra.mxu1 %v254_v42  ;;  %378 = vmatpush.msra.mxu3 %v255_v43  ;;  %v284_v23 = vld [vmem:[#allocation10 + $0x390] sm:$0xff]  ;;  %s2113_s7 = scvt.s32.f32 %s3014_s19 }
  0x42   :  { %v182_v48 = vld [vmem:[#allocation10 + $0x60] sm:$0xff]  ;;  %v183_v49 = vld [vmem:[#allocation10 + $0x68] sm:$0xff]  ;;  %319 = vmatpush.msra.mxu0 %v186_v44  ;;  %359 = vmatpush.msra.mxu2 %v187_v45  ;;  %v209_v24 = vld [vmem:[#allocation10 + $0x138] sm:$0xff]  ;;  %s2115_s21 = ssub.f32 1.0, %s2111_s20  ;;  %s2400_s25 = scvt.s32.f32 %s3019_s0 }
  0x43   :  { %v246_v50 = vld [vmem:[#allocation10 + $0x260] sm:$0xff]  ;;  %v247_v51 = vld [vmem:[#allocation10 + $0x268] sm:$0xff]  ;;  %339 = vmatpush.msra.mxu1 %v250_v46  ;;  %379 = vmatpush.msra.mxu3 %v251_v47  ;;  %v277_v25 = vld [vmem:[#allocation10 + $0x358] sm:$0xff]  ;;  %s2687_s30 = scvt.s32.f32 %s3024_s28 }
  0x44   :  { %v178_v52 = vld [vmem:[#allocation10 + $0x40] sm:$0xff]  ;;  %v179_v53 = vld [vmem:[#allocation10 + $0x48] sm:$0xff]  ;;  %320 = vmatpush.msra.mxu0 %v182_v48  ;;  %360 = vmatpush.msra.mxu2 %v183_v49  ;;  %v204_v26 = vld [vmem:[#allocation10 + $0x110] sm:$0xff] }
  0x45   :  { %v242_v54 = vld [vmem:[#allocation10 + $0x240] sm:$0xff]  ;;  %v243_v55 = vld [vmem:[#allocation10 + $0x248] sm:$0xff]  ;;  %340 = vmatpush.msra.mxu1 %v246_v50  ;;  %380 = vmatpush.msra.mxu3 %v247_v51  ;;  %v280_v27 = vld [vmem:[#allocation10 + $0x370] sm:$0xff] }
  0x46   :  { %v174_v56 = vld [vmem:[#allocation10 + $0x20] sm:$0xff]  ;;  %v175_v57 = vld [vmem:[#allocation10 + $0x28] sm:$0xff]  ;;  %321 = vmatpush.msra.mxu0 %v178_v52  ;;  %361 = vmatpush.msra.mxu2 %v179_v53  ;;  %v205_v28 = vld [vmem:[#allocation10 + $0x118] sm:$0xff] }
  0x47   :  { %v238_v58 = vld [vmem:[#allocation10 + $0x220] sm:$0xff]  ;;  %v239_v59 = vld [vmem:[#allocation10 + $0x228] sm:$0xff]  ;;  %341 = vmatpush.msra.mxu1 %v242_v54  ;;  %381 = vmatpush.msra.mxu3 %v243_v55  ;;  %v273_v29 = vld [vmem:[#allocation10 + $0x338] sm:$0xff] }
  0x48   :  { %v170_v60 = vld [vmem:[#allocation10] sm:$0xff]  ;;  %v171_v61 = vld [vmem:[#allocation10 + $0x8] sm:$0xff]  ;;  %322 = vmatpush.msra.mxu0 %v174_v56  ;;  %362 = vmatpush.msra.mxu2 %v175_v57  ;;  %v200_v30 = vld [vmem:[#allocation10 + $0xf0] sm:$0xff] }
  0x49   :  { %342 = vmatpush.msra.mxu1 %v238_v58  ;;  %382 = vmatpush.msra.mxu3 %v239_v59  ;;  %v234_v1 = vld [vmem:[#allocation10 + $0x200] sm:$0xff]  ;;  %v235_v2 = vld [vmem:[#allocation10 + $0x208] sm:$0xff]  ;;  %v276_v31 = vld [vmem:[#allocation10 + $0x350] sm:$0xff] }
  0x4a   :  { %323 = vmatpush.msra.mxu0 %v170_v60  ;;  %363 = vmatpush.msra.mxu2 %v171_v61  ;;  %v201_v32 = vld [vmem:[#allocation10 + $0xf8] sm:$0xff]  ;;  %v196_v34 = vld [vmem:[#allocation10 + $0xd0] sm:$0xff] }
  0x4b   :  { %324 = vmatmul.f32.vlgmr.msra.gmra.mxu0 %v3957_v62  ;;  %343 = vmatpush.msra.mxu1 %v234_v1  ;;  %v269_v33 = vld [vmem:[#allocation10 + $0x318] sm:$0xff]  ;;  %v272_v35 = vld [vmem:[#allocation10 + $0x330] sm:$0xff] }
  0x4c   :  { %428 = vmatpush.msrb.mxu2 %v233_v63  ;;  %388 = vmatpush.msrb.mxu0 %v232_v0  ;;  %v197_v36 = vld [vmem:[#allocation10 + $0xd8] sm:$0xff]  ;;  %v192_v38 = vld [vmem:[#allocation10 + $0xb0] sm:$0xff] }
  0x4d   :  { %364 = vmatmul.f32.vlgmr.msra.gmra.mxu2 %v3957_v62  ;;  %383 = vmatpush.msra.mxu3 %v235_v2  ;;  %v265_v37 = vld [vmem:[#allocation10 + $0x2f8] sm:$0xff]  ;;  %v268_v39 = vld [vmem:[#allocation10 + $0x310] sm:$0xff] }
  0x4e   :  { %344 = vmatmul.f32.vlgmr.msra.gmra.mxu1 %v6817_v7  ;;  %389 = vmatpush.msrb.mxu0 %v228_v3  ;;  %v193_v40 = vld [vmem:[#allocation10 + $0xb8] sm:$0xff]  ;;  %v188_v42 = vld [vmem:[#allocation10 + $0x90] sm:$0xff] }
  0x4f   :  { %429 = vmatpush.msrb.mxu2 %v229_v4  ;;  %448 = vmatpush.msrb.mxu3 %v297_v5  ;;  %v261_v41 = vld [vmem:[#allocation10 + $0x2d8] sm:$0xff]  ;;  %v264_v43 = vld [vmem:[#allocation10 + $0x2f0] sm:$0xff]  ;;  %v3969_v4 = vld [vmem:[#allocation12 + $0x68] sm:$0xff] }
  0x50   :  { %384 = vmatmul.f32.vlgmr.msra.gmra.mxu3 %v6817_v7  ;;  %390 = vmatpush.msrb.mxu0 %v224_v6  ;;  %v189_v44 = vld [vmem:[#allocation10 + $0x98] sm:$0xff]  ;;  %v184_v46 = vld [vmem:[#allocation10 + $0x70] sm:$0xff]  ;;  %v3973_v6 = vld [vmem:[#allocation12 + $0x60] sm:$0xff] }
  0x51   :  { %430 = vmatpush.msrb.mxu2 %v225_v8  ;;  %449 = vmatpush.msrb.mxu3 %v293_v9  ;;  %v257_v45 = vld [vmem:[#allocation10 + $0x2b8] sm:$0xff]  ;;  %v260_v47 = vld [vmem:[#allocation10 + $0x2d0] sm:$0xff] }
  0x52   :  { %391 = vmatpush.msrb.mxu0 %v220_v10  ;;  %408 = vmatpush.msrb.mxu1 %v296_v11  ;;  %v185_v48 = vld [vmem:[#allocation10 + $0x78] sm:$0xff]  ;;  %v180_v50 = vld [vmem:[#allocation10 + $0x50] sm:$0xff]  ;;  %v3984_v10 = vld [vmem:[#allocation12 + $0x48] sm:$0xff] }
  0x53   :  { %431 = vmatpush.msrb.mxu2 %v221_v12  ;;  %450 = vmatpush.msrb.mxu3 %v289_v13  ;;  %v253_v49 = vld [vmem:[#allocation10 + $0x298] sm:$0xff]  ;;  %v256_v51 = vld [vmem:[#allocation10 + $0x2b0] sm:$0xff]  ;;  %v3987_v11 = vld [vmem:[#allocation12 + $0x40] sm:$0xff]  ;;  %v6814_v13 = vlaneseq }
  0x54   :  { %392 = vmatpush.msrb.mxu0 %v216_v14  ;;  %409 = vmatpush.msrb.mxu1 %v292_v15  ;;  %v181_v52 = vld [vmem:[#allocation10 + $0x58] sm:$0xff]  ;;  %v176_v54 = vld [vmem:[#allocation10 + $0x30] sm:$0xff]  ;;  %v3996_v14 = vld [vmem:[#allocation12 + $0x28] sm:$0xff] }
  0x55   :  { %432 = vmatpush.msrb.mxu2 %v217_v16  ;;  %451 = vmatpush.msrb.mxu3 %v285_v17  ;;  %v249_v53 = vld [vmem:[#allocation10 + $0x278] sm:$0xff]  ;;  %v252_v55 = vld [vmem:[#allocation10 + $0x290] sm:$0xff]  ;;  %v3999_v15 = vld [vmem:[#allocation12 + $0x20] sm:$0xff]  ;;  %v4003_v16 = vand.u32 127, %v6814_v13 }
  0x56   :  { %393 = vmatpush.msrb.mxu0 %v212_v18  ;;  %410 = vmatpush.msrb.mxu1 %v288_v19  ;;  %v177_v56 = vld [vmem:[#allocation10 + $0x38] sm:$0xff]  ;;  %v172_v58 = vld [vmem:[#allocation10 + $0x10] sm:$0xff]  ;;  %v4154_v13 = vld [vmem:[#allocation13 + $0xc0] sm:$0xff] }
  0x57   :  { %433 = vmatpush.msrb.mxu2 %v213_v20  ;;  %452 = vmatpush.msrb.mxu3 %v281_v21  ;;  %v245_v57 = vld [vmem:[#allocation10 + $0x258] sm:$0xff]  ;;  %v248_v59 = vld [vmem:[#allocation10 + $0x270] sm:$0xff]  ;;  %7257 = vst [vmem:[#allocation26_spill] sm:$0xff] %v4003_v16  ;;  %v4012_v19 = vcvt.s32.f32 %v4003_v16  ;;  %v4014_v20 = vld [vmem:[#allocation12 + $0x8] sm:$0xff] }
  0x58   :  { %394 = vmatpush.msrb.mxu0 %v208_v22  ;;  %411 = vmatpush.msrb.mxu1 %v284_v23  ;;  %v173_v60 = vld [vmem:[#allocation10 + $0x18] sm:$0xff]  ;;  %v244_v1 = vld [vmem:[#allocation10 + $0x250] sm:$0xff]  ;;  %v4017_v21 = vld [vmem:[#allocation12] sm:$0xff]  ;;  %v6815_v22 = vmov 1.0  }
  0x59   :  { %434 = vmatpush.msrb.mxu2 %v209_v24  ;;  %453 = vmatpush.msrb.mxu3 %v277_v25  ;;  %v241_v61 = vld [vmem:[#allocation10 + $0x238] sm:$0xff]  ;;  %v3965_v2 = vld [vmem:[#allocation12 + $0x70] sm:$0xff]  ;;  %7258 = vst [vmem:[#allocation27_spill] sm:$0xff] %v4012_v19  ;;  %vm682_vm0 = vcmp.eq.f32.partialorder %v4012_v19, 0.0  ;;  %v4023_v23 = vld [vmem:[#allocation13 + $0x3e0] sm:$0xff] }
  0x5a   :  { %395 = vmatpush.msrb.mxu0 %v204_v26  ;;  %412 = vmatpush.msrb.mxu1 %v280_v27  ;;  %v3963_v63 = vld [vmem:[#allocation12 + $0x78] sm:$0xff]  ;;  %v240_v3 = vld [vmem:[#allocation10 + $0x230] sm:$0xff]  ;;  %7259 = vst [vmem:[#allocation28_spill] sm:$0xff] %v4017_v21  ;;  %v4025_v24 = vld [vmem:[#allocation13 + $0x3e8] sm:$0xff] }
  0x5b   :  { %435 = vmatpush.msrb.mxu2 %v205_v28  ;;  %454 = vmatpush.msrb.mxu3 %v273_v29  ;;  %v237_v0 = vld [vmem:[#allocation10 + $0x218] sm:$0xff]  ;;  %v236_v5 = vld [vmem:[#allocation10 + $0x210] sm:$0xff]  ;;  %7260 = vst [vmem:[#allocation29_spill] sm:$0xff] %v4025_v24  ;;  %v4029_v25 = vld [vmem:[#allocation13 + $0x3c0] sm:$0xff] }
  0x5c   :  { %396 = vmatpush.msrb.mxu0 %v200_v30  ;;  %413 = vmatpush.msrb.mxu1 %v276_v31  ;;  %v3977_v8 = vld [vmem:[#allocation12 + $0x58] sm:$0xff]  ;;  %v3981_v9 = vld [vmem:[#allocation12 + $0x50] sm:$0xff]  ;;  %v4031_v26 = vld [vmem:[#allocation13 + $0x3c8] sm:$0xff] }
  0x5d   :  { %436 = vmatpush.msrb.mxu2 %v201_v32  ;;  %455 = vmatpush.msrb.mxu3 %v269_v33  ;;  %v3993_v12 = vld [vmem:[#allocation12 + $0x30] sm:$0xff]  ;;  %v4005_v17 = vld [vmem:[#allocation12 + $0x18] sm:$0xff]  ;;  %7261 = vst [vmem:[#allocation30_spill] sm:$0xff] %v4031_v26  ;;  %v4035_v27 = vld [vmem:[#allocation13 + $0x3a0] sm:$0xff] }
  0x5e   :  { %397 = vmatpush.msrb.mxu0 %v196_v34  ;;  %414 = vmatpush.msrb.mxu1 %v272_v35  ;;  %v4008_v18 = vld [vmem:[#allocation12 + $0x10] sm:$0xff]  ;;  %v4037_v28 = vld [vmem:[#allocation13 + $0x3a8] sm:$0xff]  ;;  %v4041_v29 = vld [vmem:[#allocation13 + $0x1e0] sm:$0xff] }
  0x5f   :  { %437 = vmatpush.msrb.mxu2 %v197_v36  ;;  %456 = vmatpush.msrb.mxu3 %v265_v37  ;;  %7262 = vst [vmem:[#allocation31_spill] sm:$0xff] %v4037_v28  ;;  %v4043_v30 = vld [vmem:[#allocation13 + $0x380] sm:$0xff]  ;;  %v4045_v31 = vld [vmem:[#allocation13 + $0x1e8] sm:$0xff] }
  0x60   :  { %398 = vmatpush.msrb.mxu0 %v192_v38  ;;  %415 = vmatpush.msrb.mxu1 %v268_v39  ;;  %7263 = vst [vmem:[#allocation32_spill] sm:$0xff] %v4045_v31  ;;  %v4049_v32 = vld [vmem:[#allocation13 + $0x388] sm:$0xff]  ;;  %v4053_v33 = vld [vmem:[#allocation13 + $0x1c0] sm:$0xff] }
  0x61   :  { %438 = vmatpush.msrb.mxu2 %v193_v40  ;;  %457 = vmatpush.msrb.mxu3 %v261_v41  ;;  %7264 = vst [vmem:[#allocation33_spill] sm:$0xff] %v4049_v32  ;;  %v4055_v34 = vld [vmem:[#allocation13 + $0x360] sm:$0xff]  ;;  %v4057_v35 = vld [vmem:[#allocation13 + $0x1c8] sm:$0xff] }
  0x62   :  { %399 = vmatpush.msrb.mxu0 %v188_v42  ;;  %416 = vmatpush.msrb.mxu1 %v264_v43  ;;  %7265 = vst [vmem:[#allocation34_spill] sm:$0xff] %v4057_v35  ;;  %v4061_v36 = vld [vmem:[#allocation13 + $0x368] sm:$0xff]  ;;  %v4065_v37 = vld [vmem:[#allocation13 + $0x1a0] sm:$0xff] }
  0x63   :  { %439 = vmatpush.msrb.mxu2 %v189_v44  ;;  %458 = vmatpush.msrb.mxu3 %v257_v45  ;;  %7266 = vst [vmem:[#allocation35_spill] sm:$0xff] %v4061_v36  ;;  %v4067_v38 = vld [vmem:[#allocation13 + $0x340] sm:$0xff]  ;;  %v4069_v39 = vld [vmem:[#allocation13 + $0x1a8] sm:$0xff] }
  0x64   :  { %400 = vmatpush.msrb.mxu0 %v184_v46  ;;  %417 = vmatpush.msrb.mxu1 %v260_v47  ;;  %7267 = vst [vmem:[#allocation36_spill] sm:$0xff] %v4069_v39  ;;  %v4073_v40 = vld [vmem:[#allocation13 + $0x348] sm:$0xff]  ;;  %v4077_v41 = vld [vmem:[#allocation13 + $0x180] sm:$0xff] }
  0x65   :  { %440 = vmatpush.msrb.mxu2 %v185_v48  ;;  %459 = vmatpush.msrb.mxu3 %v253_v49  ;;  %7268 = vst [vmem:[#allocation37_spill] sm:$0xff] %v4073_v40  ;;  %v4079_v42 = vld [vmem:[#allocation13 + $0x320] sm:$0xff]  ;;  %v4081_v43 = vld [vmem:[#allocation13 + $0x188] sm:$0xff] }
  0x66   :  { %401 = vmatpush.msrb.mxu0 %v180_v50  ;;  %418 = vmatpush.msrb.mxu1 %v256_v51  ;;  %7269 = vst [vmem:[#allocation38_spill] sm:$0xff] %v4081_v43  ;;  %v4085_v44 = vld [vmem:[#allocation13 + $0x328] sm:$0xff]  ;;  %v4089_v45 = vld [vmem:[#allocation13 + $0x160] sm:$0xff] }
  0x67   :  { %441 = vmatpush.msrb.mxu2 %v181_v52  ;;  %460 = vmatpush.msrb.mxu3 %v249_v53  ;;  %7270 = vst [vmem:[#allocation39_spill] sm:$0xff] %v4085_v44  ;;  %v4091_v46 = vld [vmem:[#allocation13 + $0x300] sm:$0xff]  ;;  %v4093_v47 = vld [vmem:[#allocation13 + $0x168] sm:$0xff] }
  0x68   :  { %402 = vmatpush.msrb.mxu0 %v176_v54  ;;  %419 = vmatpush.msrb.mxu1 %v252_v55  ;;  %7271 = vst [vmem:[#allocation40_spill] sm:$0xff] %v4093_v47  ;;  %v4097_v48 = vld [vmem:[#allocation13 + $0x308] sm:$0xff]  ;;  %v4101_v49 = vld [vmem:[#allocation13 + $0x140] sm:$0xff] }
  0x69   :  { %442 = vmatpush.msrb.mxu2 %v177_v56  ;;  %461 = vmatpush.msrb.mxu3 %v245_v57  ;;  %7272 = vst [vmem:[#allocation41_spill] sm:$0xff] %v4097_v48  ;;  %v4103_v50 = vld [vmem:[#allocation13 + $0x2e0] sm:$0xff]  ;;  %v4105_v51 = vld [vmem:[#allocation13 + $0x148] sm:$0xff] }
  0x6a   :  { %403 = vmatpush.msrb.mxu0 %v172_v58  ;;  %420 = vmatpush.msrb.mxu1 %v248_v59  ;;  %7273 = vst [vmem:[#allocation42_spill] sm:$0xff] %v4105_v51  ;;  %v4109_v52 = vld [vmem:[#allocation13 + $0x2e8] sm:$0xff]  ;;  %v4113_v53 = vld [vmem:[#allocation13 + $0x120] sm:$0xff] }
  0x6b   :  { %443 = vmatpush.msrb.mxu2 %v173_v60  ;;  %462 = vmatpush.msrb.mxu3 %v241_v61  ;;  %7274 = vst [vmem:[#allocation43_spill] sm:$0xff] %v4109_v52  ;;  %v4115_v54 = vld [vmem:[#allocation13 + $0x2c0] sm:$0xff]  ;;  %v4117_v55 = vld [vmem:[#allocation13 + $0x128] sm:$0xff]  ;;  %v4134_v60 = vld [vmem:[%s6807_s5] sm:$0xf] }
  0x6c   :  { %444 = vmatmul.f32.vlgmr.msrb.gmra.mxu2 %v3957_v62  ;;  %684 = vmatpush.msra.mxu0 %v3963_v63  ;;  %7275 = vst [vmem:[#allocation44_spill] sm:$0xff] %v4117_v55  ;;  %v4121_v56 = vld [vmem:[#allocation13 + $0x2c8] sm:$0xff]  ;;  %v4125_v57 = vld [vmem:[#allocation13 + $0x100] sm:$0xff]  ;;  %v300_v16 = vperm.slane %v4134_v60, 0 }
  0x6d   :  { %463 = vmatpush.msrb.mxu3 %v237_v0  ;;  %421 = vmatpush.msrb.mxu1 %v244_v1  ;;  %7276 = vst [vmem:[#allocation45_spill] sm:$0xff] %v4121_v56  ;;  %v4127_v58 = vld [vmem:[#allocation13 + $0x2a0] sm:$0xff]  ;;  %v4129_v59 = vld [vmem:[#allocation13 + $0x108] sm:$0xff] }
  0x6e   :  { %464 = vmatmul.f32.vlgmr.msrb.gmra.mxu3 %v6817_v7  ;;  %685 = vmatpush.msra.mxu0 %v3965_v2  ;;  %7277 = vst [vmem:[#allocation46_spill] sm:$0xff] %v4129_v59  ;;  %v4138_v61 = vld [vmem:[#allocation13 + $0x2a8] sm:$0xff]  ;;  %v4142_v0 = vld [vmem:[#allocation13 + $0xe0] sm:$0xff] }
  0x6f   :  { %422 = vmatpush.msrb.mxu1 %v240_v3  ;;  %404 = vmatmul.f32.vlgmr.msrb.gmra.mxu0 %v3957_v62  ;;  %v3990_v62 = vld [vmem:[#allocation12 + $0x38] sm:$0xff]  ;;  %7278 = vst [vmem:[#allocation47_spill] sm:$0xff] %v4138_v61  ;;  %v4144_v1 = vld [vmem:[#allocation13 + $0x280] sm:$0xff]  ;;  %v4146_v3 = vld [vmem:[#allocation13 + $0xe8] sm:$0xff] }
  0x70   :  { %686 = vmatpush.msra.mxu0 %v3969_v4  ;;  %733 = vmatpush.msra.mxu2 %v4023_v23  ;;  %7279 = vst [vmem:[#allocation48_spill] sm:$0xff] %v4146_v3  ;;  %v4163_v19 = vld [vmem:[#allocation13 + $0x268] sm:$0xff] }
  0x71   :  { %423 = vmatpush.msrb.mxu1 %v236_v5  ;;  %753 = vmatpush.msra.mxu3 %v4045_v31  ;;  %v4150_v5 = vld [vmem:[#allocation13 + $0x288] sm:$0xff]  ;;  %7282 = vst [vmem:[#allocation51_spill] sm:$0xff] %v4163_v19 }
  0x72   :  { %687 = vmatpush.msra.mxu0 %v3973_v6  ;;  %424 = vmatmul.f32.vlgmr.msrb.gmra.mxu1 %v6817_v7  ;;  %7280 = vst [vmem:[#allocation49_spill] sm:$0xff] %v4150_v5  ;;  %v4158_v7 = vld [vmem:[#allocation13 + $0xc8] sm:$0xff] }
  0x73   :  { %734 = vmatpush.msra.mxu2 %v4029_v25  ;;  %713 = vmatpush.msra.mxu1 %v4041_v29  ;;  %7281 = vst [vmem:[#allocation50_spill] sm:$0xff] %v4158_v7  ;;  %v4187_v31 = vld [vmem:[#allocation13 + $0x228] sm:$0xff] }
  0x74   :  { %688 = vmatpush.msra.mxu0 %v3977_v8  ;;  %754 = vmatpush.msra.mxu3 %v4057_v35  ;;  %7288 = vst [vmem:[#allocation57_spill] sm:$0xff] %v4187_v31 }
  0x75   :  { %735 = vmatpush.msra.mxu2 %v4035_v27  ;;  %714 = vmatpush.msra.mxu1 %v4053_v33 }
  0x76   :  { %689 = vmatpush.msra.mxu0 %v3981_v9  ;;  %755 = vmatpush.msra.mxu3 %v4069_v39  ;;  %v4183_v39 = vld [vmem:[#allocation13 + $0x88] sm:$0xff] }
  0x77   :  { %736 = vmatpush.msra.mxu2 %v4043_v30  ;;  %715 = vmatpush.msra.mxu1 %v4065_v37  ;;  %7287 = vst [vmem:[#allocation56_spill] sm:$0xff] %v4183_v39 }
  0x78   :  { %690 = vmatpush.msra.mxu0 %v3984_v10  ;;  %756 = vmatpush.msra.mxu3 %v4081_v43  ;;  %v4181_v43 = vld [vmem:[#allocation13 + $0x220] sm:$0xff] }
  0x79   :  { %737 = vmatpush.msra.mxu2 %v4055_v34  ;;  %716 = vmatpush.msra.mxu1 %v4077_v41 }
  0x7a   :  { %691 = vmatpush.msra.mxu0 %v3987_v11  ;;  %757 = vmatpush.msra.mxu3 %v4093_v47 }
  0x7b   :  { %738 = vmatpush.msra.mxu2 %v4067_v38  ;;  %717 = vmatpush.msra.mxu1 %v4089_v45 }
  0x7c   :  { %692 = vmatpush.msra.mxu0 %v3990_v62  ;;  %758 = vmatpush.msra.mxu3 %v4105_v51  ;;  %v4175_v51 = vld [vmem:[#allocation13 + $0x248] sm:$0xff] }
  0x7d   :  { %739 = vmatpush.msra.mxu2 %v4079_v42  ;;  %718 = vmatpush.msra.mxu1 %v4101_v49  ;;  %7285 = vst [vmem:[#allocation54_spill] sm:$0xff] %v4175_v51 }
  0x7e   :  { %693 = vmatpush.msra.mxu0 %v3993_v12  ;;  %759 = vmatpush.msra.mxu3 %v4117_v55  ;;  %v4171_v55 = vld [vmem:[#allocation13 + $0xa8] sm:$0xff] }
  0x7f   :  { %740 = vmatpush.msra.mxu2 %v4091_v46  ;;  %719 = vmatpush.msra.mxu1 %v4113_v53  ;;  %7284 = vst [vmem:[#allocation53_spill] sm:$0xff] %v4171_v55 }
  0x80   :  { %694 = vmatpush.msra.mxu0 %v3996_v14  ;;  %760 = vmatpush.msra.mxu3 %v4129_v59  ;;  %v4169_v59 = vld [vmem:[#allocation13 + $0x240] sm:$0xff] }
  0x81   :  { %741 = vmatpush.msra.mxu2 %v4103_v50  ;;  %720 = vmatpush.msra.mxu1 %v4125_v57 }
  0x82   :  { %695 = vmatpush.msra.mxu0 %v3999_v15  ;;  %761 = vmatpush.msra.mxu3 %v4146_v3  ;;  %v4167_v3 = vld [vmem:[#allocation13 + $0xa0] sm:$0xff] }
  0x83   :  { %742 = vmatpush.msra.mxu2 %v4115_v54  ;;  %721 = vmatpush.msra.mxu1 %v4142_v0  ;;  %7283 = vst [vmem:[#allocation52_spill] sm:$0xff] %v4167_v3 }
  0x84   :  { %696 = vmatpush.msra.mxu0 %v4005_v17  ;;  %762 = vmatpush.msra.mxu3 %v4158_v7  ;;  %v4179_v7 = vld [vmem:[#allocation13 + $0x80] sm:$0xff] }
  0x85   :  { %743 = vmatpush.msra.mxu2 %v4127_v58  ;;  %722 = vmatpush.msra.mxu1 %v4154_v13  ;;  %7286 = vst [vmem:[#allocation55_spill] sm:$0xff] %v4179_v7 }
  0x86   :  { %697 = vmatpush.msra.mxu0 %v4008_v18  ;;  %763 = vmatpush.msra.mxu3 %v4171_v55  ;;  %v4191_v55 = vld [vmem:[#allocation13 + $0x60] sm:$0xff] }
  0x87   :  { %744 = vmatpush.msra.mxu2 %v4144_v1  ;;  %723 = vmatpush.msra.mxu1 %v4167_v3  ;;  %7289 = vst [vmem:[#allocation58_spill] sm:$0xff] %v4191_v55 }
  0x88   :  { %698 = vmatpush.msra.mxu0 %v4014_v20  ;;  %764 = vmatpush.msra.mxu3 %v4183_v39 }
  0x89   :  { %724 = vmatpush.msra.mxu1 %v4179_v7 }
  0x8a   :  { %699 = vmatpush.msra.mxu0 %v4017_v21 }
  0x8b   :  { %2992 = vmatmul.msk.f32.vlgmr.msra.gmra.mxu0 %vm682_vm0, %v6815_v22  ;;  %v4156_v22 = vld [vmem:[#allocation13 + $0x260] sm:$0xff]  ;;  %725 = vmatpush.msra.mxu1 %v4191_v55 }
  0x8c   :  { %773 = vmatpush.msrb.mxu0 %v4025_v24  ;;  %745 = vmatpush.msra.mxu2 %v4156_v22 }
  0x8e   :  { %774 = vmatpush.msrb.mxu0 %v4031_v26  ;;  %746 = vmatpush.msra.mxu2 %v4169_v59 }
  0x90   :  { %775 = vmatpush.msrb.mxu0 %v4037_v28  ;;  %747 = vmatpush.msra.mxu2 %v4181_v43 }
  0x92   :  { %776 = vmatpush.msrb.mxu0 %v4049_v32  ;;  %v4242_v32 = vld [vmem:[#allocation13 + $0x1f8] sm:$0xff] }
  0x93   :  { %7306 = vst [vmem:[#allocation75_spill] sm:$0xff] %v4242_v32 }
  0x94   :  { %777 = vmatpush.msrb.mxu0 %v4061_v36 }
  0x96   :  { %778 = vmatpush.msrb.mxu0 %v4073_v40 }
  0x98   :  { %779 = vmatpush.msrb.mxu0 %v4085_v44  ;;  %v4216_v44 = vld [vmem:[#allocation13 + $0x3d8] sm:$0xff] }
  0x99   :  { %7297 = vst [vmem:[#allocation66_spill] sm:$0xff] %v4216_v44 }
  0x9a   :  { %780 = vmatpush.msrb.mxu0 %v4097_v48  ;;  %v301_v48 = vperm.slane %v4134_v60, 1 }
  0x9c   :  { %781 = vmatpush.msrb.mxu0 %v4109_v52  ;;  %v4211_v52 = vld [vmem:[#allocation13 + $0x3d0] sm:$0xff] }
  0x9d   :  { %7296 = vst [vmem:[#allocation65_spill] sm:$0xff] %v4211_v52 }
  0x9e   :  { %782 = vmatpush.msrb.mxu0 %v4121_v56  ;;  %v4209_v56 = vld [vmem:[#allocation13 + $0x48] sm:$0xff] }
  0x9f   :  { %7295 = vst [vmem:[#allocation64_spill] sm:$0xff] %v4209_v56 }
  0xa0   :  { %783 = vmatpush.msrb.mxu0 %v4138_v61  ;;  %v4203_v61 = vld [vmem:[#allocation13 + $0x3f8] sm:$0xff] }
  0xa1   :  { %7293 = vst [vmem:[#allocation62_spill] sm:$0xff] %v4203_v61 }
  0xa2   :  { %784 = vmatpush.msrb.mxu0 %v4150_v5 }
  0xa4   :  { %785 = vmatpush.msrb.mxu0 %v4163_v19  ;;  %v4195_v19 = vld [vmem:[#allocation13 + $0x68] sm:$0xff] }
  0xa5   :  { %7290 = vst [vmem:[#allocation59_spill] sm:$0xff] %v4195_v19  ;;  %765 = vmatpush.msra.mxu3 %v4195_v19  ;;  %v4226_v19 = vld [vmem:[#allocation13 + $0x3b0] sm:$0xff] }
  0xa6   :  { %786 = vmatpush.msrb.mxu0 %v4175_v51  ;;  %v4193_v51 = vld [vmem:[#allocation13 + $0x200] sm:$0xff]  ;;  %7300 = vst [vmem:[#allocation69_spill] sm:$0xff] %v4226_v19 }
  0xa7   :  { %748 = vmatpush.msra.mxu2 %v4193_v51  ;;  %766 = vmatpush.msra.mxu3 %v4209_v56  ;;  %v4234_v56 = vld [vmem:[#allocation13 + $0x8] sm:$0xff] }
  0xa8   :  { %787 = vmatpush.msrb.mxu0 %v4187_v31  ;;  %v4207_v31 = vld [vmem:[#allocation13 + $0x40] sm:$0xff]  ;;  %7303 = vst [vmem:[#allocation72_spill] sm:$0xff] %v4234_v56 }
  0xa9   :  { %7294 = vst [vmem:[#allocation63_spill] sm:$0xff] %v4207_v31  ;;  %726 = vmatpush.msra.mxu1 %v4207_v31  ;;  %v4240_v31 = vld [vmem:[#allocation13 + $0x390] sm:$0xff] }
  0xaa   :  { %7305 = vst [vmem:[#allocation74_spill] sm:$0xff] %v4240_v31 }
  0xc8   :  { %v325_v47 = vpop.f32.mrf.mxu0 }
  0xc9   :  { %v326_v35 = vadd.f32 %v325_v47, %v300_v16  ;;  %v4199_v16 = vld [vmem:[#allocation13 + $0x208] sm:$0xff]  ;;  %v4201_v47 = vld [vmem:[#allocation13 + $0x3f0] sm:$0xff] }
  0xca   :  { %7291 = vst [vmem:[#allocation60_spill] sm:$0xff] %v4199_v16  ;;  %788 = vmatpush.msrb.mxu0 %v4199_v16  ;;  %813 = vmatpush.msrb.mxu2 %v4201_v47  ;;  %v4228_v16 = vld [vmem:[#allocation13 + $0x3b8] sm:$0xff] }
  0xcb   :  { %v345_v5 = vpop.f32.mrf.mxu1  ;;  %7292 = vst [vmem:[#allocation61_spill] sm:$0xff] %v4201_v47 }
  0xcc   :  { %v346_v39 = vadd.f32 %v345_v5, %v326_v35  ;;  %853 = vmatpush.msra.mxu0 %v4203_v61  ;;  %v4220_v35 = vld [vmem:[#allocation13 + $0x20] sm:$0xff]  ;;  %v4222_v5 = vld [vmem:[#allocation13 + $0x28] sm:$0xff]  ;;  %814 = vmatpush.msrb.mxu2 %v4211_v52  ;;  %7301 = vst [vmem:[#allocation70_spill] sm:$0xff] %v4228_v16  ;;  %v303_v52 = vperm.slane %v4134_v60, 3 }
  0xcd   :  { %7298 = vst [vmem:[#allocation67_spill] sm:$0xff] %v4220_v35  ;;  %727 = vmatpush.msra.mxu1 %v4220_v35  ;;  %767 = vmatpush.msra.mxu3 %v4222_v5 }
  0xce   :  { %v2990_v40 = vmul.f32 -1.442695, %v346_v39  ;;  %7299 = vst [vmem:[#allocation68_spill] sm:$0xff] %v4222_v5  ;;  %854 = vmatpush.msra.mxu0 %v4216_v44  ;;  %v4232_v39 = vld [vmem:[#allocation13] sm:$0xff]  ;;  %815 = vmatpush.msrb.mxu2 %v4226_v19  ;;  %v4238_v44 = vld [vmem:[#allocation13 + $0x1f0] sm:$0xff]  ;;  %v4360_v19 = vld [vmem:[#allocation13 + $0xd8] sm:$0xff] }
  0xcf   :  { %7302 = vst [vmem:[#allocation71_spill] sm:$0xff] %v4232_v39  ;;  %728 = vmatpush.msra.mxu1 %v4232_v39  ;;  %768 = vmatpush.msra.mxu3 %v4234_v56  ;;  %v4258_v39 = vld [vmem:[#allocation13 + $0x378] sm:$0xff]  ;;  %v4262_v56 = vld [vmem:[#allocation13 + $0x1b0] sm:$0xff] }
  0xd0   :  { %3044 = vpow2.f32 %v2990_v40  ;;  %v365_v61 = vpop.f32.mrf.mxu2  ;;  %855 = vmatpush.msra.mxu0 %v4228_v16  ;;  %7304 = vst [vmem:[#allocation73_spill] sm:$0xff] %v4238_v44  ;;  %v4246_v40 = vld [vmem:[#allocation13 + $0x398] sm:$0xff]  ;;  %816 = vmatpush.msrb.mxu2 %v4240_v31 }
  0xd1   :  { %v366_v36 = vadd.f32 %v365_v61, %v301_v48  ;;  %7307 = vst [vmem:[#allocation76_spill] sm:$0xff] %v4246_v40  ;;  %793 = vmatpush.msrb.mxu1 %v4238_v44  ;;  %v4250_v48 = vld [vmem:[#allocation13 + $0x1d0] sm:$0xff]  ;;  %v4254_v16 = vld [vmem:[#allocation13 + $0x1d8] sm:$0xff]  ;;  %833 = vmatpush.msrb.mxu3 %v4242_v32 }
  0xd2   :  { %7308 = vst [vmem:[#allocation77_spill] sm:$0xff] %v4250_v48  ;;  %v4252_v61 = vld [vmem:[#allocation13 + $0x370] sm:$0xff]  ;;  %856 = vmatpush.msra.mxu0 %v4246_v40  ;;  %v4266_v31 = vld [vmem:[#allocation13 + $0x1b8] sm:$0xff] }
  0xd3   :  { %v385_v5 = vpop.f32.mrf.mxu3  ;;  %7309 = vst [vmem:[#allocation78_spill] sm:$0xff] %v4252_v61  ;;  %794 = vmatpush.msrb.mxu1 %v4250_v48  ;;  %817 = vmatpush.msrb.mxu2 %v4252_v61  ;;  %v4264_v44 = vld [vmem:[#allocation13 + $0x350] sm:$0xff]  ;;  %v4280_v48 = vld [vmem:[#allocation13 + $0x198] sm:$0xff] }
  0xd4   :  { %7310 = vst [vmem:[#allocation79_spill] sm:$0xff] %v4254_v16  ;;  %v386_v35 = vadd.f32 %v385_v5, %v366_v36  ;;  %834 = vmatpush.msrb.mxu3 %v4254_v16  ;;  %857 = vmatpush.msra.mxu0 %v4258_v39  ;;  %v4270_v36 = vld [vmem:[#allocation13 + $0x358] sm:$0xff]  ;;  %v4276_v40 = vld [vmem:[#allocation13 + $0x190] sm:$0xff] }
  0xd5   :  { %7311 = vst [vmem:[#allocation80_spill] sm:$0xff] %v4258_v39  ;;  %795 = vmatpush.msrb.mxu1 %v4262_v56  ;;  %818 = vmatpush.msrb.mxu2 %v4264_v44  ;;  %v4278_v32 = vld [vmem:[#allocation13 + $0x330] sm:$0xff]  ;;  %v4293_v16 = vld [vmem:[#allocation13 + $0x178] sm:$0xff] }
  0xd6   :  { %7312 = vst [vmem:[#allocation81_spill] sm:$0xff] %v4262_v56  ;;  %v3045_v55 = vpop.eup %3044  ;;  %v2991_v28 = vmul.f32 -1.442695, %v386_v35  ;;  %835 = vmatpush.msrb.mxu3 %v4266_v31  ;;  %858 = vmatpush.msra.mxu0 %v4270_v36  ;;  %v4284_v35 = vld [vmem:[#allocation13 + $0x338] sm:$0xff]  ;;  %v4291_v39 = vld [vmem:[#allocation13 + $0x310] sm:$0xff] }
  0xd7   :  { %7313 = vst [vmem:[#allocation82_spill] sm:$0xff] %v4264_v44  ;;  %v4272_v5 = vadd.f32 1.0, %v3045_v55  ;;  %796 = vmatpush.msrb.mxu1 %v4276_v40  ;;  %819 = vmatpush.msrb.mxu2 %v4278_v32  ;;  %v4289_v55 = vld [vmem:[#allocation13 + $0x170] sm:$0xff]  ;;  %v4309_v56 = vld [vmem:[#allocation13 + $0x2f8] sm:$0xff] }
  0xd8   :  { %7314 = vst [vmem:[#allocation83_spill] sm:$0xff] %v4266_v31  ;;  %3046 = vpow2.f32 %v2991_v28  ;;  %836 = vmatpush.msrb.mxu3 %v4280_v48  ;;  %859 = vmatpush.msra.mxu0 %v4284_v35  ;;  %v4297_v28 = vld [vmem:[#allocation13 + $0x318] sm:$0xff]  ;;  %v4303_v31 = vld [vmem:[#allocation13 + $0x2f0] sm:$0xff] }
  0xd9   :  { %7315 = vst [vmem:[#allocation84_spill] sm:$0xff] %v4270_v36  ;;  %3048 = vrcp.f32 %v4272_v5  ;;  %797 = vmatpush.msrb.mxu1 %v4289_v55  ;;  %820 = vmatpush.msrb.mxu2 %v4291_v39  ;;  %v4301_v36 = vld [vmem:[#allocation13 + $0x150] sm:$0xff]  ;;  %v4333_v44 = vld [vmem:[#allocation13 + $0x118] sm:$0xff]  ;;  %v483_v26 = vand.u32 2147483648, %v4272_v5  ;;  %vm477_vm1 = vweird.f32 %v4272_v5 }
  0xda   :  { %7316 = vst [vmem:[#allocation85_spill] sm:$0xff] %v4276_v40  ;;  %v4305_v40 = vld [vmem:[#allocation13 + $0x158] sm:$0xff]  ;;  %837 = vmatpush.msrb.mxu3 %v4293_v16  ;;  %860 = vmatpush.msra.mxu0 %v4297_v28 }
  0xdb   :  { %7317 = vst [vmem:[#allocation86_spill] sm:$0xff] %v4278_v32  ;;  %798 = vmatpush.msrb.mxu1 %v4301_v36  ;;  %821 = vmatpush.msrb.mxu2 %v4303_v31  ;;  %v4350_v61 = vld [vmem:[#allocation13 + $0x298] sm:$0xff] }
  0xdc   :  { %7318 = vst [vmem:[#allocation87_spill] sm:$0xff] %v4280_v48  ;;  %v4315_v48 = vld [vmem:[#allocation13 + $0x2d0] sm:$0xff]  ;;  %838 = vmatpush.msrb.mxu3 %v4305_v40  ;;  %861 = vmatpush.msra.mxu0 %v4309_v56 }
  0xdd   :  { %7319 = vst [vmem:[#allocation88_spill] sm:$0xff] %v4284_v35  ;;  %v4313_v35 = vld [vmem:[#allocation13 + $0x130] sm:$0xff]  ;;  %822 = vmatpush.msrb.mxu2 %v4315_v48 }
  0xde   :  { %7320 = vst [vmem:[#allocation89_spill] sm:$0xff] %v4289_v55  ;;  %v4317_v55 = vld [vmem:[#allocation13 + $0x138] sm:$0xff]  ;;  %799 = vmatpush.msrb.mxu1 %v4313_v35 }
  0xdf   :  { %7321 = vst [vmem:[#allocation90_spill] sm:$0xff] %v4291_v39  ;;  %v3047_v39 = vpop.eup %3046  ;;  %839 = vmatpush.msrb.mxu3 %v4317_v55 }
  0xe0   :  { %7322 = vst [vmem:[#allocation91_spill] sm:$0xff] %v4293_v16  ;;  %v4321_v16 = vld [vmem:[#allocation13 + $0x2d8] sm:$0xff]  ;;  %v4325_v32 = vadd.f32 1.0, %v3047_v39  ;;  %v4341_v39 = vld [vmem:[#allocation13 + $0xf0] sm:$0xff] }
  0xe1   :  { %7323 = vst [vmem:[#allocation92_spill] sm:$0xff] %v4297_v28  ;;  %v4323_v28 = vpop.eup %3048  ;;  %862 = vmatpush.msra.mxu0 %v4321_v16  ;;  %840 = vmatpush.msrb.mxu3 %v4333_v44 }
  0xe2   :  { %7324 = vst [vmem:[#allocation93_spill] sm:$0xff] %v4301_v36  ;;  %v4329_v36 = vld [vmem:[#allocation13 + $0x110] sm:$0xff]  ;;  %3050 = vrcp.f32 %v4325_v32  ;;  %vm478_vm2 = vweird.f32 %v4323_v28  ;;  %vm496_vm4 = vweird.f32 %v4325_v32 }
  0xe3   :  { %7325 = vst [vmem:[#allocation94_spill] sm:$0xff] %v4303_v31  ;;  %v4331_v31 = vld [vmem:[#allocation13 + $0x2b0] sm:$0xff]  ;;  %800 = vmatpush.msrb.mxu1 %v4329_v36  ;;  %vm4431_vm3 = vmor %vm477_vm1, %vm478_vm2  ;;  %vm938_vm1 = vcmask 1040384  }
  0xe4   :  { %7326 = vst [vmem:[#allocation95_spill] sm:$0xff] %v4305_v40  ;;  %v473_v40 = vmul.f32 %v4323_v28, %v4272_v5  ;;  %823 = vmatpush.msrb.mxu2 %v4331_v31 }
  0xe5   :  { %7327 = vst [vmem:[#allocation96_spill] sm:$0xff] %v4309_v56  ;;  %v4339_v56 = vld [vmem:[#allocation13 + $0x2b8] sm:$0xff]  ;;  %801 = vmatpush.msrb.mxu1 %v4341_v39 }
  0xe6   :  { %7328 = vst [vmem:[#allocation97_spill] sm:$0xff] %v4313_v35  ;;  %v4343_v35 = vld [vmem:[#allocation13 + $0x290] sm:$0xff]  ;;  %863 = vmatpush.msra.mxu0 %v4339_v56 }
  0xe7   :  { %7329 = vst [vmem:[#allocation98_spill] sm:$0xff] %v4315_v48  ;;  %v4348_v48 = vld [vmem:[#allocation13 + $0xf8] sm:$0xff]  ;;  %824 = vmatpush.msrb.mxu2 %v4343_v35 }
  0xe8   :  { %7330 = vst [vmem:[#allocation99_spill] sm:$0xff] %v4317_v55  ;;  %v4358_v55 = vld [vmem:[#allocation13 + $0x270] sm:$0xff]  ;;  %841 = vmatpush.msrb.mxu3 %v4348_v48  ;;  %864 = vmatpush.msra.mxu0 %v4350_v61 }
  0xe9   :  { %7331 = vst [vmem:[#allocation100_spill] sm:$0xff] %v4321_v16  ;;  %v4356_v16 = vld [vmem:[#allocation13 + $0xd0] sm:$0xff]  ;;  %825 = vmatpush.msrb.mxu2 %v4358_v55 }
  0xea   :  { %7332 = vst [vmem:[#allocation101_spill] sm:$0xff] %v4329_v36  ;;  %v474_v36 = vsub.f32 1.0, %v473_v40  ;;  %802 = vmatpush.msrb.mxu1 %v4356_v16  ;;  %842 = vmatpush.msrb.mxu3 %v4360_v19  ;;  %v4378_v40 = vpop.eup %3050 }
  0xeb   :  { %7333 = vst [vmem:[#allocation102_spill] sm:$0xff] %v4331_v31  ;;  %v4364_v31 = vld [vmem:[#allocation13 + $0x278] sm:$0xff]  ;;  %vm497_vm5 = vweird.f32 %v4378_v40 }
  0xec   :  { %7334 = vst [vmem:[#allocation103_spill] sm:$0xff] %v4333_v44  ;;  %v4366_v44 = vld [vmem:[#allocation13 + $0xb0] sm:$0xff]  ;;  %865 = vmatpush.msra.mxu0 %v4364_v31  ;;  %v475_v7 = vmul.f32 %v4323_v28, %v474_v36  ;;  %v4404_v36 = vld [vmem:[#allocation13 + $0x78] sm:$0xff]  ;;  %vm498_vm7 = vmor %vm496_vm4, %vm497_vm5 }
  0xed   :  { %7335 = vst [vmem:[#allocation104_spill] sm:$0xff] %v4339_v56  ;;  %v4368_v56 = vld [vmem:[#allocation13 + $0x250] sm:$0xff]  ;;  %803 = vmatpush.msrb.mxu1 %v4366_v44 }
  0xee   :  { %7336 = vst [vmem:[#allocation105_spill] sm:$0xff] %v4341_v39  ;;  %v4372_v39 = vld [vmem:[#allocation13 + $0xb8] sm:$0xff]  ;;  %826 = vmatpush.msrb.mxu2 %v4368_v56 }
  0xef   :  { %7337 = vst [vmem:[#allocation106_spill] sm:$0xff] %v4343_v35  ;;  %v4374_v35 = vld [vmem:[#allocation13 + $0x258] sm:$0xff]  ;;  %843 = vmatpush.msrb.mxu3 %v4372_v39  ;;  %v445_v24 = vpop.f32.mrf.mxu2  ;;  %v425_v47 = vpop.f32.mrf.mxu1 }
  0xf0   :  { %7338 = vst [vmem:[#allocation107_spill] sm:$0xff] %v4348_v48  ;;  %v4384_v48 = vld [vmem:[#allocation13 + $0x230] sm:$0xff]  ;;  %866 = vmatpush.msra.mxu0 %v4374_v35 }
  0xf1   :  { %7339 = vst [vmem:[#allocation108_spill] sm:$0xff] %v4350_v61  ;;  %v4382_v61 = vld [vmem:[#allocation13 + $0x90] sm:$0xff]  ;;  %827 = vmatpush.msrb.mxu2 %v4384_v48 }
  0xf2   :  { %7340 = vst [vmem:[#allocation109_spill] sm:$0xff] %v4356_v16  ;;  %v4386_v16 = vld [vmem:[#allocation13 + $0x98] sm:$0xff]  ;;  %804 = vmatpush.msrb.mxu1 %v4382_v61 }
  0xf3   :  { %7341 = vst [vmem:[#allocation110_spill] sm:$0xff] %v4358_v55  ;;  %v492_v55 = vmul.f32 %v4378_v40, %v4325_v32  ;;  %844 = vmatpush.msrb.mxu3 %v4386_v16 }
  0xf4   :  { %7342 = vst [vmem:[#allocation111_spill] sm:$0xff] %v4360_v19  ;;  %v4397_v19 = vld [vmem:[#allocation13 + $0x70] sm:$0xff] }
  0xf5   :  { %7343 = vst [vmem:[#allocation112_spill] sm:$0xff] %v4364_v31  ;;  %v4393_v31 = vld [vmem:[#allocation13 + $0x238] sm:$0xff]  ;;  %805 = vmatpush.msrb.mxu1 %v4397_v19  ;;  %845 = vmatpush.msrb.mxu3 %v4404_v36 }
  0xf6   :  { %7344 = vst [vmem:[#allocation113_spill] sm:$0xff] %v4366_v44  ;;  %v4399_v44 = vld [vmem:[#allocation13 + $0x210] sm:$0xff]  ;;  %867 = vmatpush.msra.mxu0 %v4393_v31 }
  0xf7   :  { %7345 = vst [vmem:[#allocation114_spill] sm:$0xff] %v4368_v56  ;;  %v302_v56 = vperm.slane %v4134_v60, 2  ;;  %828 = vmatpush.msrb.mxu2 %v4399_v44  ;;  %v481_v60 = vand.u32 2147483647, %v4272_v5  ;;  %v465_v5 = vpop.f32.mrf.mxu3 }
  0xf8   :  { %7346 = vst [vmem:[#allocation115_spill] sm:$0xff] %v4372_v39  ;;  %v4406_v39 = vld [vmem:[#allocation13 + $0x218] sm:$0xff] }
  0xf9   :  { %7347 = vst [vmem:[#allocation116_spill] sm:$0xff] %v4374_v35  ;;  %v493_v35 = vsub.f32 1.0, %v492_v55  ;;  %868 = vmatpush.msra.mxu0 %v4406_v39  ;;  %v4421_v55 = vld [vmem:[#allocation13 + $0x30] sm:$0xff]  ;;  %vm482_vm6 = vcmp.eq.f32.partialorder %v481_v60, 8.507059e+37 }
  0xfa   :  { %7348 = vst [vmem:[#allocation117_spill] sm:$0xff] %v4382_v61  ;;  %v4411_v61 = vld [vmem:[#allocation13 + $0x50] sm:$0xff] }
  0xfb   :  { %7349 = vst [vmem:[#allocation118_spill] sm:$0xff] %v4384_v48  ;;  %v4413_v48 = vld [vmem:[#allocation13 + $0x58] sm:$0xff]  ;;  %806 = vmatpush.msrb.mxu1 %v4411_v61  ;;  %v494_v3 = vmul.f32 %v4378_v40, %v493_v35 }
  0xfc   :  { %7350 = vst [vmem:[#allocation119_spill] sm:$0xff] %v4386_v16  ;;  %v405_v16 = vpop.f32.mrf.mxu0  ;;  %846 = vmatpush.msrb.mxu3 %v4413_v48 }
  0xfd   :  { %7351 = vst [vmem:[#allocation120_spill] sm:$0xff] %v4393_v31  ;;  %v476_v31 = vadd.f32 %v4323_v28, %v475_v7  ;;  %v4428_v7 = vld [vmem:[#allocation13 + $0x10] sm:$0xff]  ;;  %807 = vmatpush.msrb.mxu1 %v4421_v55 }
  0xfe   :  { %7352 = vst [vmem:[#allocation121_spill] sm:$0xff] %v4397_v19  ;;  %v4424_v19 = vld [vmem:[#allocation13 + $0x38] sm:$0xff] }
  0xff   :  { %7353 = vst [vmem:[#allocation122_spill] sm:$0xff] %v4399_v44  ;;  %v406_v44 = vadd.f32 %v405_v16, %v302_v56  ;;  %v446_v56 = vadd.f32 %v445_v24, %v303_v52  ;;  %v480_v16 = vsel %vm4431_vm3, %v4323_v28, %v476_v31  ;;  %847 = vmatpush.msrb.mxu3 %v4424_v19  ;;  %v500_v31 = vand.u32 2147483647, %v4325_v32 }
 0x100   :  { %7354 = vst [vmem:[#allocation123_spill] sm:$0xff] %v4404_v36  ;;  %808 = vmatpush.msrb.mxu1 %v4428_v7  ;;  %v495_v52 = vadd.f32 %v4378_v40, %v494_v3 }
 0x101   :  { %7355 = vst [vmem:[#allocation124_spill] sm:$0xff] %v4406_v39  ;;  %v484_v39 = vor.u32 1.1754944e-38, %v483_v26  ;;  %v502_v26 = vand.u32 2147483648, %v4325_v32  ;;  %v466_v35 = vadd.f32 %v465_v5, %v446_v56  ;;  %vm501_vm8 = vcmp.eq.f32.partialorder %v500_v31, 8.507059e+37  ;;  %v7386_v32 = vld [vmem:[#allocation41_spill] sm:$0xff]  ;;  %v4552_v31 = vld [vmem:[#allocation16 + $0x78] sm:$0xff] }
 0x102   :  { %7356 = vst [vmem:[#allocation125_spill] sm:$0xff] %v4411_v61  ;;  %v4436_v61 = vld [vmem:[#allocation13 + $0x18] sm:$0xff]  ;;  %v7406_v3 = vld [vmem:[#allocation118_spill] sm:$0xff]  ;;  %v7413_v5 = vld [vmem:[#allocation117_spill] sm:$0xff] }
 0x103   :  { %7357 = vst [vmem:[#allocation126_spill] sm:$0xff] %v4413_v48  ;;  %v426_v48 = vadd.f32 %v425_v47, %v406_v44  ;;  %848 = vmatpush.msrb.mxu3 %v4436_v61  ;;  %v485_v24 = vsel %vm482_vm6, %v484_v39, %v480_v16  ;;  %v503_v36 = vor.u32 1.1754944e-38, %v502_v26  ;;  %v7408_v39 = vld [vmem:[#allocation105_spill] sm:$0xff] }
 0x104   :  { %7358 = vst [vmem:[#allocation127_spill] sm:$0xff] %v4421_v55  ;;  %v506_v28 = vmul.f32 %v485_v24, %v466_v35  ;;  %v499_v55 = vsel %vm498_vm7, %v4378_v40, %v495_v52  ;;  %v7412_v16 = vld [vmem:[#allocation113_spill] sm:$0xff] }
 0x105   :  { %7359 = vst [vmem:[#allocation128_spill] sm:$0xff] %v4424_v19  ;;  %v7414_v26 = vld [vmem:[#allocation121_spill] sm:$0xff] }
 0x106   :  { %7360 = vst [vmem:[#allocation129_spill] sm:$0xff] %v4428_v7  ;;  %v507_v19 = vadd.f32 %v506_v28, %v426_v48  ;;  %v504_v7 = vsel %vm501_vm8, %v503_v36, %v499_v55  ;;  %v7407_v48 = vld [vmem:[#allocation57_spill] sm:$0xff]  ;;  %v7409_v40 = vld [vmem:[#allocation122_spill] sm:$0xff]  ;;  %v7410_v55 = vld [vmem:[#allocation60_spill] sm:$0xff] }
 0x107   :  { %v509_v21 = vsub.f32 1.0, %v504_v7  ;;  %v511_v44 = vmul.f32 0.0, %v504_v7  ;;  %v7411_v7 = vld [vmem:[#allocation109_spill] sm:$0xff]  ;;  %v4555_v28 = vld [vmem:[#allocation16 + $0x70] sm:$0xff]  ;;  %v4558_v36 = vld [vmem:[#allocation16 + $0x68] sm:$0xff] }
 0x108   :  { %3052 = vtanh.f32 %v507_v19  ;;  %v701_v19 = vpop.f32.mrf.mxu0 }
 0x109   :  { %729 = vmatmul.f32.vlgmr.msra.gmra.mxu1 %v701_v19  ;;  %769 = vmatmul.f32.vlgmr.msra.gmra.mxu3 %v701_v19  ;;  %v7415_v35 = vld [vmem:[#allocation125_spill] sm:$0xff] }
 0x10a   :  { %999 = vmatpush.msra.mxu3 %v4041_v29  ;;  %v7384_v29 = vld [vmem:[#allocation73_spill] sm:$0xff]  ;;  %918 = vmatpush.msra.mxu1 %v4552_v31 }
 0x10b   :  { %v7416_v24 = vld [vmem:[#allocation127_spill] sm:$0xff] }
 0x10c   :  { %1000 = vmatpush.msra.mxu3 %v4053_v33  ;;  %v7387_v33 = vld [vmem:[#allocation77_spill] sm:$0xff]  ;;  %919 = vmatpush.msra.mxu1 %v4555_v28 }
 0x10d   :  { %v7417_v52 = vld [vmem:[#allocation129_spill] sm:$0xff] }
 0x10e   :  { %v3053_v56 = vpop.eup %3052  ;;  %1001 = vmatpush.msra.mxu3 %v4065_v37  ;;  %v7389_v37 = vld [vmem:[#allocation43_spill] sm:$0xff]  ;;  %920 = vmatpush.msra.mxu1 %v4558_v36 }
 0x10f   :  { %v510_v60 = vmul.f32 %v3053_v56, %v509_v21  ;;  %v7379_v21 = vld [vmem:[#allocation82_spill] sm:$0xff]  ;;  %v4561_v56 = vld [vmem:[#allocation16 + $0x60] sm:$0xff] }
 0x110   :  { %1002 = vmatpush.msra.mxu3 %v4077_v41  ;;  %v7391_v41 = vld [vmem:[#allocation98_spill] sm:$0xff]  ;;  %921 = vmatpush.msra.mxu1 %v4561_v56 }
 0x111   :  { %v4450_v47 = vadd.f32 %v511_v44, %v510_v60  ;;  %809 = vmatmul.f32.vlgmr.msrb.gmra.mxu1 %v701_v19  ;;  %849 = vmatmul.f32.vlgmr.msrb.gmra.mxu3 %v701_v19  ;;  %v4564_v60 = vld [vmem:[#allocation16 + $0x58] sm:$0xff]  ;;  %v4567_v19 = vld [vmem:[#allocation16 + $0x50] sm:$0xff] }
 0x112   :  { %1003 = vmatpush.msra.mxu3 %v4089_v45  ;;  %v7394_v45 = vld [vmem:[#allocation102_spill] sm:$0xff]  ;;  %922 = vmatpush.msra.mxu1 %v4564_v60  ;;  %v664_v44 = vld [vmem:[#allocation15] sm:$0xf] }
 0x113   :  { %749 = vmatmul.f32.vlgmr.msra.gmra.mxu2 %v4450_v47  ;;  %789 = vmatmul.f32.vlgmr.msrb.gmra.mxu0 %v4450_v47 }
 0x114   :  { %1019 = vmatpush.msrb.mxu0 %v4023_v23  ;;  %979 = vmatpush.msra.mxu2 %v3963_v63  ;;  %v7363_v63 = vld [vmem:[#allocation28_spill] sm:$0xff]  ;;  %v7381_v23 = vld [vmem:[#allocation71_spill] sm:$0xff] }
 0x115   :  { %1004 = vmatpush.msra.mxu3 %v4101_v49  ;;  %v7396_v49 = vld [vmem:[#allocation89_spill] sm:$0xff]  ;;  %7418 = vst [vmem:[#allocation28_spill] sm:$0xff] %v4564_v60  ;;  %923 = vmatpush.msra.mxu1 %v4567_v19 }
 0x116   :  { %1020 = vmatpush.msrb.mxu0 %v4029_v25  ;;  %980 = vmatpush.msra.mxu2 %v3965_v2  ;;  %v7364_v2 = vld [vmem:[#allocation61_spill] sm:$0xff]  ;;  %v7382_v25 = vld [vmem:[#allocation86_spill] sm:$0xff] }
 0x117   :  { %1005 = vmatpush.msra.mxu3 %v4113_v53  ;;  %v7399_v53 = vld [vmem:[#allocation93_spill] sm:$0xff]  ;;  %7419 = vst [vmem:[#allocation61_spill] sm:$0xff] %v4567_v19 }
 0x118   :  { %1021 = vmatpush.msrb.mxu0 %v4035_v27  ;;  %981 = vmatpush.msra.mxu2 %v3969_v4  ;;  %v7365_v4 = vld [vmem:[#allocation29_spill] sm:$0xff]  ;;  %v7383_v27 = vld [vmem:[#allocation39_spill] sm:$0xff] }
 0x119   :  { %1006 = vmatpush.msra.mxu3 %v4125_v57  ;;  %v7401_v57 = vld [vmem:[#allocation51_spill] sm:$0xff] }
 0x11a   :  { %1022 = vmatpush.msrb.mxu0 %v4043_v30  ;;  %982 = vmatpush.msra.mxu2 %v3973_v6  ;;  %v7366_v6 = vld [vmem:[#allocation52_spill] sm:$0xff]  ;;  %v7385_v30 = vld [vmem:[#allocation90_spill] sm:$0xff] }
 0x11b   :  { %829 = vmatmul.f32.vlgmr.msrb.gmra.mxu2 %v4450_v47  ;;  %869 = vmatmul.f32.vlgmr.msra.gmra.mxu0 %v4450_v47 }
 0x11c   :  { %1023 = vmatpush.msrb.mxu0 %v4055_v34  ;;  %983 = vmatpush.msra.mxu2 %v3977_v8  ;;  %v7367_v8 = vld [vmem:[#allocation65_spill] sm:$0xff]  ;;  %v7388_v34 = vld [vmem:[#allocation94_spill] sm:$0xff] }
 0x11d   :  { %1007 = vmatpush.msra.mxu3 %v4142_v0  ;;  %v7404_v0 = vld [vmem:[#allocation54_spill] sm:$0xff] }
 0x11e   :  { %1024 = vmatpush.msrb.mxu0 %v4067_v38  ;;  %984 = vmatpush.msra.mxu2 %v3981_v9  ;;  %v7368_v9 = vld [vmem:[#allocation30_spill] sm:$0xff]  ;;  %v7390_v38 = vld [vmem:[#allocation81_spill] sm:$0xff] }
 0x11f   :  { %1008 = vmatpush.msra.mxu3 %v4154_v13  ;;  %v7373_v13 = vld [vmem:[#allocation74_spill] sm:$0xff] }
 0x120   :  { %1025 = vmatpush.msrb.mxu0 %v4079_v42  ;;  %985 = vmatpush.msra.mxu2 %v3984_v10  ;;  %v7369_v10 = vld [vmem:[#allocation55_spill] sm:$0xff]  ;;  %v7392_v42 = vld [vmem:[#allocation45_spill] sm:$0xff] }
 0x121   :  { %1009 = vmatpush.msra.mxu3 %v7366_v6 }
 0x122   :  { %1026 = vmatpush.msrb.mxu0 %v4091_v46  ;;  %986 = vmatpush.msra.mxu2 %v3987_v11  ;;  %v7370_v11 = vld [vmem:[#allocation69_spill] sm:$0xff]  ;;  %v7395_v46 = vld [vmem:[#allocation47_spill] sm:$0xff] }
 0x123   :  { %1010 = vmatpush.msra.mxu3 %v7369_v10 }
 0x124   :  { %1027 = vmatpush.msrb.mxu0 %v4103_v50  ;;  %987 = vmatpush.msra.mxu2 %v3990_v62  ;;  %v7371_v62 = vld [vmem:[#allocation31_spill] sm:$0xff]  ;;  %v7397_v50 = vld [vmem:[#allocation106_spill] sm:$0xff] }
 0x126   :  { %1028 = vmatpush.msrb.mxu0 %v4115_v54  ;;  %988 = vmatpush.msra.mxu2 %v3993_v12  ;;  %v7372_v12 = vld [vmem:[#allocation58_spill] sm:$0xff] }
 0x127   :  { %1011 = vmatpush.msra.mxu3 %v7372_v12  ;;  %v7400_v54 = vld [vmem:[#allocation110_spill] sm:$0xff]  ;;  %v4584_v12 = vperm.slane %v664_v44, 1 }
 0x128   :  { %1029 = vmatpush.msrb.mxu0 %v4127_v58  ;;  %989 = vmatpush.msra.mxu2 %v3996_v14  ;;  %v7374_v14 = vld [vmem:[#allocation33_spill] sm:$0xff] }
 0x129   :  { %v7402_v58 = vld [vmem:[#allocation97_spill] sm:$0xff]  ;;  %7425 = vst [vmem:[#allocation69_spill] sm:$0xff] %v4584_v12 }
 0x12a   :  { %1030 = vmatpush.msrb.mxu0 %v4144_v1  ;;  %990 = vmatpush.msra.mxu2 %v3999_v15  ;;  %v7375_v15 = vld [vmem:[#allocation63_spill] sm:$0xff]  ;;  %v7405_v1 = vld [vmem:[#allocation101_spill] sm:$0xff] }
 0x12b   :  { %1012 = vmatpush.msra.mxu3 %v7375_v15 }
 0x12c   :  { %1031 = vmatpush.msrb.mxu0 %v4156_v22  ;;  %991 = vmatpush.msra.mxu2 %v4005_v17  ;;  %v7376_v17 = vld [vmem:[#allocation78_spill] sm:$0xff]  ;;  %v7380_v22 = vld [vmem:[#allocation37_spill] sm:$0xff] }
 0x12e   :  { %1032 = vmatpush.msrb.mxu0 %v4169_v59  ;;  %992 = vmatpush.msra.mxu2 %v4008_v18  ;;  %v7377_v18 = vld [vmem:[#allocation35_spill] sm:$0xff]  ;;  %v7403_v59 = vld [vmem:[#allocation114_spill] sm:$0xff] }
 0x130   :  { %1033 = vmatpush.msrb.mxu0 %v4181_v43  ;;  %993 = vmatpush.msra.mxu2 %v4014_v20  ;;  %v7378_v20 = vld [vmem:[#allocation67_spill] sm:$0xff]  ;;  %v7393_v43 = vld [vmem:[#allocation85_spill] sm:$0xff] }
 0x131   :  { %1013 = vmatpush.msra.mxu3 %v7378_v20  ;;  %v4590_v20 = vld [vmem:[#allocation16 + $0x20] sm:$0xff] }
 0x132   :  { %1034 = vmatpush.msrb.mxu0 %v4193_v51  ;;  %994 = vmatpush.msra.mxu2 %v7363_v63  ;;  %v7398_v51 = vld [vmem:[#allocation49_spill] sm:$0xff]  ;;  %v4570_v63 = vld [vmem:[#allocation16 + $0x48] sm:$0xff]  ;;  %7427 = vst [vmem:[#allocation58_spill] sm:$0xff] %v4590_v20 }
 0x133   :  { %1014 = vmatpush.msra.mxu3 %v7381_v23  ;;  %7420 = vst [vmem:[#allocation29_spill] sm:$0xff] %v4570_v63  ;;  %924 = vmatpush.msra.mxu1 %v4570_v63 }
 0x134   :  { %1099 = vmatpush.msra.mxu0 %v7364_v2  ;;  %1059 = vmatpush.msrb.mxu2 %v7365_v4  ;;  %v4572_v2 = vperm.slane %v664_v44, 0  ;;  %v4575_v4 = vld [vmem:[#allocation16 + $0x40] sm:$0xff] }
 0x135   :  { %1079 = vmatpush.msrb.mxu3 %v7384_v29  ;;  %7422 = vst [vmem:[#allocation65_spill] sm:$0xff] %v4575_v4  ;;  %925 = vmatpush.msra.mxu1 %v4575_v4 }
 0x136   :  { %1100 = vmatpush.msra.mxu0 %v7367_v8  ;;  %1060 = vmatpush.msrb.mxu2 %v7368_v9  ;;  %7421 = vst [vmem:[#allocation52_spill] sm:$0xff] %v4572_v2  ;;  %v4578_v8 = vld [vmem:[#allocation16 + $0x38] sm:$0xff] }
 0x137   :  { %1080 = vmatpush.msrb.mxu3 %v7387_v33  ;;  %7423 = vst [vmem:[#allocation30_spill] sm:$0xff] %v4578_v8  ;;  %926 = vmatpush.msra.mxu1 %v4578_v8 }
 0x138   :  { %1101 = vmatpush.msra.mxu0 %v7370_v11  ;;  %1061 = vmatpush.msrb.mxu2 %v7371_v62  ;;  %v4582_v11 = vld [vmem:[#allocation16 + $0x30] sm:$0xff] }
 0x139   :  { %1081 = vmatpush.msrb.mxu3 %v7390_v38  ;;  %7424 = vst [vmem:[#allocation55_spill] sm:$0xff] %v4582_v11  ;;  %927 = vmatpush.msra.mxu1 %v4582_v11 }
 0x13a   :  { %1102 = vmatpush.msra.mxu0 %v7373_v13  ;;  %1062 = vmatpush.msrb.mxu2 %v7374_v14  ;;  %v4587_v14 = vld [vmem:[#allocation16 + $0x28] sm:$0xff] }
 0x13b   :  { %1082 = vmatpush.msrb.mxu3 %v7393_v43  ;;  %7426 = vst [vmem:[#allocation31_spill] sm:$0xff] %v4587_v14  ;;  %928 = vmatpush.msra.mxu1 %v4587_v14  ;;  %v4603_v43 = vld [vmem:[#allocation16] sm:$0xff] }
 0x13c   :  { %1103 = vmatpush.msra.mxu0 %v7376_v17  ;;  %1063 = vmatpush.msrb.mxu2 %v7377_v18  ;;  %7431 = vst [vmem:[#allocation78_spill] sm:$0xff] %v4603_v43 }
 0x13d   :  { %1083 = vmatpush.msrb.mxu3 %v7396_v49  ;;  %929 = vmatpush.msra.mxu1 %v4590_v20  ;;  %v7433_v49 = vld [vmem:[#allocation34_spill] sm:$0xff] }
 0x13e   :  { %1104 = vmatpush.msra.mxu0 %v7379_v21  ;;  %1064 = vmatpush.msrb.mxu2 %v7380_v22 }
 0x13f   :  { %1084 = vmatpush.msrb.mxu3 %v7399_v53 }
 0x140   :  { %1105 = vmatpush.msra.mxu0 %v7382_v25  ;;  %1065 = vmatpush.msrb.mxu2 %v7383_v27  ;;  %v4594_v27 = vld [vmem:[#allocation16 + $0x18] sm:$0xff] }
 0x141   :  { %1085 = vmatpush.msrb.mxu3 %v7402_v58  ;;  %7428 = vst [vmem:[#allocation74_spill] sm:$0xff] %v4594_v27  ;;  %930 = vmatpush.msra.mxu1 %v4594_v27 }
 0x142   :  { %1106 = vmatpush.msra.mxu0 %v7385_v30  ;;  %1066 = vmatpush.msrb.mxu2 %v7386_v32  ;;  %v4597_v32 = vld [vmem:[#allocation16 + $0x10] sm:$0xff] }
 0x143   :  { %1086 = vmatpush.msrb.mxu3 %v7405_v1  ;;  %7429 = vst [vmem:[#allocation33_spill] sm:$0xff] %v4597_v32  ;;  %931 = vmatpush.msra.mxu1 %v4597_v32 }
 0x144   :  { %1107 = vmatpush.msra.mxu0 %v7388_v34  ;;  %1067 = vmatpush.msrb.mxu2 %v7389_v37  ;;  %v4600_v37 = vld [vmem:[#allocation16 + $0x8] sm:$0xff] }
 0x145   :  { %1087 = vmatpush.msrb.mxu3 %v7408_v39  ;;  %7430 = vst [vmem:[#allocation63_spill] sm:$0xff] %v4600_v37  ;;  %932 = vmatpush.msra.mxu1 %v4600_v37 }
 0x146   :  { %1108 = vmatpush.msra.mxu0 %v7391_v41  ;;  %1068 = vmatpush.msrb.mxu2 %v7392_v42 }
 0x147   :  { %1088 = vmatpush.msrb.mxu3 %v7411_v7  ;;  %933 = vmatpush.msra.mxu1 %v4603_v43 }
 0x148   :  { %1109 = vmatpush.msra.mxu0 %v7394_v45  ;;  %1069 = vmatpush.msrb.mxu2 %v7395_v46  ;;  %v7432_v46 = vld [vmem:[#allocation32_spill] sm:$0xff] }
 0x149   :  { %1089 = vmatpush.msrb.mxu3 %v7412_v16  ;;  %1039 = vmatpush.msrb.mxu1 %v7432_v46  ;;  %v7439_v46 = vld [vmem:[#allocation42_spill] sm:$0xff] }
 0x14a   :  { %1110 = vmatpush.msra.mxu0 %v7397_v50  ;;  %1070 = vmatpush.msrb.mxu2 %v7398_v51 }
 0x14b   :  { %1090 = vmatpush.msrb.mxu3 %v7413_v5  ;;  %1040 = vmatpush.msrb.mxu1 %v7433_v49  ;;  %v7442_v5 = vld [vmem:[#allocation48_spill] sm:$0xff] }
 0x14c   :  { %1111 = vmatpush.msra.mxu0 %v7400_v54  ;;  %1071 = vmatpush.msrb.mxu2 %v7401_v57 }
 0x14d   :  { %1091 = vmatpush.msrb.mxu3 %v7414_v26 }
 0x14e   :  { %1112 = vmatpush.msra.mxu0 %v7403_v59  ;;  %1072 = vmatpush.msrb.mxu2 %v7404_v0 }
 0x14f   :  { %1092 = vmatpush.msrb.mxu3 %v7415_v35 }
 0x150   :  { %1113 = vmatpush.msra.mxu0 %v7406_v3  ;;  %1073 = vmatpush.msrb.mxu2 %v7407_v48 }
 0x151   :  { %1093 = vmatpush.msrb.mxu3 %v7416_v24 }
 0x152   :  { %1114 = vmatpush.msra.mxu0 %v7409_v40  ;;  %1074 = vmatpush.msrb.mxu2 %v7410_v55 }
 0x153   :  { %1094 = vmatpush.msrb.mxu3 %v7417_v52 }
 0x186   :  { %v730_v6 = vpop.f32.mrf.mxu1 }
 0x187   :  { %v731_v9 = vadd.f32 %v730_v6, %v4572_v2  ;;  %v7434_v6 = vld [vmem:[#allocation36_spill] sm:$0xff] }
 0x188   :  { %1041 = vmatpush.msrb.mxu1 %v7434_v6 }
 0x18c   :  { %v770_v18 = vpop.f32.mrf.mxu3 }
 0x18d   :  { %v771_v22 = vadd.f32 %v770_v18, %v4584_v12  ;;  %v4612_v18 = vperm.slane %v664_v44, 2  ;;  %v7440_v12 = vld [vmem:[#allocation44_spill] sm:$0xff] }
 0x18f   :  { %7437 = vst [vmem:[#allocation67_spill] sm:$0xff] %v4612_v18 }
 0x190   :  { %v790_v23 = vpop.f32.mrf.mxu0 }
 0x191   :  { %v791_v29 = vadd.f32 %v790_v23, %v771_v22  ;;  %v7438_v23 = vld [vmem:[#allocation40_spill] sm:$0xff] }
 0x193   :  { %v2994_v33 = vmul.f32 -1.442695, %v791_v29  ;;  %v810_v29 = vpop.f32.mrf.mxu1 }
 0x194   :  { %v850_v22 = vpop.f32.mrf.mxu3 }
 0x196   :  { %v750_v10 = vpop.f32.mrf.mxu2 }
 0x197   :  { %v751_v62 = vadd.f32 %v750_v10, %v731_v9  ;;  %v7435_v10 = vld [vmem:[#allocation38_spill] sm:$0xff] }
 0x198   :  { %1042 = vmatpush.msrb.mxu1 %v7435_v10  ;;  %v811_v10 = vadd.f32 %v810_v29, %v4612_v18  ;;  %v870_v24 = vpop.f32.mrf.mxu0 }
 0x199   :  { %v2993_v15 = vmul.f32 -1.442695, %v751_v62 }
 0x19a   :  { %1043 = vmatpush.msrb.mxu1 %v7438_v23 }
 0x19b   :  { %3054 = vpow2.f32 %v2993_v15  ;;  %v4610_v15 = vperm.slane %v664_v44, 3 }
 0x19c   :  { %3056 = vpow2.f32 %v2994_v33  ;;  %1044 = vmatpush.msrb.mxu1 %v7439_v46 }
 0x19d   :  { %7436 = vst [vmem:[#allocation35_spill] sm:$0xff] %v4610_v15  ;;  %v851_v49 = vadd.f32 %v850_v22, %v4610_v15 }
 0x19e   :  { %1045 = vmatpush.msrb.mxu1 %v7440_v12  ;;  %v830_v46 = vpop.f32.mrf.mxu2 }
 0x19f   :  { %v871_v26 = vadd.f32 %v870_v24, %v851_v49 }
 0x1a1   :  { %v3055_v38 = vpop.eup %3054 }
 0x1a2   :  { %v876_v42 = vadd.f32 1.0, %v3055_v38  ;;  %v3057_v53 = vpop.eup %3056 }
 0x1a3   :  { %v895_v58 = vadd.f32 1.0, %v3057_v53 }
 0x1a4   :  { %3058 = vrcp.f32 %v876_v42  ;;  %v888_v38 = vand.u32 2147483648, %v876_v42  ;;  %v886_v6 = vand.u32 2147483647, %v876_v42  ;;  %vm882_vm10 = vweird.f32 %v876_v42 }
 0x1a5   :  { %3060 = vrcp.f32 %v895_v58  ;;  %v907_v12 = vand.u32 2147483648, %v895_v58  ;;  %vm901_vm14 = vweird.f32 %v895_v58 }
 0x1a6   :  { %v889_v23 = vor.u32 1.1754944e-38, %v888_v38  ;;  %vm887_vm12 = vcmp.eq.f32.partialorder %v886_v6, 8.507059e+37 }
 0x1a7   :  { %v908_v24 = vor.u32 1.1754944e-38, %v907_v12  ;;  %v7454_v12 = vld [vmem:[#allocation91_spill] sm:$0xff] }
 0x1aa   :  { %v3059_v9 = vpop.eup %3058 }
 0x1ab   :  { %v878_v62 = vmul.f32 %v3059_v9, %v876_v42  ;;  %vm883_vm9 = vweird.f32 %v3059_v9  ;;  %v3061_v2 = vpop.eup %3060  ;;  %v7443_v42 = vld [vmem:[#allocation50_spill] sm:$0xff] }
 0x1ac   :  { %v897_v44 = vmul.f32 %v3061_v2, %v895_v58  ;;  %vm884_vm11 = vmor %vm882_vm10, %vm883_vm9  ;;  %vm902_vm13 = vweird.f32 %v3061_v2 }
 0x1ad   :  { %v879_v33 = vsub.f32 1.0, %v878_v62  ;;  %v7441_v62 = vld [vmem:[#allocation46_spill] sm:$0xff]  ;;  %vm903_vm15 = vmor %vm901_vm14, %vm902_vm13 }
 0x1ae   :  { %1046 = vmatpush.msrb.mxu1 %v7441_v62  ;;  %v898_v35 = vsub.f32 1.0, %v897_v44  ;;  %v7444_v44 = vld [vmem:[#allocation53_spill] sm:$0xff]  ;;  %v7451_v62 = vld [vmem:[#allocation79_spill] sm:$0xff] }
 0x1af   :  { %v880_v53 = vmul.f32 %v3059_v9, %v879_v33  ;;  %v831_v33 = vadd.f32 %v830_v46, %v811_v10  ;;  %v4638_v46 = vld [vmem:[#allocation12 + $0x70] sm:$0xff] }
 0x1b0   :  { %1047 = vmatpush.msrb.mxu1 %v7442_v5  ;;  %v899_v29 = vmul.f32 %v3061_v2, %v898_v35  ;;  %v7446_v35 = vld [vmem:[#allocation59_spill] sm:$0xff] }
 0x1b1   :  { %v881_v52 = vadd.f32 %v3059_v9, %v880_v53  ;;  %v905_v53 = vand.u32 2147483647, %v895_v58 }
 0x1b2   :  { %1048 = vmatpush.msrb.mxu1 %v7443_v42  ;;  %v900_v16 = vadd.f32 %v3061_v2, %v899_v29  ;;  %v4646_v29 = vld [vmem:[#allocation12 + $0x60] sm:$0xff]  ;;  %v7455_v42 = vld [vmem:[#allocation95_spill] sm:$0xff] }
 0x1b3   :  { %v885_v22 = vsel %vm884_vm11, %v3059_v9, %v881_v52  ;;  %vm906_vm0 = vcmp.eq.f32.partialorder %v905_v53, 8.507059e+37  ;;  %v7445_v9 = vld [vmem:[#allocation56_spill] sm:$0xff] }
 0x1b4   :  { %v890_v15 = vsel %vm887_vm12, %v889_v23, %v885_v22  ;;  %1049 = vmatpush.msrb.mxu1 %v7444_v44  ;;  %v904_v52 = vsel %vm903_vm15, %v3061_v2, %v900_v16  ;;  %v7449_v23 = vld [vmem:[#allocation72_spill] sm:$0xff]  ;;  %v7450_v16 = vld [vmem:[#allocation75_spill] sm:$0xff]  ;;  %v4642_v22 = vld [vmem:[#allocation12 + $0x68] sm:$0xff] }
 0x1b5   :  { %v911_v18 = vmul.f32 %v890_v15, %v871_v26  ;;  %v909_v5 = vsel %vm906_vm0, %v908_v24, %v904_v52  ;;  %v7447_v26 = vld [vmem:[#allocation64_spill] sm:$0xff]  ;;  %v7456_v44 = vld [vmem:[#allocation99_spill] sm:$0xff]  ;;  %v4659_v24 = vld [vmem:[#allocation12 + $0x48] sm:$0xff] }
 0x1b6   :  { %1050 = vmatpush.msrb.mxu1 %v7445_v9  ;;  %v914_v49 = vsub.f32 1.0, %v909_v5  ;;  %v916_v58 = vmul.f32 %v909_v5, %v4450_v47  ;;  %v4634_v2 = vld [vmem:[#allocation12 + $0x78] sm:$0xff]  ;;  %v4663_v9 = vld [vmem:[#allocation12 + $0x40] sm:$0xff] }
 0x1b7   :  { %v912_v38 = vadd.f32 %v911_v18, %v831_v33  ;;  %v7448_v18 = vld [vmem:[#allocation68_spill] sm:$0xff]  ;;  %v7452_v47 = vld [vmem:[#allocation83_spill] sm:$0xff] }
 0x1b8   :  { %1051 = vmatpush.msrb.mxu1 %v7446_v35  ;;  %v7453_v33 = vld [vmem:[#allocation87_spill] sm:$0xff] }
 0x1b9   :  { %3062 = vtanh.f32 %v912_v38  ;;  %v4651_v53 = vld [vmem:[#allocation12 + $0x58] sm:$0xff]  ;;  %v4655_v38 = vld [vmem:[#allocation12 + $0x50] sm:$0xff] }
 0x1ba   :  { %1052 = vmatpush.msrb.mxu1 %v7447_v26  ;;  %v7457_v52 = vld [vmem:[#allocation103_spill] sm:$0xff] }
 0x1bb   :  { %v7458_v5 = vld [vmem:[#allocation107_spill] sm:$0xff] }
 0x1bc   :  { %1053 = vmatpush.msrb.mxu1 %v7448_v18  ;;  %v4667_v35 = vld [vmem:[#allocation12 + $0x38] sm:$0xff]  ;;  %v4671_v26 = vld [vmem:[#allocation12 + $0x30] sm:$0xff]  ;;  %v4679_v18 = vld [vmem:[#allocation12 + $0x20] sm:$0xff] }
 0x1be   :  { %1054 = vmatpush.msrb.mxu1 %v7449_v23  ;;  %v7462_v23 = vld [vmem:[#allocation123_spill] sm:$0xff] }
 0x1bf   :  { %v3063_v15 = vpop.eup %3062 }
 0x1c0   :  { %v915_v6 = vmul.f32 %v3063_v15, %v914_v49  ;;  %v7459_v49 = vld [vmem:[#allocation111_spill] sm:$0xff] }
 0x1c1   :  { %v7460_v15 = vld [vmem:[#allocation115_spill] sm:$0xff] }
 0x1c2   :  { %v4628_v10 = vadd.f32 %v916_v58, %v915_v6  ;;  %v4675_v6 = vld [vmem:[#allocation12 + $0x28] sm:$0xff]  ;;  %v7461_v58 = vld [vmem:[#allocation119_spill] sm:$0xff] }
 0x1c4   :  { %934 = vmatmul.f32.vlgmr.msra.gmra.mxu1 %v4628_v10  ;;  %1035 = vmatmul.f32.vlgmr.msrb.gmra.mxu0 %v4628_v10 }
 0x1c5   :  { %1119 = vmatpush.msra.mxu1 %v7450_v16  ;;  %1266 = vmatpush.msrb.mxu0 %v4634_v2  ;;  %v4683_v16 = vld [vmem:[#allocation12 + $0x18] sm:$0xff] }
 0x1c7   :  { %1120 = vmatpush.msra.mxu1 %v7451_v62  ;;  %1267 = vmatpush.msrb.mxu0 %v4638_v46  ;;  %v7463_v62 = vld [vmem:[#allocation126_spill] sm:$0xff] }
 0x1c9   :  { %1121 = vmatpush.msra.mxu1 %v7452_v47  ;;  %1268 = vmatpush.msrb.mxu0 %v4642_v22  ;;  %v4687_v47 = vld [vmem:[#allocation12 + $0x10] sm:$0xff] }
 0x1cb   :  { %1122 = vmatpush.msra.mxu1 %v7453_v33  ;;  %1269 = vmatpush.msrb.mxu0 %v4646_v29  ;;  %v7464_v33 = vld [vmem:[#allocation128_spill] sm:$0xff] }
 0x1cc   :  { %1115 = vmatmul.f32.vlgmr.msra.gmra.mxu0 %v4628_v10 }
 0x1cd   :  { %1123 = vmatpush.msra.mxu1 %v7454_v12  ;;  %1270 = vmatpush.msrb.mxu0 %v4651_v53  ;;  %v4691_v12 = vld [vmem:[#allocation12 + $0x8] sm:$0xff] }
 0x1cf   :  { %1124 = vmatpush.msra.mxu1 %v7455_v42  ;;  %1271 = vmatpush.msrb.mxu0 %v4655_v38  ;;  %v4695_v42 = vld [vmem:[#allocation12] sm:$0xff] }
 0x1d1   :  { %1125 = vmatpush.msra.mxu1 %v7456_v44  ;;  %1272 = vmatpush.msrb.mxu0 %v4659_v24  ;;  %v4698_v44 = vld [vmem:[#allocation13 + $0x3e8] sm:$0xff] }
 0x1d2   :  { %7465 = vst [vmem:[#allocation82_spill] sm:$0xff] %v4698_v44 }
 0x1d3   :  { %1126 = vmatpush.msra.mxu1 %v7457_v52  ;;  %1273 = vmatpush.msrb.mxu0 %v4663_v9  ;;  %v4701_v52 = vld [vmem:[#allocation13 + $0x3c8] sm:$0xff] }
 0x1d4   :  { %7466 = vst [vmem:[#allocation37_spill] sm:$0xff] %v4701_v52 }
 0x1d5   :  { %1127 = vmatpush.msra.mxu1 %v7458_v5  ;;  %1274 = vmatpush.msrb.mxu0 %v4667_v35  ;;  %v4704_v5 = vld [vmem:[#allocation13 + $0x3a8] sm:$0xff] }
 0x1d6   :  { %7467 = vst [vmem:[#allocation71_spill] sm:$0xff] %v4704_v5 }
 0x1d7   :  { %1128 = vmatpush.msra.mxu1 %v7459_v49  ;;  %1275 = vmatpush.msrb.mxu0 %v4671_v26  ;;  %v4707_v49 = vld [vmem:[#allocation13 + $0x388] sm:$0xff] }
 0x1d8   :  { %7468 = vst [vmem:[#allocation86_spill] sm:$0xff] %v4707_v49 }
 0x1d9   :  { %1129 = vmatpush.msra.mxu1 %v7460_v15  ;;  %1276 = vmatpush.msrb.mxu0 %v4675_v6  ;;  %v4713_v15 = vld [vmem:[#allocation13 + $0x348] sm:$0xff] }
 0x1da   :  { %7470 = vst [vmem:[#allocation73_spill] sm:$0xff] %v4713_v15 }
 0x1db   :  { %1130 = vmatpush.msra.mxu1 %v7461_v58  ;;  %1277 = vmatpush.msrb.mxu0 %v4679_v18  ;;  %v4716_v58 = vld [vmem:[#allocation13 + $0x328] sm:$0xff] }
 0x1dc   :  { %7471 = vst [vmem:[#allocation90_spill] sm:$0xff] %v4716_v58 }
 0x1dd   :  { %1131 = vmatpush.msra.mxu1 %v7462_v23  ;;  %1278 = vmatpush.msrb.mxu0 %v4683_v16  ;;  %v4719_v23 = vld [vmem:[#allocation13 + $0x308] sm:$0xff] }
 0x1de   :  { %7472 = vst [vmem:[#allocation41_spill] sm:$0xff] %v4719_v23 }
 0x1df   :  { %1132 = vmatpush.msra.mxu1 %v7463_v62  ;;  %1279 = vmatpush.msrb.mxu0 %v4687_v47  ;;  %v4722_v62 = vld [vmem:[#allocation13 + $0x2e8] sm:$0xff] }
 0x1e0   :  { %7473 = vst [vmem:[#allocation77_spill] sm:$0xff] %v4722_v62 }
 0x1e1   :  { %1133 = vmatpush.msra.mxu1 %v7464_v33  ;;  %1280 = vmatpush.msrb.mxu0 %v4691_v12  ;;  %v4725_v33 = vld [vmem:[#allocation13 + $0x2c8] sm:$0xff] }
 0x1e2   :  { %7474 = vst [vmem:[#allocation94_spill] sm:$0xff] %v4725_v33 }
 0x1e3   :  { %1134 = vmatpush.msra.mxu1 %v4436_v61  ;;  %1281 = vmatpush.msrb.mxu0 %v4695_v42  ;;  %v4710_v61 = vld [vmem:[#allocation13 + $0x368] sm:$0xff] }
 0x1e4   :  { %7469 = vst [vmem:[#allocation39_spill] sm:$0xff] %v4710_v61 }
 0x1e5   :  { %1346 = vmatpush.msra.mxu0 %v4698_v44  ;;  %v7487_v44 = vld [vmem:[#allocation76_spill] sm:$0xff] }
 0x1e7   :  { %1347 = vmatpush.msra.mxu0 %v4701_v52  ;;  %v7486_v52 = vld [vmem:[#allocation70_spill] sm:$0xff] }
 0x1e9   :  { %1348 = vmatpush.msra.mxu0 %v4704_v5 }
 0x1eb   :  { %1349 = vmatpush.msra.mxu0 %v4707_v49  ;;  %v7481_v49 = vmov 0.0  }
 0x1ed   :  { %1350 = vmatpush.msra.mxu0 %v4710_v61  ;;  %v4728_v61 = vld [vmem:[#allocation13 + $0x2a8] sm:$0xff] }
 0x1ee   :  { %7475 = vst [vmem:[#allocation43_spill] sm:$0xff] %v4728_v61 }
 0x1ef   :  { %1351 = vmatpush.msra.mxu0 %v4713_v15 }
 0x1f1   :  { %1352 = vmatpush.msra.mxu0 %v4716_v58  ;;  %v971_v58 = vstv %s967_s23  ;;  %s3018_s23 = sld [smem:[#allocation8 + $0x5]] }
 0x1f3   :  { %1353 = vmatpush.msra.mxu0 %v4719_v23 }
 0x1f5   :  { %1354 = vmatpush.msra.mxu0 %v4722_v62  ;;  %v4739_v62 = vld [vmem:[%s6812_s10] sm:$0x1] }
 0x1f6   :  { %7476 = vst [vmem:[#allocation81_spill] sm:$0xff] %v4739_v62 }
 0x1f7   :  { %1355 = vmatpush.msra.mxu0 %v4725_v33  ;;  %s2398_s24 = scvt.s32.f32 %s3018_s23 }
 0x1f9   :  { %1356 = vmatpush.msra.mxu0 %v4728_v61  ;;  %s2402_s26 = ssub.f32 1.0, %s2398_s24 }
 0x1fb   :  { %1357 = vmatpush.msra.mxu0 %v7398_v51 }
 0x1fd   :  { %1358 = vmatpush.msra.mxu0 %v7401_v57  ;;  %v7478_v57 = vld [vmem:[#allocation27_spill] sm:$0xff] }
 0x1ff   :  { %1359 = vmatpush.msra.mxu0 %v7404_v0  ;;  %v4747_v0 = vsub.f32 0.0, %v7478_v57 }
 0x201   :  { %1360 = vmatpush.msra.mxu0 %v7407_v48  ;;  %7479 = vst [vmem:[#allocation45_spill] sm:$0xff] %v4747_v0 }
 0x203   :  { %1361 = vmatpush.msra.mxu0 %v7410_v55 }
 0x241   :  { %v935_v33 = vpop.f32.mrf.mxu1 }
 0x242   :  { %v4742_v23 = vadd.f32 %v935_v33, %v4739_v62  ;;  %v969_v33 = vstv %s968_s22  ;;  %s2114_s22 = smul.f32 %s2113_s7, %s2111_s20 }
 0x244   :  { %7477 = vst [vmem:[#allocation98_spill] sm:$0xff] %v4742_v23  ;;  %v939_v51 = vsel %vm938_vm1, %v4742_v23, -inf }
 0x245   :  { %940 = vmax.xlane.f32.xlu0 %v939_v51 }
 0x2b8   :  { %v4749_v48 = vpop.xlane.xlu0 %940 }
 0x2b9   :  { %7480 = vst [vmem:[#allocation85_spill] sm:$0xff] %v4749_v48  ;;  %vm957_vm2 = vcmp.eq.f32.partialorder %v4742_v23, %v4749_v48 }
 0x2ba   :  { %v958_v55 = vsel %vm957_vm2, %v4747_v0, -inf  ;;  %v7485_v0 = vld [vmem:[#allocation66_spill] sm:$0xff] }
 0x2bb   :  { %v959_v61 = vsel %vm938_vm1, %v958_v55, -inf  ;;  %v7484_v55 = vld [vmem:[#allocation62_spill] sm:$0xff] }
 0x2bc   :  { %960 = vmax.xlane.f32.xlu0 %v959_v61  ;;  %v7483_v61 = vmov 1.0  }
 0x32f   :  { %v961_v51 = vpop.xlane.xlu0 %960 }
 0x330   :  { %v962_v62 = vsub.f32 0.0, %v961_v51  ;;  %v7489_v51 = vld [vmem:[#allocation84_spill] sm:$0xff] }
 0x332   :  { %v970_v15 = vmul.f32 %v969_v33, %v962_v62  ;;  %vm973_vm3 = vcmp.eq.f32.partialorder %v962_v62, 1.0  ;;  %v7488_v62 = vld [vmem:[#allocation80_spill] sm:$0xff] }
 0x333   :  { %v974_v5 = vsel %vm973_vm3, 1.0, %v7481_v49 }
 0x334   :  { %v972_v23 = vadd.f32 %v971_v58, %v970_v15  ;;  %v4756_v48 = vmul.f32 %v974_v5, %v969_v33  ;;  %v7490_v5 = vld [vmem:[#allocation88_spill] sm:$0xff] }
 0x335   :  { %v7491_v15 = vld [vmem:[#allocation92_spill] sm:$0xff] }
 0x336   :  { %7482 = vst [vmem:[#allocation102_spill] sm:$0xff] %v4756_v48  ;;  %vm977_vm4 = vcmp.eq.f32.partialorder %v7478_v57, %v972_v23  ;;  %v7492_v58 = vld [vmem:[#allocation96_spill] sm:$0xff] }
 0x337   :  { %2995 = vmatmul.msk.f32.vlgmr.msra.gmra.mxu2 %vm977_vm4, %v7483_v61  ;;  %v7493_v23 = vld [vmem:[#allocation100_spill] sm:$0xff] }
 0x338   :  { %1139 = vmatpush.msra.mxu2 %v7484_v55  ;;  %v7494_v33 = vld [vmem:[#allocation104_spill] sm:$0xff] }
 0x339   :  { %v7498_v55 = vld [vmem:[#allocation120_spill] sm:$0xff] }
 0x33a   :  { %1140 = vmatpush.msra.mxu2 %v7485_v0  ;;  %v7495_v0 = vld [vmem:[#allocation108_spill] sm:$0xff] }
 0x33c   :  { %1141 = vmatpush.msra.mxu2 %v7486_v52  ;;  %v7496_v52 = vld [vmem:[#allocation112_spill] sm:$0xff] }
 0x33e   :  { %1142 = vmatpush.msra.mxu2 %v7487_v44  ;;  %v7497_v44 = vld [vmem:[#allocation116_spill] sm:$0xff] }
 0x33f   :  { %1075 = vmatmul.f32.vlgmr.msrb.gmra.mxu2 %v4628_v10 }
 0x340   :  { %1143 = vmatpush.msra.mxu2 %v7488_v62  ;;  %v7499_v62 = vld [vmem:[#allocation124_spill] sm:$0xff] }
 0x342   :  { %1144 = vmatpush.msra.mxu2 %v7489_v51  ;;  %v4778_v51 = vld [vmem:[#allocation13 + $0x3e0] sm:$0xff] }
 0x344   :  { %1145 = vmatpush.msra.mxu2 %v7490_v5  ;;  %v4781_v5 = vld [vmem:[#allocation13 + $0x3c0] sm:$0xff] }
 0x346   :  { %1146 = vmatpush.msra.mxu2 %v7491_v15  ;;  %v4784_v15 = vld [vmem:[#allocation13 + $0x3a0] sm:$0xff] }
 0x348   :  { %1147 = vmatpush.msra.mxu2 %v7492_v58  ;;  %v4787_v58 = vld [vmem:[#allocation13 + $0x380] sm:$0xff] }
 0x34a   :  { %1148 = vmatpush.msra.mxu2 %v7493_v23  ;;  %v4790_v23 = vld [vmem:[#allocation13 + $0x360] sm:$0xff] }
 0x34c   :  { %1149 = vmatpush.msra.mxu2 %v7494_v33  ;;  %v4793_v33 = vld [vmem:[#allocation13 + $0x340] sm:$0xff] }
 0x34d   :  { %7500 = vst [vmem:[#allocation47_spill] sm:$0xff] %v4793_v33 }
 0x34e   :  { %1150 = vmatpush.msra.mxu2 %v7495_v0  ;;  %v4796_v0 = vld [vmem:[#allocation13 + $0x320] sm:$0xff] }
 0x34f   :  { %7501 = vst [vmem:[#allocation89_spill] sm:$0xff] %v4796_v0 }
 0x350   :  { %1151 = vmatpush.msra.mxu2 %v7496_v52  ;;  %v4799_v52 = vld [vmem:[#allocation13 + $0x300] sm:$0xff] }
 0x351   :  { %7502 = vst [vmem:[#allocation106_spill] sm:$0xff] %v4799_v52 }
 0x352   :  { %1152 = vmatpush.msra.mxu2 %v7497_v44  ;;  %v4802_v44 = vld [vmem:[#allocation13 + $0x2e0] sm:$0xff] }
 0x353   :  { %7503 = vst [vmem:[#allocation49_spill] sm:$0xff] %v4802_v44 }
 0x354   :  { %1153 = vmatpush.msra.mxu2 %v7498_v55  ;;  %v4805_v55 = vld [vmem:[#allocation13 + $0x2c0] sm:$0xff] }
 0x355   :  { %7504 = vst [vmem:[#allocation93_spill] sm:$0xff] %v4805_v55 }
 0x356   :  { %1154 = vmatpush.msra.mxu2 %v7499_v62  ;;  %v4808_v62 = vld [vmem:[#allocation13 + $0x2a0] sm:$0xff] }
 0x357   :  { %1155 = vmatmul.f32.vlgmr.msra.gmra.mxu2 %v4628_v10  ;;  %7505 = vst [vmem:[#allocation110_spill] sm:$0xff] %v4808_v62 }
 0x358   :  { %1306 = vmatpush.msrb.mxu2 %v4778_v51 }
 0x35a   :  { %1307 = vmatpush.msrb.mxu2 %v4781_v5 }
 0x35c   :  { %1308 = vmatpush.msrb.mxu2 %v4784_v15 }
 0x35e   :  { %1309 = vmatpush.msrb.mxu2 %v4787_v58 }
 0x360   :  { %1310 = vmatpush.msrb.mxu2 %v4790_v23 }
 0x362   :  { %1311 = vmatpush.msrb.mxu2 %v4793_v33  ;;  %v4811_v33 = vld [vmem:[#allocation13 + $0x280] sm:$0xff] }
 0x363   :  { %7506 = vst [vmem:[#allocation51_spill] sm:$0xff] %v4811_v33 }
 0x364   :  { %1312 = vmatpush.msrb.mxu2 %v4796_v0  ;;  %v4814_v0 = vld [vmem:[#allocation13 + $0x260] sm:$0xff] }
 0x365   :  { %7507 = vst [vmem:[#allocation97_spill] sm:$0xff] %v4814_v0 }
 0x366   :  { %1313 = vmatpush.msrb.mxu2 %v4799_v52  ;;  %v4817_v52 = vld [vmem:[#allocation13 + $0x240] sm:$0xff] }
 0x368   :  { %1314 = vmatpush.msrb.mxu2 %v4802_v44  ;;  %v4820_v44 = vld [vmem:[#allocation13 + $0x220] sm:$0xff] }
 0x36a   :  { %1315 = vmatpush.msrb.mxu2 %v4805_v55  ;;  %v4823_v55 = vld [vmem:[#allocation13 + $0x200] sm:$0xff] }
 0x36c   :  { %1316 = vmatpush.msrb.mxu2 %v4808_v62  ;;  %v4826_v62 = vld [vmem:[#allocation13 + $0x3f0] sm:$0xff] }
 0x36e   :  { %1317 = vmatpush.msrb.mxu2 %v4811_v33  ;;  %v4829_v33 = vld [vmem:[#allocation13 + $0x3d0] sm:$0xff] }
 0x370   :  { %1318 = vmatpush.msrb.mxu2 %v4814_v0  ;;  %v4832_v0 = vld [vmem:[#allocation13 + $0x3b0] sm:$0xff] }
 0x372   :  { %1319 = vmatpush.msrb.mxu2 %v4817_v52 }
 0x374   :  { %1320 = vmatpush.msrb.mxu2 %v4820_v44 }
 0x376   :  { %1321 = vmatpush.msrb.mxu2 %v4823_v55 }
 0x378   :  { %1386 = vmatpush.msra.mxu2 %v4826_v62 }
 0x37a   :  { %1387 = vmatpush.msra.mxu2 %v4829_v33 }
 0x37c   :  { %1388 = vmatpush.msra.mxu2 %v4832_v0 }
 0x37e   :  { %1389 = vmatpush.msra.mxu2 %v7373_v13 }
 0x380   :  { %1390 = vmatpush.msra.mxu2 %v7376_v17  ;;  %v4849_v17 = vld [vmem:[#allocation13 + $0x1e0] sm:$0xff] }
 0x382   :  { %1391 = vmatpush.msra.mxu2 %v7379_v21  ;;  %v4853_v21 = vld [vmem:[#allocation13 + $0x1c0] sm:$0xff] }
 0x384   :  { %1392 = vmatpush.msra.mxu2 %v7382_v25  ;;  %v4857_v25 = vld [vmem:[#allocation13 + $0x1a0] sm:$0xff] }
 0x386   :  { %1393 = vmatpush.msra.mxu2 %v7385_v30  ;;  %v4861_v30 = vld [vmem:[#allocation13 + $0x180] sm:$0xff] }
 0x387   :  { %7508 = vst [vmem:[#allocation114_spill] sm:$0xff] %v4861_v30 }
 0x388   :  { %1394 = vmatpush.msra.mxu2 %v7388_v34  ;;  %v4865_v34 = vld [vmem:[#allocation13 + $0x160] sm:$0xff] }
 0x389   :  { %7509 = vst [vmem:[#allocation54_spill] sm:$0xff] %v4865_v34 }
 0x38a   :  { %1395 = vmatpush.msra.mxu2 %v7391_v41  ;;  %v4869_v41 = vld [vmem:[#allocation13 + $0x140] sm:$0xff] }
 0x38b   :  { %7510 = vst [vmem:[#allocation101_spill] sm:$0xff] %v4869_v41 }
 0x38c   :  { %1396 = vmatpush.msra.mxu2 %v7394_v45  ;;  %v4873_v45 = vld [vmem:[#allocation13 + $0x120] sm:$0xff] }
 0x38d   :  { %7511 = vst [vmem:[#allocation118_spill] sm:$0xff] %v4873_v45 }
 0x38e   :  { %1397 = vmatpush.msra.mxu2 %v7397_v50  ;;  %v4877_v50 = vld [vmem:[#allocation13 + $0x100] sm:$0xff] }
 0x38f   :  { %7512 = vst [vmem:[#allocation57_spill] sm:$0xff] %v4877_v50 }
 0x390   :  { %1398 = vmatpush.msra.mxu2 %v7400_v54  ;;  %v4881_v54 = vld [vmem:[#allocation13 + $0xe0] sm:$0xff] }
 0x391   :  { %7513 = vst [vmem:[#allocation105_spill] sm:$0xff] %v4881_v54 }
 0x392   :  { %1399 = vmatpush.msra.mxu2 %v7403_v59  ;;  %v4885_v59 = vld [vmem:[#allocation13 + $0xc0] sm:$0xff] }
 0x393   :  { %7514 = vst [vmem:[#allocation122_spill] sm:$0xff] %v4885_v59 }
 0x394   :  { %1400 = vmatpush.msra.mxu2 %v7406_v3  ;;  %v4889_v3 = vld [vmem:[#allocation13 + $0xa0] sm:$0xff] }
 0x395   :  { %7515 = vst [vmem:[#allocation60_spill] sm:$0xff] %v4889_v3 }
 0x396   :  { %1401 = vmatpush.msra.mxu2 %v7409_v40  ;;  %v4893_v40 = vld [vmem:[#allocation13 + $0x80] sm:$0xff] }
 0x397   :  { %7516 = vst [vmem:[#allocation109_spill] sm:$0xff] %v4893_v40 }
 0x3ba   :  { %v996_v13 = vpop.f32.mrf.mxu2 }
 0x3bb   :  { %1015 = vmatmul.f32.vlgmr.msra.gmra.mxu3 %v996_v13  ;;  %1055 = vmatmul.f32.vlgmr.msrb.gmra.mxu1 %v996_v13 }
 0x3bc   :  { %1204 = vmatpush.msra.mxu3 %v4552_v31  ;;  %1286 = vmatpush.msrb.mxu1 %v4849_v17 }
 0x3be   :  { %1205 = vmatpush.msra.mxu3 %v4555_v28  ;;  %1287 = vmatpush.msrb.mxu1 %v4853_v21 }
 0x3c0   :  { %1206 = vmatpush.msra.mxu3 %v4558_v36  ;;  %1288 = vmatpush.msrb.mxu1 %v4857_v25 }
 0x3c2   :  { %1207 = vmatpush.msra.mxu3 %v4561_v56  ;;  %1289 = vmatpush.msrb.mxu1 %v4861_v30 }
 0x3c3   :  { %1095 = vmatmul.f32.vlgmr.msrb.gmra.mxu3 %v996_v13  ;;  %1135 = vmatmul.f32.vlgmr.msra.gmra.mxu1 %v996_v13  ;;  %v4897_v13 = vld [vmem:[#allocation13 + $0x60] sm:$0xff] }
 0x3c4   :  { %1208 = vmatpush.msra.mxu3 %v4564_v60  ;;  %1290 = vmatpush.msrb.mxu1 %v4865_v34  ;;  %7517 = vst [vmem:[#allocation32_spill] sm:$0xff] %v4897_v13 }
 0x3c6   :  { %1209 = vmatpush.msra.mxu3 %v4567_v19  ;;  %1291 = vmatpush.msrb.mxu1 %v4869_v41 }
 0x3c8   :  { %1210 = vmatpush.msra.mxu3 %v4570_v63  ;;  %1292 = vmatpush.msrb.mxu1 %v4873_v45 }
 0x3ca   :  { %1211 = vmatpush.msra.mxu3 %v4575_v4  ;;  %1293 = vmatpush.msrb.mxu1 %v4877_v50 }
 0x3cc   :  { %1212 = vmatpush.msra.mxu3 %v4578_v8  ;;  %1294 = vmatpush.msrb.mxu1 %v4881_v54 }
 0x3ce   :  { %1213 = vmatpush.msra.mxu3 %v4582_v11  ;;  %1295 = vmatpush.msrb.mxu1 %v4885_v59  ;;  %v4901_v59 = vld [vmem:[#allocation13 + $0x40] sm:$0xff]  ;;  %v1036_v11 = vpop.f32.mrf.mxu0 }
 0x3cf   :  { %7518 = vst [vmem:[#allocation34_spill] sm:$0xff] %v4901_v59 }
 0x3d0   :  { %1214 = vmatpush.msra.mxu3 %v4587_v14  ;;  %1296 = vmatpush.msrb.mxu1 %v4889_v3  ;;  %v4905_v3 = vld [vmem:[#allocation13 + $0x20] sm:$0xff] }
 0x3d1   :  { %7519 = vst [vmem:[#allocation36_spill] sm:$0xff] %v4905_v3 }
 0x3d2   :  { %1215 = vmatpush.msra.mxu3 %v4590_v20  ;;  %1297 = vmatpush.msrb.mxu1 %v4893_v40  ;;  %v4909_v40 = vld [vmem:[#allocation13] sm:$0xff] }
 0x3d3   :  { %7520 = vst [vmem:[#allocation38_spill] sm:$0xff] %v4909_v40 }
 0x3d4   :  { %1216 = vmatpush.msra.mxu3 %v4594_v27  ;;  %1298 = vmatpush.msrb.mxu1 %v4897_v13  ;;  %v4912_v27 = vld [vmem:[#allocation13 + $0x1e8] sm:$0xff] }
 0x3d5   :  { %7521 = vst [vmem:[#allocation40_spill] sm:$0xff] %v4912_v27 }
 0x3d6   :  { %1217 = vmatpush.msra.mxu3 %v4597_v32  ;;  %1299 = vmatpush.msrb.mxu1 %v4901_v59  ;;  %v4915_v32 = vld [vmem:[#allocation13 + $0x1f0] sm:$0xff]  ;;  %v4918_v59 = vld [vmem:[#allocation13 + $0x1c8] sm:$0xff] }
 0x3d7   :  { %7522 = vst [vmem:[#allocation42_spill] sm:$0xff] %v4915_v32 }
 0x3d8   :  { %1218 = vmatpush.msra.mxu3 %v4600_v37  ;;  %1300 = vmatpush.msrb.mxu1 %v4905_v3  ;;  %7523 = vst [vmem:[#allocation44_spill] sm:$0xff] %v4918_v59  ;;  %v4921_v37 = vld [vmem:[#allocation13 + $0x1d0] sm:$0xff]  ;;  %v1076_v3 = vpop.f32.mrf.mxu2 }
 0x3d9   :  { %7524 = vst [vmem:[#allocation46_spill] sm:$0xff] %v4921_v37 }
 0x3da   :  { %1219 = vmatpush.msra.mxu3 %v4603_v43  ;;  %1301 = vmatpush.msrb.mxu1 %v4909_v40  ;;  %v4924_v43 = vld [vmem:[#allocation13 + $0x1a8] sm:$0xff]  ;;  %v4927_v40 = vld [vmem:[#allocation13 + $0x1b0] sm:$0xff] }
 0x3db   :  { %7525 = vst [vmem:[#allocation48_spill] sm:$0xff] %v4924_v43 }
 0x3dc   :  { %1326 = vmatpush.msrb.mxu3 %v4912_v27  ;;  %1366 = vmatpush.msra.mxu1 %v4915_v32  ;;  %7526 = vst [vmem:[#allocation50_spill] sm:$0xff] %v4927_v40  ;;  %v4930_v27 = vld [vmem:[#allocation13 + $0x188] sm:$0xff]  ;;  %v4933_v32 = vld [vmem:[#allocation13 + $0x190] sm:$0xff] }
 0x3dd   :  { %7527 = vst [vmem:[#allocation53_spill] sm:$0xff] %v4930_v27 }
 0x3de   :  { %1327 = vmatpush.msrb.mxu3 %v4918_v59  ;;  %1367 = vmatpush.msra.mxu1 %v4921_v37  ;;  %7528 = vst [vmem:[#allocation56_spill] sm:$0xff] %v4933_v32  ;;  %v4936_v59 = vld [vmem:[#allocation13 + $0x168] sm:$0xff]  ;;  %v4939_v37 = vld [vmem:[#allocation13 + $0x170] sm:$0xff] }
 0x3df   :  { %7529 = vst [vmem:[#allocation59_spill] sm:$0xff] %v4936_v59 }
 0x3e0   :  { %1328 = vmatpush.msrb.mxu3 %v4924_v43  ;;  %1368 = vmatpush.msra.mxu1 %v4927_v40  ;;  %7530 = vst [vmem:[#allocation64_spill] sm:$0xff] %v4939_v37  ;;  %v4942_v43 = vld [vmem:[#allocation13 + $0x148] sm:$0xff]  ;;  %v4945_v40 = vld [vmem:[#allocation13 + $0x150] sm:$0xff]  ;;  %v1156_v63 = vpop.f32.mrf.mxu2 }
 0x3e1   :  { %7531 = vst [vmem:[#allocation68_spill] sm:$0xff] %v4942_v43 }
 0x3e2   :  { %1329 = vmatpush.msrb.mxu3 %v4930_v27  ;;  %1369 = vmatpush.msra.mxu1 %v4933_v32  ;;  %7532 = vst [vmem:[#allocation72_spill] sm:$0xff] %v4945_v40  ;;  %v4948_v27 = vld [vmem:[#allocation13 + $0x128] sm:$0xff]  ;;  %v4951_v32 = vld [vmem:[#allocation13 + $0x130] sm:$0xff] }
 0x3e3   :  { %7533 = vst [vmem:[#allocation75_spill] sm:$0xff] %v4948_v27 }
 0x3e4   :  { %1330 = vmatpush.msrb.mxu3 %v4936_v59  ;;  %1370 = vmatpush.msra.mxu1 %v4939_v37  ;;  %7534 = vst [vmem:[#allocation79_spill] sm:$0xff] %v4951_v32  ;;  %v4954_v59 = vld [vmem:[#allocation13 + $0x108] sm:$0xff] }
 0x3e5   :  { %7535 = vst [vmem:[#allocation83_spill] sm:$0xff] %v4954_v59  ;;  %v4958_v37 = vld [vmem:[#allocation13 + $0xe8] sm:$0xff] }
 0x3e6   :  { %1331 = vmatpush.msrb.mxu3 %v4942_v43  ;;  %1371 = vmatpush.msra.mxu1 %v4945_v40  ;;  %7536 = vst [vmem:[#allocation87_spill] sm:$0xff] %v4958_v37  ;;  %v4962_v40 = vld [vmem:[#allocation13 + $0xc8] sm:$0xff] }
 0x3e7   :  { %7537 = vst [vmem:[#allocation91_spill] sm:$0xff] %v4962_v40 }
 0x3e8   :  { %1332 = vmatpush.msrb.mxu3 %v4948_v27  ;;  %1372 = vmatpush.msra.mxu1 %v4951_v32  ;;  %v4966_v27 = vld [vmem:[#allocation13 + $0xa8] sm:$0xff] }
 0x3e9   :  { %7538 = vst [vmem:[#allocation95_spill] sm:$0xff] %v4966_v27  ;;  %v7539_v32 = vld [vmem:[#allocation113_spill] sm:$0xff] }
 0x3ea   :  { %1333 = vmatpush.msrb.mxu3 %v4954_v59  ;;  %1373 = vmatpush.msra.mxu1 %v7405_v1  ;;  %v4970_v59 = vld [vmem:[#allocation13 + $0x88] sm:$0xff] }
 0x3eb   :  { %7540 = vst [vmem:[#allocation99_spill] sm:$0xff] %v4970_v59  ;;  %v7541_v1 = vld [vmem:[#allocation117_spill] sm:$0xff] }
 0x3ec   :  { %1334 = vmatpush.msrb.mxu3 %v4958_v37  ;;  %1374 = vmatpush.msra.mxu1 %v7408_v39  ;;  %v4974_v37 = vld [vmem:[#allocation13 + $0x68] sm:$0xff] }
 0x3ed   :  { %7542 = vst [vmem:[#allocation103_spill] sm:$0xff] %v4974_v37  ;;  %v7543_v39 = vld [vmem:[#allocation121_spill] sm:$0xff] }
 0x3ee   :  { %1335 = vmatpush.msrb.mxu3 %v4962_v40  ;;  %1375 = vmatpush.msra.mxu1 %v7411_v7  ;;  %v4978_v40 = vld [vmem:[#allocation13 + $0x48] sm:$0xff] }
 0x3ef   :  { %7544 = vst [vmem:[#allocation107_spill] sm:$0xff] %v4978_v40  ;;  %v7545_v7 = vld [vmem:[#allocation125_spill] sm:$0xff] }
 0x3f0   :  { %1336 = vmatpush.msrb.mxu3 %v4966_v27  ;;  %1376 = vmatpush.msra.mxu1 %v7539_v32  ;;  %v4982_v27 = vld [vmem:[#allocation13 + $0x28] sm:$0xff]  ;;  %v7547_v32 = vld [vmem:[#allocation127_spill] sm:$0xff] }
 0x3f1   :  { %7546 = vst [vmem:[#allocation111_spill] sm:$0xff] %v4982_v27 }
 0x3f2   :  { %1337 = vmatpush.msrb.mxu3 %v4970_v59  ;;  %1377 = vmatpush.msra.mxu1 %v7541_v1  ;;  %v4986_v59 = vld [vmem:[#allocation13 + $0x8] sm:$0xff] }
 0x3f3   :  { %7548 = vst [vmem:[#allocation115_spill] sm:$0xff] %v4986_v59  ;;  %v7549_v1 = vld [vmem:[#allocation129_spill] sm:$0xff] }
 0x3f4   :  { %1338 = vmatpush.msrb.mxu3 %v4974_v37  ;;  %1378 = vmatpush.msra.mxu1 %v7543_v39  ;;  %v7550_v39 = vld [vmem:[#allocation69_spill] sm:$0xff] }
 0x3f6   :  { %1339 = vmatpush.msrb.mxu3 %v4978_v40  ;;  %1379 = vmatpush.msra.mxu1 %v7545_v7  ;;  %v7551_v7 = vld [vmem:[#allocation52_spill] sm:$0xff] }
 0x3f8   :  { %1340 = vmatpush.msrb.mxu3 %v4982_v27  ;;  %1380 = vmatpush.msra.mxu1 %v7547_v32 }
 0x3fa   :  { %1341 = vmatpush.msrb.mxu3 %v4986_v59  ;;  %1381 = vmatpush.msra.mxu1 %v7549_v1 }
 0x438   :  { %v1056_v37 = vpop.f32.mrf.mxu1 }
 0x439   :  { %v1057_v43 = vadd.f32 %v1056_v37, %v7550_v39 }
 0x43b   :  { %v1077_v13 = vadd.f32 %v1076_v3, %v1057_v43 }
 0x43d   :  { %v2997_v40 = vmul.f32 -1.442695, %v1077_v13 }
 0x43e   :  { %v1016_v20 = vpop.f32.mrf.mxu3 }
 0x43f   :  { %3064 = vpow2.f32 %v2997_v40  ;;  %v1017_v14 = vadd.f32 %v1016_v20, %v7551_v7  ;;  %v7552_v20 = vld [vmem:[#allocation35_spill] sm:$0xff] }
 0x440   :  { %v1136_v3 = vpop.f32.mrf.mxu1 }
 0x441   :  { %v1037_v27 = vadd.f32 %v1036_v11, %v1017_v14  ;;  %v1137_v7 = vadd.f32 %v1136_v3, %v7552_v20 }
 0x443   :  { %v2996_v54 = vmul.f32 -1.442695, %v1037_v27  ;;  %v1157_v19 = vadd.f32 %v1156_v63, %v1137_v7 }
 0x445   :  { %v3065_v32 = vpop.eup %3064  ;;  %3066 = vpow2.f32 %v2996_v54 }
 0x446   :  { %v1181_v8 = vadd.f32 1.0, %v3065_v32  ;;  %v1096_v45 = vpop.f32.mrf.mxu3  ;;  %v7553_v32 = vld [vmem:[#allocation67_spill] sm:$0xff] }
 0x448   :  { %3068 = vrcp.f32 %v1181_v8  ;;  %v1193_v30 = vand.u32 2147483648, %v1181_v8  ;;  %vm1187_vm10 = vweird.f32 %v1181_v8  ;;  %v1191_v20 = vand.u32 2147483647, %v1181_v8 }
 0x44a   :  { %vm1192_vm12 = vcmp.eq.f32.partialorder %v1191_v20, 8.507059e+37  ;;  %v7560_v20 = vld [vmem:[#allocation90_spill] sm:$0xff] }
 0x44b   :  { %v3067_v59 = vpop.eup %3066 }
 0x44c   :  { %v1162_v50 = vadd.f32 1.0, %v3067_v59  ;;  %v1097_v59 = vadd.f32 %v1096_v45, %v7553_v32 }
 0x44e   :  { %3070 = vrcp.f32 %v1162_v50  ;;  %v3069_v1 = vpop.eup %3068  ;;  %v1174_v40 = vand.u32 2147483648, %v1162_v50  ;;  %v1172_v14 = vand.u32 2147483647, %v1162_v50  ;;  %vm1168_vm6 = vweird.f32 %v1162_v50 }
 0x44f   :  { %v1183_v4 = vmul.f32 %v3069_v1, %v1181_v8  ;;  %vm1188_vm9 = vweird.f32 %v3069_v1  ;;  %v5007_v8 = vld [vmem:[#allocation13 + $0x1b8] sm:$0xff] }
 0x450   :  { %v1175_v41 = vor.u32 1.1754944e-38, %v1174_v40  ;;  %vm1173_vm8 = vcmp.eq.f32.partialorder %v1172_v14, 8.507059e+37  ;;  %vm1189_vm11 = vmor %vm1187_vm10, %vm1188_vm9 }
 0x451   :  { %v1184_v43 = vsub.f32 1.0, %v1183_v4  ;;  %v1116_v4 = vpop.f32.mrf.mxu0 }
 0x453   :  { %v1185_v27 = vmul.f32 %v3069_v1, %v1184_v43 }
 0x454   :  { %v3071_v37 = vpop.eup %3070 }
 0x455   :  { %v1164_v39 = vmul.f32 %v3071_v37, %v1162_v50  ;;  %vm1169_vm5 = vweird.f32 %v3071_v37  ;;  %v1186_v60 = vadd.f32 %v3069_v1, %v1185_v27  ;;  %v7562_v27 = vld [vmem:[#allocation77_spill] sm:$0xff] }
 0x456   :  { %vm1170_vm7 = vmor %vm1168_vm6, %vm1169_vm5 }
 0x457   :  { %v1165_v13 = vsub.f32 1.0, %v1164_v39  ;;  %v1190_v50 = vsel %vm1189_vm11, %v3069_v1, %v1186_v60  ;;  %v5003_v60 = vld [vmem:[#allocation13 + $0x1d8] sm:$0xff]  ;;  %v7559_v1 = vld [vmem:[#allocation73_spill] sm:$0xff] }
 0x459   :  { %v1166_v11 = vmul.f32 %v3071_v37, %v1165_v13  ;;  %v1117_v13 = vadd.f32 %v1116_v4, %v1097_v59  ;;  %v5075_v59 = vld [vmem:[#allocation13 + $0x288] sm:$0xff] }
 0x45a   :  { %v5078_v4 = vld [vmem:[#allocation13 + $0x268] sm:$0xff] }
 0x45b   :  { %v1167_v54 = vadd.f32 %v3071_v37, %v1166_v11  ;;  %v1194_v11 = vor.u32 1.1754944e-38, %v1193_v30  ;;  %v5032_v30 = vld [vmem:[#allocation13 + $0xf8] sm:$0xff] }
 0x45d   :  { %v1171_v34 = vsel %vm1170_vm7, %v3071_v37, %v1167_v54  ;;  %v1195_v45 = vsel %vm1192_vm12, %v1194_v11, %v1190_v50  ;;  %v7563_v54 = vld [vmem:[#allocation94_spill] sm:$0xff]  ;;  %v7565_v50 = vld [vmem:[#allocation81_spill] sm:$0xff] }
 0x45e   :  { %v1176_v39 = vsel %vm1173_vm8, %v1175_v41, %v1171_v34  ;;  %v1200_v40 = vsub.f32 1.0, %v1195_v45  ;;  %v1202_v37 = vmul.f32 %v1195_v45, %v4628_v10  ;;  %v5011_v10 = vld [vmem:[#allocation13 + $0x198] sm:$0xff]  ;;  %v7557_v41 = vld [vmem:[#allocation86_spill] sm:$0xff] }
 0x45f   :  { %v1197_v3 = vmul.f32 %v1176_v39, %v1157_v19  ;;  %v4999_v19 = vld [vmem:[#allocation13 + $0x1f8] sm:$0xff]  ;;  %v5081_v39 = vld [vmem:[#allocation13 + $0x248] sm:$0xff] }
 0x460   :  { %v7556_v34 = vld [vmem:[#allocation71_spill] sm:$0xff] }
 0x461   :  { %v1198_v43 = vadd.f32 %v1197_v3, %v1117_v13  ;;  %v5084_v3 = vld [vmem:[#allocation13 + $0x228] sm:$0xff] }
 0x462   :  { %v5087_v13 = vld [vmem:[#allocation13 + $0x208] sm:$0xff] }
 0x463   :  { %3072 = vtanh.f32 %v1198_v43 }
 0x469   :  { %v3073_v63 = vpop.eup %3072 }
 0x46a   :  { %v1201_v7 = vmul.f32 %v3073_v63, %v1200_v40  ;;  %v7568_v63 = vld [vmem:[#allocation45_spill] sm:$0xff] }
 0x46c   :  { %v4995_v14 = vadd.f32 %v1202_v37, %v1201_v7 }
 0x46e   :  { %1220 = vmatmul.f32.vlgmr.msra.gmra.mxu3 %v4995_v14  ;;  %1322 = vmatmul.f32.vlgmr.msrb.gmra.mxu2 %v4995_v14 }
 0x46f   :  { %1406 = vmatpush.msra.mxu3 %v4999_v19  ;;  %1553 = vmatpush.msrb.mxu2 %v4634_v2  ;;  %v5016_v2 = vld [vmem:[#allocation13 + $0x178] sm:$0xff] }
 0x471   :  { %1407 = vmatpush.msra.mxu3 %v5003_v60  ;;  %1554 = vmatpush.msrb.mxu2 %v4638_v46  ;;  %v5020_v46 = vld [vmem:[#allocation13 + $0x158] sm:$0xff] }
 0x473   :  { %1408 = vmatpush.msra.mxu3 %v5007_v8  ;;  %1555 = vmatpush.msrb.mxu2 %v4642_v22  ;;  %v5024_v22 = vld [vmem:[#allocation13 + $0x138] sm:$0xff] }
 0x475   :  { %1409 = vmatpush.msra.mxu3 %v5011_v10  ;;  %1556 = vmatpush.msrb.mxu2 %v4646_v29  ;;  %v5028_v29 = vld [vmem:[#allocation13 + $0x118] sm:$0xff] }
 0x476   :  { %1402 = vmatmul.f32.vlgmr.msra.gmra.mxu2 %v4995_v14 }
 0x477   :  { %1410 = vmatpush.msra.mxu3 %v5016_v2  ;;  %1557 = vmatpush.msrb.mxu2 %v4651_v53  ;;  %v5036_v53 = vld [vmem:[#allocation13 + $0xd8] sm:$0xff] }
 0x479   :  { %1411 = vmatpush.msra.mxu3 %v5020_v46  ;;  %1558 = vmatpush.msrb.mxu2 %v4655_v38  ;;  %v5040_v38 = vld [vmem:[#allocation13 + $0xb8] sm:$0xff] }
 0x47b   :  { %1412 = vmatpush.msra.mxu3 %v5024_v22  ;;  %1559 = vmatpush.msrb.mxu2 %v4659_v24  ;;  %v5044_v24 = vld [vmem:[#allocation13 + $0x98] sm:$0xff] }
 0x47d   :  { %1413 = vmatpush.msra.mxu3 %v5028_v29  ;;  %1560 = vmatpush.msrb.mxu2 %v4663_v9  ;;  %v5048_v9 = vld [vmem:[#allocation13 + $0x78] sm:$0xff] }
 0x47f   :  { %1414 = vmatpush.msra.mxu3 %v5032_v30  ;;  %1561 = vmatpush.msrb.mxu2 %v4667_v35  ;;  %v5052_v35 = vld [vmem:[#allocation13 + $0x58] sm:$0xff] }
 0x481   :  { %1415 = vmatpush.msra.mxu3 %v5036_v53  ;;  %1562 = vmatpush.msrb.mxu2 %v4671_v26  ;;  %v5056_v26 = vld [vmem:[#allocation13 + $0x38] sm:$0xff] }
 0x483   :  { %1416 = vmatpush.msra.mxu3 %v5040_v38  ;;  %1563 = vmatpush.msrb.mxu2 %v4675_v6  ;;  %v5060_v6 = vld [vmem:[#allocation13 + $0x18] sm:$0xff] }
 0x485   :  { %1417 = vmatpush.msra.mxu3 %v5044_v24  ;;  %1564 = vmatpush.msrb.mxu2 %v4679_v18  ;;  %v7554_v18 = vld [vmem:[#allocation82_spill] sm:$0xff] }
 0x487   :  { %1418 = vmatpush.msra.mxu3 %v5048_v9  ;;  %1565 = vmatpush.msrb.mxu2 %v4683_v16  ;;  %v7555_v16 = vld [vmem:[#allocation37_spill] sm:$0xff] }
 0x489   :  { %1419 = vmatpush.msra.mxu3 %v5052_v35  ;;  %1566 = vmatpush.msrb.mxu2 %v4687_v47  ;;  %v7558_v47 = vld [vmem:[#allocation39_spill] sm:$0xff] }
 0x48b   :  { %1420 = vmatpush.msra.mxu3 %v5056_v26  ;;  %1567 = vmatpush.msrb.mxu2 %v4691_v12  ;;  %v7561_v12 = vld [vmem:[#allocation41_spill] sm:$0xff] }
 0x48d   :  { %1421 = vmatpush.msra.mxu3 %v5060_v6  ;;  %1568 = vmatpush.msrb.mxu2 %v4695_v42  ;;  %v7564_v42 = vld [vmem:[#allocation43_spill] sm:$0xff] }
 0x48f   :  { %1633 = vmatpush.msra.mxu2 %v7554_v18  ;;  %v1255_v18 = vstv %s1254_s27  ;;  %s2401_s27 = smul.f32 %s2400_s25, %s2398_s24 }
 0x491   :  { %1634 = vmatpush.msra.mxu2 %v7555_v16 }
 0x493   :  { %1635 = vmatpush.msra.mxu2 %v7556_v34 }
 0x495   :  { %1636 = vmatpush.msra.mxu2 %v7557_v41  ;;  %v1257_v41 = vstv %s1253_s2  ;;  %s3023_s2 = sld [smem:[#allocation8 + $0x6]] }
 0x497   :  { %1637 = vmatpush.msra.mxu2 %v7558_v47 }
 0x499   :  { %1638 = vmatpush.msra.mxu2 %v7559_v1 }
 0x49b   :  { %1639 = vmatpush.msra.mxu2 %v7560_v20  ;;  %s2685_s29 = scvt.s32.f32 %s3023_s2 }
 0x49d   :  { %1640 = vmatpush.msra.mxu2 %v7561_v12  ;;  %s2689_s3 = ssub.f32 1.0, %s2685_s29  ;;  %s2688_s1 = smul.f32 %s2687_s30, %s2685_s29 }
 0x49f   :  { %1641 = vmatpush.msra.mxu2 %v7562_v27  ;;  %v7032_v27 = vsub.f32 1.0, %v4756_v48  ;;  %v5155_v48 = vld [vmem:[#allocation13 + $0x218] sm:$0xff] }
 0x4a0   :  { %7574 = vst [vmem:[#allocation70_spill] sm:$0xff] %v5155_v48 }
 0x4a1   :  { %1642 = vmatpush.msra.mxu2 %v7563_v54 }
 0x4a3   :  { %1643 = vmatpush.msra.mxu2 %v7564_v42 }
 0x4a5   :  { %1644 = vmatpush.msra.mxu2 %v5075_v59 }
 0x4a7   :  { %1645 = vmatpush.msra.mxu2 %v5078_v4 }
 0x4a9   :  { %1646 = vmatpush.msra.mxu2 %v5081_v39 }
 0x4ab   :  { %1647 = vmatpush.msra.mxu2 %v5084_v3 }
 0x4ad   :  { %1648 = vmatpush.msra.mxu2 %v5087_v13 }
 0x4f1   :  { %v1221_v43 = vpop.f32.mrf.mxu3 }
 0x4f2   :  { %v5091_v11 = vadd.f32 %v1221_v43, %v7565_v50  ;;  %v5109_v43 = vld [vmem:[#allocation13 + $0x3f8] sm:$0xff] }
 0x4f3   :  { %v5112_v50 = vld [vmem:[#allocation13 + $0x3d8] sm:$0xff] }
 0x4f4   :  { %7566 = vst [vmem:[#allocation119_spill] sm:$0xff] %v5091_v11  ;;  %v1224_v45 = vsel %vm938_vm1, %v5091_v11, -inf }
 0x4f5   :  { %1225 = vmax.xlane.f32.xlu1 %v1224_v45  ;;  %v5115_v45 = vld [vmem:[#allocation13 + $0x3b8] sm:$0xff] }
 0x568   :  { %v5095_v40 = vpop.xlane.xlu1 %1225 }
 0x569   :  { %7567 = vst [vmem:[#allocation123_spill] sm:$0xff] %v5095_v40  ;;  %vm1243_vm13 = vcmp.eq.f32.partialorder %v5091_v11, %v5095_v40  ;;  %v7575_v11 = vld [vmem:[#allocation47_spill] sm:$0xff]  ;;  %v7576_v40 = vld [vmem:[#allocation89_spill] sm:$0xff] }
 0x56a   :  { %v1244_v7 = vsel %vm1243_vm13, %v7568_v63, -inf }
 0x56b   :  { %v1245_v37 = vsel %vm938_vm1, %v1244_v7, -inf  ;;  %v5118_v7 = vld [vmem:[#allocation13 + $0x398] sm:$0xff] }
 0x56c   :  { %1246 = vmax.xlane.f32.xlu1 %v1245_v37  ;;  %v5122_v37 = vld [vmem:[#allocation13 + $0x378] sm:$0xff] }
 0x5df   :  { %v1247_v16 = vpop.xlane.xlu1 %1246 }
 0x5e0   :  { %v1248_v34 = vsub.f32 0.0, %v1247_v16  ;;  %v5128_v16 = vld [vmem:[#allocation13 + $0x338] sm:$0xff] }
 0x5e2   :  { %v1256_v47 = vmul.f32 %v1255_v18, %v1248_v34  ;;  %vm1259_vm14 = vcmp.eq.f32.partialorder %v1248_v34, 1.0  ;;  %v5131_v34 = vld [vmem:[#allocation13 + $0x318] sm:$0xff] }
 0x5e3   :  { %v1260_v1 = vsel %vm1259_vm14, 1.0, %v7481_v49 }
 0x5e4   :  { %v1258_v20 = vadd.f32 %v1257_v41, %v1256_v47  ;;  %v1261_v12 = vmul.f32 %v1260_v1, %v1255_v18  ;;  %v5125_v18 = vld [vmem:[#allocation13 + $0x358] sm:$0xff] }
 0x5e5   :  { %v5134_v41 = vld [vmem:[#allocation13 + $0x2f8] sm:$0xff] }
 0x5e6   :  { %v1262_v54 = vsub.f32 1.0, %v1261_v12  ;;  %vm1264_vm15 = vcmp.eq.f32.partialorder %v7478_v57, %v1258_v20  ;;  %v5137_v47 = vld [vmem:[#allocation13 + $0x2d8] sm:$0xff] }
 0x5e7   :  { %3000 = vmatmul.msk.f32.vlgmr.msrb.gmra.mxu0 %vm1264_vm15, %v7483_v61  ;;  %v5140_v1 = vld [vmem:[#allocation13 + $0x2b8] sm:$0xff] }
 0x5e8   :  { %v5107_v42 = vmul.f32 %v1262_v54, %v7032_v27  ;;  %1426 = vmatpush.msrb.mxu0 %v5109_v43  ;;  %v5143_v20 = vld [vmem:[#allocation13 + $0x298] sm:$0xff] }
 0x5e9   :  { %7570 = vst [vmem:[#allocation128_spill] sm:$0xff] %v5143_v20  ;;  %v5146_v12 = vld [vmem:[#allocation13 + $0x278] sm:$0xff] }
 0x5ea   :  { %7569 = vst [vmem:[#allocation126_spill] sm:$0xff] %v5107_v42  ;;  %1427 = vmatpush.msrb.mxu0 %v5112_v50  ;;  %v5149_v54 = vld [vmem:[#allocation13 + $0x258] sm:$0xff] }
 0x5eb   :  { %7571 = vst [vmem:[#allocation27_spill] sm:$0xff] %v5146_v12  ;;  %v5152_v27 = vld [vmem:[#allocation13 + $0x238] sm:$0xff] }
 0x5ec   :  { %1428 = vmatpush.msrb.mxu0 %v5115_v45  ;;  %7572 = vst [vmem:[#allocation62_spill] sm:$0xff] %v5149_v54 }
 0x5ed   :  { %7573 = vst [vmem:[#allocation66_spill] sm:$0xff] %v5152_v27 }
 0x5ee   :  { %1429 = vmatpush.msrb.mxu0 %v5118_v7 }
 0x5ef   :  { %1362 = vmatmul.f32.vlgmr.msra.gmra.mxu0 %v4995_v14 }
 0x5f0   :  { %1430 = vmatpush.msrb.mxu0 %v5122_v37 }
 0x5f2   :  { %1431 = vmatpush.msrb.mxu0 %v5125_v18 }
 0x5f4   :  { %1432 = vmatpush.msrb.mxu0 %v5128_v16 }
 0x5f6   :  { %1433 = vmatpush.msrb.mxu0 %v5131_v34 }
 0x5f8   :  { %1434 = vmatpush.msrb.mxu0 %v5134_v41 }
 0x5fa   :  { %1435 = vmatpush.msrb.mxu0 %v5137_v47 }
 0x5fc   :  { %1436 = vmatpush.msrb.mxu0 %v5140_v1 }
 0x5fe   :  { %1437 = vmatpush.msrb.mxu0 %v5143_v20 }
 0x600   :  { %1438 = vmatpush.msrb.mxu0 %v5146_v12  ;;  %v7580_v12 = vld [vmem:[#allocation110_spill] sm:$0xff] }
 0x602   :  { %1439 = vmatpush.msrb.mxu0 %v5149_v54  ;;  %v7578_v54 = vld [vmem:[#allocation49_spill] sm:$0xff] }
 0x604   :  { %1440 = vmatpush.msrb.mxu0 %v5152_v27  ;;  %v7577_v27 = vld [vmem:[#allocation106_spill] sm:$0xff] }
 0x606   :  { %1441 = vmatpush.msrb.mxu0 %v5155_v48  ;;  %v7579_v48 = vld [vmem:[#allocation93_spill] sm:$0xff] }
 0x607   :  { %1442 = vmatmul.f32.vlgmr.msrb.gmra.mxu0 %v4995_v14 }
 0x608   :  { %1593 = vmatpush.msra.mxu0 %v4778_v51  ;;  %v7581_v51 = vld [vmem:[#allocation51_spill] sm:$0xff] }
 0x60a   :  { %1594 = vmatpush.msra.mxu0 %v4781_v5  ;;  %v7582_v5 = vld [vmem:[#allocation97_spill] sm:$0xff] }
 0x60c   :  { %1595 = vmatpush.msra.mxu0 %v4784_v15  ;;  %v5178_v15 = vld [vmem:[#allocation13 + $0x390] sm:$0xff] }
 0x60d   :  { %7583 = vst [vmem:[#allocation76_spill] sm:$0xff] %v5178_v15 }
 0x60e   :  { %1596 = vmatpush.msra.mxu0 %v4787_v58  ;;  %v5184_v58 = vld [vmem:[#allocation13 + $0x350] sm:$0xff] }
 0x60f   :  { %7585 = vst [vmem:[#allocation84_spill] sm:$0xff] %v5184_v58 }
 0x610   :  { %1597 = vmatpush.msra.mxu0 %v4790_v23  ;;  %v5187_v23 = vld [vmem:[#allocation13 + $0x330] sm:$0xff] }
 0x611   :  { %7586 = vst [vmem:[#allocation88_spill] sm:$0xff] %v5187_v23 }
 0x612   :  { %1598 = vmatpush.msra.mxu0 %v7575_v11  ;;  %v5208_v11 = vld [vmem:[#allocation13 + $0x250] sm:$0xff] }
 0x613   :  { %7593 = vst [vmem:[#allocation116_spill] sm:$0xff] %v5208_v11 }
 0x614   :  { %1599 = vmatpush.msra.mxu0 %v7576_v40  ;;  %v5211_v40 = vld [vmem:[#allocation13 + $0x230] sm:$0xff] }
 0x615   :  { %7594 = vst [vmem:[#allocation120_spill] sm:$0xff] %v5211_v40 }
 0x616   :  { %1600 = vmatpush.msra.mxu0 %v7577_v27  ;;  %v5214_v27 = vld [vmem:[#allocation13 + $0x210] sm:$0xff] }
 0x617   :  { %7595 = vst [vmem:[#allocation124_spill] sm:$0xff] %v5214_v27 }
 0x618   :  { %1601 = vmatpush.msra.mxu0 %v7578_v54  ;;  %v7596_v54 = vld [vmem:[#allocation114_spill] sm:$0xff] }
 0x61a   :  { %1602 = vmatpush.msra.mxu0 %v7579_v48  ;;  %v5181_v48 = vld [vmem:[#allocation13 + $0x370] sm:$0xff] }
 0x61b   :  { %7584 = vst [vmem:[#allocation80_spill] sm:$0xff] %v5181_v48 }
 0x61c   :  { %1603 = vmatpush.msra.mxu0 %v7580_v12 }
 0x61e   :  { %1604 = vmatpush.msra.mxu0 %v7581_v51  ;;  %v7597_v51 = vld [vmem:[#allocation28_spill] sm:$0xff] }
 0x620   :  { %1605 = vmatpush.msra.mxu0 %v7582_v5  ;;  %v7598_v5 = vld [vmem:[#allocation54_spill] sm:$0xff] }
 0x622   :  { %1606 = vmatpush.msra.mxu0 %v4817_v52  ;;  %v5190_v52 = vld [vmem:[#allocation13 + $0x310] sm:$0xff] }
 0x623   :  { %7587 = vst [vmem:[#allocation92_spill] sm:$0xff] %v5190_v52 }
 0x624   :  { %1607 = vmatpush.msra.mxu0 %v4820_v44  ;;  %v5199_v44 = vld [vmem:[#allocation13 + $0x2b0] sm:$0xff] }
 0x625   :  { %7590 = vst [vmem:[#allocation104_spill] sm:$0xff] %v5199_v44 }
 0x626   :  { %1608 = vmatpush.msra.mxu0 %v4823_v55  ;;  %v5202_v55 = vld [vmem:[#allocation13 + $0x290] sm:$0xff] }
 0x627   :  { %7591 = vst [vmem:[#allocation108_spill] sm:$0xff] %v5202_v55 }
 0x628   :  { %1673 = vmatpush.msrb.mxu0 %v4826_v62  ;;  %v5205_v62 = vld [vmem:[#allocation13 + $0x270] sm:$0xff] }
 0x629   :  { %7592 = vst [vmem:[#allocation112_spill] sm:$0xff] %v5205_v62 }
 0x62a   :  { %1674 = vmatpush.msrb.mxu0 %v4829_v33  ;;  %v5193_v33 = vld [vmem:[#allocation13 + $0x2f0] sm:$0xff] }
 0x62b   :  { %7588 = vst [vmem:[#allocation96_spill] sm:$0xff] %v5193_v33 }
 0x62c   :  { %1675 = vmatpush.msrb.mxu0 %v4832_v0  ;;  %v5196_v0 = vld [vmem:[#allocation13 + $0x2d0] sm:$0xff] }
 0x62d   :  { %7589 = vst [vmem:[#allocation100_spill] sm:$0xff] %v5196_v0 }
 0x62e   :  { %1676 = vmatpush.msrb.mxu0 %v5178_v15 }
 0x630   :  { %1677 = vmatpush.msrb.mxu0 %v5181_v48 }
 0x632   :  { %1678 = vmatpush.msrb.mxu0 %v5184_v58 }
 0x634   :  { %1679 = vmatpush.msrb.mxu0 %v5187_v23 }
 0x636   :  { %1680 = vmatpush.msrb.mxu0 %v5190_v52 }
 0x638   :  { %1681 = vmatpush.msrb.mxu0 %v5193_v33 }
 0x63a   :  { %1682 = vmatpush.msrb.mxu0 %v5196_v0 }
 0x63c   :  { %1683 = vmatpush.msrb.mxu0 %v5199_v44 }
 0x63e   :  { %1684 = vmatpush.msrb.mxu0 %v5202_v55 }
 0x640   :  { %1685 = vmatpush.msrb.mxu0 %v5205_v62 }
 0x642   :  { %1686 = vmatpush.msrb.mxu0 %v5208_v11 }
 0x644   :  { %1687 = vmatpush.msrb.mxu0 %v5211_v40 }
 0x646   :  { %1688 = vmatpush.msrb.mxu0 %v5214_v27 }
 0x664   :  { %v1283_v12 = vpop.f32.mrf.mxu0 }
 0x665   :  { %1302 = vmatmul.f32.vlgmr.msrb.gmra.mxu1 %v1283_v12  ;;  %1342 = vmatmul.f32.vlgmr.msrb.gmra.mxu3 %v1283_v12 }
 0x666   :  { %1491 = vmatpush.msrb.mxu1 %v4552_v31  ;;  %1573 = vmatpush.msrb.mxu3 %v4849_v17  ;;  %v7599_v31 = vld [vmem:[#allocation61_spill] sm:$0xff] }
 0x667   :  { %v7600_v17 = vld [vmem:[#allocation101_spill] sm:$0xff] }
 0x668   :  { %1492 = vmatpush.msrb.mxu1 %v4555_v28  ;;  %1574 = vmatpush.msrb.mxu3 %v4853_v21  ;;  %v7601_v28 = vld [vmem:[#allocation29_spill] sm:$0xff]  ;;  %v7602_v21 = vld [vmem:[#allocation118_spill] sm:$0xff] }
 0x66a   :  { %1493 = vmatpush.msrb.mxu1 %v4558_v36  ;;  %1575 = vmatpush.msrb.mxu3 %v4857_v25  ;;  %v7603_v36 = vld [vmem:[#allocation65_spill] sm:$0xff] }
 0x66b   :  { %v7604_v25 = vld [vmem:[#allocation57_spill] sm:$0xff] }
 0x66c   :  { %1494 = vmatpush.msrb.mxu1 %v4561_v56  ;;  %1576 = vmatpush.msrb.mxu3 %v7596_v54  ;;  %v7605_v56 = vld [vmem:[#allocation30_spill] sm:$0xff]  ;;  %v7606_v54 = vld [vmem:[#allocation105_spill] sm:$0xff]  ;;  %v1363_v40 = vpop.f32.mrf.mxu0 }
 0x66d   :  { %1382 = vmatmul.f32.vlgmr.msra.gmra.mxu1 %v1283_v12  ;;  %1422 = vmatmul.f32.vlgmr.msra.gmra.mxu3 %v1283_v12  ;;  %v7607_v12 = vld [vmem:[#allocation55_spill] sm:$0xff] }
 0x66e   :  { %1495 = vmatpush.msrb.mxu1 %v7597_v51  ;;  %1577 = vmatpush.msrb.mxu3 %v7598_v5  ;;  %v7608_v51 = vld [vmem:[#allocation122_spill] sm:$0xff]  ;;  %v7609_v5 = vld [vmem:[#allocation31_spill] sm:$0xff] }
 0x670   :  { %1496 = vmatpush.msrb.mxu1 %v7599_v31  ;;  %1578 = vmatpush.msrb.mxu3 %v7600_v17  ;;  %v7610_v31 = vld [vmem:[#allocation60_spill] sm:$0xff]  ;;  %v7611_v17 = vld [vmem:[#allocation58_spill] sm:$0xff] }
 0x672   :  { %1497 = vmatpush.msrb.mxu1 %v7601_v28  ;;  %1579 = vmatpush.msrb.mxu3 %v7602_v21  ;;  %v7612_v28 = vld [vmem:[#allocation109_spill] sm:$0xff]  ;;  %v7613_v21 = vld [vmem:[#allocation74_spill] sm:$0xff] }
 0x674   :  { %1498 = vmatpush.msrb.mxu1 %v7603_v36  ;;  %1580 = vmatpush.msrb.mxu3 %v7604_v25  ;;  %v7614_v36 = vld [vmem:[#allocation32_spill] sm:$0xff]  ;;  %v7615_v25 = vld [vmem:[#allocation33_spill] sm:$0xff] }
 0x676   :  { %1499 = vmatpush.msrb.mxu1 %v7605_v56  ;;  %1581 = vmatpush.msrb.mxu3 %v7606_v54  ;;  %v7616_v56 = vld [vmem:[#allocation34_spill] sm:$0xff]  ;;  %v7617_v54 = vld [vmem:[#allocation63_spill] sm:$0xff] }
 0x678   :  { %1500 = vmatpush.msrb.mxu1 %v7607_v12  ;;  %1582 = vmatpush.msrb.mxu3 %v7608_v51  ;;  %v7618_v12 = vld [vmem:[#allocation36_spill] sm:$0xff]  ;;  %v7619_v51 = vld [vmem:[#allocation78_spill] sm:$0xff] }
 0x67a   :  { %1501 = vmatpush.msrb.mxu1 %v7609_v5  ;;  %1583 = vmatpush.msrb.mxu3 %v7610_v31  ;;  %v7620_v5 = vld [vmem:[#allocation38_spill] sm:$0xff]  ;;  %v7621_v31 = vld [vmem:[#allocation40_spill] sm:$0xff] }
 0x67c   :  { %1502 = vmatpush.msrb.mxu1 %v7611_v17  ;;  %1584 = vmatpush.msrb.mxu3 %v7612_v28  ;;  %v7622_v17 = vld [vmem:[#allocation42_spill] sm:$0xff]  ;;  %v7623_v28 = vld [vmem:[#allocation44_spill] sm:$0xff] }
 0x67e   :  { %1503 = vmatpush.msrb.mxu1 %v7613_v21  ;;  %1585 = vmatpush.msrb.mxu3 %v7614_v36  ;;  %v7624_v21 = vld [vmem:[#allocation46_spill] sm:$0xff]  ;;  %v7625_v36 = vld [vmem:[#allocation48_spill] sm:$0xff] }
 0x680   :  { %1504 = vmatpush.msrb.mxu1 %v7615_v25  ;;  %1586 = vmatpush.msrb.mxu3 %v7616_v56  ;;  %v7626_v25 = vld [vmem:[#allocation50_spill] sm:$0xff]  ;;  %v7627_v56 = vld [vmem:[#allocation53_spill] sm:$0xff] }
 0x682   :  { %1505 = vmatpush.msrb.mxu1 %v7617_v54  ;;  %1587 = vmatpush.msrb.mxu3 %v7618_v12  ;;  %v7628_v54 = vld [vmem:[#allocation56_spill] sm:$0xff]  ;;  %v7629_v12 = vld [vmem:[#allocation59_spill] sm:$0xff] }
 0x684   :  { %1506 = vmatpush.msrb.mxu1 %v7619_v51  ;;  %1588 = vmatpush.msrb.mxu3 %v7620_v5  ;;  %v7630_v51 = vld [vmem:[#allocation64_spill] sm:$0xff] }
 0x685   :  { %v7631_v5 = vld [vmem:[#allocation68_spill] sm:$0xff] }
 0x686   :  { %1613 = vmatpush.msra.mxu1 %v7621_v31  ;;  %1653 = vmatpush.msra.mxu3 %v7622_v17  ;;  %v7632_v31 = vld [vmem:[#allocation72_spill] sm:$0xff]  ;;  %v7633_v17 = vld [vmem:[#allocation75_spill] sm:$0xff] }
 0x688   :  { %1614 = vmatpush.msra.mxu1 %v7623_v28  ;;  %1654 = vmatpush.msra.mxu3 %v7624_v21  ;;  %v7634_v28 = vld [vmem:[#allocation79_spill] sm:$0xff] }
 0x689   :  { %v7635_v21 = vld [vmem:[#allocation83_spill] sm:$0xff] }
 0x68a   :  { %1615 = vmatpush.msra.mxu1 %v7625_v36  ;;  %1655 = vmatpush.msra.mxu3 %v7626_v25  ;;  %v5264_v36 = vld [vmem:[#allocation13 + $0x110] sm:$0xff] }
 0x68b   :  { %7636 = vst [vmem:[#allocation113_spill] sm:$0xff] %v5264_v36  ;;  %v7637_v25 = vld [vmem:[#allocation87_spill] sm:$0xff] }
 0x68c   :  { %1616 = vmatpush.msra.mxu1 %v7627_v56  ;;  %1656 = vmatpush.msra.mxu3 %v7628_v54  ;;  %v5268_v56 = vld [vmem:[#allocation13 + $0xf0] sm:$0xff] }
 0x68d   :  { %7638 = vst [vmem:[#allocation117_spill] sm:$0xff] %v5268_v56  ;;  %v7639_v54 = vld [vmem:[#allocation91_spill] sm:$0xff] }
 0x68e   :  { %1617 = vmatpush.msra.mxu1 %v7629_v12  ;;  %1657 = vmatpush.msra.mxu3 %v7630_v51  ;;  %v5272_v12 = vld [vmem:[#allocation13 + $0xd0] sm:$0xff] }
 0x68f   :  { %7640 = vst [vmem:[#allocation121_spill] sm:$0xff] %v5272_v12  ;;  %v7641_v51 = vld [vmem:[#allocation95_spill] sm:$0xff] }
 0x690   :  { %1618 = vmatpush.msra.mxu1 %v7631_v5  ;;  %1658 = vmatpush.msra.mxu3 %v7632_v31  ;;  %v5276_v5 = vld [vmem:[#allocation13 + $0xb0] sm:$0xff] }
 0x691   :  { %7642 = vst [vmem:[#allocation125_spill] sm:$0xff] %v5276_v5  ;;  %v7643_v31 = vld [vmem:[#allocation99_spill] sm:$0xff] }
 0x692   :  { %1619 = vmatpush.msra.mxu1 %v7633_v17  ;;  %1659 = vmatpush.msra.mxu3 %v7634_v28  ;;  %v5280_v17 = vld [vmem:[#allocation13 + $0x90] sm:$0xff] }
 0x693   :  { %7644 = vst [vmem:[#allocation127_spill] sm:$0xff] %v5280_v17  ;;  %v7645_v28 = vld [vmem:[#allocation103_spill] sm:$0xff] }
 0x694   :  { %1620 = vmatpush.msra.mxu1 %v7635_v21  ;;  %1660 = vmatpush.msra.mxu3 %v5264_v36  ;;  %v5284_v21 = vld [vmem:[#allocation13 + $0x70] sm:$0xff] }
 0x695   :  { %7646 = vst [vmem:[#allocation129_spill] sm:$0xff] %v5284_v21 }
 0x696   :  { %1621 = vmatpush.msra.mxu1 %v7637_v25  ;;  %1661 = vmatpush.msra.mxu3 %v5268_v56  ;;  %v7647_v25 = vld [vmem:[#allocation107_spill] sm:$0xff] }
 0x698   :  { %1622 = vmatpush.msra.mxu1 %v7639_v54  ;;  %1662 = vmatpush.msra.mxu3 %v5272_v12  ;;  %v5288_v54 = vld [vmem:[#allocation13 + $0x50] sm:$0xff] }
 0x699   :  { %7648 = vst [vmem:[#allocation67_spill] sm:$0xff] %v5288_v54 }
 0x69a   :  { %1623 = vmatpush.msra.mxu1 %v7641_v51  ;;  %1663 = vmatpush.msra.mxu3 %v5276_v5  ;;  %v7649_v51 = vld [vmem:[#allocation111_spill] sm:$0xff] }
 0x69b   :  { %v5292_v5 = vld [vmem:[#allocation13 + $0x30] sm:$0xff] }
 0x69c   :  { %1624 = vmatpush.msra.mxu1 %v7643_v31  ;;  %1664 = vmatpush.msra.mxu3 %v5280_v17  ;;  %7650 = vst [vmem:[#allocation82_spill] sm:$0xff] %v5292_v5  ;;  %v7651_v31 = vld [vmem:[#allocation115_spill] sm:$0xff] }
 0x69d   :  { %v5296_v17 = vld [vmem:[#allocation13 + $0x10] sm:$0xff] }
 0x69e   :  { %1625 = vmatpush.msra.mxu1 %v7645_v28  ;;  %1665 = vmatpush.msra.mxu3 %v5284_v21  ;;  %7652 = vst [vmem:[#allocation37_spill] sm:$0xff] %v5296_v17  ;;  %v7653_v21 = vld [vmem:[#allocation52_spill] sm:$0xff] }
 0x6a0   :  { %1626 = vmatpush.msra.mxu1 %v7647_v25  ;;  %1666 = vmatpush.msra.mxu3 %v5288_v54  ;;  %v1323_v25 = vpop.f32.mrf.mxu2  ;;  %v7654_v54 = vld [vmem:[#allocation69_spill] sm:$0xff] }
 0x6a2   :  { %1627 = vmatpush.msra.mxu1 %v7649_v51  ;;  %1667 = vmatpush.msra.mxu3 %v5292_v5 }
 0x6a4   :  { %1628 = vmatpush.msra.mxu1 %v7651_v31  ;;  %1668 = vmatpush.msra.mxu3 %v5296_v17 }
 0x6e2   :  { %v1303_v28 = vpop.f32.mrf.mxu1 }
 0x6e3   :  { %v1304_v12 = vadd.f32 %v1303_v28, %v7653_v21 }
 0x6e5   :  { %v1324_v56 = vadd.f32 %v1323_v25, %v1304_v12  ;;  %v7655_v25 = vld [vmem:[#allocation35_spill] sm:$0xff] }
 0x6e7   :  { %v3001_v36 = vmul.f32 -1.442695, %v1324_v56 }
 0x6e8   :  { %v1343_v27 = vpop.f32.mrf.mxu3 }
 0x6e9   :  { %3074 = vpow2.f32 %v3001_v36  ;;  %v1344_v51 = vadd.f32 %v1343_v27, %v7654_v54  ;;  %v1403_v54 = vpop.f32.mrf.mxu2 }
 0x6ea   :  { %v1383_v21 = vpop.f32.mrf.mxu1 }
 0x6eb   :  { %v1364_v11 = vadd.f32 %v1363_v40, %v1344_v51  ;;  %v1443_v51 = vpop.f32.mrf.mxu0 }
 0x6ed   :  { %v3002_v62 = vmul.f32 -1.442695, %v1364_v11  ;;  %v1384_v11 = vadd.f32 %v1383_v21, %v7553_v32 }
 0x6ef   :  { %v3075_v5 = vpop.eup %3074  ;;  %3076 = vpow2.f32 %v3002_v62 }
 0x6f0   :  { %v1449_v31 = vadd.f32 1.0, %v3075_v5  ;;  %v1423_v28 = vpop.f32.mrf.mxu3 }
 0x6f1   :  { %v1424_v36 = vadd.f32 %v1423_v28, %v7655_v25 }
 0x6f2   :  { %3078 = vrcp.f32 %v1449_v31  ;;  %v1461_v56 = vand.u32 2147483648, %v1449_v31  ;;  %v1459_v27 = vand.u32 2147483647, %v1449_v31  ;;  %vm1455_vm2 = vweird.f32 %v1449_v31 }
 0x6f3   :  { %v1444_v23 = vadd.f32 %v1443_v51, %v1424_v36  ;;  %v5414_v51 = vld [vmem:[%s6812_s10] sm:$0x1] }
 0x6f4   :  { %vm1460_vm4 = vcmp.eq.f32.partialorder %v1459_v27, 8.507059e+37  ;;  %v5397_v27 = vld [vmem:[#allocation13 + $0x2e8] sm:$0xff] }
 0x6f5   :  { %v3077_v55 = vpop.eup %3076 }
 0x6f6   :  { %v1468_v44 = vadd.f32 1.0, %v3077_v55  ;;  %v1462_v55 = vor.u32 1.1754944e-38, %v1461_v56 }
 0x6f8   :  { %v3079_v17 = vpop.eup %3078  ;;  %3080 = vrcp.f32 %v1468_v44  ;;  %v1478_v15 = vand.u32 2147483647, %v1468_v44  ;;  %vm1474_vm6 = vweird.f32 %v1468_v44 }
 0x6f9   :  { %v1451_v0 = vmul.f32 %v3079_v17, %v1449_v31  ;;  %vm1456_vm0 = vweird.f32 %v3079_v17 }
 0x6fa   :  { %vm1457_vm3 = vmor %vm1455_vm2, %vm1456_vm0  ;;  %vm1479_vm8 = vcmp.eq.f32.partialorder %v1478_v15, 8.507059e+37  ;;  %v5321_v15 = vld [vmem:[#allocation12 + $0x60] sm:$0xff] }
 0x6fb   :  { %v1452_v12 = vsub.f32 1.0, %v1451_v0  ;;  %v1404_v0 = vadd.f32 %v1403_v54, %v1384_v11  ;;  %v5403_v11 = vld [vmem:[#allocation13 + $0x2a8] sm:$0xff] }
 0x6fd   :  { %v1453_v33 = vmul.f32 %v3079_v17, %v1452_v12  ;;  %v1480_v12 = vand.u32 2147483648, %v1468_v44 }
 0x6fe   :  { %v3081_v40 = vpop.eup %3080 }
 0x6ff   :  { %v1470_v62 = vmul.f32 %v3081_v40, %v1468_v44  ;;  %v1454_v5 = vadd.f32 %v3079_v17, %v1453_v33  ;;  %vm1475_vm5 = vweird.f32 %v3081_v40  ;;  %v1481_v33 = vor.u32 1.1754944e-38, %v1480_v12  ;;  %v5391_v44 = vld [vmem:[#allocation13 + $0x328] sm:$0xff] }
 0x700   :  { %vm1476_vm7 = vmor %vm1474_vm6, %vm1475_vm5  ;;  %v1544_v12 = vstv %s1540_s14 }
 0x701   :  { %v1471_v52 = vsub.f32 1.0, %v1470_v62  ;;  %v1458_v58 = vsel %vm1457_vm3, %v3079_v17, %v1454_v5 }
 0x702   :  { %v1463_v48 = vsel %vm1460_vm4, %v1462_v55, %v1458_v58 }
 0x703   :  { %v1472_v28 = vmul.f32 %v3081_v40, %v1471_v52  ;;  %v1484_v25 = vmul.f32 %v1463_v48, %v1444_v23  ;;  %v5309_v48 = vld [vmem:[#allocation12 + $0x78] sm:$0xff]  ;;  %v5379_v23 = vld [vmem:[#allocation13 + $0x3a8] sm:$0xff] }
 0x704   :  { %v5388_v52 = vld [vmem:[#allocation13 + $0x348] sm:$0xff] }
 0x705   :  { %v1473_v20 = vadd.f32 %v3081_v40, %v1472_v28  ;;  %v1485_v21 = vadd.f32 %v1484_v25, %v1404_v0  ;;  %v5394_v25 = vld [vmem:[#allocation13 + $0x308] sm:$0xff] }
 0x707   :  { %v1477_v31 = vsel %vm1476_vm7, %v3081_v40, %v1473_v20  ;;  %3082 = vtanh.f32 %v1485_v21  ;;  %v5313_v20 = vld [vmem:[#allocation12 + $0x70] sm:$0xff]  ;;  %v5400_v40 = vld [vmem:[#allocation13 + $0x2c8] sm:$0xff] }
 0x708   :  { %v1482_v56 = vsel %vm1479_vm8, %v1481_v33, %v1477_v31 }
 0x709   :  { %v1487_v62 = vsub.f32 1.0, %v1482_v56  ;;  %v1489_v54 = vmul.f32 %v1482_v56, %v4995_v14  ;;  %v5317_v14 = vld [vmem:[#allocation12 + $0x68] sm:$0xff] }
 0x70d   :  { %v3083_v36 = vpop.eup %3082 }
 0x70e   :  { %v1488_v17 = vmul.f32 %v3083_v36, %v1487_v62 }
 0x710   :  { %v5304_v58 = vadd.f32 %v1489_v54, %v1488_v17  ;;  %v5469_v17 = vld [vmem:[#allocation13 + $0x320] sm:$0xff] }
 0x711   :  { %7665 = vst [vmem:[#allocation90_spill] sm:$0xff] %v5469_v17  ;;  %v5472_v54 = vld [vmem:[#allocation13 + $0x300] sm:$0xff] }
 0x712   :  { %1507 = vmatmul.f32.vlgmr.msrb.gmra.mxu1 %v5304_v58  ;;  %1609 = vmatmul.f32.vlgmr.msra.gmra.mxu0 %v5304_v58  ;;  %7666 = vst [vmem:[#allocation41_spill] sm:$0xff] %v5472_v54 }
 0x713   :  { %1693 = vmatpush.msrb.mxu1 %v4999_v19  ;;  %1840 = vmatpush.msra.mxu0 %v5309_v48  ;;  %v5326_v19 = vld [vmem:[#allocation12 + $0x58] sm:$0xff] }
 0x715   :  { %1694 = vmatpush.msrb.mxu1 %v5003_v60  ;;  %1841 = vmatpush.msra.mxu0 %v5313_v20  ;;  %v5330_v60 = vld [vmem:[#allocation12 + $0x50] sm:$0xff] }
 0x717   :  { %1695 = vmatpush.msrb.mxu1 %v5007_v8  ;;  %1842 = vmatpush.msra.mxu0 %v5317_v14  ;;  %v5334_v8 = vld [vmem:[#allocation12 + $0x48] sm:$0xff] }
 0x719   :  { %1696 = vmatpush.msrb.mxu1 %v5011_v10  ;;  %1843 = vmatpush.msra.mxu0 %v5321_v15  ;;  %v5338_v10 = vld [vmem:[#allocation12 + $0x40] sm:$0xff] }
 0x71a   :  { %1689 = vmatmul.f32.vlgmr.msrb.gmra.mxu0 %v5304_v58 }
 0x71b   :  { %1697 = vmatpush.msrb.mxu1 %v5016_v2  ;;  %1844 = vmatpush.msra.mxu0 %v5326_v19  ;;  %v5342_v2 = vld [vmem:[#allocation12 + $0x38] sm:$0xff] }
 0x71d   :  { %1698 = vmatpush.msrb.mxu1 %v5020_v46  ;;  %1845 = vmatpush.msra.mxu0 %v5330_v60  ;;  %v5346_v46 = vld [vmem:[#allocation12 + $0x30] sm:$0xff] }
 0x71f   :  { %1699 = vmatpush.msrb.mxu1 %v5024_v22  ;;  %1846 = vmatpush.msra.mxu0 %v5334_v8  ;;  %v5350_v22 = vld [vmem:[#allocation12 + $0x28] sm:$0xff] }
 0x721   :  { %1700 = vmatpush.msrb.mxu1 %v5028_v29  ;;  %1847 = vmatpush.msra.mxu0 %v5338_v10  ;;  %v5354_v29 = vld [vmem:[#allocation12 + $0x20] sm:$0xff] }
 0x723   :  { %1701 = vmatpush.msrb.mxu1 %v5032_v30  ;;  %1848 = vmatpush.msra.mxu0 %v5342_v2  ;;  %v5358_v30 = vld [vmem:[#allocation12 + $0x18] sm:$0xff] }
 0x725   :  { %1702 = vmatpush.msrb.mxu1 %v5036_v53  ;;  %1849 = vmatpush.msra.mxu0 %v5346_v46  ;;  %v5362_v53 = vld [vmem:[#allocation12 + $0x10] sm:$0xff] }
 0x727   :  { %1703 = vmatpush.msrb.mxu1 %v5040_v38  ;;  %1850 = vmatpush.msra.mxu0 %v5350_v22  ;;  %v5366_v38 = vld [vmem:[#allocation12 + $0x8] sm:$0xff] }
 0x729   :  { %1704 = vmatpush.msrb.mxu1 %v5044_v24  ;;  %1851 = vmatpush.msra.mxu0 %v5354_v29  ;;  %v5370_v24 = vld [vmem:[#allocation12] sm:$0xff] }
 0x72b   :  { %1705 = vmatpush.msrb.mxu1 %v5048_v9  ;;  %1852 = vmatpush.msra.mxu0 %v5358_v30  ;;  %v5373_v9 = vld [vmem:[#allocation13 + $0x3e8] sm:$0xff] }
 0x72d   :  { %1706 = vmatpush.msrb.mxu1 %v5052_v35  ;;  %1853 = vmatpush.msra.mxu0 %v5362_v53  ;;  %v5376_v35 = vld [vmem:[#allocation13 + $0x3c8] sm:$0xff] }
 0x72f   :  { %1707 = vmatpush.msrb.mxu1 %v5056_v26  ;;  %1854 = vmatpush.msra.mxu0 %v5366_v38  ;;  %v5382_v26 = vld [vmem:[#allocation13 + $0x388] sm:$0xff] }
 0x731   :  { %1708 = vmatpush.msrb.mxu1 %v5060_v6  ;;  %1855 = vmatpush.msra.mxu0 %v5370_v24  ;;  %v5385_v6 = vld [vmem:[#allocation13 + $0x368] sm:$0xff] }
 0x733   :  { %1920 = vmatpush.msrb.mxu0 %v5373_v9 }
 0x735   :  { %1921 = vmatpush.msrb.mxu0 %v5376_v35 }
 0x737   :  { %1922 = vmatpush.msrb.mxu0 %v5379_v23 }
 0x739   :  { %1923 = vmatpush.msrb.mxu0 %v5382_v26 }
 0x73b   :  { %1924 = vmatpush.msrb.mxu0 %v5385_v6 }
 0x73d   :  { %1925 = vmatpush.msrb.mxu0 %v5388_v52 }
 0x73f   :  { %1926 = vmatpush.msrb.mxu0 %v5391_v44 }
 0x741   :  { %1927 = vmatpush.msrb.mxu0 %v5394_v25 }
 0x743   :  { %1928 = vmatpush.msrb.mxu0 %v5397_v27 }
 0x745   :  { %1929 = vmatpush.msrb.mxu0 %v5400_v40 }
 0x747   :  { %1930 = vmatpush.msrb.mxu0 %v5403_v11 }
 0x749   :  { %1931 = vmatpush.msrb.mxu0 %v5075_v59 }
 0x74b   :  { %1932 = vmatpush.msrb.mxu0 %v5078_v4 }
 0x74d   :  { %1933 = vmatpush.msrb.mxu0 %v5081_v39 }
 0x74f   :  { %1934 = vmatpush.msrb.mxu0 %v5084_v3 }
 0x751   :  { %1935 = vmatpush.msrb.mxu0 %v5087_v13  ;;  %v1542_v13 = vstv %s1541_s13 }
 0x78f   :  { %v1508_v5 = vpop.f32.mrf.mxu1 }
 0x790   :  { %v5417_v55 = vadd.f32 %v5414_v51, %v1508_v5  ;;  %v5475_v5 = vld [vmem:[#allocation13 + $0x2e0] sm:$0xff] }
 0x791   :  { %7667 = vst [vmem:[#allocation77_spill] sm:$0xff] %v5475_v5 }
 0x792   :  { %7656 = vst [vmem:[#allocation71_spill] sm:$0xff] %v5417_v55  ;;  %v1511_v59 = vsel %vm938_vm1, %v5417_v55, -inf }
 0x793   :  { %1512 = vmax.xlane.f32.xlu2 %v1511_v59  ;;  %v5478_v59 = vld [vmem:[#allocation13 + $0x2c0] sm:$0xff] }
 0x794   :  { %7668 = vst [vmem:[#allocation94_spill] sm:$0xff] %v5478_v59 }
 0x806   :  { %v5421_v4 = vpop.xlane.xlu2 %1512 }
 0x807   :  { %7657 = vst [vmem:[#allocation86_spill] sm:$0xff] %v5421_v4  ;;  %vm1530_vm9 = vcmp.eq.f32.partialorder %v5417_v55, %v5421_v4  ;;  %v7686_v55 = vld [vmem:[#allocation108_spill] sm:$0xff] }
 0x808   :  { %v1531_v39 = vsel %vm1530_vm9, %v7568_v63, -inf  ;;  %v7687_v4 = vld [vmem:[#allocation112_spill] sm:$0xff] }
 0x809   :  { %v1532_v3 = vsel %vm938_vm1, %v1531_v39, -inf  ;;  %v5481_v39 = vld [vmem:[#allocation13 + $0x2a0] sm:$0xff] }
 0x80a   :  { %1533 = vmax.xlane.f32.xlu2 %v1532_v3  ;;  %7669 = vst [vmem:[#allocation43_spill] sm:$0xff] %v5481_v39  ;;  %v5484_v3 = vld [vmem:[#allocation13 + $0x280] sm:$0xff] }
 0x80b   :  { %7670 = vst [vmem:[#allocation81_spill] sm:$0xff] %v5484_v3 }
 0x87d   :  { %v1534_v0 = vpop.xlane.xlu2 %1533 }
 0x87e   :  { %v1535_v28 = vsub.f32 0.0, %v1534_v0  ;;  %v5490_v0 = vld [vmem:[#allocation13 + $0x240] sm:$0xff] }
 0x87f   :  { %7672 = vst [vmem:[#allocation47_spill] sm:$0xff] %v5490_v0 }
 0x880   :  { %v1543_v21 = vmul.f32 %v1542_v13, %v1535_v28  ;;  %vm1546_vm10 = vcmp.eq.f32.partialorder %v1535_v28, 1.0  ;;  %v5493_v28 = vld [vmem:[#allocation13 + $0x220] sm:$0xff] }
 0x881   :  { %v1547_v33 = vsel %vm1546_vm10, 1.0, %v7481_v49  ;;  %7673 = vst [vmem:[#allocation89_spill] sm:$0xff] %v5493_v28 }
 0x882   :  { %v1545_v31 = vadd.f32 %v1544_v12, %v1543_v21  ;;  %v1548_v56 = vmul.f32 %v1547_v33, %v1542_v13  ;;  %v5487_v13 = vld [vmem:[#allocation13 + $0x260] sm:$0xff]  ;;  %v5499_v21 = vld [vmem:[#allocation13 + $0x3f0] sm:$0xff] }
 0x883   :  { %7671 = vst [vmem:[#allocation45_spill] sm:$0xff] %v5487_v13  ;;  %v5496_v12 = vld [vmem:[#allocation13 + $0x200] sm:$0xff]  ;;  %v5502_v33 = vld [vmem:[#allocation13 + $0x3d0] sm:$0xff] }
 0x884   :  { %v1549_v62 = vsub.f32 1.0, %v1548_v56  ;;  %vm1551_vm11 = vcmp.eq.f32.partialorder %v7478_v57, %v1545_v31  ;;  %7674 = vst [vmem:[#allocation106_spill] sm:$0xff] %v5496_v12  ;;  %v5505_v31 = vld [vmem:[#allocation13 + $0x3b0] sm:$0xff]  ;;  %v7678_v56 = vld [vmem:[#allocation76_spill] sm:$0xff] }
 0x885   :  { %3005 = vmatmul.msk.f32.vlgmr.msrb.gmra.mxu2 %vm1551_vm11, %v7483_v61  ;;  %7675 = vst [vmem:[#allocation49_spill] sm:$0xff] %v5499_v21 }
 0x886   :  { %v5431_v36 = vmul.f32 %v1549_v62, %v5107_v42  ;;  %1713 = vmatpush.msrb.mxu2 %v5109_v43  ;;  %v7659_v43 = vld [vmem:[#allocation128_spill] sm:$0xff]  ;;  %7676 = vst [vmem:[#allocation93_spill] sm:$0xff] %v5502_v33 }
 0x887   :  { %7677 = vst [vmem:[#allocation110_spill] sm:$0xff] %v5505_v31  ;;  %v7679_v62 = vld [vmem:[#allocation80_spill] sm:$0xff] }
 0x888   :  { %7658 = vst [vmem:[#allocation39_spill] sm:$0xff] %v5431_v36  ;;  %1714 = vmatpush.msrb.mxu2 %v5112_v50  ;;  %v7660_v50 = vld [vmem:[#allocation27_spill] sm:$0xff]  ;;  %v7685_v42 = vld [vmem:[#allocation104_spill] sm:$0xff] }
 0x88a   :  { %1715 = vmatpush.msrb.mxu2 %v5115_v45  ;;  %v7661_v45 = vld [vmem:[#allocation62_spill] sm:$0xff] }
 0x88c   :  { %1716 = vmatpush.msrb.mxu2 %v5118_v7  ;;  %v7662_v7 = vld [vmem:[#allocation66_spill] sm:$0xff] }
 0x88d   :  { %1649 = vmatmul.f32.vlgmr.msra.gmra.mxu2 %v5304_v58 }
 0x88e   :  { %1717 = vmatpush.msrb.mxu2 %v5122_v37  ;;  %v7663_v37 = vld [vmem:[#allocation70_spill] sm:$0xff] }
 0x890   :  { %1718 = vmatpush.msrb.mxu2 %v5125_v18  ;;  %v5451_v18 = vld [vmem:[#allocation13 + $0x3e0] sm:$0xff] }
 0x892   :  { %1719 = vmatpush.msrb.mxu2 %v5128_v16  ;;  %v5454_v16 = vld [vmem:[#allocation13 + $0x3c0] sm:$0xff] }
 0x894   :  { %1720 = vmatpush.msrb.mxu2 %v5131_v34  ;;  %v5457_v34 = vld [vmem:[#allocation13 + $0x3a0] sm:$0xff] }
 0x896   :  { %1721 = vmatpush.msrb.mxu2 %v5134_v41  ;;  %v5460_v41 = vld [vmem:[#allocation13 + $0x380] sm:$0xff] }
 0x898   :  { %1722 = vmatpush.msrb.mxu2 %v5137_v47  ;;  %v5463_v47 = vld [vmem:[#allocation13 + $0x360] sm:$0xff] }
 0x89a   :  { %1723 = vmatpush.msrb.mxu2 %v5140_v1  ;;  %v5466_v1 = vld [vmem:[#allocation13 + $0x340] sm:$0xff] }
 0x89b   :  { %7664 = vst [vmem:[#allocation73_spill] sm:$0xff] %v5466_v1 }
 0x89c   :  { %1724 = vmatpush.msrb.mxu2 %v7659_v43  ;;  %v7680_v43 = vld [vmem:[#allocation84_spill] sm:$0xff] }
 0x89e   :  { %1725 = vmatpush.msrb.mxu2 %v7660_v50  ;;  %v7681_v50 = vld [vmem:[#allocation88_spill] sm:$0xff] }
 0x8a0   :  { %1726 = vmatpush.msrb.mxu2 %v7661_v45  ;;  %v7682_v45 = vld [vmem:[#allocation92_spill] sm:$0xff] }
 0x8a2   :  { %1727 = vmatpush.msrb.mxu2 %v7662_v7  ;;  %v7683_v7 = vld [vmem:[#allocation96_spill] sm:$0xff] }
 0x8a4   :  { %1728 = vmatpush.msrb.mxu2 %v7663_v37  ;;  %v7684_v37 = vld [vmem:[#allocation100_spill] sm:$0xff] }
 0x8a5   :  { %1729 = vmatmul.f32.vlgmr.msrb.gmra.mxu2 %v5304_v58 }
 0x8a6   :  { %1880 = vmatpush.msra.mxu2 %v5451_v18 }
 0x8a8   :  { %1881 = vmatpush.msra.mxu2 %v5454_v16 }
 0x8aa   :  { %1882 = vmatpush.msra.mxu2 %v5457_v34 }
 0x8ac   :  { %1883 = vmatpush.msra.mxu2 %v5460_v41 }
 0x8ae   :  { %1884 = vmatpush.msra.mxu2 %v5463_v47 }
 0x8b0   :  { %1885 = vmatpush.msra.mxu2 %v5466_v1 }
 0x8b2   :  { %1886 = vmatpush.msra.mxu2 %v5469_v17 }
 0x8b4   :  { %1887 = vmatpush.msra.mxu2 %v5472_v54 }
 0x8b6   :  { %1888 = vmatpush.msra.mxu2 %v5475_v5 }
 0x8b8   :  { %1889 = vmatpush.msra.mxu2 %v5478_v59 }
 0x8ba   :  { %1890 = vmatpush.msra.mxu2 %v5481_v39 }
 0x8bc   :  { %1891 = vmatpush.msra.mxu2 %v5484_v3 }
 0x8be   :  { %1892 = vmatpush.msra.mxu2 %v5487_v13 }
 0x8c0   :  { %1893 = vmatpush.msra.mxu2 %v5490_v0 }
 0x8c2   :  { %1894 = vmatpush.msra.mxu2 %v5493_v28 }
 0x8c4   :  { %1895 = vmatpush.msra.mxu2 %v5496_v12  ;;  %v1610_v12 = vpop.f32.mrf.mxu0 }
 0x8c6   :  { %1960 = vmatpush.msrb.mxu2 %v5499_v21 }
 0x8c8   :  { %1961 = vmatpush.msrb.mxu2 %v5502_v33 }
 0x8ca   :  { %1962 = vmatpush.msrb.mxu2 %v5505_v31  ;;  %v7688_v31 = vld [vmem:[#allocation116_spill] sm:$0xff] }
 0x8cc   :  { %1963 = vmatpush.msrb.mxu2 %v7678_v56  ;;  %v7689_v56 = vld [vmem:[#allocation120_spill] sm:$0xff] }
 0x8ce   :  { %1964 = vmatpush.msrb.mxu2 %v7679_v62  ;;  %v7690_v62 = vld [vmem:[#allocation124_spill] sm:$0xff] }
 0x8d0   :  { %1965 = vmatpush.msrb.mxu2 %v7680_v43 }
 0x8d2   :  { %1966 = vmatpush.msrb.mxu2 %v7681_v50  ;;  %v5521_v50 = vld [vmem:[#allocation16 + $0x78] sm:$0xff] }
 0x8d3   :  { %7691 = vst [vmem:[#allocation51_spill] sm:$0xff] %v5521_v50 }
 0x8d4   :  { %1967 = vmatpush.msrb.mxu2 %v7682_v45  ;;  %v5524_v45 = vld [vmem:[#allocation13 + $0x1e0] sm:$0xff] }
 0x8d5   :  { %7692 = vst [vmem:[#allocation97_spill] sm:$0xff] %v5524_v45 }
 0x8d6   :  { %1968 = vmatpush.msrb.mxu2 %v7683_v7  ;;  %v5539_v7 = vld [vmem:[#allocation16 + $0x60] sm:$0xff] }
 0x8d7   :  { %7697 = vst [vmem:[#allocation101_spill] sm:$0xff] %v5539_v7 }
 0x8d8   :  { %1969 = vmatpush.msrb.mxu2 %v7684_v37  ;;  %v5542_v37 = vld [vmem:[#allocation13 + $0x180] sm:$0xff] }
 0x8d9   :  { %7698 = vst [vmem:[#allocation29_spill] sm:$0xff] %v5542_v37 }
 0x8da   :  { %1970 = vmatpush.msrb.mxu2 %v7685_v42  ;;  %v5527_v42 = vld [vmem:[#allocation16 + $0x70] sm:$0xff] }
 0x8db   :  { %7693 = vst [vmem:[#allocation114_spill] sm:$0xff] %v5527_v42 }
 0x8dc   :  { %1971 = vmatpush.msrb.mxu2 %v7686_v55  ;;  %v5530_v55 = vld [vmem:[#allocation13 + $0x1c0] sm:$0xff] }
 0x8dd   :  { %7694 = vst [vmem:[#allocation28_spill] sm:$0xff] %v5530_v55 }
 0x8de   :  { %1972 = vmatpush.msrb.mxu2 %v7687_v4  ;;  %v5533_v4 = vld [vmem:[#allocation16 + $0x68] sm:$0xff] }
 0x8df   :  { %7695 = vst [vmem:[#allocation54_spill] sm:$0xff] %v5533_v4 }
 0x8e0   :  { %1973 = vmatpush.msrb.mxu2 %v7688_v31  ;;  %v5536_v31 = vld [vmem:[#allocation13 + $0x1a0] sm:$0xff] }
 0x8e1   :  { %7696 = vst [vmem:[#allocation61_spill] sm:$0xff] %v5536_v31 }
 0x8e2   :  { %1974 = vmatpush.msrb.mxu2 %v7689_v56  ;;  %v5545_v56 = vld [vmem:[#allocation16 + $0x58] sm:$0xff] }
 0x8e3   :  { %7699 = vst [vmem:[#allocation118_spill] sm:$0xff] %v5545_v56 }
 0x8e4   :  { %1975 = vmatpush.msrb.mxu2 %v7690_v62  ;;  %v5548_v62 = vld [vmem:[#allocation13 + $0x160] sm:$0xff] }
 0x8e5   :  { %7700 = vst [vmem:[#allocation65_spill] sm:$0xff] %v5548_v62 }
 0x908   :  { %v1570_v43 = vpop.f32.mrf.mxu2 }
 0x909   :  { %1589 = vmatmul.f32.vlgmr.msrb.gmra.mxu3 %v1570_v43  ;;  %1629 = vmatmul.f32.vlgmr.msra.gmra.mxu1 %v1570_v43 }
 0x90a   :  { %1778 = vmatpush.msrb.mxu3 %v5521_v50  ;;  %1860 = vmatpush.msra.mxu1 %v5524_v45 }
 0x90c   :  { %1779 = vmatpush.msrb.mxu3 %v5527_v42  ;;  %1861 = vmatpush.msra.mxu1 %v5530_v55  ;;  %v5671_v55 = vld [vmem:[#allocation13 + $0xa8] sm:$0xff] }
 0x90d   :  { %7743 = vst [vmem:[#allocation115_spill] sm:$0xff] %v5671_v55 }
 0x90e   :  { %1780 = vmatpush.msrb.mxu3 %v5533_v4  ;;  %1862 = vmatpush.msra.mxu1 %v5536_v31  ;;  %v5551_v4 = vld [vmem:[#allocation16 + $0x50] sm:$0xff]  ;;  %v5554_v31 = vld [vmem:[#allocation13 + $0x140] sm:$0xff] }
 0x90f   :  { %7701 = vst [vmem:[#allocation57_spill] sm:$0xff] %v5551_v4 }
 0x910   :  { %1781 = vmatpush.msrb.mxu3 %v5539_v7  ;;  %1863 = vmatpush.msra.mxu1 %v5542_v37  ;;  %7702 = vst [vmem:[#allocation30_spill] sm:$0xff] %v5554_v31  ;;  %v5557_v7 = vld [vmem:[#allocation16 + $0x48] sm:$0xff]  ;;  %v1650_v45 = vpop.f32.mrf.mxu2 }
 0x911   :  { %1669 = vmatmul.f32.vlgmr.msra.gmra.mxu3 %v1570_v43  ;;  %1709 = vmatmul.f32.vlgmr.msrb.gmra.mxu1 %v1570_v43  ;;  %7703 = vst [vmem:[#allocation105_spill] sm:$0xff] %v5557_v7  ;;  %v5560_v43 = vld [vmem:[#allocation13 + $0x120] sm:$0xff]  ;;  %v5663_v37 = vld [vmem:[#allocation13 + $0xe8] sm:$0xff] }
 0x912   :  { %1782 = vmatpush.msrb.mxu3 %v5545_v56  ;;  %1864 = vmatpush.msra.mxu1 %v5548_v62  ;;  %7704 = vst [vmem:[#allocation55_spill] sm:$0xff] %v5560_v43  ;;  %v5563_v56 = vld [vmem:[#allocation16 + $0x40] sm:$0xff] }
 0x913   :  { %7705 = vst [vmem:[#allocation122_spill] sm:$0xff] %v5563_v56  ;;  %v5566_v62 = vld [vmem:[#allocation13 + $0x100] sm:$0xff] }
 0x914   :  { %1783 = vmatpush.msrb.mxu3 %v5551_v4  ;;  %1865 = vmatpush.msra.mxu1 %v5554_v31  ;;  %7706 = vst [vmem:[#allocation31_spill] sm:$0xff] %v5566_v62  ;;  %v5569_v4 = vld [vmem:[#allocation16 + $0x38] sm:$0xff] }
 0x915   :  { %7707 = vst [vmem:[#allocation60_spill] sm:$0xff] %v5569_v4  ;;  %v5572_v31 = vld [vmem:[#allocation13 + $0xe0] sm:$0xff] }
 0x916   :  { %1784 = vmatpush.msrb.mxu3 %v5557_v7  ;;  %1866 = vmatpush.msra.mxu1 %v5560_v43  ;;  %7708 = vst [vmem:[#allocation58_spill] sm:$0xff] %v5572_v31  ;;  %v5575_v7 = vld [vmem:[#allocation16 + $0x30] sm:$0xff]  ;;  %v5578_v43 = vld [vmem:[#allocation13 + $0xc0] sm:$0xff] }
 0x917   :  { %7709 = vst [vmem:[#allocation109_spill] sm:$0xff] %v5575_v7 }
 0x918   :  { %1785 = vmatpush.msrb.mxu3 %v5563_v56  ;;  %1867 = vmatpush.msra.mxu1 %v5566_v62  ;;  %7710 = vst [vmem:[#allocation74_spill] sm:$0xff] %v5578_v43  ;;  %v5581_v56 = vld [vmem:[#allocation16 + $0x28] sm:$0xff]  ;;  %v5584_v62 = vld [vmem:[#allocation13 + $0xa0] sm:$0xff] }
 0x919   :  { %7711 = vst [vmem:[#allocation32_spill] sm:$0xff] %v5581_v56 }
 0x91a   :  { %1786 = vmatpush.msrb.mxu3 %v5569_v4  ;;  %1868 = vmatpush.msra.mxu1 %v5572_v31  ;;  %7712 = vst [vmem:[#allocation33_spill] sm:$0xff] %v5584_v62  ;;  %v5587_v4 = vld [vmem:[#allocation16 + $0x20] sm:$0xff] }
 0x91b   :  { %7713 = vst [vmem:[#allocation34_spill] sm:$0xff] %v5587_v4  ;;  %v5590_v31 = vld [vmem:[#allocation13 + $0x80] sm:$0xff] }
 0x91c   :  { %1787 = vmatpush.msrb.mxu3 %v5575_v7  ;;  %1869 = vmatpush.msra.mxu1 %v5578_v43  ;;  %7714 = vst [vmem:[#allocation63_spill] sm:$0xff] %v5590_v31  ;;  %v5593_v7 = vld [vmem:[#allocation16 + $0x18] sm:$0xff] }
 0x91d   :  { %7715 = vst [vmem:[#allocation36_spill] sm:$0xff] %v5593_v7  ;;  %v5596_v43 = vld [vmem:[#allocation13 + $0x60] sm:$0xff] }
 0x91e   :  { %1788 = vmatpush.msrb.mxu3 %v5581_v56  ;;  %1870 = vmatpush.msra.mxu1 %v5584_v62  ;;  %7716 = vst [vmem:[#allocation78_spill] sm:$0xff] %v5596_v43  ;;  %v5599_v56 = vld [vmem:[#allocation16 + $0x10] sm:$0xff]  ;;  %v5602_v62 = vld [vmem:[#allocation13 + $0x40] sm:$0xff] }
 0x91f   :  { %7717 = vst [vmem:[#allocation38_spill] sm:$0xff] %v5599_v56 }
 0x920   :  { %1789 = vmatpush.msrb.mxu3 %v5587_v4  ;;  %1871 = vmatpush.msra.mxu1 %v5590_v31  ;;  %7718 = vst [vmem:[#allocation40_spill] sm:$0xff] %v5602_v62  ;;  %v5605_v4 = vld [vmem:[#allocation16 + $0x8] sm:$0xff]  ;;  %v5608_v31 = vld [vmem:[#allocation13 + $0x20] sm:$0xff] }
 0x921   :  { %7719 = vst [vmem:[#allocation42_spill] sm:$0xff] %v5605_v4 }
 0x922   :  { %1790 = vmatpush.msrb.mxu3 %v5593_v7  ;;  %1872 = vmatpush.msra.mxu1 %v5596_v43  ;;  %7720 = vst [vmem:[#allocation44_spill] sm:$0xff] %v5608_v31  ;;  %v5611_v7 = vld [vmem:[#allocation16] sm:$0xff] }
 0x923   :  { %7721 = vst [vmem:[#allocation46_spill] sm:$0xff] %v5611_v7  ;;  %v5614_v43 = vld [vmem:[#allocation13] sm:$0xff] }
 0x924   :  { %1791 = vmatpush.msrb.mxu3 %v5599_v56  ;;  %1873 = vmatpush.msra.mxu1 %v5602_v62  ;;  %7722 = vst [vmem:[#allocation48_spill] sm:$0xff] %v5614_v43  ;;  %v5617_v56 = vld [vmem:[#allocation13 + $0x1e8] sm:$0xff]  ;;  %v5620_v62 = vld [vmem:[#allocation13 + $0x1f0] sm:$0xff] }
 0x925   :  { %7723 = vst [vmem:[#allocation50_spill] sm:$0xff] %v5617_v56 }
 0x926   :  { %1792 = vmatpush.msrb.mxu3 %v5605_v4  ;;  %1874 = vmatpush.msra.mxu1 %v5608_v31  ;;  %7724 = vst [vmem:[#allocation53_spill] sm:$0xff] %v5620_v62  ;;  %v5623_v4 = vld [vmem:[#allocation13 + $0x1c8] sm:$0xff]  ;;  %v5626_v31 = vld [vmem:[#allocation13 + $0x1d0] sm:$0xff] }
 0x927   :  { %7725 = vst [vmem:[#allocation56_spill] sm:$0xff] %v5623_v4 }
 0x928   :  { %1793 = vmatpush.msrb.mxu3 %v5611_v7  ;;  %1875 = vmatpush.msra.mxu1 %v5614_v43  ;;  %7726 = vst [vmem:[#allocation59_spill] sm:$0xff] %v5626_v31  ;;  %v5629_v7 = vld [vmem:[#allocation13 + $0x1a8] sm:$0xff]  ;;  %v5632_v43 = vld [vmem:[#allocation13 + $0x1b0] sm:$0xff] }
 0x929   :  { %7727 = vst [vmem:[#allocation64_spill] sm:$0xff] %v5629_v7 }
 0x92a   :  { %1900 = vmatpush.msra.mxu3 %v5617_v56  ;;  %1940 = vmatpush.msrb.mxu1 %v5620_v62  ;;  %7728 = vst [vmem:[#allocation68_spill] sm:$0xff] %v5632_v43  ;;  %v5635_v56 = vld [vmem:[#allocation13 + $0x188] sm:$0xff]  ;;  %v5638_v62 = vld [vmem:[#allocation13 + $0x190] sm:$0xff] }
 0x92b   :  { %7729 = vst [vmem:[#allocation72_spill] sm:$0xff] %v5635_v56 }
 0x92c   :  { %1901 = vmatpush.msra.mxu3 %v5623_v4  ;;  %1941 = vmatpush.msrb.mxu1 %v5626_v31  ;;  %7730 = vst [vmem:[#allocation75_spill] sm:$0xff] %v5638_v62  ;;  %v5641_v4 = vld [vmem:[#allocation13 + $0x168] sm:$0xff]  ;;  %v5644_v31 = vld [vmem:[#allocation13 + $0x170] sm:$0xff] }
 0x92d   :  { %7731 = vst [vmem:[#allocation79_spill] sm:$0xff] %v5641_v4 }
 0x92e   :  { %1902 = vmatpush.msra.mxu3 %v5629_v7  ;;  %1942 = vmatpush.msrb.mxu1 %v5632_v43  ;;  %7732 = vst [vmem:[#allocation83_spill] sm:$0xff] %v5644_v31  ;;  %v5647_v7 = vld [vmem:[#allocation13 + $0x148] sm:$0xff]  ;;  %v5650_v43 = vld [vmem:[#allocation13 + $0x150] sm:$0xff] }
 0x92f   :  { %7733 = vst [vmem:[#allocation87_spill] sm:$0xff] %v5647_v7 }
 0x930   :  { %1903 = vmatpush.msra.mxu3 %v5635_v56  ;;  %1943 = vmatpush.msrb.mxu1 %v5638_v62  ;;  %7734 = vst [vmem:[#allocation91_spill] sm:$0xff] %v5650_v43  ;;  %v5653_v56 = vld [vmem:[#allocation13 + $0x128] sm:$0xff]  ;;  %v5656_v62 = vld [vmem:[#allocation13 + $0x130] sm:$0xff] }
 0x931   :  { %7735 = vst [vmem:[#allocation95_spill] sm:$0xff] %v5653_v56 }
 0x932   :  { %1904 = vmatpush.msra.mxu3 %v5641_v4  ;;  %1944 = vmatpush.msrb.mxu1 %v5644_v31  ;;  %7736 = vst [vmem:[#allocation99_spill] sm:$0xff] %v5656_v62  ;;  %v5659_v4 = vld [vmem:[#allocation13 + $0x108] sm:$0xff] }
 0x933   :  { %7737 = vst [vmem:[#allocation103_spill] sm:$0xff] %v5659_v4  ;;  %v7738_v31 = vld [vmem:[#allocation113_spill] sm:$0xff] }
 0x934   :  { %1905 = vmatpush.msra.mxu3 %v5647_v7  ;;  %1945 = vmatpush.msrb.mxu1 %v5650_v43  ;;  %7739 = vst [vmem:[#allocation107_spill] sm:$0xff] %v5663_v37  ;;  %v7740_v7 = vld [vmem:[#allocation117_spill] sm:$0xff] }
 0x935   :  { %v5667_v43 = vld [vmem:[#allocation13 + $0xc8] sm:$0xff] }
 0x936   :  { %1906 = vmatpush.msra.mxu3 %v5653_v56  ;;  %1946 = vmatpush.msrb.mxu1 %v5656_v62  ;;  %7741 = vst [vmem:[#allocation111_spill] sm:$0xff] %v5667_v43  ;;  %v7742_v56 = vld [vmem:[#allocation121_spill] sm:$0xff] }
 0x937   :  { %v7744_v62 = vld [vmem:[#allocation125_spill] sm:$0xff] }
 0x938   :  { %1907 = vmatpush.msra.mxu3 %v5659_v4  ;;  %1947 = vmatpush.msrb.mxu1 %v7738_v31  ;;  %v5675_v4 = vld [vmem:[#allocation13 + $0x88] sm:$0xff]  ;;  %v7746_v31 = vld [vmem:[#allocation127_spill] sm:$0xff] }
 0x939   :  { %7745 = vst [vmem:[#allocation128_spill] sm:$0xff] %v5675_v4 }
 0x93a   :  { %1908 = vmatpush.msra.mxu3 %v5663_v37  ;;  %1948 = vmatpush.msrb.mxu1 %v7740_v7  ;;  %v5679_v37 = vld [vmem:[#allocation13 + $0x68] sm:$0xff] }
 0x93b   :  { %7747 = vst [vmem:[#allocation27_spill] sm:$0xff] %v5679_v37  ;;  %v7748_v7 = vld [vmem:[#allocation129_spill] sm:$0xff] }
 0x93c   :  { %1909 = vmatpush.msra.mxu3 %v5667_v43  ;;  %1949 = vmatpush.msrb.mxu1 %v7742_v56  ;;  %v5683_v43 = vld [vmem:[#allocation13 + $0x48] sm:$0xff]  ;;  %v7750_v56 = vld [vmem:[#allocation67_spill] sm:$0xff] }
 0x93d   :  { %7749 = vst [vmem:[#allocation62_spill] sm:$0xff] %v5683_v43 }
 0x93e   :  { %1910 = vmatpush.msra.mxu3 %v5671_v55  ;;  %1950 = vmatpush.msrb.mxu1 %v7744_v62  ;;  %v5687_v55 = vld [vmem:[#allocation13 + $0x28] sm:$0xff] }
 0x93f   :  { %7751 = vst [vmem:[#allocation66_spill] sm:$0xff] %v5687_v55  ;;  %v7752_v62 = vld [vmem:[#allocation82_spill] sm:$0xff] }
 0x940   :  { %1911 = vmatpush.msra.mxu3 %v5675_v4  ;;  %1951 = vmatpush.msrb.mxu1 %v7746_v31  ;;  %v5691_v4 = vld [vmem:[#allocation13 + $0x8] sm:$0xff] }
 0x941   :  { %7753 = vst [vmem:[#allocation70_spill] sm:$0xff] %v5691_v4  ;;  %v7754_v31 = vld [vmem:[#allocation37_spill] sm:$0xff] }
 0x942   :  { %1912 = vmatpush.msra.mxu3 %v5679_v37  ;;  %1952 = vmatpush.msrb.mxu1 %v7748_v7  ;;  %v7755_v7 = vld [vmem:[#allocation69_spill] sm:$0xff] }
 0x944   :  { %1913 = vmatpush.msra.mxu3 %v5683_v43  ;;  %1953 = vmatpush.msrb.mxu1 %v7750_v56  ;;  %v7756_v56 = vld [vmem:[#allocation52_spill] sm:$0xff] }
 0x946   :  { %1914 = vmatpush.msra.mxu3 %v5687_v55  ;;  %1954 = vmatpush.msrb.mxu1 %v7752_v62 }
 0x948   :  { %1915 = vmatpush.msra.mxu3 %v5691_v4  ;;  %1955 = vmatpush.msrb.mxu1 %v7754_v31 }
 0x986   :  { %v1630_v37 = vpop.f32.mrf.mxu1 }
 0x987   :  { %v1631_v42 = vadd.f32 %v1630_v37, %v7755_v7 }
 0x989   :  { %v1651_v50 = vadd.f32 %v1650_v45, %v1631_v42 }
 0x98b   :  { %v3007_v43 = vmul.f32 -1.442695, %v1651_v50 }
 0x98c   :  { %v1590_v33 = vpop.f32.mrf.mxu3 }
 0x98d   :  { %3084 = vpow2.f32 %v3007_v43  ;;  %v1591_v21 = vadd.f32 %v1590_v33, %v7756_v56  ;;  %v7757_v33 = vld [vmem:[#allocation35_spill] sm:$0xff] }
 0x98e   :  { %v1710_v50 = vpop.f32.mrf.mxu1 }
 0x98f   :  { %v1611_v55 = vadd.f32 %v1610_v12, %v1591_v21  ;;  %v1711_v56 = vadd.f32 %v1710_v50, %v7757_v33 }
 0x991   :  { %v3006_v28 = vmul.f32 -1.442695, %v1611_v55 }
 0x993   :  { %v3085_v62 = vpop.eup %3084  ;;  %3086 = vpow2.f32 %v3006_v28 }
 0x994   :  { %v1755_v0 = vadd.f32 1.0, %v3085_v62  ;;  %v1670_v39 = vpop.f32.mrf.mxu3  ;;  %v1730_v62 = vpop.f32.mrf.mxu2 }
 0x995   :  { %v1731_v5 = vadd.f32 %v1730_v62, %v1711_v56  ;;  %v5818_v62 = vld [vmem:[#allocation13 + $0x3b8] sm:$0xff] }
 0x996   :  { %3088 = vrcp.f32 %v1755_v0  ;;  %v1767_v1 = vand.u32 2147483648, %v1755_v0  ;;  %vm1761_vm2 = vweird.f32 %v1755_v0  ;;  %v1765_v33 = vand.u32 2147483647, %v1755_v0 }
 0x998   :  { %vm1766_vm4 = vcmp.eq.f32.partialorder %v1765_v33, 8.507059e+37 }
 0x999   :  { %v3087_v4 = vpop.eup %3086 }
 0x99a   :  { %v1736_v13 = vadd.f32 1.0, %v3087_v4  ;;  %v1671_v4 = vadd.f32 %v1670_v39, %v7553_v32 }
 0x99c   :  { %3090 = vrcp.f32 %v1736_v13  ;;  %v3089_v31 = vpop.eup %3088  ;;  %v1748_v43 = vand.u32 2147483648, %v1736_v13  ;;  %v1746_v21 = vand.u32 2147483647, %v1736_v13  ;;  %vm1742_vm13 = vweird.f32 %v1736_v13 }
 0x99d   :  { %v1757_v3 = vmul.f32 %v3089_v31, %v1755_v0  ;;  %vm1762_vm0 = vweird.f32 %v3089_v31 }
 0x99e   :  { %v1749_v59 = vor.u32 1.1754944e-38, %v1748_v43  ;;  %vm1747_vm15 = vcmp.eq.f32.partialorder %v1746_v21, 8.507059e+37  ;;  %vm1763_vm3 = vmor %vm1761_vm2, %vm1762_vm0 }
 0x99f   :  { %v1758_v45 = vsub.f32 1.0, %v1757_v3  ;;  %v1690_v3 = vpop.f32.mrf.mxu0 }
 0x9a1   :  { %v1759_v28 = vmul.f32 %v3089_v31, %v1758_v45 }
 0x9a2   :  { %v3091_v37 = vpop.eup %3090 }
 0x9a3   :  { %v1738_v7 = vmul.f32 %v3091_v37, %v1736_v13  ;;  %vm1743_vm12 = vweird.f32 %v3091_v37  ;;  %v1760_v17 = vadd.f32 %v3089_v31, %v1759_v28  ;;  %v5812_v28 = vld [vmem:[#allocation13 + $0x3f8] sm:$0xff] }
 0x9a4   :  { %vm1744_vm14 = vmor %vm1742_vm13, %vm1743_vm12 }
 0x9a5   :  { %v1739_v42 = vsub.f32 1.0, %v1738_v7  ;;  %v1764_v13 = vsel %vm1763_vm3, %v3089_v31, %v1760_v17  ;;  %v5712_v17 = vld [vmem:[#allocation13 + $0x1b8] sm:$0xff] }
 0x9a7   :  { %v1740_v12 = vmul.f32 %v3091_v37, %v1739_v42  ;;  %v1691_v42 = vadd.f32 %v1690_v3, %v1671_v4  ;;  %v5815_v4 = vld [vmem:[#allocation13 + $0x3d8] sm:$0xff] }
 0x9a8   :  { %v5821_v3 = vld [vmem:[#allocation13 + $0x398] sm:$0xff] }
 0x9a9   :  { %v1741_v55 = vadd.f32 %v3091_v37, %v1740_v12  ;;  %v1768_v12 = vor.u32 1.1754944e-38, %v1767_v1  ;;  %v5708_v1 = vld [vmem:[#allocation13 + $0x1d8] sm:$0xff] }
 0x9ab   :  { %v1745_v54 = vsel %vm1744_vm14, %v3091_v37, %v1741_v55  ;;  %v1769_v39 = vsel %vm1766_vm4, %v1768_v12, %v1764_v13  ;;  %v5837_v13 = vld [vmem:[#allocation13 + $0x2f8] sm:$0xff] }
 0x9ac   :  { %v1750_v7 = vsel %vm1747_vm15, %v1749_v59, %v1745_v54  ;;  %v1774_v43 = vsub.f32 1.0, %v1769_v39  ;;  %v1776_v21 = vmul.f32 %v1769_v39, %v5304_v58  ;;  %v5704_v54 = vld [vmem:[#allocation13 + $0x1f8] sm:$0xff] }
 0x9ad   :  { %v1771_v50 = vmul.f32 %v1750_v7, %v1731_v5  ;;  %v5716_v58 = vld [vmem:[#allocation13 + $0x198] sm:$0xff] }
 0x9ae   :  { %v5737_v5 = vld [vmem:[#allocation13 + $0xf8] sm:$0xff] }
 0x9af   :  { %v1772_v45 = vadd.f32 %v1771_v50, %v1691_v42  ;;  %v5825_v7 = vld [vmem:[#allocation13 + $0x378] sm:$0xff] }
 0x9b0   :  { %v5828_v50 = vld [vmem:[#allocation13 + $0x358] sm:$0xff] }
 0x9b1   :  { %3092 = vtanh.f32 %v1772_v45  ;;  %v5831_v42 = vld [vmem:[#allocation13 + $0x338] sm:$0xff] }
 0x9b2   :  { %v5834_v45 = vld [vmem:[#allocation13 + $0x318] sm:$0xff] }
 0x9b3   :  { %v5840_v12 = vld [vmem:[#allocation13 + $0x2d8] sm:$0xff] }
 0x9b4   :  { %v5843_v39 = vld [vmem:[#allocation13 + $0x2b8] sm:$0xff] }
 0x9b7   :  { %v3093_v56 = vpop.eup %3092 }
 0x9b8   :  { %v1775_v37 = vmul.f32 %v3093_v56, %v1774_v43  ;;  %v5846_v43 = vld [vmem:[#allocation13 + $0x298] sm:$0xff] }
 0x9b9   :  { %7761 = vst [vmem:[#allocation88_spill] sm:$0xff] %v5846_v43  ;;  %v5849_v56 = vld [vmem:[#allocation13 + $0x278] sm:$0xff] }
 0x9ba   :  { %v5700_v55 = vadd.f32 %v1776_v21, %v1775_v37  ;;  %7762 = vst [vmem:[#allocation92_spill] sm:$0xff] %v5849_v56  ;;  %v5852_v37 = vld [vmem:[#allocation13 + $0x258] sm:$0xff] }
 0x9bb   :  { %7763 = vst [vmem:[#allocation96_spill] sm:$0xff] %v5852_v37  ;;  %v5855_v21 = vld [vmem:[#allocation13 + $0x238] sm:$0xff] }
 0x9bc   :  { %1794 = vmatmul.f32.vlgmr.msrb.gmra.mxu3 %v5700_v55  ;;  %1896 = vmatmul.f32.vlgmr.msra.gmra.mxu2 %v5700_v55  ;;  %7764 = vst [vmem:[#allocation100_spill] sm:$0xff] %v5855_v21 }
 0x9bd   :  { %1980 = vmatpush.msrb.mxu3 %v5704_v54  ;;  %2127 = vmatpush.msra.mxu2 %v5309_v48  ;;  %v5721_v48 = vld [vmem:[#allocation13 + $0x178] sm:$0xff] }
 0x9bf   :  { %1981 = vmatpush.msrb.mxu3 %v5708_v1  ;;  %2128 = vmatpush.msra.mxu2 %v5313_v20  ;;  %v5725_v20 = vld [vmem:[#allocation13 + $0x158] sm:$0xff] }
 0x9c1   :  { %1982 = vmatpush.msrb.mxu3 %v5712_v17  ;;  %2129 = vmatpush.msra.mxu2 %v5317_v14  ;;  %v5729_v14 = vld [vmem:[#allocation13 + $0x138] sm:$0xff] }
 0x9c3   :  { %1983 = vmatpush.msrb.mxu3 %v5716_v58  ;;  %2130 = vmatpush.msra.mxu2 %v5321_v15  ;;  %v5733_v15 = vld [vmem:[#allocation13 + $0x118] sm:$0xff] }
 0x9c4   :  { %1976 = vmatmul.f32.vlgmr.msrb.gmra.mxu2 %v5700_v55 }
 0x9c5   :  { %1984 = vmatpush.msrb.mxu3 %v5721_v48  ;;  %2131 = vmatpush.msra.mxu2 %v5326_v19  ;;  %v5741_v19 = vld [vmem:[#allocation13 + $0xd8] sm:$0xff] }
 0x9c7   :  { %1985 = vmatpush.msrb.mxu3 %v5725_v20  ;;  %2132 = vmatpush.msra.mxu2 %v5330_v60  ;;  %v5745_v60 = vld [vmem:[#allocation13 + $0xb8] sm:$0xff] }
 0x9c9   :  { %1986 = vmatpush.msrb.mxu3 %v5729_v14  ;;  %2133 = vmatpush.msra.mxu2 %v5334_v8  ;;  %v5749_v8 = vld [vmem:[#allocation13 + $0x98] sm:$0xff] }
 0x9cb   :  { %1987 = vmatpush.msrb.mxu3 %v5733_v15  ;;  %2134 = vmatpush.msra.mxu2 %v5338_v10  ;;  %v5753_v10 = vld [vmem:[#allocation13 + $0x78] sm:$0xff] }
 0x9cd   :  { %1988 = vmatpush.msrb.mxu3 %v5737_v5  ;;  %2135 = vmatpush.msra.mxu2 %v5342_v2  ;;  %v5757_v2 = vld [vmem:[#allocation13 + $0x58] sm:$0xff] }
 0x9cf   :  { %1989 = vmatpush.msrb.mxu3 %v5741_v19  ;;  %2136 = vmatpush.msra.mxu2 %v5346_v46  ;;  %v5761_v46 = vld [vmem:[#allocation13 + $0x38] sm:$0xff] }
 0x9d1   :  { %1990 = vmatpush.msrb.mxu3 %v5745_v60  ;;  %2137 = vmatpush.msra.mxu2 %v5350_v22  ;;  %v5765_v22 = vld [vmem:[#allocation13 + $0x18] sm:$0xff] }
 0x9d3   :  { %1991 = vmatpush.msrb.mxu3 %v5749_v8  ;;  %2138 = vmatpush.msra.mxu2 %v5354_v29  ;;  %v5780_v29 = vld [vmem:[#allocation13 + $0x288] sm:$0xff] }
 0x9d5   :  { %1992 = vmatpush.msrb.mxu3 %v5753_v10  ;;  %2139 = vmatpush.msra.mxu2 %v5358_v30  ;;  %v5783_v30 = vld [vmem:[#allocation13 + $0x268] sm:$0xff] }
 0x9d7   :  { %1993 = vmatpush.msrb.mxu3 %v5757_v2  ;;  %2140 = vmatpush.msra.mxu2 %v5362_v53  ;;  %v5786_v53 = vld [vmem:[#allocation13 + $0x248] sm:$0xff] }
 0x9d9   :  { %1994 = vmatpush.msrb.mxu3 %v5761_v46  ;;  %2141 = vmatpush.msra.mxu2 %v5366_v38  ;;  %v5789_v38 = vld [vmem:[#allocation13 + $0x228] sm:$0xff] }
 0x9db   :  { %1995 = vmatpush.msrb.mxu3 %v5765_v22  ;;  %2142 = vmatpush.msra.mxu2 %v5370_v24  ;;  %v5792_v24 = vld [vmem:[#allocation13 + $0x208] sm:$0xff] }
 0x9dd   :  { %2207 = vmatpush.msrb.mxu2 %v5373_v9 }
 0x9df   :  { %2208 = vmatpush.msrb.mxu2 %v5376_v35 }
 0x9e1   :  { %2209 = vmatpush.msrb.mxu2 %v5379_v23 }
 0x9e3   :  { %2210 = vmatpush.msrb.mxu2 %v5382_v26 }
 0x9e5   :  { %2211 = vmatpush.msrb.mxu2 %v5385_v6 }
 0x9e7   :  { %2212 = vmatpush.msrb.mxu2 %v5388_v52 }
 0x9e9   :  { %2213 = vmatpush.msrb.mxu2 %v5391_v44  ;;  %v1829_v44 = vstv %s1828_s9 }
 0x9eb   :  { %2214 = vmatpush.msrb.mxu2 %v5394_v25 }
 0x9ed   :  { %2215 = vmatpush.msrb.mxu2 %v5397_v27 }
 0x9ef   :  { %2216 = vmatpush.msrb.mxu2 %v5400_v40  ;;  %v1831_v40 = vstv %s1827_s16 }
 0x9f1   :  { %2217 = vmatpush.msrb.mxu2 %v5403_v11 }
 0x9f3   :  { %2218 = vmatpush.msrb.mxu2 %v5780_v29 }
 0x9f5   :  { %2219 = vmatpush.msrb.mxu2 %v5783_v30 }
 0x9f7   :  { %2220 = vmatpush.msrb.mxu2 %v5786_v53 }
 0x9f9   :  { %2221 = vmatpush.msrb.mxu2 %v5789_v38 }
 0x9fb   :  { %2222 = vmatpush.msrb.mxu2 %v5792_v24 }
 0xa3f   :  { %v1795_v9 = vpop.f32.mrf.mxu3 }
 0xa40   :  { %v5796_v35 = vadd.f32 %v5414_v51, %v1795_v9  ;;  %v5858_v9 = vld [vmem:[#allocation13 + $0x218] sm:$0xff] }
 0xa41   :  { %7765 = vst [vmem:[#allocation104_spill] sm:$0xff] %v5858_v9 }
 0xa42   :  { %7758 = vst [vmem:[#allocation76_spill] sm:$0xff] %v5796_v35  ;;  %v1798_v23 = vsel %vm938_vm1, %v5796_v35, -inf }
 0xa43   :  { %1799 = vmax.xlane.f32.xlu0 %v1798_v23  ;;  %v7766_v23 = vld [vmem:[#allocation73_spill] sm:$0xff] }
 0xab6   :  { %v5800_v26 = vpop.xlane.xlu0 %1799 }
 0xab7   :  { %7759 = vst [vmem:[#allocation80_spill] sm:$0xff] %v5800_v26  ;;  %vm1817_vm5 = vcmp.eq.f32.partialorder %v5796_v35, %v5800_v26  ;;  %v7797_v35 = vld [vmem:[#allocation54_spill] sm:$0xff]  ;;  %v7798_v26 = vld [vmem:[#allocation61_spill] sm:$0xff] }
 0xab8   :  { %v1818_v6 = vsel %vm1817_vm5, %v7568_v63, -inf }
 0xab9   :  { %v1819_v52 = vsel %vm938_vm1, %v1818_v6, -inf  ;;  %v7767_v6 = vld [vmem:[#allocation90_spill] sm:$0xff] }
 0xaba   :  { %1820 = vmax.xlane.f32.xlu1 %v1819_v52  ;;  %v7768_v52 = vld [vmem:[#allocation41_spill] sm:$0xff] }
 0xb2d   :  { %v1821_v25 = vpop.xlane.xlu1 %1820 }
 0xb2e   :  { %v1822_v27 = vsub.f32 0.0, %v1821_v25  ;;  %v7770_v25 = vld [vmem:[#allocation94_spill] sm:$0xff] }
 0xb30   :  { %v1830_v11 = vmul.f32 %v1829_v44, %v1822_v27  ;;  %vm1833_vm6 = vcmp.eq.f32.partialorder %v1822_v27, 1.0  ;;  %v7771_v27 = vld [vmem:[#allocation43_spill] sm:$0xff] }
 0xb31   :  { %v1834_v51 = vsel %vm1833_vm6, 1.0, %v7481_v49 }
 0xb32   :  { %v1832_v59 = vadd.f32 %v1831_v40, %v1830_v11  ;;  %v1835_v0 = vmul.f32 %v1834_v51, %v1829_v44  ;;  %v7769_v44 = vld [vmem:[#allocation77_spill] sm:$0xff]  ;;  %v7779_v51 = vld [vmem:[#allocation110_spill] sm:$0xff] }
 0xb33   :  { %v7777_v40 = vld [vmem:[#allocation49_spill] sm:$0xff] }
 0xb34   :  { %v1836_v31 = vsub.f32 1.0, %v1835_v0  ;;  %vm1838_vm7 = vcmp.eq.f32.partialorder %v7478_v57, %v1832_v59  ;;  %v7778_v11 = vld [vmem:[#allocation93_spill] sm:$0xff]  ;;  %v5881_v59 = vld [vmem:[#allocation13 + $0x390] sm:$0xff] }
 0xb35   :  { %3010 = vmatmul.msk.f32.vlgmr.msra.gmra.mxu0 %vm1838_vm7, %v7483_v61  ;;  %7780 = vst [vmem:[#allocation108_spill] sm:$0xff] %v5881_v59  ;;  %v5884_v0 = vld [vmem:[#allocation13 + $0x370] sm:$0xff] }
 0xb36   :  { %v5810_v33 = vmul.f32 %v1836_v31, %v5431_v36  ;;  %2000 = vmatpush.msra.mxu0 %v5812_v28  ;;  %7781 = vst [vmem:[#allocation112_spill] sm:$0xff] %v5884_v0  ;;  %v5887_v31 = vld [vmem:[#allocation13 + $0x350] sm:$0xff]  ;;  %v7796_v36 = vld [vmem:[#allocation28_spill] sm:$0xff] }
 0xb37   :  { %7782 = vst [vmem:[#allocation116_spill] sm:$0xff] %v5887_v31 }
 0xb38   :  { %7760 = vst [vmem:[#allocation84_spill] sm:$0xff] %v5810_v33  ;;  %2001 = vmatpush.msra.mxu0 %v5815_v4 }
 0xb3a   :  { %2002 = vmatpush.msra.mxu0 %v5818_v62 }
 0xb3c   :  { %2003 = vmatpush.msra.mxu0 %v5821_v3 }
 0xb3d   :  { %1936 = vmatmul.f32.vlgmr.msrb.gmra.mxu0 %v5700_v55 }
 0xb3e   :  { %2004 = vmatpush.msra.mxu0 %v5825_v7 }
 0xb40   :  { %2005 = vmatpush.msra.mxu0 %v5828_v50 }
 0xb42   :  { %2006 = vmatpush.msra.mxu0 %v5831_v42 }
 0xb44   :  { %2007 = vmatpush.msra.mxu0 %v5834_v45 }
 0xb46   :  { %2008 = vmatpush.msra.mxu0 %v5837_v13 }
 0xb48   :  { %2009 = vmatpush.msra.mxu0 %v5840_v12 }
 0xb4a   :  { %2010 = vmatpush.msra.mxu0 %v5843_v39 }
 0xb4c   :  { %2011 = vmatpush.msra.mxu0 %v5846_v43 }
 0xb4e   :  { %2012 = vmatpush.msra.mxu0 %v5849_v56 }
 0xb50   :  { %2013 = vmatpush.msra.mxu0 %v5852_v37 }
 0xb52   :  { %2014 = vmatpush.msra.mxu0 %v5855_v21 }
 0xb54   :  { %2015 = vmatpush.msra.mxu0 %v5858_v9 }
 0xb55   :  { %2016 = vmatmul.f32.vlgmr.msra.gmra.mxu0 %v5700_v55 }
 0xb56   :  { %2167 = vmatpush.msrb.mxu0 %v5451_v18  ;;  %v7772_v18 = vld [vmem:[#allocation81_spill] sm:$0xff] }
 0xb58   :  { %2168 = vmatpush.msrb.mxu0 %v5454_v16  ;;  %v7773_v16 = vld [vmem:[#allocation45_spill] sm:$0xff] }
 0xb5a   :  { %2169 = vmatpush.msrb.mxu0 %v5457_v34  ;;  %v7774_v34 = vld [vmem:[#allocation47_spill] sm:$0xff] }
 0xb5c   :  { %2170 = vmatpush.msrb.mxu0 %v5460_v41  ;;  %v7775_v41 = vld [vmem:[#allocation89_spill] sm:$0xff] }
 0xb5e   :  { %2171 = vmatpush.msrb.mxu0 %v5463_v47  ;;  %v7776_v47 = vld [vmem:[#allocation106_spill] sm:$0xff] }
 0xb60   :  { %2172 = vmatpush.msrb.mxu0 %v7766_v23  ;;  %v5890_v23 = vld [vmem:[#allocation13 + $0x330] sm:$0xff] }
 0xb61   :  { %7783 = vst [vmem:[#allocation120_spill] sm:$0xff] %v5890_v23 }
 0xb62   :  { %2173 = vmatpush.msrb.mxu0 %v7767_v6  ;;  %v5893_v6 = vld [vmem:[#allocation13 + $0x310] sm:$0xff] }
 0xb63   :  { %7784 = vst [vmem:[#allocation124_spill] sm:$0xff] %v5893_v6 }
 0xb64   :  { %2174 = vmatpush.msrb.mxu0 %v7768_v52  ;;  %v5896_v52 = vld [vmem:[#allocation13 + $0x2f0] sm:$0xff] }
 0xb65   :  { %7785 = vst [vmem:[#allocation113_spill] sm:$0xff] %v5896_v52 }
 0xb66   :  { %2175 = vmatpush.msrb.mxu0 %v7769_v44  ;;  %v5899_v44 = vld [vmem:[#allocation13 + $0x2d0] sm:$0xff] }
 0xb67   :  { %7786 = vst [vmem:[#allocation117_spill] sm:$0xff] %v5899_v44 }
 0xb68   :  { %2176 = vmatpush.msrb.mxu0 %v7770_v25  ;;  %v5902_v25 = vld [vmem:[#allocation13 + $0x2b0] sm:$0xff] }
 0xb69   :  { %7787 = vst [vmem:[#allocation121_spill] sm:$0xff] %v5902_v25 }
 0xb6a   :  { %2177 = vmatpush.msrb.mxu0 %v7771_v27  ;;  %v5905_v27 = vld [vmem:[#allocation13 + $0x290] sm:$0xff] }
 0xb6b   :  { %7788 = vst [vmem:[#allocation125_spill] sm:$0xff] %v5905_v27 }
 0xb6c   :  { %2178 = vmatpush.msrb.mxu0 %v7772_v18  ;;  %v5908_v18 = vld [vmem:[#allocation13 + $0x270] sm:$0xff] }
 0xb6d   :  { %7789 = vst [vmem:[#allocation127_spill] sm:$0xff] %v5908_v18 }
 0xb6e   :  { %2179 = vmatpush.msrb.mxu0 %v7773_v16  ;;  %v5911_v16 = vld [vmem:[#allocation13 + $0x250] sm:$0xff] }
 0xb6f   :  { %7790 = vst [vmem:[#allocation129_spill] sm:$0xff] %v5911_v16 }
 0xb70   :  { %2180 = vmatpush.msrb.mxu0 %v7774_v34  ;;  %v5914_v34 = vld [vmem:[#allocation13 + $0x230] sm:$0xff] }
 0xb71   :  { %7791 = vst [vmem:[#allocation67_spill] sm:$0xff] %v5914_v34 }
 0xb72   :  { %2181 = vmatpush.msrb.mxu0 %v7775_v41  ;;  %v5917_v41 = vld [vmem:[#allocation13 + $0x210] sm:$0xff] }
 0xb73   :  { %7792 = vst [vmem:[#allocation82_spill] sm:$0xff] %v5917_v41 }
 0xb74   :  { %2182 = vmatpush.msrb.mxu0 %v7776_v47 }
 0xb76   :  { %2247 = vmatpush.msra.mxu0 %v7777_v40  ;;  %v7793_v40 = vld [vmem:[#allocation51_spill] sm:$0xff] }
 0xb78   :  { %2248 = vmatpush.msra.mxu0 %v7778_v11  ;;  %v7794_v11 = vld [vmem:[#allocation97_spill] sm:$0xff] }
 0xb7a   :  { %2249 = vmatpush.msra.mxu0 %v7779_v51  ;;  %v7795_v51 = vld [vmem:[#allocation114_spill] sm:$0xff] }
 0xb7c   :  { %2250 = vmatpush.msra.mxu0 %v5881_v59 }
 0xb7e   :  { %2251 = vmatpush.msra.mxu0 %v5884_v0 }
 0xb80   :  { %2252 = vmatpush.msra.mxu0 %v5887_v31 }
 0xb82   :  { %2253 = vmatpush.msra.mxu0 %v5890_v23 }
 0xb84   :  { %2254 = vmatpush.msra.mxu0 %v5893_v6 }
 0xb86   :  { %2255 = vmatpush.msra.mxu0 %v5896_v52 }
 0xb88   :  { %2256 = vmatpush.msra.mxu0 %v5899_v44 }
 0xb8a   :  { %2257 = vmatpush.msra.mxu0 %v5902_v25 }
 0xb8c   :  { %2258 = vmatpush.msra.mxu0 %v5905_v27 }
 0xb8e   :  { %2259 = vmatpush.msra.mxu0 %v5908_v18  ;;  %v7802_v18 = vld [vmem:[#allocation65_spill] sm:$0xff] }
 0xb90   :  { %2260 = vmatpush.msra.mxu0 %v5911_v16  ;;  %v7800_v16 = vld [vmem:[#allocation29_spill] sm:$0xff] }
 0xb92   :  { %2261 = vmatpush.msra.mxu0 %v5914_v34  ;;  %v7799_v34 = vld [vmem:[#allocation101_spill] sm:$0xff] }
 0xb94   :  { %2262 = vmatpush.msra.mxu0 %v5917_v41  ;;  %v7801_v41 = vld [vmem:[#allocation118_spill] sm:$0xff] }
 0xbb2   :  { %v1857_v47 = vpop.f32.mrf.mxu0 }
 0xbb3   :  { %1876 = vmatmul.f32.vlgmr.msra.gmra.mxu1 %v1857_v47  ;;  %1916 = vmatmul.f32.vlgmr.msra.gmra.mxu3 %v1857_v47 }
 0xbb4   :  { %2065 = vmatpush.msra.mxu1 %v7793_v40  ;;  %2147 = vmatpush.msra.mxu3 %v7794_v11  ;;  %v7803_v40 = vld [vmem:[#allocation57_spill] sm:$0xff]  ;;  %v7804_v11 = vld [vmem:[#allocation30_spill] sm:$0xff] }
 0xbb6   :  { %2066 = vmatpush.msra.mxu1 %v7795_v51  ;;  %2148 = vmatpush.msra.mxu3 %v7796_v36  ;;  %v7805_v51 = vld [vmem:[#allocation105_spill] sm:$0xff]  ;;  %v7806_v36 = vld [vmem:[#allocation55_spill] sm:$0xff] }
 0xbb8   :  { %2067 = vmatpush.msra.mxu1 %v7797_v35  ;;  %2149 = vmatpush.msra.mxu3 %v7798_v26  ;;  %v7807_v35 = vld [vmem:[#allocation122_spill] sm:$0xff]  ;;  %v7808_v26 = vld [vmem:[#allocation31_spill] sm:$0xff] }
 0xbba   :  { %2068 = vmatpush.msra.mxu1 %v7799_v34  ;;  %2150 = vmatpush.msra.mxu3 %v7800_v16  ;;  %v7809_v34 = vld [vmem:[#allocation60_spill] sm:$0xff]  ;;  %v7810_v16 = vld [vmem:[#allocation58_spill] sm:$0xff]  ;;  %v1937_v25 = vpop.f32.mrf.mxu0 }
 0xbbb   :  { %1956 = vmatmul.f32.vlgmr.msrb.gmra.mxu1 %v1857_v47  ;;  %1996 = vmatmul.f32.vlgmr.msrb.gmra.mxu3 %v1857_v47  ;;  %v7811_v47 = vld [vmem:[#allocation109_spill] sm:$0xff] }
 0xbbc   :  { %2069 = vmatpush.msra.mxu1 %v7801_v41  ;;  %2151 = vmatpush.msra.mxu3 %v7802_v18  ;;  %v7812_v41 = vld [vmem:[#allocation74_spill] sm:$0xff]  ;;  %v7813_v18 = vld [vmem:[#allocation32_spill] sm:$0xff] }
 0xbbe   :  { %2070 = vmatpush.msra.mxu1 %v7803_v40  ;;  %2152 = vmatpush.msra.mxu3 %v7804_v11  ;;  %v7814_v40 = vld [vmem:[#allocation33_spill] sm:$0xff]  ;;  %v7815_v11 = vld [vmem:[#allocation34_spill] sm:$0xff] }
 0xbc0   :  { %2071 = vmatpush.msra.mxu1 %v7805_v51  ;;  %2153 = vmatpush.msra.mxu3 %v7806_v36  ;;  %v7816_v51 = vld [vmem:[#allocation63_spill] sm:$0xff]  ;;  %v7817_v36 = vld [vmem:[#allocation36_spill] sm:$0xff] }
 0xbc2   :  { %2072 = vmatpush.msra.mxu1 %v7807_v35  ;;  %2154 = vmatpush.msra.mxu3 %v7808_v26  ;;  %v7818_v35 = vld [vmem:[#allocation78_spill] sm:$0xff] }
 0xbc3   :  { %v7819_v26 = vld [vmem:[#allocation38_spill] sm:$0xff] }
 0xbc4   :  { %2073 = vmatpush.msra.mxu1 %v7809_v34  ;;  %2155 = vmatpush.msra.mxu3 %v7810_v16  ;;  %v7820_v34 = vld [vmem:[#allocation40_spill] sm:$0xff]  ;;  %v7821_v16 = vld [vmem:[#allocation42_spill] sm:$0xff] }
 0xbc6   :  { %2074 = vmatpush.msra.mxu1 %v7811_v47  ;;  %2156 = vmatpush.msra.mxu3 %v7812_v41  ;;  %v7822_v47 = vld [vmem:[#allocation44_spill] sm:$0xff]  ;;  %v7823_v41 = vld [vmem:[#allocation46_spill] sm:$0xff] }
 0xbc8   :  { %2075 = vmatpush.msra.mxu1 %v7813_v18  ;;  %2157 = vmatpush.msra.mxu3 %v7814_v40  ;;  %v7824_v18 = vld [vmem:[#allocation48_spill] sm:$0xff]  ;;  %v7825_v40 = vld [vmem:[#allocation50_spill] sm:$0xff] }
 0xbca   :  { %2076 = vmatpush.msra.mxu1 %v7815_v11  ;;  %2158 = vmatpush.msra.mxu3 %v7816_v51  ;;  %v7826_v11 = vld [vmem:[#allocation53_spill] sm:$0xff]  ;;  %v7827_v51 = vld [vmem:[#allocation56_spill] sm:$0xff] }
 0xbcc   :  { %2077 = vmatpush.msra.mxu1 %v7817_v36  ;;  %2159 = vmatpush.msra.mxu3 %v7818_v35  ;;  %v7828_v36 = vld [vmem:[#allocation59_spill] sm:$0xff]  ;;  %v7829_v35 = vld [vmem:[#allocation64_spill] sm:$0xff] }
 0xbce   :  { %2078 = vmatpush.msra.mxu1 %v7819_v26  ;;  %2160 = vmatpush.msra.mxu3 %v7820_v34  ;;  %v7830_v26 = vld [vmem:[#allocation68_spill] sm:$0xff] }
 0xbcf   :  { %v7831_v34 = vld [vmem:[#allocation72_spill] sm:$0xff] }
 0xbd0   :  { %2079 = vmatpush.msra.mxu1 %v7821_v16  ;;  %2161 = vmatpush.msra.mxu3 %v7822_v47  ;;  %v7832_v16 = vld [vmem:[#allocation75_spill] sm:$0xff] }
 0xbd1   :  { %v7833_v47 = vld [vmem:[#allocation79_spill] sm:$0xff] }
 0xbd2   :  { %2080 = vmatpush.msra.mxu1 %v7823_v41  ;;  %2162 = vmatpush.msra.mxu3 %v7824_v18  ;;  %v7834_v41 = vld [vmem:[#allocation83_spill] sm:$0xff] }
 0xbd3   :  { %v7835_v18 = vld [vmem:[#allocation87_spill] sm:$0xff] }
 0xbd4   :  { %2187 = vmatpush.msrb.mxu1 %v7825_v40  ;;  %2227 = vmatpush.msrb.mxu3 %v7826_v11  ;;  %v7836_v40 = vld [vmem:[#allocation91_spill] sm:$0xff] }
 0xbd5   :  { %v7837_v11 = vld [vmem:[#allocation95_spill] sm:$0xff] }
 0xbd6   :  { %2188 = vmatpush.msrb.mxu1 %v7827_v51  ;;  %2228 = vmatpush.msrb.mxu3 %v7828_v36  ;;  %v7838_v51 = vld [vmem:[#allocation99_spill] sm:$0xff] }
 0xbd7   :  { %v7839_v36 = vld [vmem:[#allocation103_spill] sm:$0xff] }
 0xbd8   :  { %2189 = vmatpush.msrb.mxu1 %v7829_v35  ;;  %2229 = vmatpush.msrb.mxu3 %v7830_v26  ;;  %v5967_v35 = vld [vmem:[#allocation13 + $0x110] sm:$0xff] }
 0xbd9   :  { %7840 = vst [vmem:[#allocation37_spill] sm:$0xff] %v5967_v35  ;;  %v7841_v26 = vld [vmem:[#allocation107_spill] sm:$0xff] }
 0xbda   :  { %2190 = vmatpush.msrb.mxu1 %v7831_v34  ;;  %2230 = vmatpush.msrb.mxu3 %v7832_v16  ;;  %v5971_v34 = vld [vmem:[#allocation13 + $0xf0] sm:$0xff] }
 0xbdb   :  { %7842 = vst [vmem:[#allocation73_spill] sm:$0xff] %v5971_v34  ;;  %v7843_v16 = vld [vmem:[#allocation111_spill] sm:$0xff] }
 0xbdc   :  { %2191 = vmatpush.msrb.mxu1 %v7833_v47  ;;  %2231 = vmatpush.msrb.mxu3 %v7834_v41  ;;  %v5975_v47 = vld [vmem:[#allocation13 + $0xd0] sm:$0xff] }
 0xbdd   :  { %7844 = vst [vmem:[#allocation90_spill] sm:$0xff] %v5975_v47  ;;  %v7845_v41 = vld [vmem:[#allocation115_spill] sm:$0xff] }
 0xbde   :  { %2192 = vmatpush.msrb.mxu1 %v7835_v18  ;;  %2232 = vmatpush.msrb.mxu3 %v7836_v40  ;;  %v5979_v18 = vld [vmem:[#allocation13 + $0xb0] sm:$0xff]  ;;  %v7847_v40 = vld [vmem:[#allocation128_spill] sm:$0xff] }
 0xbdf   :  { %7846 = vst [vmem:[#allocation41_spill] sm:$0xff] %v5979_v18 }
 0xbe0   :  { %2193 = vmatpush.msrb.mxu1 %v7837_v11  ;;  %2233 = vmatpush.msrb.mxu3 %v7838_v51  ;;  %v5983_v11 = vld [vmem:[#allocation13 + $0x90] sm:$0xff] }
 0xbe1   :  { %7848 = vst [vmem:[#allocation77_spill] sm:$0xff] %v5983_v11  ;;  %v7849_v51 = vld [vmem:[#allocation27_spill] sm:$0xff] }
 0xbe2   :  { %2194 = vmatpush.msrb.mxu1 %v7839_v36  ;;  %2234 = vmatpush.msrb.mxu3 %v5967_v35  ;;  %v5987_v36 = vld [vmem:[#allocation13 + $0x70] sm:$0xff] }
 0xbe3   :  { %7850 = vst [vmem:[#allocation94_spill] sm:$0xff] %v5987_v36 }
 0xbe4   :  { %2195 = vmatpush.msrb.mxu1 %v7841_v26  ;;  %2235 = vmatpush.msrb.mxu3 %v5971_v34  ;;  %v7851_v26 = vld [vmem:[#allocation62_spill] sm:$0xff] }
 0xbe6   :  { %2196 = vmatpush.msrb.mxu1 %v7843_v16  ;;  %2236 = vmatpush.msrb.mxu3 %v5975_v47  ;;  %v5991_v16 = vld [vmem:[#allocation13 + $0x50] sm:$0xff] }
 0xbe7   :  { %7852 = vst [vmem:[#allocation43_spill] sm:$0xff] %v5991_v16 }
 0xbe8   :  { %2197 = vmatpush.msrb.mxu1 %v7845_v41  ;;  %2237 = vmatpush.msrb.mxu3 %v5979_v18  ;;  %v7853_v41 = vld [vmem:[#allocation66_spill] sm:$0xff] }
 0xbe9   :  { %v5995_v18 = vld [vmem:[#allocation13 + $0x30] sm:$0xff] }
 0xbea   :  { %2198 = vmatpush.msrb.mxu1 %v7847_v40  ;;  %2238 = vmatpush.msrb.mxu3 %v5983_v11  ;;  %7854 = vst [vmem:[#allocation81_spill] sm:$0xff] %v5995_v18  ;;  %v7855_v40 = vld [vmem:[#allocation70_spill] sm:$0xff] }
 0xbeb   :  { %v5999_v11 = vld [vmem:[#allocation13 + $0x10] sm:$0xff] }
 0xbec   :  { %2199 = vmatpush.msrb.mxu1 %v7849_v51  ;;  %2239 = vmatpush.msrb.mxu3 %v5987_v36  ;;  %7856 = vst [vmem:[#allocation45_spill] sm:$0xff] %v5999_v11  ;;  %v7857_v36 = vld [vmem:[#allocation52_spill] sm:$0xff] }
 0xbee   :  { %2200 = vmatpush.msrb.mxu1 %v7851_v26  ;;  %2240 = vmatpush.msrb.mxu3 %v5991_v16  ;;  %v1897_v26 = vpop.f32.mrf.mxu2  ;;  %v7858_v16 = vld [vmem:[#allocation69_spill] sm:$0xff] }
 0xbf0   :  { %2201 = vmatpush.msrb.mxu1 %v7853_v41  ;;  %2241 = vmatpush.msrb.mxu3 %v5995_v18 }
 0xbf2   :  { %2202 = vmatpush.msrb.mxu1 %v7855_v40  ;;  %2242 = vmatpush.msrb.mxu3 %v5999_v11 }
 0xc30   :  { %v1877_v51 = vpop.f32.mrf.mxu1 }
 0xc31   :  { %v1878_v47 = vadd.f32 %v1877_v51, %v7857_v36 }
 0xc33   :  { %v1898_v34 = vadd.f32 %v1897_v26, %v1878_v47  ;;  %v7859_v26 = vld [vmem:[#allocation35_spill] sm:$0xff] }
 0xc35   :  { %v3011_v35 = vmul.f32 -1.442695, %v1898_v34 }
 0xc36   :  { %v1917_v27 = vpop.f32.mrf.mxu3 }
 0xc37   :  { %3094 = vpow2.f32 %v3011_v35  ;;  %v1918_v41 = vadd.f32 %v1917_v27, %v7858_v16  ;;  %v1977_v16 = vpop.f32.mrf.mxu2 }
 0xc38   :  { %v1957_v36 = vpop.f32.mrf.mxu1 }
 0xc39   :  { %v1938_v44 = vadd.f32 %v1937_v25, %v1918_v41  ;;  %v2017_v41 = vpop.f32.mrf.mxu0 }
 0xc3b   :  { %v3012_v52 = vmul.f32 -1.442695, %v1938_v44  ;;  %v1958_v44 = vadd.f32 %v1957_v36, %v7553_v32 }
 0xc3d   :  { %v3095_v18 = vpop.eup %3094  ;;  %3096 = vpow2.f32 %v3012_v52 }
 0xc3e   :  { %v2023_v40 = vadd.f32 1.0, %v3095_v18  ;;  %v1997_v51 = vpop.f32.mrf.mxu3 }
 0xc3f   :  { %v1998_v35 = vadd.f32 %v1997_v51, %v7859_v26 }
 0xc40   :  { %3098 = vrcp.f32 %v2023_v40  ;;  %v2035_v34 = vand.u32 2147483648, %v2023_v40  ;;  %v2033_v27 = vand.u32 2147483647, %v2023_v40  ;;  %vm2029_vm9 = vweird.f32 %v2023_v40 }
 0xc41   :  { %v2018_v9 = vadd.f32 %v2017_v41, %v1998_v35  ;;  %v6117_v41 = vld [vmem:[%s6812_s10] sm:$0x1] }
 0xc42   :  { %vm2034_vm11 = vcmp.eq.f32.partialorder %v2033_v27, 8.507059e+37  ;;  %v6100_v27 = vld [vmem:[#allocation13 + $0x2e8] sm:$0xff] }
 0xc43   :  { %v3097_v6 = vpop.eup %3096 }
 0xc44   :  { %v2042_v23 = vadd.f32 1.0, %v3097_v6  ;;  %v2036_v6 = vor.u32 1.1754944e-38, %v2035_v34 }
 0xc46   :  { %v3099_v11 = vpop.eup %3098  ;;  %3100 = vrcp.f32 %v2042_v23  ;;  %v2052_v56 = vand.u32 2147483647, %v2042_v23  ;;  %vm2048_vm13 = vweird.f32 %v2042_v23 }
 0xc47   :  { %v2025_v31 = vmul.f32 %v3099_v11, %v2023_v40  ;;  %vm2030_vm8 = vweird.f32 %v3099_v11 }
 0xc48   :  { %vm2031_vm10 = vmor %vm2029_vm9, %vm2030_vm8  ;;  %vm2053_vm15 = vcmp.eq.f32.partialorder %v2052_v56, 8.507059e+37  ;;  %v6024_v56 = vld [vmem:[#allocation12 + $0x60] sm:$0xff] }
 0xc49   :  { %v2026_v47 = vsub.f32 1.0, %v2025_v31  ;;  %v1978_v31 = vadd.f32 %v1977_v16, %v1958_v44  ;;  %v6106_v44 = vld [vmem:[#allocation13 + $0x2a8] sm:$0xff] }
 0xc4b   :  { %v2027_v0 = vmul.f32 %v3099_v11, %v2026_v47  ;;  %v2054_v47 = vand.u32 2147483648, %v2042_v23 }
 0xc4c   :  { %v3101_v25 = vpop.eup %3100 }
 0xc4d   :  { %v2044_v52 = vmul.f32 %v3101_v25, %v2042_v23  ;;  %v2028_v18 = vadd.f32 %v3099_v11, %v2027_v0  ;;  %vm2049_vm12 = vweird.f32 %v3101_v25  ;;  %v2055_v0 = vor.u32 1.1754944e-38, %v2054_v47  ;;  %v6094_v23 = vld [vmem:[#allocation13 + $0x328] sm:$0xff] }
 0xc4e   :  { %vm2050_vm14 = vmor %vm2048_vm13, %vm2049_vm12  ;;  %v2118_v47 = vstv %s2114_s22 }
 0xc4f   :  { %v2045_v59 = vsub.f32 1.0, %v2044_v52  ;;  %v2032_v21 = vsel %vm2031_vm10, %v3099_v11, %v2028_v18 }
 0xc50   :  { %v2037_v37 = vsel %vm2034_vm11, %v2036_v6, %v2032_v21 }
 0xc51   :  { %v2046_v51 = vmul.f32 %v3101_v25, %v2045_v59  ;;  %v2058_v26 = vmul.f32 %v2037_v37, %v2018_v9  ;;  %v6012_v37 = vld [vmem:[#allocation12 + $0x78] sm:$0xff]  ;;  %v6082_v9 = vld [vmem:[#allocation13 + $0x3a8] sm:$0xff] }
 0xc52   :  { %v6091_v59 = vld [vmem:[#allocation13 + $0x348] sm:$0xff] }
 0xc53   :  { %v2047_v43 = vadd.f32 %v3101_v25, %v2046_v51  ;;  %v2059_v36 = vadd.f32 %v2058_v26, %v1978_v31  ;;  %v6097_v26 = vld [vmem:[#allocation13 + $0x308] sm:$0xff] }
 0xc55   :  { %v2051_v40 = vsel %vm2050_vm14, %v3101_v25, %v2047_v43  ;;  %3102 = vtanh.f32 %v2059_v36  ;;  %v6016_v43 = vld [vmem:[#allocation12 + $0x70] sm:$0xff]  ;;  %v6103_v25 = vld [vmem:[#allocation13 + $0x2c8] sm:$0xff] }
 0xc56   :  { %v2056_v34 = vsel %vm2053_vm15, %v2055_v0, %v2051_v40 }
 0xc57   :  { %v2061_v52 = vsub.f32 1.0, %v2056_v34  ;;  %v2063_v16 = vmul.f32 %v2056_v34, %v5700_v55  ;;  %v6020_v55 = vld [vmem:[#allocation12 + $0x68] sm:$0xff] }
 0xc5b   :  { %v3103_v35 = vpop.eup %3102 }
 0xc5c   :  { %v2062_v11 = vmul.f32 %v3103_v35, %v2061_v52 }
 0xc5e   :  { %v6007_v21 = vadd.f32 %v2063_v16, %v2062_v11  ;;  %v6172_v11 = vld [vmem:[#allocation13 + $0x320] sm:$0xff] }
 0xc5f   :  { %7869 = vst [vmem:[#allocation93_spill] sm:$0xff] %v6172_v11  ;;  %v6175_v16 = vld [vmem:[#allocation13 + $0x300] sm:$0xff] }
 0xc60   :  { %2081 = vmatmul.f32.vlgmr.msra.gmra.mxu1 %v6007_v21  ;;  %2183 = vmatmul.f32.vlgmr.msrb.gmra.mxu0 %v6007_v21  ;;  %7870 = vst [vmem:[#allocation110_spill] sm:$0xff] %v6175_v16 }
 0xc61   :  { %2267 = vmatpush.msra.mxu1 %v5704_v54  ;;  %2414 = vmatpush.msrb.mxu0 %v6012_v37  ;;  %v6029_v54 = vld [vmem:[#allocation12 + $0x58] sm:$0xff] }
 0xc63   :  { %2268 = vmatpush.msra.mxu1 %v5708_v1  ;;  %2415 = vmatpush.msrb.mxu0 %v6016_v43  ;;  %v6033_v1 = vld [vmem:[#allocation12 + $0x50] sm:$0xff] }
 0xc65   :  { %2269 = vmatpush.msra.mxu1 %v5712_v17  ;;  %2416 = vmatpush.msrb.mxu0 %v6020_v55  ;;  %v6037_v17 = vld [vmem:[#allocation12 + $0x48] sm:$0xff] }
 0xc67   :  { %2270 = vmatpush.msra.mxu1 %v5716_v58  ;;  %2417 = vmatpush.msrb.mxu0 %v6024_v56  ;;  %v6041_v58 = vld [vmem:[#allocation12 + $0x40] sm:$0xff] }
 0xc68   :  { %2263 = vmatmul.f32.vlgmr.msra.gmra.mxu0 %v6007_v21 }
 0xc69   :  { %2271 = vmatpush.msra.mxu1 %v5721_v48  ;;  %2418 = vmatpush.msrb.mxu0 %v6029_v54  ;;  %v6045_v48 = vld [vmem:[#allocation12 + $0x38] sm:$0xff] }
 0xc6b   :  { %2272 = vmatpush.msra.mxu1 %v5725_v20  ;;  %2419 = vmatpush.msrb.mxu0 %v6033_v1  ;;  %v6049_v20 = vld [vmem:[#allocation12 + $0x30] sm:$0xff] }
 0xc6d   :  { %2273 = vmatpush.msra.mxu1 %v5729_v14  ;;  %2420 = vmatpush.msrb.mxu0 %v6037_v17  ;;  %v6053_v14 = vld [vmem:[#allocation12 + $0x28] sm:$0xff] }
 0xc6f   :  { %2274 = vmatpush.msra.mxu1 %v5733_v15  ;;  %2421 = vmatpush.msrb.mxu0 %v6041_v58  ;;  %v6057_v15 = vld [vmem:[#allocation12 + $0x20] sm:$0xff] }
 0xc71   :  { %2275 = vmatpush.msra.mxu1 %v5737_v5  ;;  %2422 = vmatpush.msrb.mxu0 %v6045_v48  ;;  %v6061_v5 = vld [vmem:[#allocation12 + $0x18] sm:$0xff] }
 0xc73   :  { %2276 = vmatpush.msra.mxu1 %v5741_v19  ;;  %2423 = vmatpush.msrb.mxu0 %v6049_v20  ;;  %v6065_v19 = vld [vmem:[#allocation12 + $0x10] sm:$0xff] }
 0xc75   :  { %2277 = vmatpush.msra.mxu1 %v5745_v60  ;;  %2424 = vmatpush.msrb.mxu0 %v6053_v14  ;;  %v6069_v60 = vld [vmem:[#allocation12 + $0x8] sm:$0xff] }
 0xc77   :  { %2278 = vmatpush.msra.mxu1 %v5749_v8  ;;  %2425 = vmatpush.msrb.mxu0 %v6057_v15  ;;  %v6073_v8 = vld [vmem:[#allocation12] sm:$0xff] }
 0xc79   :  { %2279 = vmatpush.msra.mxu1 %v5753_v10  ;;  %2426 = vmatpush.msrb.mxu0 %v6061_v5  ;;  %v6076_v10 = vld [vmem:[#allocation13 + $0x3e8] sm:$0xff] }
 0xc7b   :  { %2280 = vmatpush.msra.mxu1 %v5757_v2  ;;  %2427 = vmatpush.msrb.mxu0 %v6065_v19  ;;  %v6079_v2 = vld [vmem:[#allocation13 + $0x3c8] sm:$0xff] }
 0xc7d   :  { %2281 = vmatpush.msra.mxu1 %v5761_v46  ;;  %2428 = vmatpush.msrb.mxu0 %v6069_v60  ;;  %v6085_v46 = vld [vmem:[#allocation13 + $0x388] sm:$0xff] }
 0xc7f   :  { %2282 = vmatpush.msra.mxu1 %v5765_v22  ;;  %2429 = vmatpush.msrb.mxu0 %v6073_v8  ;;  %v6088_v22 = vld [vmem:[#allocation13 + $0x368] sm:$0xff] }
 0xc81   :  { %2494 = vmatpush.msra.mxu0 %v6076_v10 }
 0xc83   :  { %2495 = vmatpush.msra.mxu0 %v6079_v2 }
 0xc85   :  { %2496 = vmatpush.msra.mxu0 %v6082_v9 }
 0xc87   :  { %2497 = vmatpush.msra.mxu0 %v6085_v46 }
 0xc89   :  { %2498 = vmatpush.msra.mxu0 %v6088_v22 }
 0xc8b   :  { %2499 = vmatpush.msra.mxu0 %v6091_v59 }
 0xc8d   :  { %2500 = vmatpush.msra.mxu0 %v6094_v23 }
 0xc8f   :  { %2501 = vmatpush.msra.mxu0 %v6097_v26 }
 0xc91   :  { %2502 = vmatpush.msra.mxu0 %v6100_v27 }
 0xc93   :  { %2503 = vmatpush.msra.mxu0 %v6103_v25 }
 0xc95   :  { %2504 = vmatpush.msra.mxu0 %v6106_v44 }
 0xc97   :  { %2505 = vmatpush.msra.mxu0 %v5780_v29 }
 0xc99   :  { %2506 = vmatpush.msra.mxu0 %v5783_v30 }
 0xc9b   :  { %2507 = vmatpush.msra.mxu0 %v5786_v53 }
 0xc9d   :  { %2508 = vmatpush.msra.mxu0 %v5789_v38 }
 0xc9f   :  { %2509 = vmatpush.msra.mxu0 %v5792_v24  ;;  %v2116_v24 = vstv %s2115_s21 }
 0xcdd   :  { %v2082_v18 = vpop.f32.mrf.mxu1 }
 0xcde   :  { %v6120_v6 = vadd.f32 %v6117_v41, %v2082_v18  ;;  %v6178_v18 = vld [vmem:[#allocation13 + $0x2e0] sm:$0xff] }
 0xcdf   :  { %7871 = vst [vmem:[#allocation51_spill] sm:$0xff] %v6178_v18 }
 0xce0   :  { %7860 = vst [vmem:[#allocation47_spill] sm:$0xff] %v6120_v6  ;;  %v2085_v29 = vsel %vm938_vm1, %v6120_v6, -inf }
 0xce1   :  { %2086 = vmax.xlane.f32.xlu2 %v2085_v29  ;;  %v6181_v29 = vld [vmem:[#allocation13 + $0x2c0] sm:$0xff] }
 0xce2   :  { %7872 = vst [vmem:[#allocation97_spill] sm:$0xff] %v6181_v29 }
 0xd54   :  { %v6124_v30 = vpop.xlane.xlu2 %2086 }
 0xd55   :  { %7861 = vst [vmem:[#allocation89_spill] sm:$0xff] %v6124_v30  ;;  %vm2104_vm0 = vcmp.eq.f32.partialorder %v6120_v6, %v6124_v30  ;;  %v7890_v6 = vld [vmem:[#allocation125_spill] sm:$0xff]  ;;  %v7891_v30 = vld [vmem:[#allocation127_spill] sm:$0xff] }
 0xd56   :  { %v2105_v53 = vsel %vm2104_vm0, %v7568_v63, -inf }
 0xd57   :  { %v2106_v38 = vsel %vm938_vm1, %v2105_v53, -inf  ;;  %v6184_v53 = vld [vmem:[#allocation13 + $0x2a0] sm:$0xff] }
 0xd58   :  { %2107 = vmax.xlane.f32.xlu0 %v2106_v38  ;;  %7873 = vst [vmem:[#allocation114_spill] sm:$0xff] %v6184_v53  ;;  %v6187_v38 = vld [vmem:[#allocation13 + $0x280] sm:$0xff] }
 0xd59   :  { %7874 = vst [vmem:[#allocation28_spill] sm:$0xff] %v6187_v38 }
 0xdcb   :  { %v2108_v31 = vpop.xlane.xlu0 %2107 }
 0xdcc   :  { %v2109_v51 = vsub.f32 0.0, %v2108_v31  ;;  %v6193_v31 = vld [vmem:[#allocation13 + $0x240] sm:$0xff] }
 0xdcd   :  { %7876 = vst [vmem:[#allocation61_spill] sm:$0xff] %v6193_v31 }
 0xdce   :  { %v2117_v36 = vmul.f32 %v2116_v24, %v2109_v51  ;;  %vm2120_vm2 = vcmp.eq.f32.partialorder %v2109_v51, 1.0  ;;  %v6196_v51 = vld [vmem:[#allocation13 + $0x220] sm:$0xff] }
 0xdcf   :  { %v2121_v0 = vsel %vm2120_vm2, 1.0, %v7481_v49  ;;  %7877 = vst [vmem:[#allocation101_spill] sm:$0xff] %v6196_v51 }
 0xdd0   :  { %v2119_v40 = vadd.f32 %v2118_v47, %v2117_v36  ;;  %v2122_v34 = vmul.f32 %v2121_v0, %v2116_v24  ;;  %v6190_v24 = vld [vmem:[#allocation13 + $0x260] sm:$0xff]  ;;  %v6202_v36 = vld [vmem:[#allocation13 + $0x3f0] sm:$0xff] }
 0xdd1   :  { %7875 = vst [vmem:[#allocation54_spill] sm:$0xff] %v6190_v24  ;;  %v6199_v47 = vld [vmem:[#allocation13 + $0x200] sm:$0xff]  ;;  %v6205_v0 = vld [vmem:[#allocation13 + $0x3d0] sm:$0xff] }
 0xdd2   :  { %v2123_v52 = vsub.f32 1.0, %v2122_v34  ;;  %vm2125_vm3 = vcmp.eq.f32.partialorder %v7478_v57, %v2119_v40  ;;  %7878 = vst [vmem:[#allocation29_spill] sm:$0xff] %v6199_v47  ;;  %v6208_v40 = vld [vmem:[#allocation13 + $0x3b0] sm:$0xff]  ;;  %v7882_v34 = vld [vmem:[#allocation108_spill] sm:$0xff] }
 0xdd3   :  { %3015 = vmatmul.msk.f32.vlgmr.msra.gmra.mxu2 %vm2125_vm3, %v7483_v61  ;;  %7879 = vst [vmem:[#allocation118_spill] sm:$0xff] %v6202_v36 }
 0xdd4   :  { %v6134_v35 = vmul.f32 %v2123_v52, %v5810_v33  ;;  %2287 = vmatpush.msra.mxu2 %v5812_v28  ;;  %v7863_v28 = vld [vmem:[#allocation88_spill] sm:$0xff]  ;;  %7880 = vst [vmem:[#allocation65_spill] sm:$0xff] %v6205_v0  ;;  %v7889_v33 = vld [vmem:[#allocation121_spill] sm:$0xff] }
 0xdd5   :  { %7881 = vst [vmem:[#allocation57_spill] sm:$0xff] %v6208_v40  ;;  %v7883_v52 = vld [vmem:[#allocation112_spill] sm:$0xff] }
 0xdd6   :  { %7862 = vst [vmem:[#allocation106_spill] sm:$0xff] %v6134_v35  ;;  %2288 = vmatpush.msra.mxu2 %v5815_v4  ;;  %v7864_v4 = vld [vmem:[#allocation92_spill] sm:$0xff] }
 0xdd8   :  { %2289 = vmatpush.msra.mxu2 %v5818_v62  ;;  %v7865_v62 = vld [vmem:[#allocation96_spill] sm:$0xff] }
 0xdda   :  { %2290 = vmatpush.msra.mxu2 %v5821_v3  ;;  %v7866_v3 = vld [vmem:[#allocation100_spill] sm:$0xff] }
 0xddb   :  { %2223 = vmatmul.f32.vlgmr.msrb.gmra.mxu2 %v6007_v21 }
 0xddc   :  { %2291 = vmatpush.msra.mxu2 %v5825_v7  ;;  %v7867_v7 = vld [vmem:[#allocation104_spill] sm:$0xff] }
 0xdde   :  { %2292 = vmatpush.msra.mxu2 %v5828_v50  ;;  %v6154_v50 = vld [vmem:[#allocation13 + $0x3e0] sm:$0xff] }
 0xde0   :  { %2293 = vmatpush.msra.mxu2 %v5831_v42  ;;  %v6157_v42 = vld [vmem:[#allocation13 + $0x3c0] sm:$0xff] }
 0xde2   :  { %2294 = vmatpush.msra.mxu2 %v5834_v45  ;;  %v6160_v45 = vld [vmem:[#allocation13 + $0x3a0] sm:$0xff] }
 0xde4   :  { %2295 = vmatpush.msra.mxu2 %v5837_v13  ;;  %v6163_v13 = vld [vmem:[#allocation13 + $0x380] sm:$0xff] }
 0xde6   :  { %2296 = vmatpush.msra.mxu2 %v5840_v12  ;;  %v6166_v12 = vld [vmem:[#allocation13 + $0x360] sm:$0xff] }
 0xde8   :  { %2297 = vmatpush.msra.mxu2 %v5843_v39  ;;  %v6169_v39 = vld [vmem:[#allocation13 + $0x340] sm:$0xff] }
 0xde9   :  { %7868 = vst [vmem:[#allocation49_spill] sm:$0xff] %v6169_v39 }
 0xdea   :  { %2298 = vmatpush.msra.mxu2 %v7863_v28  ;;  %v7884_v28 = vld [vmem:[#allocation116_spill] sm:$0xff] }
 0xdec   :  { %2299 = vmatpush.msra.mxu2 %v7864_v4  ;;  %v7885_v4 = vld [vmem:[#allocation120_spill] sm:$0xff] }
 0xdee   :  { %2300 = vmatpush.msra.mxu2 %v7865_v62  ;;  %v7886_v62 = vld [vmem:[#allocation124_spill] sm:$0xff] }
 0xdf0   :  { %2301 = vmatpush.msra.mxu2 %v7866_v3  ;;  %v7887_v3 = vld [vmem:[#allocation113_spill] sm:$0xff] }
 0xdf2   :  { %2302 = vmatpush.msra.mxu2 %v7867_v7  ;;  %v7888_v7 = vld [vmem:[#allocation117_spill] sm:$0xff] }
 0xdf3   :  { %2303 = vmatmul.f32.vlgmr.msra.gmra.mxu2 %v6007_v21 }
 0xdf4   :  { %2454 = vmatpush.msrb.mxu2 %v6154_v50 }
 0xdf6   :  { %2455 = vmatpush.msrb.mxu2 %v6157_v42 }
 0xdf8   :  { %2456 = vmatpush.msrb.mxu2 %v6160_v45 }
 0xdfa   :  { %2457 = vmatpush.msrb.mxu2 %v6163_v13 }
 0xdfc   :  { %2458 = vmatpush.msrb.mxu2 %v6166_v12 }
 0xdfe   :  { %2459 = vmatpush.msrb.mxu2 %v6169_v39 }
 0xe00   :  { %2460 = vmatpush.msrb.mxu2 %v6172_v11 }
 0xe02   :  { %2461 = vmatpush.msrb.mxu2 %v6175_v16 }
 0xe04   :  { %2462 = vmatpush.msrb.mxu2 %v6178_v18 }
 0xe06   :  { %2463 = vmatpush.msrb.mxu2 %v6181_v29 }
 0xe08   :  { %2464 = vmatpush.msrb.mxu2 %v6184_v53 }
 0xe0a   :  { %2465 = vmatpush.msrb.mxu2 %v6187_v38 }
 0xe0c   :  { %2466 = vmatpush.msrb.mxu2 %v6190_v24 }
 0xe0e   :  { %2467 = vmatpush.msrb.mxu2 %v6193_v31 }
 0xe10   :  { %2468 = vmatpush.msrb.mxu2 %v6196_v51 }
 0xe12   :  { %2469 = vmatpush.msrb.mxu2 %v6199_v47  ;;  %v2184_v47 = vpop.f32.mrf.mxu0 }
 0xe14   :  { %2534 = vmatpush.msra.mxu2 %v6202_v36 }
 0xe16   :  { %2535 = vmatpush.msra.mxu2 %v6205_v0 }
 0xe18   :  { %2536 = vmatpush.msra.mxu2 %v6208_v40  ;;  %v7892_v40 = vld [vmem:[#allocation129_spill] sm:$0xff] }
 0xe1a   :  { %2537 = vmatpush.msra.mxu2 %v7882_v34  ;;  %v7893_v34 = vld [vmem:[#allocation67_spill] sm:$0xff] }
 0xe1c   :  { %2538 = vmatpush.msra.mxu2 %v7883_v52  ;;  %v7894_v52 = vld [vmem:[#allocation82_spill] sm:$0xff] }
 0xe1e   :  { %2539 = vmatpush.msra.mxu2 %v7884_v28 }
 0xe20   :  { %2540 = vmatpush.msra.mxu2 %v7885_v4  ;;  %v6224_v4 = vld [vmem:[#allocation16 + $0x78] sm:$0xff] }
 0xe21   :  { %7895 = vst [vmem:[#allocation30_spill] sm:$0xff] %v6224_v4 }
 0xe22   :  { %2541 = vmatpush.msra.mxu2 %v7886_v62  ;;  %v6227_v62 = vld [vmem:[#allocation13 + $0x1e0] sm:$0xff] }
 0xe23   :  { %7896 = vst [vmem:[#allocation105_spill] sm:$0xff] %v6227_v62 }
 0xe24   :  { %2542 = vmatpush.msra.mxu2 %v7887_v3  ;;  %v6242_v3 = vld [vmem:[#allocation16 + $0x60] sm:$0xff] }
 0xe25   :  { %7901 = vst [vmem:[#allocation58_spill] sm:$0xff] %v6242_v3 }
 0xe26   :  { %2543 = vmatpush.msra.mxu2 %v7888_v7  ;;  %v6245_v7 = vld [vmem:[#allocation13 + $0x180] sm:$0xff] }
 0xe27   :  { %7902 = vst [vmem:[#allocation109_spill] sm:$0xff] %v6245_v7 }
 0xe28   :  { %2544 = vmatpush.msra.mxu2 %v7889_v33  ;;  %v6230_v33 = vld [vmem:[#allocation16 + $0x70] sm:$0xff] }
 0xe29   :  { %7897 = vst [vmem:[#allocation55_spill] sm:$0xff] %v6230_v33 }
 0xe2a   :  { %2545 = vmatpush.msra.mxu2 %v7890_v6  ;;  %v6233_v6 = vld [vmem:[#allocation13 + $0x1c0] sm:$0xff] }
 0xe2b   :  { %7898 = vst [vmem:[#allocation122_spill] sm:$0xff] %v6233_v6 }
 0xe2c   :  { %2546 = vmatpush.msra.mxu2 %v7891_v30  ;;  %v6236_v30 = vld [vmem:[#allocation16 + $0x68] sm:$0xff] }
 0xe2d   :  { %7899 = vst [vmem:[#allocation31_spill] sm:$0xff] %v6236_v30 }
 0xe2e   :  { %2547 = vmatpush.msra.mxu2 %v7892_v40  ;;  %v6239_v40 = vld [vmem:[#allocation13 + $0x1a0] sm:$0xff] }
 0xe2f   :  { %7900 = vst [vmem:[#allocation60_spill] sm:$0xff] %v6239_v40 }
 0xe30   :  { %2548 = vmatpush.msra.mxu2 %v7893_v34  ;;  %v6248_v34 = vld [vmem:[#allocation16 + $0x58] sm:$0xff] }
 0xe31   :  { %7903 = vst [vmem:[#allocation74_spill] sm:$0xff] %v6248_v34 }
 0xe32   :  { %2549 = vmatpush.msra.mxu2 %v7894_v52  ;;  %v6251_v52 = vld [vmem:[#allocation13 + $0x160] sm:$0xff] }
 0xe33   :  { %7904 = vst [vmem:[#allocation32_spill] sm:$0xff] %v6251_v52 }
 0xe56   :  { %v2144_v28 = vpop.f32.mrf.mxu2 }
 0xe57   :  { %2163 = vmatmul.f32.vlgmr.msra.gmra.mxu3 %v2144_v28  ;;  %2203 = vmatmul.f32.vlgmr.msrb.gmra.mxu1 %v2144_v28 }
 0xe58   :  { %2352 = vmatpush.msra.mxu3 %v6224_v4  ;;  %2434 = vmatpush.msrb.mxu1 %v6227_v62 }
 0xe5a   :  { %2353 = vmatpush.msra.mxu3 %v6230_v33  ;;  %2435 = vmatpush.msrb.mxu1 %v6233_v6  ;;  %v6374_v6 = vld [vmem:[#allocation13 + $0xa8] sm:$0xff] }
 0xe5b   :  { %7947 = vst [vmem:[#allocation108_spill] sm:$0xff] %v6374_v6 }
 0xe5c   :  { %2354 = vmatpush.msra.mxu3 %v6236_v30  ;;  %2436 = vmatpush.msrb.mxu1 %v6239_v40  ;;  %v6254_v30 = vld [vmem:[#allocation16 + $0x50] sm:$0xff]  ;;  %v6257_v40 = vld [vmem:[#allocation13 + $0x140] sm:$0xff] }
 0xe5d   :  { %7905 = vst [vmem:[#allocation33_spill] sm:$0xff] %v6254_v30 }
 0xe5e   :  { %2355 = vmatpush.msra.mxu3 %v6242_v3  ;;  %2437 = vmatpush.msrb.mxu1 %v6245_v7  ;;  %7906 = vst [vmem:[#allocation34_spill] sm:$0xff] %v6257_v40  ;;  %v6260_v3 = vld [vmem:[#allocation16 + $0x48] sm:$0xff]  ;;  %v2224_v62 = vpop.f32.mrf.mxu2 }
 0xe5f   :  { %2243 = vmatmul.f32.vlgmr.msrb.gmra.mxu3 %v2144_v28  ;;  %2283 = vmatmul.f32.vlgmr.msra.gmra.mxu1 %v2144_v28  ;;  %7907 = vst [vmem:[#allocation63_spill] sm:$0xff] %v6260_v3  ;;  %v6263_v28 = vld [vmem:[#allocation13 + $0x120] sm:$0xff]  ;;  %v6366_v7 = vld [vmem:[#allocation13 + $0xe8] sm:$0xff] }
 0xe60   :  { %2356 = vmatpush.msra.mxu3 %v6248_v34  ;;  %2438 = vmatpush.msrb.mxu1 %v6251_v52  ;;  %7908 = vst [vmem:[#allocation36_spill] sm:$0xff] %v6263_v28  ;;  %v6266_v34 = vld [vmem:[#allocation16 + $0x40] sm:$0xff] }
 0xe61   :  { %7909 = vst [vmem:[#allocation78_spill] sm:$0xff] %v6266_v34  ;;  %v6269_v52 = vld [vmem:[#allocation13 + $0x100] sm:$0xff] }
 0xe62   :  { %2357 = vmatpush.msra.mxu3 %v6254_v30  ;;  %2439 = vmatpush.msrb.mxu1 %v6257_v40  ;;  %7910 = vst [vmem:[#allocation38_spill] sm:$0xff] %v6269_v52  ;;  %v6272_v30 = vld [vmem:[#allocation16 + $0x38] sm:$0xff] }
 0xe63   :  { %7911 = vst [vmem:[#allocation40_spill] sm:$0xff] %v6272_v30  ;;  %v6275_v40 = vld [vmem:[#allocation13 + $0xe0] sm:$0xff] }
 0xe64   :  { %2358 = vmatpush.msra.mxu3 %v6260_v3  ;;  %2440 = vmatpush.msrb.mxu1 %v6263_v28  ;;  %7912 = vst [vmem:[#allocation42_spill] sm:$0xff] %v6275_v40  ;;  %v6278_v3 = vld [vmem:[#allocation16 + $0x30] sm:$0xff]  ;;  %v6281_v28 = vld [vmem:[#allocation13 + $0xc0] sm:$0xff] }
 0xe65   :  { %7913 = vst [vmem:[#allocation44_spill] sm:$0xff] %v6278_v3 }
 0xe66   :  { %2359 = vmatpush.msra.mxu3 %v6266_v34  ;;  %2441 = vmatpush.msrb.mxu1 %v6269_v52  ;;  %7914 = vst [vmem:[#allocation46_spill] sm:$0xff] %v6281_v28  ;;  %v6284_v34 = vld [vmem:[#allocation16 + $0x28] sm:$0xff]  ;;  %v6287_v52 = vld [vmem:[#allocation13 + $0xa0] sm:$0xff] }
 0xe67   :  { %7915 = vst [vmem:[#allocation48_spill] sm:$0xff] %v6284_v34 }
 0xe68   :  { %2360 = vmatpush.msra.mxu3 %v6272_v30  ;;  %2442 = vmatpush.msrb.mxu1 %v6275_v40  ;;  %7916 = vst [vmem:[#allocation50_spill] sm:$0xff] %v6287_v52  ;;  %v6290_v30 = vld [vmem:[#allocation16 + $0x20] sm:$0xff] }
 0xe69   :  { %7917 = vst [vmem:[#allocation53_spill] sm:$0xff] %v6290_v30  ;;  %v6293_v40 = vld [vmem:[#allocation13 + $0x80] sm:$0xff] }
 0xe6a   :  { %2361 = vmatpush.msra.mxu3 %v6278_v3  ;;  %2443 = vmatpush.msrb.mxu1 %v6281_v28  ;;  %7918 = vst [vmem:[#allocation56_spill] sm:$0xff] %v6293_v40  ;;  %v6296_v3 = vld [vmem:[#allocation16 + $0x18] sm:$0xff] }
 0xe6b   :  { %7919 = vst [vmem:[#allocation59_spill] sm:$0xff] %v6296_v3  ;;  %v6299_v28 = vld [vmem:[#allocation13 + $0x60] sm:$0xff] }
 0xe6c   :  { %2362 = vmatpush.msra.mxu3 %v6284_v34  ;;  %2444 = vmatpush.msrb.mxu1 %v6287_v52  ;;  %7920 = vst [vmem:[#allocation64_spill] sm:$0xff] %v6299_v28  ;;  %v6302_v34 = vld [vmem:[#allocation16 + $0x10] sm:$0xff]  ;;  %v6305_v52 = vld [vmem:[#allocation13 + $0x40] sm:$0xff] }
 0xe6d   :  { %7921 = vst [vmem:[#allocation68_spill] sm:$0xff] %v6302_v34 }
 0xe6e   :  { %2363 = vmatpush.msra.mxu3 %v6290_v30  ;;  %2445 = vmatpush.msrb.mxu1 %v6293_v40  ;;  %7922 = vst [vmem:[#allocation72_spill] sm:$0xff] %v6305_v52  ;;  %v6308_v30 = vld [vmem:[#allocation16 + $0x8] sm:$0xff]  ;;  %v6311_v40 = vld [vmem:[#allocation13 + $0x20] sm:$0xff] }
 0xe6f   :  { %7923 = vst [vmem:[#allocation75_spill] sm:$0xff] %v6308_v30 }
 0xe70   :  { %2364 = vmatpush.msra.mxu3 %v6296_v3  ;;  %2446 = vmatpush.msrb.mxu1 %v6299_v28  ;;  %7924 = vst [vmem:[#allocation79_spill] sm:$0xff] %v6311_v40  ;;  %v6314_v3 = vld [vmem:[#allocation16] sm:$0xff] }
 0xe71   :  { %7925 = vst [vmem:[#allocation83_spill] sm:$0xff] %v6314_v3  ;;  %v6317_v28 = vld [vmem:[#allocation13] sm:$0xff] }
 0xe72   :  { %2365 = vmatpush.msra.mxu3 %v6302_v34  ;;  %2447 = vmatpush.msrb.mxu1 %v6305_v52  ;;  %7926 = vst [vmem:[#allocation87_spill] sm:$0xff] %v6317_v28  ;;  %v6320_v34 = vld [vmem:[#allocation13 + $0x1e8] sm:$0xff]  ;;  %v6323_v52 = vld [vmem:[#allocation13 + $0x1f0] sm:$0xff] }
 0xe73   :  { %7927 = vst [vmem:[#allocation91_spill] sm:$0xff] %v6320_v34 }
 0xe74   :  { %2366 = vmatpush.msra.mxu3 %v6308_v30  ;;  %2448 = vmatpush.msrb.mxu1 %v6311_v40  ;;  %7928 = vst [vmem:[#allocation95_spill] sm:$0xff] %v6323_v52  ;;  %v6326_v30 = vld [vmem:[#allocation13 + $0x1c8] sm:$0xff]  ;;  %v6329_v40 = vld [vmem:[#allocation13 + $0x1d0] sm:$0xff] }
 0xe75   :  { %7929 = vst [vmem:[#allocation99_spill] sm:$0xff] %v6326_v30 }
 0xe76   :  { %2367 = vmatpush.msra.mxu3 %v6314_v3  ;;  %2449 = vmatpush.msrb.mxu1 %v6317_v28  ;;  %7930 = vst [vmem:[#allocation103_spill] sm:$0xff] %v6329_v40  ;;  %v6332_v3 = vld [vmem:[#allocation13 + $0x1a8] sm:$0xff]  ;;  %v6335_v28 = vld [vmem:[#allocation13 + $0x1b0] sm:$0xff] }
 0xe77   :  { %7931 = vst [vmem:[#allocation107_spill] sm:$0xff] %v6332_v3 }
 0xe78   :  { %2474 = vmatpush.msrb.mxu3 %v6320_v34  ;;  %2514 = vmatpush.msra.mxu1 %v6323_v52  ;;  %7932 = vst [vmem:[#allocation111_spill] sm:$0xff] %v6335_v28  ;;  %v6338_v34 = vld [vmem:[#allocation13 + $0x188] sm:$0xff]  ;;  %v6341_v52 = vld [vmem:[#allocation13 + $0x190] sm:$0xff] }
 0xe79   :  { %7933 = vst [vmem:[#allocation115_spill] sm:$0xff] %v6338_v34 }
 0xe7a   :  { %2475 = vmatpush.msrb.mxu3 %v6326_v30  ;;  %2515 = vmatpush.msra.mxu1 %v6329_v40  ;;  %7934 = vst [vmem:[#allocation128_spill] sm:$0xff] %v6341_v52  ;;  %v6344_v30 = vld [vmem:[#allocation13 + $0x168] sm:$0xff]  ;;  %v6347_v40 = vld [vmem:[#allocation13 + $0x170] sm:$0xff] }
 0xe7b   :  { %7935 = vst [vmem:[#allocation27_spill] sm:$0xff] %v6344_v30 }
 0xe7c   :  { %2476 = vmatpush.msrb.mxu3 %v6332_v3  ;;  %2516 = vmatpush.msra.mxu1 %v6335_v28  ;;  %7936 = vst [vmem:[#allocation62_spill] sm:$0xff] %v6347_v40  ;;  %v6350_v3 = vld [vmem:[#allocation13 + $0x148] sm:$0xff]  ;;  %v6353_v28 = vld [vmem:[#allocation13 + $0x150] sm:$0xff] }
 0xe7d   :  { %7937 = vst [vmem:[#allocation66_spill] sm:$0xff] %v6350_v3 }
 0xe7e   :  { %2477 = vmatpush.msrb.mxu3 %v6338_v34  ;;  %2517 = vmatpush.msra.mxu1 %v6341_v52  ;;  %7938 = vst [vmem:[#allocation70_spill] sm:$0xff] %v6353_v28  ;;  %v6356_v34 = vld [vmem:[#allocation13 + $0x128] sm:$0xff]  ;;  %v6359_v52 = vld [vmem:[#allocation13 + $0x130] sm:$0xff] }
 0xe7f   :  { %7939 = vst [vmem:[#allocation88_spill] sm:$0xff] %v6356_v34 }
 0xe80   :  { %2478 = vmatpush.msrb.mxu3 %v6344_v30  ;;  %2518 = vmatpush.msra.mxu1 %v6347_v40  ;;  %7940 = vst [vmem:[#allocation92_spill] sm:$0xff] %v6359_v52  ;;  %v6362_v30 = vld [vmem:[#allocation13 + $0x108] sm:$0xff] }
 0xe81   :  { %7941 = vst [vmem:[#allocation96_spill] sm:$0xff] %v6362_v30  ;;  %v7942_v40 = vld [vmem:[#allocation37_spill] sm:$0xff] }
 0xe82   :  { %2479 = vmatpush.msrb.mxu3 %v6350_v3  ;;  %2519 = vmatpush.msra.mxu1 %v6353_v28  ;;  %7943 = vst [vmem:[#allocation100_spill] sm:$0xff] %v6366_v7  ;;  %v7944_v3 = vld [vmem:[#allocation73_spill] sm:$0xff] }
 0xe83   :  { %v6370_v28 = vld [vmem:[#allocation13 + $0xc8] sm:$0xff] }
 0xe84   :  { %2480 = vmatpush.msrb.mxu3 %v6356_v34  ;;  %2520 = vmatpush.msra.mxu1 %v6359_v52  ;;  %7945 = vst [vmem:[#allocation104_spill] sm:$0xff] %v6370_v28  ;;  %v7946_v34 = vld [vmem:[#allocation90_spill] sm:$0xff]  ;;  %v7948_v52 = vld [vmem:[#allocation41_spill] sm:$0xff] }
 0xe86   :  { %2481 = vmatpush.msrb.mxu3 %v6362_v30  ;;  %2521 = vmatpush.msra.mxu1 %v7942_v40  ;;  %v6378_v30 = vld [vmem:[#allocation13 + $0x88] sm:$0xff] }
 0xe87   :  { %7949 = vst [vmem:[#allocation112_spill] sm:$0xff] %v6378_v30  ;;  %v7950_v40 = vld [vmem:[#allocation77_spill] sm:$0xff] }
 0xe88   :  { %2482 = vmatpush.msrb.mxu3 %v6366_v7  ;;  %2522 = vmatpush.msra.mxu1 %v7944_v3  ;;  %v6382_v7 = vld [vmem:[#allocation13 + $0x68] sm:$0xff] }
 0xe89   :  { %7951 = vst [vmem:[#allocation116_spill] sm:$0xff] %v6382_v7  ;;  %v7952_v3 = vld [vmem:[#allocation94_spill] sm:$0xff] }
 0xe8a   :  { %2483 = vmatpush.msrb.mxu3 %v6370_v28  ;;  %2523 = vmatpush.msra.mxu1 %v7946_v34  ;;  %v6386_v28 = vld [vmem:[#allocation13 + $0x48] sm:$0xff]  ;;  %v7954_v34 = vld [vmem:[#allocation43_spill] sm:$0xff] }
 0xe8b   :  { %7953 = vst [vmem:[#allocation120_spill] sm:$0xff] %v6386_v28 }
 0xe8c   :  { %2484 = vmatpush.msrb.mxu3 %v6374_v6  ;;  %2524 = vmatpush.msra.mxu1 %v7948_v52  ;;  %v6390_v6 = vld [vmem:[#allocation13 + $0x28] sm:$0xff] }
 0xe8d   :  { %7955 = vst [vmem:[#allocation124_spill] sm:$0xff] %v6390_v6  ;;  %v7956_v52 = vld [vmem:[#allocation81_spill] sm:$0xff] }
 0xe8e   :  { %2485 = vmatpush.msrb.mxu3 %v6378_v30  ;;  %2525 = vmatpush.msra.mxu1 %v7950_v40  ;;  %v6394_v30 = vld [vmem:[#allocation13 + $0x8] sm:$0xff] }
 0xe8f   :  { %7957 = vst [vmem:[#allocation113_spill] sm:$0xff] %v6394_v30  ;;  %v7958_v40 = vld [vmem:[#allocation45_spill] sm:$0xff] }
 0xe90   :  { %2486 = vmatpush.msrb.mxu3 %v6382_v7  ;;  %2526 = vmatpush.msra.mxu1 %v7952_v3  ;;  %v7959_v3 = vld [vmem:[#allocation69_spill] sm:$0xff] }
 0xe92   :  { %2487 = vmatpush.msrb.mxu3 %v6386_v28  ;;  %2527 = vmatpush.msra.mxu1 %v7954_v34  ;;  %v7960_v34 = vld [vmem:[#allocation52_spill] sm:$0xff] }
 0xe94   :  { %2488 = vmatpush.msrb.mxu3 %v6390_v6  ;;  %2528 = vmatpush.msra.mxu1 %v7956_v52 }
 0xe96   :  { %2489 = vmatpush.msrb.mxu3 %v6394_v30  ;;  %2529 = vmatpush.msra.mxu1 %v7958_v40 }
 0xed4   :  { %v2204_v7 = vpop.f32.mrf.mxu1 }
 0xed5   :  { %v2205_v33 = vadd.f32 %v2204_v7, %v7959_v3 }
 0xed7   :  { %v2225_v4 = vadd.f32 %v2224_v62, %v2205_v33 }
 0xed9   :  { %v3017_v28 = vmul.f32 -1.442695, %v2225_v4 }
 0xeda   :  { %v2164_v0 = vpop.f32.mrf.mxu3 }
 0xedb   :  { %3104 = vpow2.f32 %v3017_v28  ;;  %v2165_v36 = vadd.f32 %v2164_v0, %v7960_v34  ;;  %v7961_v0 = vld [vmem:[#allocation35_spill] sm:$0xff] }
 0xedc   :  { %v2284_v4 = vpop.f32.mrf.mxu1 }
 0xedd   :  { %v2185_v6 = vadd.f32 %v2184_v47, %v2165_v36  ;;  %v2285_v34 = vadd.f32 %v2284_v4, %v7961_v0 }
 0xedf   :  { %v3016_v51 = vmul.f32 -1.442695, %v2185_v6 }
 0xee1   :  { %v3105_v52 = vpop.eup %3104  ;;  %3106 = vpow2.f32 %v3016_v51 }
 0xee2   :  { %v2329_v31 = vadd.f32 1.0, %v3105_v52  ;;  %v2244_v53 = vpop.f32.mrf.mxu3  ;;  %v2304_v52 = vpop.f32.mrf.mxu2 }
 0xee3   :  { %v2305_v18 = vadd.f32 %v2304_v52, %v2285_v34  ;;  %v6503_v52 = vld [vmem:[#allocation13 + $0x3d8] sm:$0xff] }
 0xee4   :  { %3108 = vrcp.f32 %v2329_v31  ;;  %v2341_v39 = vand.u32 2147483648, %v2329_v31  ;;  %vm2335_vm9 = vweird.f32 %v2329_v31  ;;  %v2339_v0 = vand.u32 2147483647, %v2329_v31 }
 0xee6   :  { %vm2340_vm11 = vcmp.eq.f32.partialorder %v2339_v0, 8.507059e+37 }
 0xee7   :  { %v3107_v30 = vpop.eup %3106 }
 0xee8   :  { %v2310_v24 = vadd.f32 1.0, %v3107_v30  ;;  %v2245_v30 = vadd.f32 %v2244_v53, %v7553_v32 }
 0xeea   :  { %3110 = vrcp.f32 %v2310_v24  ;;  %v3109_v40 = vpop.eup %3108  ;;  %v2322_v28 = vand.u32 2147483648, %v2310_v24  ;;  %v2320_v36 = vand.u32 2147483647, %v2310_v24  ;;  %vm2316_vm5 = vweird.f32 %v2310_v24 }
 0xeeb   :  { %v2331_v38 = vmul.f32 %v3109_v40, %v2329_v31  ;;  %vm2336_vm8 = vweird.f32 %v3109_v40 }
 0xeec   :  { %v2323_v29 = vor.u32 1.1754944e-38, %v2322_v28  ;;  %vm2321_vm7 = vcmp.eq.f32.partialorder %v2320_v36, 8.507059e+37  ;;  %vm2337_vm10 = vmor %vm2335_vm9, %vm2336_vm8 }
 0xeed   :  { %v2332_v62 = vsub.f32 1.0, %v2331_v38  ;;  %v2264_v38 = vpop.f32.mrf.mxu0 }
 0xeef   :  { %v2333_v51 = vmul.f32 %v3109_v40, %v2332_v62 }
 0xef0   :  { %v3111_v7 = vpop.eup %3110 }
 0xef1   :  { %v2312_v3 = vmul.f32 %v3111_v7, %v2310_v24  ;;  %vm2317_vm4 = vweird.f32 %v3111_v7  ;;  %v2334_v11 = vadd.f32 %v3109_v40, %v2333_v51 }
 0xef2   :  { %vm2318_vm6 = vmor %vm2316_vm5, %vm2317_vm4 }
 0xef3   :  { %v2313_v33 = vsub.f32 1.0, %v2312_v3  ;;  %v2338_v24 = vsel %vm2337_vm10, %v3109_v40, %v2334_v11  ;;  %v6415_v11 = vld [vmem:[#allocation13 + $0x1b8] sm:$0xff] }
 0xef5   :  { %v2314_v47 = vmul.f32 %v3111_v7, %v2313_v33  ;;  %v2265_v33 = vadd.f32 %v2264_v38, %v2245_v30  ;;  %v6500_v30 = vld [vmem:[#allocation13 + $0x3f8] sm:$0xff] }
 0xef6   :  { %v6506_v38 = vld [vmem:[#allocation13 + $0x3b8] sm:$0xff] }
 0xef7   :  { %v2315_v6 = vadd.f32 %v3111_v7, %v2314_v47  ;;  %v2342_v47 = vor.u32 1.1754944e-38, %v2341_v39  ;;  %v6411_v39 = vld [vmem:[#allocation13 + $0x1d8] sm:$0xff] }
 0xef9   :  { %v2319_v16 = vsel %vm2318_vm6, %v3111_v7, %v2315_v6  ;;  %v2343_v53 = vsel %vm2340_vm11, %v2342_v47, %v2338_v24  ;;  %v6522_v24 = vld [vmem:[#allocation13 + $0x318] sm:$0xff] }
 0xefa   :  { %v2324_v3 = vsel %vm2321_vm7, %v2323_v29, %v2319_v16  ;;  %v2348_v28 = vsub.f32 1.0, %v2343_v53  ;;  %v2350_v36 = vmul.f32 %v2343_v53, %v6007_v21  ;;  %v6407_v16 = vld [vmem:[#allocation13 + $0x1f8] sm:$0xff] }
 0xefb   :  { %v2345_v4 = vmul.f32 %v2324_v3, %v2305_v18  ;;  %v6419_v21 = vld [vmem:[#allocation13 + $0x198] sm:$0xff] }
 0xefc   :  { %v6440_v18 = vld [vmem:[#allocation13 + $0xf8] sm:$0xff] }
 0xefd   :  { %v2346_v62 = vadd.f32 %v2345_v4, %v2265_v33  ;;  %v6509_v3 = vld [vmem:[#allocation13 + $0x398] sm:$0xff] }
 0xefe   :  { %v6513_v4 = vld [vmem:[#allocation13 + $0x378] sm:$0xff] }
 0xeff   :  { %3112 = vtanh.f32 %v2346_v62  ;;  %v6516_v33 = vld [vmem:[#allocation13 + $0x358] sm:$0xff] }
 0xf00   :  { %v6519_v62 = vld [vmem:[#allocation13 + $0x338] sm:$0xff] }
 0xf01   :  { %v6525_v47 = vld [vmem:[#allocation13 + $0x2f8] sm:$0xff] }
 0xf02   :  { %v6528_v53 = vld [vmem:[#allocation13 + $0x2d8] sm:$0xff] }
 0xf05   :  { %v3113_v34 = vpop.eup %3112 }
 0xf06   :  { %v2349_v7 = vmul.f32 %v3113_v34, %v2348_v28  ;;  %v6531_v28 = vld [vmem:[#allocation13 + $0x2b8] sm:$0xff] }
 0xf07   :  { %v6534_v34 = vld [vmem:[#allocation13 + $0x298] sm:$0xff] }
 0xf08   :  { %v6403_v6 = vadd.f32 %v2350_v36, %v2349_v7  ;;  %v6537_v7 = vld [vmem:[#allocation13 + $0x278] sm:$0xff] }
 0xf09   :  { %v6540_v36 = vld [vmem:[#allocation13 + $0x258] sm:$0xff] }
 0xf0a   :  { %2368 = vmatmul.f32.vlgmr.msra.gmra.mxu3 %v6403_v6  ;;  %2470 = vmatmul.f32.vlgmr.msrb.gmra.mxu2 %v6403_v6 }
 0xf0b   :  { %2554 = vmatpush.msra.mxu3 %v6407_v16  ;;  %2701 = vmatpush.msrb.mxu2 %v6012_v37  ;;  %v6424_v37 = vld [vmem:[#allocation13 + $0x178] sm:$0xff] }
 0xf0d   :  { %2555 = vmatpush.msra.mxu3 %v6411_v39  ;;  %2702 = vmatpush.msrb.mxu2 %v6016_v43  ;;  %v6428_v43 = vld [vmem:[#allocation13 + $0x158] sm:$0xff] }
 0xf0f   :  { %2556 = vmatpush.msra.mxu3 %v6415_v11  ;;  %2703 = vmatpush.msrb.mxu2 %v6020_v55  ;;  %v6432_v55 = vld [vmem:[#allocation13 + $0x138] sm:$0xff] }
 0xf11   :  { %2557 = vmatpush.msra.mxu3 %v6419_v21  ;;  %2704 = vmatpush.msrb.mxu2 %v6024_v56  ;;  %v6436_v56 = vld [vmem:[#allocation13 + $0x118] sm:$0xff] }
 0xf12   :  { %2550 = vmatmul.f32.vlgmr.msra.gmra.mxu2 %v6403_v6 }
 0xf13   :  { %2558 = vmatpush.msra.mxu3 %v6424_v37  ;;  %2705 = vmatpush.msrb.mxu2 %v6029_v54  ;;  %v6444_v54 = vld [vmem:[#allocation13 + $0xd8] sm:$0xff] }
 0xf15   :  { %2559 = vmatpush.msra.mxu3 %v6428_v43  ;;  %2706 = vmatpush.msrb.mxu2 %v6033_v1  ;;  %v6448_v1 = vld [vmem:[#allocation13 + $0xb8] sm:$0xff] }
 0xf17   :  { %2560 = vmatpush.msra.mxu3 %v6432_v55  ;;  %2707 = vmatpush.msrb.mxu2 %v6037_v17  ;;  %v6452_v17 = vld [vmem:[#allocation13 + $0x98] sm:$0xff] }
 0xf19   :  { %2561 = vmatpush.msra.mxu3 %v6436_v56  ;;  %2708 = vmatpush.msrb.mxu2 %v6041_v58  ;;  %v6456_v58 = vld [vmem:[#allocation13 + $0x78] sm:$0xff] }
 0xf1b   :  { %2562 = vmatpush.msra.mxu3 %v6440_v18  ;;  %2709 = vmatpush.msrb.mxu2 %v6045_v48  ;;  %v6460_v48 = vld [vmem:[#allocation13 + $0x58] sm:$0xff] }
 0xf1d   :  { %2563 = vmatpush.msra.mxu3 %v6444_v54  ;;  %2710 = vmatpush.msrb.mxu2 %v6049_v20  ;;  %v6464_v20 = vld [vmem:[#allocation13 + $0x38] sm:$0xff] }
 0xf1f   :  { %2564 = vmatpush.msra.mxu3 %v6448_v1  ;;  %2711 = vmatpush.msrb.mxu2 %v6053_v14  ;;  %v6468_v14 = vld [vmem:[#allocation13 + $0x18] sm:$0xff] }
 0xf21   :  { %2565 = vmatpush.msra.mxu3 %v6452_v17  ;;  %2712 = vmatpush.msrb.mxu2 %v6057_v15  ;;  %v3589_v15 = vld [vmem:[#allocation13 + $0x288] sm:$0xff] }
 0xf23   :  { %2566 = vmatpush.msra.mxu3 %v6456_v58  ;;  %2713 = vmatpush.msrb.mxu2 %v6061_v5  ;;  %v3590_v5 = vld [vmem:[#allocation13 + $0x268] sm:$0xff] }
 0xf25   :  { %2567 = vmatpush.msra.mxu3 %v6460_v48  ;;  %2714 = vmatpush.msrb.mxu2 %v6065_v19  ;;  %v3591_v19 = vld [vmem:[#allocation13 + $0x248] sm:$0xff] }
 0xf27   :  { %2568 = vmatpush.msra.mxu3 %v6464_v20  ;;  %2715 = vmatpush.msrb.mxu2 %v6069_v60  ;;  %v3592_v60 = vld [vmem:[#allocation13 + $0x228] sm:$0xff] }
 0xf29   :  { %2569 = vmatpush.msra.mxu3 %v6468_v14  ;;  %2716 = vmatpush.msrb.mxu2 %v6073_v8  ;;  %v3593_v8 = vld [vmem:[#allocation13 + $0x208] sm:$0xff] }
 0xf2b   :  { %2781 = vmatpush.msra.mxu2 %v6076_v10 }
 0xf2d   :  { %2782 = vmatpush.msra.mxu2 %v6079_v2 }
 0xf2f   :  { %2783 = vmatpush.msra.mxu2 %v6082_v9 }
 0xf31   :  { %2784 = vmatpush.msra.mxu2 %v6085_v46 }
 0xf33   :  { %2785 = vmatpush.msra.mxu2 %v6088_v22 }
 0xf35   :  { %2786 = vmatpush.msra.mxu2 %v6091_v59 }
 0xf37   :  { %2787 = vmatpush.msra.mxu2 %v6094_v23  ;;  %v2403_v23 = vstv %s2402_s26 }
 0xf39   :  { %2788 = vmatpush.msra.mxu2 %v6097_v26 }
 0xf3b   :  { %2789 = vmatpush.msra.mxu2 %v6100_v27 }
 0xf3d   :  { %2790 = vmatpush.msra.mxu2 %v6103_v25  ;;  %v2405_v25 = vstv %s2401_s27 }
 0xf3f   :  { %2791 = vmatpush.msra.mxu2 %v6106_v44 }
 0xf41   :  { %2792 = vmatpush.msra.mxu2 %v3589_v15  ;;  %v6543_v15 = vld [vmem:[#allocation13 + $0x238] sm:$0xff] }
 0xf43   :  { %2793 = vmatpush.msra.mxu2 %v3590_v5  ;;  %v6546_v5 = vld [vmem:[#allocation13 + $0x218] sm:$0xff] }
 0xf44   :  { %7964 = vst [vmem:[#allocation125_spill] sm:$0xff] %v6546_v5 }
 0xf45   :  { %2794 = vmatpush.msra.mxu2 %v3591_v19  ;;  %v7965_v19 = vld [vmem:[#allocation49_spill] sm:$0xff] }
 0xf47   :  { %2795 = vmatpush.msra.mxu2 %v3592_v60  ;;  %v7966_v60 = vld [vmem:[#allocation93_spill] sm:$0xff] }
 0xf49   :  { %2796 = vmatpush.msra.mxu2 %v3593_v8  ;;  %v7967_v8 = vld [vmem:[#allocation110_spill] sm:$0xff] }
 0xf8d   :  { %v2369_v10 = vpop.f32.mrf.mxu3 }
 0xf8e   :  { %v6484_v2 = vadd.f32 %v6117_v41, %v2369_v10  ;;  %v7968_v10 = vld [vmem:[#allocation51_spill] sm:$0xff] }
 0xf90   :  { %7962 = vst [vmem:[#allocation117_spill] sm:$0xff] %v6484_v2  ;;  %v2372_v9 = vsel %vm938_vm1, %v6484_v2, -inf }
 0xf91   :  { %2373 = vmax.xlane.f32.xlu1 %v2372_v9  ;;  %v7969_v9 = vld [vmem:[#allocation97_spill] sm:$0xff] }
0x1004   :  { %v6488_v46 = vpop.xlane.xlu1 %2373 }
0x1005   :  { %7963 = vst [vmem:[#allocation121_spill] sm:$0xff] %v6488_v46  ;;  %vm2391_vm12 = vcmp.eq.f32.partialorder %v6484_v2, %v6488_v46  ;;  %v8012_v2 = vld [vmem:[#allocation95_spill] sm:$0xff] }
0x1006   :  { %v2392_v22 = vsel %vm2391_vm12, %v7568_v63, -inf  ;;  %v8014_v46 = vld [vmem:[#allocation103_spill] sm:$0xff] }
0x1007   :  { %v2393_v59 = vsel %vm938_vm1, %v2392_v22, -inf  ;;  %v7970_v22 = vld [vmem:[#allocation114_spill] sm:$0xff] }
0x1008   :  { %2394 = vmax.xlane.f32.xlu2 %v2393_v59  ;;  %v7976_v59 = vld [vmem:[#allocation118_spill] sm:$0xff] }
0x107b   :  { %v2395_v26 = vpop.xlane.xlu2 %2394 }
0x107c   :  { %v2396_v27 = vsub.f32 0.0, %v2395_v26  ;;  %v7978_v26 = vld [vmem:[#allocation57_spill] sm:$0xff] }
0x107e   :  { %v2404_v44 = vmul.f32 %v2403_v23, %v2396_v27  ;;  %vm2407_vm13 = vcmp.eq.f32.partialorder %v2396_v27, 1.0  ;;  %v3610_v27 = vld [vmem:[#allocation13 + $0x390] sm:$0xff] }
0x107f   :  { %v2408_v29 = vsel %vm2407_vm13, 1.0, %v7481_v49 }
0x1080   :  { %v2406_v31 = vadd.f32 %v2405_v25, %v2404_v44  ;;  %v2409_v40 = vmul.f32 %v2408_v29, %v2403_v23  ;;  %v7977_v23 = vld [vmem:[#allocation65_spill] sm:$0xff]  ;;  %v3611_v25 = vld [vmem:[#allocation13 + $0x370] sm:$0xff] }
0x1081   :  { %v3612_v44 = vld [vmem:[#allocation13 + $0x350] sm:$0xff] }
0x1082   :  { %v2410_v0 = vsub.f32 1.0, %v2409_v40  ;;  %vm2412_vm14 = vcmp.eq.f32.partialorder %v7478_v57, %v2406_v31  ;;  %v3613_v29 = vld [vmem:[#allocation13 + $0x330] sm:$0xff] }
0x1083   :  { %3020 = vmatmul.msk.f32.vlgmr.msrb.gmra.mxu0 %vm2412_vm14, %v7483_v61  ;;  %v3614_v31 = vld [vmem:[#allocation13 + $0x310] sm:$0xff] }
0x1084   :  { %v6498_v51 = vmul.f32 %v2410_v0, %v6134_v35  ;;  %2574 = vmatpush.msrb.mxu0 %v6500_v30  ;;  %v3615_v40 = vld [vmem:[#allocation13 + $0x2f0] sm:$0xff] }
0x1085   :  { %v3616_v0 = vld [vmem:[#allocation13 + $0x2d0] sm:$0xff] }
0x1086   :  { %2575 = vmatpush.msrb.mxu0 %v6503_v52  ;;  %v8010_v35 = vld [vmem:[#allocation87_spill] sm:$0xff] }
0x1088   :  { %2576 = vmatpush.msrb.mxu0 %v6506_v38 }
0x108a   :  { %2577 = vmatpush.msrb.mxu0 %v6509_v3 }
0x108b   :  { %2510 = vmatmul.f32.vlgmr.msra.gmra.mxu0 %v6403_v6 }
0x108c   :  { %2578 = vmatpush.msrb.mxu0 %v6513_v4 }
0x108e   :  { %2579 = vmatpush.msrb.mxu0 %v6516_v33 }
0x1090   :  { %2580 = vmatpush.msrb.mxu0 %v6519_v62 }
0x1092   :  { %2581 = vmatpush.msrb.mxu0 %v6522_v24 }
0x1094   :  { %2582 = vmatpush.msrb.mxu0 %v6525_v47 }
0x1096   :  { %2583 = vmatpush.msrb.mxu0 %v6528_v53 }
0x1098   :  { %2584 = vmatpush.msrb.mxu0 %v6531_v28 }
0x109a   :  { %2585 = vmatpush.msrb.mxu0 %v6534_v34 }
0x109c   :  { %2586 = vmatpush.msrb.mxu0 %v6537_v7 }
0x109e   :  { %2587 = vmatpush.msrb.mxu0 %v6540_v36 }
0x10a0   :  { %2588 = vmatpush.msrb.mxu0 %v6543_v15 }
0x10a2   :  { %2589 = vmatpush.msrb.mxu0 %v6546_v5 }
0x10a3   :  { %2590 = vmatmul.f32.vlgmr.msrb.gmra.mxu0 %v6403_v6 }
0x10a4   :  { %2741 = vmatpush.msra.mxu0 %v6154_v50  ;;  %v7971_v50 = vld [vmem:[#allocation28_spill] sm:$0xff] }
0x10a6   :  { %2742 = vmatpush.msra.mxu0 %v6157_v42  ;;  %v7972_v42 = vld [vmem:[#allocation54_spill] sm:$0xff] }
0x10a8   :  { %2743 = vmatpush.msra.mxu0 %v6160_v45  ;;  %v7973_v45 = vld [vmem:[#allocation61_spill] sm:$0xff] }
0x10aa   :  { %2744 = vmatpush.msra.mxu0 %v6163_v13  ;;  %v7974_v13 = vld [vmem:[#allocation101_spill] sm:$0xff] }
0x10ac   :  { %2745 = vmatpush.msra.mxu0 %v6166_v12  ;;  %v7975_v12 = vld [vmem:[#allocation29_spill] sm:$0xff] }
0x10ae   :  { %2746 = vmatpush.msra.mxu0 %v7965_v19  ;;  %v3617_v19 = vld [vmem:[#allocation13 + $0x2b0] sm:$0xff] }
0x10b0   :  { %2747 = vmatpush.msra.mxu0 %v7966_v60  ;;  %v3618_v60 = vld [vmem:[#allocation13 + $0x290] sm:$0xff] }
0x10b2   :  { %2748 = vmatpush.msra.mxu0 %v7967_v8  ;;  %v3619_v8 = vld [vmem:[#allocation13 + $0x270] sm:$0xff] }
0x10b4   :  { %2749 = vmatpush.msra.mxu0 %v7968_v10  ;;  %v3620_v10 = vld [vmem:[#allocation13 + $0x250] sm:$0xff] }
0x10b6   :  { %2750 = vmatpush.msra.mxu0 %v7969_v9  ;;  %v3621_v9 = vld [vmem:[#allocation13 + $0x230] sm:$0xff] }
0x10b8   :  { %2751 = vmatpush.msra.mxu0 %v7970_v22  ;;  %v3622_v22 = vld [vmem:[#allocation13 + $0x210] sm:$0xff] }
0x10ba   :  { %2752 = vmatpush.msra.mxu0 %v7971_v50 }
0x10bc   :  { %2753 = vmatpush.msra.mxu0 %v7972_v42  ;;  %v7979_v42 = vld [vmem:[#allocation30_spill] sm:$0xff] }
0x10be   :  { %2754 = vmatpush.msra.mxu0 %v7973_v45  ;;  %v7980_v45 = vld [vmem:[#allocation105_spill] sm:$0xff] }
0x10c0   :  { %2755 = vmatpush.msra.mxu0 %v7974_v13  ;;  %v7981_v13 = vld [vmem:[#allocation55_spill] sm:$0xff] }
0x10c2   :  { %2756 = vmatpush.msra.mxu0 %v7975_v12  ;;  %v7982_v12 = vld [vmem:[#allocation122_spill] sm:$0xff] }
0x10c4   :  { %2821 = vmatpush.msrb.mxu0 %v7976_v59  ;;  %v7983_v59 = vld [vmem:[#allocation31_spill] sm:$0xff] }
0x10c6   :  { %2822 = vmatpush.msrb.mxu0 %v7977_v23  ;;  %v7984_v23 = vld [vmem:[#allocation60_spill] sm:$0xff] }
0x10c8   :  { %2823 = vmatpush.msrb.mxu0 %v7978_v26  ;;  %v7985_v26 = vld [vmem:[#allocation58_spill] sm:$0xff] }
0x10ca   :  { %2824 = vmatpush.msrb.mxu0 %v3610_v27  ;;  %v7986_v27 = vld [vmem:[#allocation109_spill] sm:$0xff] }
0x10cc   :  { %2825 = vmatpush.msrb.mxu0 %v3611_v25  ;;  %v7987_v25 = vld [vmem:[#allocation74_spill] sm:$0xff] }
0x10ce   :  { %2826 = vmatpush.msrb.mxu0 %v3612_v44  ;;  %v7988_v44 = vld [vmem:[#allocation32_spill] sm:$0xff] }
0x10d0   :  { %2827 = vmatpush.msrb.mxu0 %v3613_v29  ;;  %v7989_v29 = vld [vmem:[#allocation33_spill] sm:$0xff] }
0x10d2   :  { %2828 = vmatpush.msrb.mxu0 %v3614_v31  ;;  %v7990_v31 = vld [vmem:[#allocation34_spill] sm:$0xff] }
0x10d4   :  { %2829 = vmatpush.msrb.mxu0 %v3615_v40  ;;  %v7991_v40 = vld [vmem:[#allocation63_spill] sm:$0xff] }
0x10d6   :  { %2830 = vmatpush.msrb.mxu0 %v3616_v0  ;;  %v7992_v0 = vld [vmem:[#allocation36_spill] sm:$0xff] }
0x10d8   :  { %2831 = vmatpush.msrb.mxu0 %v3617_v19  ;;  %v7993_v19 = vld [vmem:[#allocation78_spill] sm:$0xff] }
0x10da   :  { %2832 = vmatpush.msrb.mxu0 %v3618_v60  ;;  %v7994_v60 = vld [vmem:[#allocation38_spill] sm:$0xff] }
0x10dc   :  { %2833 = vmatpush.msrb.mxu0 %v3619_v8  ;;  %v7995_v8 = vld [vmem:[#allocation40_spill] sm:$0xff] }
0x10de   :  { %2834 = vmatpush.msrb.mxu0 %v3620_v10  ;;  %v7996_v10 = vld [vmem:[#allocation42_spill] sm:$0xff] }
0x10e0   :  { %2835 = vmatpush.msrb.mxu0 %v3621_v9  ;;  %v7997_v9 = vld [vmem:[#allocation44_spill] sm:$0xff] }
0x10e2   :  { %2836 = vmatpush.msrb.mxu0 %v3622_v22  ;;  %v7998_v22 = vld [vmem:[#allocation46_spill] sm:$0xff] }
0x1100   :  { %v2431_v50 = vpop.f32.mrf.mxu0 }
0x1101   :  { %2450 = vmatmul.f32.vlgmr.msrb.gmra.mxu1 %v2431_v50  ;;  %2490 = vmatmul.f32.vlgmr.msrb.gmra.mxu3 %v2431_v50 }
0x1102   :  { %2639 = vmatpush.msrb.mxu1 %v7979_v42  ;;  %2721 = vmatpush.msrb.mxu3 %v7980_v45  ;;  %v8000_v45 = vld [vmem:[#allocation50_spill] sm:$0xff] }
0x1104   :  { %2640 = vmatpush.msrb.mxu1 %v7981_v13  ;;  %2722 = vmatpush.msrb.mxu3 %v7982_v12  ;;  %v8001_v12 = vld [vmem:[#allocation53_spill] sm:$0xff] }
0x1106   :  { %2641 = vmatpush.msrb.mxu1 %v7983_v59  ;;  %2723 = vmatpush.msrb.mxu3 %v7984_v23  ;;  %v8002_v23 = vld [vmem:[#allocation56_spill] sm:$0xff] }
0x1108   :  { %2642 = vmatpush.msrb.mxu1 %v7985_v26  ;;  %2724 = vmatpush.msrb.mxu3 %v7986_v27  ;;  %v8003_v27 = vld [vmem:[#allocation59_spill] sm:$0xff] }
0x1109   :  { %2530 = vmatmul.f32.vlgmr.msra.gmra.mxu1 %v2431_v50  ;;  %2570 = vmatmul.f32.vlgmr.msra.gmra.mxu3 %v2431_v50  ;;  %v7999_v50 = vld [vmem:[#allocation48_spill] sm:$0xff] }
0x110a   :  { %2643 = vmatpush.msrb.mxu1 %v7987_v25  ;;  %2725 = vmatpush.msrb.mxu3 %v7988_v44  ;;  %v8004_v44 = vld [vmem:[#allocation64_spill] sm:$0xff] }
0x110c   :  { %2644 = vmatpush.msrb.mxu1 %v7989_v29  ;;  %2726 = vmatpush.msrb.mxu3 %v7990_v31  ;;  %v8005_v31 = vld [vmem:[#allocation68_spill] sm:$0xff] }
0x110e   :  { %2645 = vmatpush.msrb.mxu1 %v7991_v40  ;;  %2727 = vmatpush.msrb.mxu3 %v7992_v0  ;;  %v8006_v0 = vld [vmem:[#allocation72_spill] sm:$0xff] }
0x1110   :  { %2646 = vmatpush.msrb.mxu1 %v7993_v19  ;;  %2728 = vmatpush.msrb.mxu3 %v7994_v60  ;;  %v8007_v60 = vld [vmem:[#allocation75_spill] sm:$0xff] }
0x1112   :  { %2647 = vmatpush.msrb.mxu1 %v7995_v8  ;;  %2729 = vmatpush.msrb.mxu3 %v7996_v10  ;;  %v8008_v10 = vld [vmem:[#allocation79_spill] sm:$0xff] }
0x1114   :  { %2648 = vmatpush.msrb.mxu1 %v7997_v9  ;;  %2730 = vmatpush.msrb.mxu3 %v7998_v22  ;;  %v8009_v22 = vld [vmem:[#allocation83_spill] sm:$0xff]  ;;  %v2511_v9 = vpop.f32.mrf.mxu0 }
0x1116   :  { %2649 = vmatpush.msrb.mxu1 %v7999_v50  ;;  %2731 = vmatpush.msrb.mxu3 %v8000_v45  ;;  %v8011_v45 = vld [vmem:[#allocation91_spill] sm:$0xff] }
0x1118   :  { %2650 = vmatpush.msrb.mxu1 %v8001_v12  ;;  %2732 = vmatpush.msrb.mxu3 %v8002_v23  ;;  %v8013_v23 = vld [vmem:[#allocation99_spill] sm:$0xff] }
0x111a   :  { %2651 = vmatpush.msrb.mxu1 %v8003_v27  ;;  %2733 = vmatpush.msrb.mxu3 %v8004_v44  ;;  %v8015_v44 = vld [vmem:[#allocation107_spill] sm:$0xff] }
0x111c   :  { %2652 = vmatpush.msrb.mxu1 %v8005_v31  ;;  %2734 = vmatpush.msrb.mxu3 %v8006_v0  ;;  %v8016_v31 = vld [vmem:[#allocation111_spill] sm:$0xff] }
0x111d   :  { %v8017_v0 = vld [vmem:[#allocation115_spill] sm:$0xff] }
0x111e   :  { %2653 = vmatpush.msrb.mxu1 %v8007_v60  ;;  %2735 = vmatpush.msrb.mxu3 %v8008_v10  ;;  %v8018_v60 = vld [vmem:[#allocation128_spill] sm:$0xff]  ;;  %v8019_v10 = vld [vmem:[#allocation27_spill] sm:$0xff] }
0x1120   :  { %2654 = vmatpush.msrb.mxu1 %v8009_v22  ;;  %2736 = vmatpush.msrb.mxu3 %v8010_v35  ;;  %v8020_v22 = vld [vmem:[#allocation62_spill] sm:$0xff] }
0x1121   :  { %v8021_v35 = vld [vmem:[#allocation66_spill] sm:$0xff] }
0x1122   :  { %2761 = vmatpush.msra.mxu1 %v8011_v45  ;;  %2801 = vmatpush.msra.mxu3 %v8012_v2  ;;  %v8022_v45 = vld [vmem:[#allocation70_spill] sm:$0xff]  ;;  %v8023_v2 = vld [vmem:[#allocation88_spill] sm:$0xff] }
0x1124   :  { %2762 = vmatpush.msra.mxu1 %v8013_v23  ;;  %2802 = vmatpush.msra.mxu3 %v8014_v46  ;;  %v8024_v23 = vld [vmem:[#allocation92_spill] sm:$0xff] }
0x1125   :  { %v8025_v46 = vld [vmem:[#allocation96_spill] sm:$0xff] }
0x1126   :  { %2763 = vmatpush.msra.mxu1 %v8015_v44  ;;  %2803 = vmatpush.msra.mxu3 %v8016_v31  ;;  %v3623_v44 = vld [vmem:[#allocation13 + $0x110] sm:$0xff]  ;;  %v8026_v31 = vld [vmem:[#allocation100_spill] sm:$0xff] }
0x1128   :  { %2764 = vmatpush.msra.mxu1 %v8017_v0  ;;  %2804 = vmatpush.msra.mxu3 %v8018_v60  ;;  %v3624_v0 = vld [vmem:[#allocation13 + $0xf0] sm:$0xff]  ;;  %v8027_v60 = vld [vmem:[#allocation104_spill] sm:$0xff] }
0x112a   :  { %2765 = vmatpush.msra.mxu1 %v8019_v10  ;;  %2805 = vmatpush.msra.mxu3 %v8020_v22  ;;  %v3625_v10 = vld [vmem:[#allocation13 + $0xd0] sm:$0xff]  ;;  %v8028_v22 = vld [vmem:[#allocation108_spill] sm:$0xff] }
0x112c   :  { %2766 = vmatpush.msra.mxu1 %v8021_v35  ;;  %2806 = vmatpush.msra.mxu3 %v8022_v45  ;;  %v3626_v35 = vld [vmem:[#allocation13 + $0xb0] sm:$0xff]  ;;  %v8029_v45 = vld [vmem:[#allocation112_spill] sm:$0xff] }
0x112e   :  { %2767 = vmatpush.msra.mxu1 %v8023_v2  ;;  %2807 = vmatpush.msra.mxu3 %v8024_v23  ;;  %v3627_v2 = vld [vmem:[#allocation13 + $0x90] sm:$0xff]  ;;  %v8030_v23 = vld [vmem:[#allocation116_spill] sm:$0xff] }
0x1130   :  { %2768 = vmatpush.msra.mxu1 %v8025_v46  ;;  %2808 = vmatpush.msra.mxu3 %v3623_v44  ;;  %v3628_v46 = vld [vmem:[#allocation13 + $0x70] sm:$0xff]  ;;  %v8031_v44 = vld [vmem:[#allocation120_spill] sm:$0xff] }
0x1132   :  { %2769 = vmatpush.msra.mxu1 %v8026_v31  ;;  %2809 = vmatpush.msra.mxu3 %v3624_v0  ;;  %v3629_v31 = vld [vmem:[#allocation13 + $0x50] sm:$0xff]  ;;  %v8032_v0 = vld [vmem:[#allocation124_spill] sm:$0xff] }
0x1134   :  { %2770 = vmatpush.msra.mxu1 %v8027_v60  ;;  %2810 = vmatpush.msra.mxu3 %v3625_v10  ;;  %v3630_v60 = vld [vmem:[#allocation13 + $0x30] sm:$0xff]  ;;  %v8033_v10 = vld [vmem:[#allocation113_spill] sm:$0xff] }
0x1136   :  { %2771 = vmatpush.msra.mxu1 %v8028_v22  ;;  %2811 = vmatpush.msra.mxu3 %v3626_v35  ;;  %v3631_v22 = vld [vmem:[#allocation13 + $0x10] sm:$0xff] }
0x1138   :  { %2772 = vmatpush.msra.mxu1 %v8029_v45  ;;  %2812 = vmatpush.msra.mxu3 %v3627_v2  ;;  %v8034_v45 = vld [vmem:[#allocation52_spill] sm:$0xff]  ;;  %v2471_v2 = vpop.f32.mrf.mxu2 }
0x113a   :  { %2773 = vmatpush.msra.mxu1 %v8030_v23  ;;  %2813 = vmatpush.msra.mxu3 %v3628_v46  ;;  %v8035_v46 = vld [vmem:[#allocation69_spill] sm:$0xff] }
0x113c   :  { %2774 = vmatpush.msra.mxu1 %v8031_v44  ;;  %2814 = vmatpush.msra.mxu3 %v3629_v31 }
0x113e   :  { %2775 = vmatpush.msra.mxu1 %v8032_v0  ;;  %2815 = vmatpush.msra.mxu3 %v3630_v60 }
0x1140   :  { %2776 = vmatpush.msra.mxu1 %v8033_v10  ;;  %2816 = vmatpush.msra.mxu3 %v3631_v22 }
0x117e   :  { %v2451_v35 = vpop.f32.mrf.mxu1 }
0x117f   :  { %v2452_v27 = vadd.f32 %v2451_v35, %v8034_v45 }
0x1181   :  { %v2472_v12 = vadd.f32 %v2471_v2, %v2452_v27  ;;  %v8036_v2 = vld [vmem:[#allocation35_spill] sm:$0xff] }
0x1183   :  { %v3021_v23 = vmul.f32 -1.442695, %v2472_v12 }
0x1184   :  { %v2491_v50 = vpop.f32.mrf.mxu3 }
0x1185   :  { %3114 = vpow2.f32 %v3021_v23  ;;  %v2492_v44 = vadd.f32 %v2491_v50, %v8035_v46  ;;  %v2551_v46 = vpop.f32.mrf.mxu2 }
0x1186   :  { %v2531_v45 = vpop.f32.mrf.mxu1 }
0x1187   :  { %v2512_v31 = vadd.f32 %v2511_v9, %v2492_v44  ;;  %v2532_v44 = vadd.f32 %v2531_v45, %v7553_v32 }
0x1189   :  { %v3022_v8 = vmul.f32 -1.442695, %v2512_v31 }
0x118b   :  { %v3115_v0 = vpop.eup %3114  ;;  %3116 = vpow2.f32 %v3022_v8 }
0x118c   :  { %v2597_v60 = vadd.f32 1.0, %v3115_v0  ;;  %v2571_v35 = vpop.f32.mrf.mxu3  ;;  %v2591_v0 = vpop.f32.mrf.mxu0 }
0x118d   :  { %v2572_v23 = vadd.f32 %v2571_v35, %v8036_v2 }
0x118e   :  { %3118 = vrcp.f32 %v2597_v60  ;;  %v2609_v12 = vand.u32 2147483648, %v2597_v60  ;;  %v2607_v50 = vand.u32 2147483647, %v2597_v60  ;;  %vm2603_vm0 = vweird.f32 %v2597_v60 }
0x118f   :  { %v2592_v26 = vadd.f32 %v2591_v0, %v2572_v23 }
0x1190   :  { %vm2608_vm3 = vcmp.eq.f32.partialorder %v2607_v50, 8.507059e+37 }
0x1191   :  { %v3117_v10 = vpop.eup %3116 }
0x1192   :  { %v2616_v19 = vadd.f32 1.0, %v3117_v10  ;;  %v2610_v10 = vor.u32 1.1754944e-38, %v2609_v12 }
0x1194   :  { %v3119_v22 = vpop.eup %3118  ;;  %3120 = vrcp.f32 %v2616_v19  ;;  %v2626_v42 = vand.u32 2147483647, %v2616_v19  ;;  %vm2622_vm5 = vweird.f32 %v2616_v19 }
0x1195   :  { %v2599_v40 = vmul.f32 %v3119_v22, %v2597_v60  ;;  %vm2604_vm15 = vweird.f32 %v3119_v22 }
0x1196   :  { %vm2605_vm2 = vmor %vm2603_vm0, %vm2604_vm15  ;;  %vm2627_vm7 = vcmp.eq.f32.partialorder %v2626_v42, 8.507059e+37 }
0x1197   :  { %v2600_v27 = vsub.f32 1.0, %v2599_v40  ;;  %v2552_v40 = vadd.f32 %v2551_v46, %v2532_v44 }
0x1199   :  { %v2601_v29 = vmul.f32 %v3119_v22, %v2600_v27  ;;  %v2628_v27 = vand.u32 2147483648, %v2616_v19 }
0x119a   :  { %v3121_v9 = vpop.eup %3120 }
0x119b   :  { %v2618_v8 = vmul.f32 %v3121_v9, %v2616_v19  ;;  %v2602_v31 = vadd.f32 %v3119_v22, %v2601_v29  ;;  %vm2623_vm4 = vweird.f32 %v3121_v9  ;;  %v2629_v29 = vor.u32 1.1754944e-38, %v2628_v27 }
0x119c   :  { %vm2624_vm6 = vmor %vm2622_vm5, %vm2623_vm4  ;;  %v2690_v27 = vstv %s2689_s3 }
0x119d   :  { %v2619_v25 = vsub.f32 1.0, %v2618_v8  ;;  %v2606_v59 = vsel %vm2605_vm2, %v3119_v22, %v2602_v31 }
0x119e   :  { %v2611_v13 = vsel %vm2608_vm3, %v2610_v10, %v2606_v59 }
0x119f   :  { %v2620_v35 = vmul.f32 %v3121_v9, %v2619_v25  ;;  %v2632_v2 = vmul.f32 %v2611_v13, %v2592_v26  ;;  %v8043_v26 = vld [vmem:[#allocation89_spill] sm:$0xff]  ;;  %v8044_v25 = vld [vmem:[#allocation47_spill] sm:$0xff] }
0x11a0   :  { %v6673_v19 = vsub.f32 %v8044_v25, %v8043_v26 }
0x11a1   :  { %v2621_v5 = vadd.f32 %v3121_v9, %v2620_v35  ;;  %v2633_v45 = vadd.f32 %v2632_v2, %v2552_v40 }
0x11a2   :  { %v2089_v44 = vmul.f32 1.442695, %v6673_v19 }
0x11a3   :  { %v2625_v60 = vsel %vm2624_vm6, %v3121_v9, %v2621_v5  ;;  %3122 = vtanh.f32 %v2633_v45 }
0x11a4   :  { %v2630_v12 = vsel %vm2627_vm7, %v2629_v29, %v2625_v60  ;;  %v2692_v60 = vstv %s2688_s1 }
0x11a5   :  { %v2635_v8 = vsub.f32 1.0, %v2630_v12  ;;  %v2637_v46 = vmul.f32 %v2630_v12, %v6403_v6  ;;  %v8037_v6 = vld [vmem:[#allocation123_spill] sm:$0xff] }
0x11a9   :  { %v3123_v23 = vpop.eup %3122 }
0x11aa   :  { %v2636_v22 = vmul.f32 %v3123_v23, %v2635_v8 }
0x11ac   :  { %v6629_v59 = vadd.f32 %v2637_v46, %v2636_v22 }
0x11ae   :  { %2655 = vmatmul.f32.vlgmr.msrb.gmra.mxu1 %v6629_v59  ;;  %2757 = vmatmul.f32.vlgmr.msra.gmra.mxu0 %v6629_v59 }
0x11af   :  { %2841 = vmatpush.msrb.mxu1 %v6407_v16  ;;  %v8038_v16 = vld [vmem:[#allocation119_spill] sm:$0xff] }
0x11b1   :  { %2842 = vmatpush.msrb.mxu1 %v6411_v39  ;;  %v6652_v39 = vsub.f32 %v8038_v16, %v8037_v6  ;;  %v8061_v16 = vld [vmem:[#allocation83_spill] sm:$0xff] }
0x11b3   :  { %2843 = vmatpush.msrb.mxu1 %v6415_v11  ;;  %v1228_v11 = vmul.f32 1.442695, %v6652_v39 }
0x11b5   :  { %2844 = vmatpush.msrb.mxu1 %v6419_v21  ;;  %3124 = vpow2.f32 %v1228_v11 }
0x11b6   :  { %2837 = vmatmul.f32.vlgmr.msrb.gmra.mxu0 %v6629_v59 }
0x11b7   :  { %2845 = vmatpush.msrb.mxu1 %v6424_v37 }
0x11b9   :  { %2846 = vmatpush.msrb.mxu1 %v6428_v43  ;;  %v8039_v43 = vld [vmem:[#allocation80_spill] sm:$0xff] }
0x11bb   :  { %2847 = vmatpush.msrb.mxu1 %v6432_v55  ;;  %v8040_v55 = vld [vmem:[#allocation76_spill] sm:$0xff] }
0x11bd   :  { %2848 = vmatpush.msrb.mxu1 %v6436_v56  ;;  %v6658_v56 = vsub.f32 %v8040_v55, %v8039_v43 }
0x11bf   :  { %2849 = vmatpush.msrb.mxu1 %v6440_v18 }
0x11c1   :  { %2850 = vmatpush.msrb.mxu1 %v6444_v54  ;;  %v1802_v54 = vmul.f32 1.442695, %v6658_v56 }
0x11c3   :  { %2851 = vmatpush.msrb.mxu1 %v6448_v1  ;;  %v3125_v1 = vpop.eup %3124  ;;  %3126 = vpow2.f32 %v1802_v54 }
0x11c5   :  { %2852 = vmatpush.msrb.mxu1 %v6452_v17  ;;  %v1230_v17 = vsel %vm938_vm1, %v3125_v1, 0.0  ;;  %v8063_v1 = vld [vmem:[#allocation52_spill] sm:$0xff] }
0x11c7   :  { %2853 = vmatpush.msrb.mxu1 %v6456_v58 }
0x11c9   :  { %2854 = vmatpush.msrb.mxu1 %v6460_v48  ;;  %v3127_v58 = vpop.eup %3126 }
0x11ca   :  { %v1804_v48 = vsel %vm938_vm1, %v3127_v58, 0.0 }
0x11cb   :  { %2855 = vmatpush.msrb.mxu1 %v6464_v20  ;;  %v8042_v20 = vld [vmem:[#allocation98_spill] sm:$0xff] }
0x11cd   :  { %2856 = vmatpush.msrb.mxu1 %v6468_v14 }
0x122b   :  { %v2656_v21 = vpop.f32.mrf.mxu1  ;;  %v2758_v58 = vpop.f32.mrf.mxu0 }
0x122c   :  { %v2657_v37 = vadd.f32 %v6117_v41, %v2656_v21  ;;  %v8041_v41 = vld [vmem:[#allocation85_spill] sm:$0xff] }
0x122d   :  { %v6666_v14 = vsub.f32 %v8042_v20, %v8041_v41  ;;  %v8062_v21 = vld [vmem:[#allocation69_spill] sm:$0xff] }
0x122e   :  { %v2659_v18 = vsel %vm938_vm1, %v2657_v37, -inf }
0x122f   :  { %2660 = vmax.xlane.f32.xlu0 %v2659_v18  ;;  %v943_v5 = vmul.f32 1.442695, %v6666_v14 }
0x1231   :  { %3128 = vpow2.f32 %v943_v5 }
0x1237   :  { %1231 = vadd.xlane.f32.xlu0 %v1230_v17  ;;  %v3129_v31 = vpop.eup %3128 }
0x1238   :  { %v945_v10 = vsel %vm938_vm1, %v3129_v31, 0.0 }
0x123f   :  { %1805 = vadd.xlane.f32.xlu0 %v1804_v48 }
0x12a2   :  { %v2661_v42 = vpop.xlane.xlu0 %2660 }
0x12a3   :  { %v6669_v13 = vsub.f32 %v2657_v37, %v2661_v42  ;;  %vm2678_vm8 = vcmp.eq.f32.partialorder %v2657_v37, %v2661_v42 }
0x12a4   :  { %v2679_v2 = vsel %vm2678_vm8, %v7568_v63, -inf }
0x12a5   :  { %v2663_v50 = vmul.f32 1.442695, %v6669_v13  ;;  %v2680_v9 = vsel %vm938_vm1, %v2679_v2, -inf }
0x12a6   :  { %2681 = vmax.xlane.f32.xlu1 %v2680_v9 }
0x12a7   :  { %3130 = vpow2.f32 %v2663_v50 }
0x12a8   :  { %3132 = vpow2.f32 %v2089_v44 }
0x12ad   :  { %v3131_v0 = vpop.eup %3130 }
0x12ae   :  { %946 = vadd.xlane.f32.xlu1 %v945_v10  ;;  %v2665_v40 = vsel %vm938_vm1, %v3131_v0, 0.0  ;;  %v3133_v35 = vpop.eup %3132 }
0x12af   :  { %2666 = vadd.xlane.f32.xlu0 %v2665_v40  ;;  %v2091_v63 = vsel %vm938_vm1, %v3133_v35, 0.0  ;;  %v8064_v35 = vld [vmem:[#allocation35_spill] sm:$0xff] }
0x12b6   :  { %2092 = vadd.xlane.f32.xlu1 %v2091_v63 }
0x1319   :  { %v2682_v45 = vpop.xlane.xlu1 %2681 }
0x131a   :  { %v2683_v29 = vsub.f32 0.0, %v2682_v45 }
0x131c   :  { %v2691_v12 = vmul.f32 %v2690_v27, %v2683_v29  ;;  %vm2694_vm9 = vcmp.eq.f32.partialorder %v2683_v29, 1.0 }
0x131d   :  { %v2695_v8 = vsel %vm2694_vm9, 1.0, %v7481_v49 }
0x131e   :  { %v2693_v23 = vadd.f32 %v2692_v60, %v2691_v12  ;;  %v2696_v22 = vmul.f32 %v2695_v8, %v2690_v27 }
0x1320   :  { %v2697_v46 = vsub.f32 1.0, %v2696_v22  ;;  %vm2699_vm10 = vcmp.eq.f32.partialorder %v7478_v57, %v2693_v23  ;;  %v8045_v57 = vld [vmem:[#allocation125_spill] sm:$0xff] }
0x1321   :  { %3025 = vmatmul.msk.f32.vlgmr.msrb.gmra.mxu2 %vm2699_vm10, %v7483_v61 }
0x1322   :  { %v6686_v6 = vmul.f32 %v2697_v46, %v6498_v51  ;;  %2861 = vmatpush.msrb.mxu2 %v6500_v30  ;;  %v8046_v30 = vld [vmem:[#allocation30_spill] sm:$0xff] }
0x1324   :  { %2862 = vmatpush.msrb.mxu2 %v6503_v52  ;;  %v8047_v52 = vld [vmem:[#allocation55_spill] sm:$0xff] }
0x1326   :  { %2863 = vmatpush.msrb.mxu2 %v6506_v38  ;;  %v8048_v38 = vld [vmem:[#allocation31_spill] sm:$0xff] }
0x1328   :  { %2864 = vmatpush.msrb.mxu2 %v6509_v3  ;;  %v8049_v3 = vld [vmem:[#allocation58_spill] sm:$0xff] }
0x1329   :  { %2797 = vmatmul.f32.vlgmr.msra.gmra.mxu2 %v6629_v59 }
0x132a   :  { %2865 = vmatpush.msrb.mxu2 %v6513_v4  ;;  %v8050_v4 = vld [vmem:[#allocation74_spill] sm:$0xff] }
0x132c   :  { %2866 = vmatpush.msrb.mxu2 %v6516_v33  ;;  %v8051_v33 = vld [vmem:[#allocation33_spill] sm:$0xff] }
0x132e   :  { %2867 = vmatpush.msrb.mxu2 %v6519_v62  ;;  %v8052_v62 = vld [vmem:[#allocation63_spill] sm:$0xff] }
0x1330   :  { %2868 = vmatpush.msrb.mxu2 %v6522_v24  ;;  %v8053_v24 = vld [vmem:[#allocation78_spill] sm:$0xff] }
0x1332   :  { %2869 = vmatpush.msrb.mxu2 %v6525_v47  ;;  %v8054_v47 = vld [vmem:[#allocation40_spill] sm:$0xff] }
0x1334   :  { %2870 = vmatpush.msrb.mxu2 %v6528_v53  ;;  %v8055_v53 = vld [vmem:[#allocation44_spill] sm:$0xff] }
0x1336   :  { %2871 = vmatpush.msrb.mxu2 %v6531_v28  ;;  %v8056_v28 = vld [vmem:[#allocation48_spill] sm:$0xff] }
0x1338   :  { %2872 = vmatpush.msrb.mxu2 %v6534_v34  ;;  %v8057_v34 = vld [vmem:[#allocation53_spill] sm:$0xff] }
0x133a   :  { %2873 = vmatpush.msrb.mxu2 %v6537_v7  ;;  %v8058_v7 = vld [vmem:[#allocation59_spill] sm:$0xff] }
0x133c   :  { %2874 = vmatpush.msrb.mxu2 %v6540_v36  ;;  %v8059_v36 = vld [vmem:[#allocation68_spill] sm:$0xff] }
0x133e   :  { %2875 = vmatpush.msrb.mxu2 %v6543_v15  ;;  %v8060_v15 = vld [vmem:[#allocation75_spill] sm:$0xff] }
0x1340   :  { %2876 = vmatpush.msrb.mxu2 %v8045_v57  ;;  %v2838_v57 = vpop.f32.mrf.mxu0 }
0x1341   :  { %2877 = vmatmul.f32.vlgmr.msrb.gmra.mxu2 %v6629_v59 }
0x13a4   :  { %v2718_v61 = vpop.f32.mrf.mxu2 }
0x13a5   :  { %2737 = vmatmul.f32.vlgmr.msrb.gmra.mxu3 %v2718_v61  ;;  %2777 = vmatmul.f32.vlgmr.msra.gmra.mxu1 %v2718_v61 }
0x13a6   :  { %2926 = vmatpush.msrb.mxu3 %v8046_v30 }
0x13a8   :  { %2927 = vmatpush.msrb.mxu3 %v8047_v52 }
0x13aa   :  { %2928 = vmatpush.msrb.mxu3 %v8048_v38 }
0x13ac   :  { %2929 = vmatpush.msrb.mxu3 %v8049_v3  ;;  %v2798_v43 = vpop.f32.mrf.mxu2 }
0x13ad   :  { %2817 = vmatmul.f32.vlgmr.msra.gmra.mxu3 %v2718_v61  ;;  %2857 = vmatmul.f32.vlgmr.msrb.gmra.mxu1 %v2718_v61 }
0x13ae   :  { %2930 = vmatpush.msrb.mxu3 %v8050_v4 }
0x13b0   :  { %2931 = vmatpush.msrb.mxu3 %v8051_v33 }
0x13b2   :  { %2932 = vmatpush.msrb.mxu3 %v8052_v62 }
0x13b4   :  { %2933 = vmatpush.msrb.mxu3 %v8053_v24 }
0x13b6   :  { %2934 = vmatpush.msrb.mxu3 %v8054_v47 }
0x13b8   :  { %2935 = vmatpush.msrb.mxu3 %v8055_v53 }
0x13ba   :  { %2936 = vmatpush.msrb.mxu3 %v8056_v28 }
0x13bc   :  { %2937 = vmatpush.msrb.mxu3 %v8057_v34 }
0x13be   :  { %2938 = vmatpush.msrb.mxu3 %v8058_v7 }
0x13c0   :  { %2939 = vmatpush.msrb.mxu3 %v8059_v36  ;;  %v8065_v36 = vld [vmem:[#allocation86_spill] sm:$0xff] }
0x13c2   :  { %2940 = vmatpush.msrb.mxu3 %v8060_v15  ;;  %v8066_v15 = vld [vmem:[#allocation71_spill] sm:$0xff] }
0x13c4   :  { %2941 = vmatpush.msrb.mxu3 %v8061_v16  ;;  %v2878_v8 = vpop.f32.mrf.mxu2  ;;  %v6729_v16 = vsub.f32 %v8066_v15, %v8065_v36 }
0x1422   :  { %v2778_v11 = vpop.f32.mrf.mxu1 }
0x1423   :  { %v2779_v37 = vadd.f32 %v2778_v11, %v8062_v21  ;;  %v1515_v11 = vmul.f32 1.442695, %v6729_v16 }
0x1425   :  { %v2799_v55 = vadd.f32 %v2798_v43, %v2779_v37  ;;  %v3632_v37 = vld [vmem:[%s6812_s10] sm:$0x1]  ;;  %s3866_s10 = smov [#allocation18]  }
0x1426   :  { %s2971_s14 = sshll.u32 %s3866_s10, 4  ;;  %s2972_s14 = int_to_ptr.vmem [resolvable:$true] %s2971_s14 }
0x1427   :  { %v3027_v18 = vmul.f32 -1.442695, %v2799_v55  ;;  %v8067_v55 = vld [vmem:[#allocation121_spill] sm:$0xff] }
0x1428   :  { %v2738_v54 = vpop.f32.mrf.mxu3 }
0x1429   :  { %3134 = vpow2.f32 %v3027_v18  ;;  %v2739_v17 = vadd.f32 %v2738_v54, %v8063_v1  ;;  %v8068_v18 = vld [vmem:[#allocation117_spill] sm:$0xff] }
0x142a   :  { %v2858_v31 = vpop.f32.mrf.mxu1  ;;  %v6737_v54 = vsub.f32 %v8068_v18, %v8067_v55  ;;  %v8075_v55 = vld [vmem:[#allocation126_spill] sm:$0xff] }
0x142b   :  { %v2759_v48 = vadd.f32 %v2758_v58, %v2739_v17  ;;  %v2859_v63 = vadd.f32 %v2858_v31, %v8064_v35 }
0x142c   :  { %v2376_v1 = vmul.f32 1.442695, %v6737_v54 }
0x142d   :  { %v3026_v41 = vmul.f32 -1.442695, %v2759_v48  ;;  %v2879_v22 = vadd.f32 %v2878_v8, %v2859_v63 }
0x142f   :  { %v3135_v20 = vpop.eup %3134  ;;  %3136 = vpow2.f32 %v3026_v41 }
0x1430   :  { %v2903_v5 = vadd.f32 1.0, %v3135_v20  ;;  %v2818_v40 = vpop.f32.mrf.mxu3  ;;  %v1232_v20 = vpop.xlane.xlu0 %1231 }
0x1431   :  { %v2819_v12 = vadd.f32 %v2818_v40, %v7553_v32 }
0x1432   :  { %3138 = vrcp.f32 %v2903_v5  ;;  %v2915_v3 = vand.u32 2147483648, %v2903_v5  ;;  %vm2909_vm0 = vweird.f32 %v2903_v5  ;;  %v2913_v4 = vand.u32 2147483647, %v2903_v5 }
0x1433   :  { %v2839_v38 = vadd.f32 %v2838_v57, %v2819_v12 }
0x1434   :  { %v2916_v32 = vor.u32 1.1754944e-38, %v2915_v3  ;;  %vm2914_vm3 = vcmp.eq.f32.partialorder %v2913_v4, 8.507059e+37 }
0x1435   :  { %v3137_v42 = vpop.eup %3136 }
0x1436   :  { %v2884_v26 = vadd.f32 1.0, %v3137_v42 }
0x1438   :  { %3140 = vrcp.f32 %v2884_v26  ;;  %v3139_v25 = vpop.eup %3138  ;;  %v2896_v10 = vand.u32 2147483648, %v2884_v26  ;;  %v2894_v45 = vand.u32 2147483647, %v2884_v26  ;;  %vm2890_vm12 = vweird.f32 %v2884_v26  ;;  %v1806_v42 = vpop.xlane.xlu0 %1805 }
0x1439   :  { %v2905_v2 = vmul.f32 %v3139_v25, %v2903_v5  ;;  %vm2910_vm15 = vweird.f32 %v3139_v25  ;;  %v947_v5 = vpop.xlane.xlu1 %946 }
0x143a   :  { %v2897_v23 = vor.u32 1.1754944e-38, %v2896_v10  ;;  %vm2895_vm14 = vcmp.eq.f32.partialorder %v2894_v45, 8.507059e+37  ;;  %vm2911_vm2 = vmor %vm2909_vm0, %vm2910_vm15 }
0x143b   :  { %v2906_v44 = vsub.f32 1.0, %v2905_v2 }
0x143d   :  { %v2907_v29 = vmul.f32 %v3139_v25, %v2906_v44 }
0x143e   :  { %v3141_v50 = vpop.eup %3140 }
0x143f   :  { %v2886_v9 = vmul.f32 %v3141_v50, %v2884_v26  ;;  %vm2891_vm11 = vweird.f32 %v3141_v50  ;;  %v2908_v30 = vadd.f32 %v3139_v25, %v2907_v29  ;;  %v8069_v29 = vld [vmem:[#allocation26_spill] sm:$0xff] }
0x1440   :  { %vm2892_vm13 = vmor %vm2890_vm12, %vm2891_vm11  ;;  %vm517_vm4 = vcmp.lt.s32.totalorder %v8069_v29, 48 }
0x1441   :  { %v2887_v0 = vsub.f32 1.0, %v2886_v9  ;;  %v2912_v62 = vsel %vm2911_vm2, %v3139_v25, %v2908_v30  ;;  %v2093_v26 = vpop.xlane.xlu1 %2092 }
0x1442   :  { %v2917_v24 = vsel %vm2914_vm3, %v2916_v32, %v2912_v62 }
0x1443   :  { %v2888_v27 = vmul.f32 %v3141_v50, %v2887_v0  ;;  %v2922_v47 = vsub.f32 1.0, %v2917_v24  ;;  %v2924_v34 = vmul.f32 %v2917_v24, %v6629_v59  ;;  %v2667_v0 = vpop.xlane.xlu0 %2666 }
0x1445   :  { %v2889_v60 = vadd.f32 %v3141_v50, %v2888_v27 }
0x1447   :  { %v2893_v46 = vsel %vm2892_vm13, %v3141_v50, %v2889_v60 }
0x1448   :  { %v2898_v61 = vsel %vm2895_vm14, %v2897_v23, %v2893_v46 }
0x1449   :  { %v2919_v52 = vmul.f32 %v2898_v61, %v2879_v22  ;;  %v8070_v61 = vlaneseq }
0x144b   :  { %v2920_v33 = vadd.f32 %v2919_v52, %v2839_v38  ;;  %v6754_v30 = vshrl.u32 %v8070_v61, 7  ;;  %v8071_v38 = vld [vmem:[#allocation102_spill] sm:$0xff] }
0x144c   :  { %v8072_v3 = vsub.f32 1.0, %v8071_v38 }
0x144d   :  { %3142 = vtanh.f32 %v2920_v33  ;;  %vm952_vm5 = vcmp.eq.s32.totalorder %v6754_v30, 0  ;;  %vm1525_vm6 = vcmp.eq.s32.totalorder %v6754_v30, 2  ;;  %vm1812_vm7 = vcmp.eq.s32.totalorder %v6754_v30, 3 }
0x144e   :  { %3144 = vpow2.f32 %v1515_v11  ;;  %vm2099_vm8 = vcmp.eq.s32.totalorder %v6754_v30, 4  ;;  %vm2386_vm9 = vcmp.eq.s32.totalorder %v6754_v30, 5  ;;  %vm2673_vm10 = vcmp.eq.s32.totalorder %v6754_v30, 6 }
0x144f   :  { %3146 = vpow2.f32 %v2376_v1  ;;  %vm2960_vm11 = vcmp.eq.s32.totalorder %v6754_v30, 7 }
0x1450   :  { %3148 = vlog2.f32 %v1232_v20 }
0x1451   :  { %3150 = vlog2.f32 %v947_v5 }
0x1452   :  { %3152 = vlog2.f32 %v1806_v42 }
0x1453   :  { %v3143_v53 = vpop.eup %3142  ;;  %3154 = vlog2.f32 %v2093_v26  ;;  %v2100_v26 = vsel %vm2099_vm8, 1.0, %v7481_v49 }
0x1454   :  { %v2923_v28 = vmul.f32 %v3143_v53, %v2922_v47  ;;  %v3145_v17 = vpop.eup %3144  ;;  %v953_v47 = vsel %vm952_vm5, 1.0, %v7481_v49 }
0x1455   :  { %v1517_v58 = vsel %vm938_vm1, %v3145_v17, 0.0  ;;  %v3147_v48 = vpop.eup %3146 }
0x1456   :  { %v2925_v7 = vadd.f32 %v2924_v34, %v2923_v28  ;;  %v2378_v41 = vsel %vm938_vm1, %v3147_v48, 0.0  ;;  %v3149_v2 = vpop.eup %3148  ;;  %v8073_v34 = vld [vmem:[#allocation39_spill] sm:$0xff] }
0x1457   :  { %v3151_v9 = vpop.eup %3150  ;;  %v1234_v31 = vmul.f32 0.6931472, %v3149_v2 }
0x1458   :  { %2942 = vmatmul.f32.vlgmr.msrb.gmra.mxu3 %v2925_v7  ;;  %v3153_v10 = vpop.eup %3152  ;;  %v949_v40 = vmul.f32 0.6931472, %v3151_v9 }
0x1459   :  { %v3155_v35 = vpop.eup %3154  ;;  %v1235_v63 = vsub.f32 %v6652_v39, %v1234_v31  ;;  %v1808_v27 = vmul.f32 0.6931472, %v3153_v10  ;;  %v8076_v10 = vld [vmem:[#allocation106_spill] sm:$0xff] }
0x145a   :  { %v950_v60 = vsub.f32 %v6666_v14, %v949_v40  ;;  %v2095_v12 = vmul.f32 0.6931472, %v3155_v35 }
0x145b   :  { %v1236_v23 = vsel %vm517_vm4, %v1235_v63, 0.0  ;;  %v1809_v22 = vsub.f32 %v6658_v56, %v1808_v27  ;;  %v2387_v63 = vsel %vm2386_vm9, 1.0, %v7481_v49 }
0x145c   :  { %v951_v39 = vsel %vm517_vm4, %v950_v60, 0.0  ;;  %v2096_v52 = vsub.f32 %v6673_v19, %v2095_v12  ;;  %v1237_v4 = vmul.f32 %v1236_v23, %v8072_v3  ;;  %v2674_v60 = vsel %vm2673_vm10, 1.0, %v7481_v49 }
0x145d   :  { %v1810_v56 = vsel %vm517_vm4, %v1809_v22, 0.0  ;;  %v954_v24 = vperm.slane %v951_v39, 0 }
0x145e   :  { %v2097_v19 = vsel %vm517_vm4, %v2096_v52, 0.0  ;;  %v1240_v28 = vperm.slane %v1237_v4, 0  ;;  %v1811_v7 = vmul.f32 %v1810_v56, %v8073_v34 }
0x1460   :  { %v1814_v17 = vperm.slane %v1811_v7, 0 }
0x14db   :  { %v2943_v21 = vpop.f32.mrf.mxu3 }
0x14dc   :  { %v2944_v43 = vadd.f32 %v3632_v37, %v2943_v21  ;;  %v955_v21 = vmul.f32 %v954_v24, %v953_v47  ;;  %v8074_v37 = vld [vmem:[#allocation84_spill] sm:$0xff] }
0x14de   :  { %v2946_v59 = vsel %vm938_vm1, %v2944_v43, -inf }
0x14df   :  { %2947 = vmax.xlane.f32.xlu2 %v2946_v59 }
0x14e7   :  { %1518 = vadd.xlane.f32.xlu2 %v1517_v58 }
0x14ef   :  { %2379 = vadd.xlane.f32.xlu2 %v2378_v41 }
0x1552   :  { %v2948_v25 = vpop.xlane.xlu2 %2947 }
0x1553   :  { %v6743_v50 = vsub.f32 %v2944_v43, %v2948_v25  ;;  %v2098_v43 = vmul.f32 %v2097_v19, %v8074_v37 }
0x1555   :  { %v2950_v44 = vmul.f32 1.442695, %v6743_v50  ;;  %v2101_v5 = vperm.slane %v2098_v43, 0 }
0x1557   :  { %3156 = vpow2.f32 %v2950_v44 }
0x1558   :  { %3158 = vlog2.f32 %v2667_v0  ;;  %v2102_v0 = vmul.f32 %v2101_v5, %v2100_v26 }
0x155a   :  { %v1519_v45 = vpop.xlane.xlu2 %1518 }
0x155b   :  { %3160 = vlog2.f32 %v1519_v45 }
0x155d   :  { %v3157_v8 = vpop.eup %3156 }
0x155e   :  { %v2952_v46 = vsel %vm938_vm1, %v3157_v8, 0.0  ;;  %v3159_v57 = vpop.eup %3158  ;;  %vm1238_vm1 = vcmp.eq.s32.totalorder %v6754_v30, 1 }
0x155f   :  { %2953 = vadd.xlane.f32.xlu1 %v2952_v46  ;;  %v2669_v33 = vmul.f32 0.6931472, %v3159_v57  ;;  %v1239_v36 = vsel %vm1238_vm1, 1.0, %v7481_v49 }
0x1560   :  { %v1241_v1 = vmul.f32 %v1240_v28, %v1239_v36 }
0x1561   :  { %v3161_v14 = vpop.eup %3160  ;;  %v2670_v15 = vsub.f32 %v6669_v13, %v2669_v33  ;;  %v1813_v13 = vsel %vm1812_vm7, 1.0, %v7481_v49 }
0x1562   :  { %v1521_v62 = vmul.f32 0.6931472, %v3161_v14  ;;  %v2380_v32 = vpop.xlane.xlu2 %2379  ;;  %v1242_v20 = vadd.f32 %v1241_v1, %v955_v21  ;;  %v1815_v2 = vmul.f32 %v1814_v17, %v1813_v13  ;;  %v2961_v14 = vsel %vm2960_vm11, 1.0, %v7481_v49 }
0x1563   :  { %3162 = vlog2.f32 %v2380_v32  ;;  %v2671_v48 = vsel %vm517_vm4, %v2670_v15, 0.0 }
0x1564   :  { %v1522_v53 = vsub.f32 %v6729_v16, %v1521_v62  ;;  %v1526_v16 = vsel %vm1525_vm6, 1.0, %v7481_v49  ;;  %v2672_v9 = vmul.f32 %v2671_v48, %v6498_v51 }
0x1566   :  { %v1523_v11 = vsel %vm517_vm4, %v1522_v53, 0.0  ;;  %v2675_v27 = vperm.slane %v2672_v9, 0 }
0x1567   :  { %v1524_v18 = vmul.f32 %v1523_v11, %v8075_v55 }
0x1568   :  { %v2676_v8 = vmul.f32 %v2675_v27, %v2674_v60 }
0x1569   :  { %v3163_v59 = vpop.eup %3162  ;;  %v1527_v58 = vperm.slane %v1524_v18, 0 }
0x156a   :  { %v2382_v41 = vmul.f32 0.6931472, %v3163_v59 }
0x156b   :  { %v1528_v42 = vmul.f32 %v1527_v58, %v1526_v16 }
0x156c   :  { %v2383_v25 = vsub.f32 %v6737_v54, %v2382_v41 }
0x156d   :  { %v1529_v44 = vadd.f32 %v1528_v42, %v1242_v20 }
0x156e   :  { %v2384_v31 = vsel %vm517_vm4, %v2383_v25, 0.0 }
0x156f   :  { %v2385_v40 = vmul.f32 %v2384_v31, %v8076_v10  ;;  %v1816_v35 = vadd.f32 %v1815_v2, %v1529_v44 }
0x1571   :  { %v2388_v45 = vperm.slane %v2385_v40, 0  ;;  %v2103_v54 = vadd.f32 %v2102_v0, %v1816_v35 }
0x1573   :  { %v2389_v51 = vmul.f32 %v2388_v45, %v2387_v63 }
0x1575   :  { %v2390_v12 = vadd.f32 %v2389_v51, %v2103_v54 }
0x1577   :  { %v2677_v23 = vadd.f32 %v2676_v8, %v2390_v12 }
0x15d2   :  { %v2954_v22 = vpop.xlane.xlu1 %2953 }
0x15d3   :  { %3164 = vlog2.f32 %v2954_v22 }
0x15d9   :  { %v3165_v46 = vpop.eup %3164 }
0x15da   :  { %v2956_v57 = vmul.f32 0.6931472, %v3165_v46 }
0x15dc   :  { %v2957_v61 = vsub.f32 %v6743_v50, %v2956_v57 }
0x15de   :  { %v2958_v39 = vsel %vm517_vm4, %v2957_v61, 0.0 }
0x15df   :  { %v2959_v52 = vmul.f32 %v2958_v39, %v6686_v6 }
0x15e1   :  { %v2962_v38 = vperm.slane %v2959_v52, 0 }
0x15e3   :  { %v2963_v3 = vmul.f32 %v2962_v38, %v2961_v14 }
0x15e5   :  { %v2964_v4 = vadd.f32 %v2963_v3, %v2677_v23 }
0x15e7   :  { %2965 = vst [vmem:[#allocation18] sm:$0xff] %v2964_v4 }
0x15e8   :  { %2976 = dma.vmem_to_hbm [thread:$0]  %s2972_s14, 128, %s2974_s15, [#allocation4]  }
0x15e9   :  { %3849 = dma.done.wait [#allocation4], 128  }
0x15ea   :  { %3850 = vsyncadd [#allocation4], 4294967168 }
0x15eb   :  { %2981 = vsyncpa [#allocation3], 1 }
0x15ec   :  { %2982 = vsyncpa [#allocation11], 1 }
0x15ed   :  { %2983 = vsyncpa [#allocation14], 1 }
0x15ee   :  { %2984 = vsyncpa [#allocation17], 1 }
0x15ef   :  { %2985 = vsyncpa [#allocation4], 1 }
0x15f0   :  { %2986 = vsyncpa [#allocation5], 1 }
0x15f1   :  { %2987 = vsyncpa [#allocation7], 1 }

</bundles_post_ra>
